<compile_context>
chip_gen: v7x
topology: tpu7x:2x2x1
jax: 0.10.0
libtpu: 0.0.40
codegen_flags: <defaults>
</compile_context>

<pallas_src>
import functools

import jax
import jax.numpy as jnp
from jax.experimental import pallas as pl
from jax.experimental.pallas import tpu as pltpu


def _vmem_limit_bytes():
    cap = 128 * 1024 * 1024
    try:
        info = pltpu.get_tpu_info()
        cap = int(getattr(info, "vmem_capacity_bytes", cap))
    except Exception:
        pass
    # ~25% headroom for double-buffered I/O + compiler temporaries:
    # -> ~96-100 MiB on v5e/v6e (128 MiB VMEM), ~48 MiB on v7x (64 MiB).
    return min(int(cap * 3 // 4), 100 * 1024 * 1024)


# ----------------------------------------------------------------------------
# In-kernel helpers (pure jnp on VMEM values).
# ----------------------------------------------------------------------------
def _zero_pad_hw(a):
    """Zero-pad axes 0,1 of an (H, W, C) value by 1 on each side, in VMEM."""
    h, w, c = a.shape
    zc = jnp.zeros((h, 1, c), a.dtype)
    a = jnp.concatenate([zc, a, zc], axis=1)
    zr = jnp.zeros((1, w + 2, c), a.dtype)
    return jnp.concatenate([zr, a, zr], axis=0)


def _im2col(xp, offs_y, offs_x, out_h, out_w):
    """Padded (Hp, Wp, C) -> (out_h*out_w, len(offs_y)*len(offs_x)*C) patch."""
    c = xp.shape[-1]
    cols = [xp[oy:oy + out_h, ox:ox + out_w, :] for oy in offs_y for ox in offs_x]
    patch = jnp.concatenate(cols, axis=-1)              # lane-dim concat (VMEM)
    return patch.reshape(out_h * out_w, len(offs_y) * len(offs_x) * c)


# ----------------------------------------------------------------------------
# Kernel 1: phase-split ConvTranspose2d(3x3) + folded BN + ReLU.
# Input : (1, Cin, H*W) f32 channel-major (lane-dense DMA, cast in VMEM).
# Output: (1, P*Cout, H*W) bf16 channel-major (lane-dense store); phases are
#         interleaved to (Cout, Ho*Wo) by one cheap XLA bf16 transpose pass.
# ----------------------------------------------------------------------------
def _conv1_phase_kernel(x_ref, w_ref, sb_ref, o_ref, *, H, W, Ty, Tx):
    x = jnp.transpose(x_ref[0])                           # (H*W, Cin) 2-D transpose
    x = x.reshape(H, W, x.shape[-1]).astype(jnp.bfloat16)
    patch = _im2col(_zero_pad_hw(x), Ty, Tx, H, W)        # (H*W, |Ty||Tx|*Cin)
    y = jnp.dot(patch, w_ref[...], preferred_element_type=jnp.float32)
    y = jnp.maximum(y * sb_ref[0:1, :] + sb_ref[1:2, :], 0.0)   # folded BN + ReLU
    o_ref[0] = jnp.transpose(y).astype(jnp.bfloat16)      # (P*Cout, H*W) lane-dense


# ----------------------------------------------------------------------------
# Kernel 2: fused ConvBlockRes chain.
#   cat = concat(h, skip) (channel-major, in VMEM); per block:
#     t = ReLU(BN(conv3x3(inp)));  u = ReLU(BN(conv3x3(t)));  out = u + shortcut
#   shortcut = 1x1 conv + bias for the first block (2*Cout -> Cout), identity
#   afterwards (added in f32, matching PyTorch: residual AFTER the ReLU).
# Output stored channel-major (Cout, Ho*Wo) -> lane-dense f32 stores.
# ----------------------------------------------------------------------------
def _res_blocks_kernel(*refs, Ho, Wo, Cout, has_sc):
    f32, bf16 = jnp.float32, jnp.bfloat16
    refs = list(refs)
    o_ref = refs.pop()
    h_ref, skip_ref, vec_ref = refs[0], refs[1], refs[2]
    wr = refs[3:]
    M = Ho * Wo
    k33 = (0, 1, 2)

    # Channel concat stays in VMEM; cheap axis-0 concat in channel-major form,
    # then ONE 2-D transpose to pixel-major for the im2col matmuls.
    cat_cm = jnp.concatenate(
        [h_ref[0].astype(f32), skip_ref[0].astype(f32)], axis=0)   # (2*Cout, M)
    cat = jnp.transpose(cat_cm).astype(bf16).reshape(Ho, Wo, 2 * Cout)

    cur2d = None                                          # (M, Cout) f32
    widx = 0
    vrow = 0
    for i, sc_flag in enumerate(has_sc):
        inp = cat if i == 0 else cur2d.reshape(Ho, Wo, Cout).astype(bf16)
        cin = inp.shape[-1]
        if sc_flag:                                       # 1x1-conv shortcut (+bias)
            wsc = wr[widx][...]
            widx += 1
            bsc = vec_ref[vrow:vrow + 1, :]
            vrow += 1
            sc = jnp.dot(inp.reshape(M, cin), wsc,
                         preferred_element_type=f32) + bsc
        else:                                             # identity residual, f32
            sc = cur2d
        wa, wb = wr[widx][...], wr[widx + 1][...]
        widx += 2
        sa = vec_ref[vrow + 0:vrow + 1, :]
        ba = vec_ref[vrow + 1:vrow + 2, :]
        sb = vec_ref[vrow + 2:vrow + 3, :]
        bb = vec_ref[vrow + 3:vrow + 4, :]
        vrow += 4

        pa = _im2col(_zero_pad_hw(inp), k33, k33, Ho, Wo)           # (M, 9*cin)
        t = jnp.maximum(jnp.dot(pa, wa, preferred_element_type=f32) * sa + ba, 0.0)
        pb = _im2col(_zero_pad_hw(t.reshape(Ho, Wo, Cout).astype(bf16)),
                     k33, k33, Ho, Wo)                              # (M, 9*Cout)
        u = jnp.maximum(jnp.dot(pb, wb, preferred_element_type=f32) * sb + bb, 0.0)
        cur2d = u + sc

    o_ref[0] = jnp.transpose(cur2d)                       # (Cout, M) lane-dense


# ----------------------------------------------------------------------------
# Weight / BN preparation (tiny, done once in XLA).
# ----------------------------------------------------------------------------
def _fold_bn(bn, eps=1e-5):
    scale = bn["gamma"] / jnp.sqrt(bn["var"] + eps)
    return scale, bn["beta"] - bn["mean"] * scale


def _taps(s):
    # padded-coordinate tap offsets for the phase-split transposed conv
    return (1, 2) if s == 2 else (0, 1, 2)


def _phase_weight(wt, sh, sw):
    """torch ConvTranspose2d weight (Cin, Cout, 3, 3) -> (|Ty||Tx|*Cin, sh*sw*Cout).

    Transposed conv identity: out[s*i + k - 1] += x[i] * w[k]  (pad=1, k=3,
    output_padding = 1 iff s == 2).  Per output phase r and tap offset t (in
    1-padded coordinates) the contributing kernel index is k = r + 1 - s*(t-1).
    """
    cin, cout = wt.shape[0], wt.shape[1]
    ty_list, tx_list = _taps(sh), _taps(sw)
    rows = []
    for ty in ty_list:
        for tx in tx_list:
            cols = []
            for ry in range(sh):
                for rx in range(sw):
                    ky = ry + 1 - sh * (ty - 1)
                    kx = rx + 1 - sw * (tx - 1)
                    if 0 <= ky <= 2 and 0 <= kx <= 2:
                        cols.append(wt[:, :, ky, kx])
                    else:
                        cols.append(jnp.zeros((cin, cout), wt.dtype))
            rows.append(jnp.concatenate(cols, axis=1))
    return jnp.concatenate(rows, axis=0).astype(jnp.bfloat16)


def _conv3x3_weight(w_oihw):  # torch Conv2d (O, I, 3, 3) -> (9*I, O) bf16
    return jnp.transpose(w_oihw, (2, 3, 1, 0)).reshape(-1, w_oihw.shape[0]).astype(jnp.bfloat16)


def _conv1x1_weight(w_oihw):  # torch Conv2d (O, I, 1, 1) -> (I, O) bf16
    return jnp.transpose(w_oihw[:, :, 0, 0], (1, 0)).astype(jnp.bfloat16)


# ----------------------------------------------------------------------------
# Forward pass (NCHW in / NCHW out, BatchNorm in eval mode).
# ----------------------------------------------------------------------------
def res_decoder_block_forward(x_nchw, concat_nchw, params, stride):
    assert stride in ((2, 2), (1, 2)), "rmvpe only uses stride (2,2) / (1,2)"
    sh, sw = stride
    N, Cin, H, W = x_nchw.shape
    Cout = params["bn1"]["gamma"].shape[0]
    Ho, Wo, P = H * sh, W * sw, sh * sw
    Mi, Mo = H * W, Ho * Wo
    Ty, Tx = _taps(sh), _taps(sw)
    vmem = _vmem_limit_bytes()

    # Channel-major 2-D views: pure metadata, no XLA passes over activations.
    x_cm = x_nchw.reshape(N, Cin, Mi)
    skip_cm = concat_nchw.reshape(N, Cout, Mo)

    # ---- kernel 1: phase-split transposed conv + BN + ReLU -----------------
    w1 = _phase_weight(params["conv1_w"], sh, sw)                 # (K1, P*Cout)
    s1, b1 = _fold_bn(params["bn1"])
    sb1 = jnp.stack([jnp.tile(s1, P), jnp.tile(b1, P)], axis=0).astype(jnp.float32)

    o1 = pl.pallas_call(
        functools.partial(_conv1_phase_kernel, H=H, W=W, Ty=Ty, Tx=Tx),
        grid=(N,),
        in_specs=[
            pl.BlockSpec((1, Cin, Mi), lambda n: (n, 0, 0)),
            pl.BlockSpec(w1.shape, lambda n: (0, 0)),
            pl.BlockSpec(sb1.shape, lambda n: (0, 0)),
        ],
        out_specs=pl.BlockSpec((1, P * Cout, Mi), lambda n: (n, 0, 0)),
        out_shape=jax.ShapeDtypeStruct((N, P * Cout, Mi), jnp.bfloat16),
        compiler_params=pltpu.CompilerParams(
            dimension_semantics=("parallel",), vmem_limit_bytes=vmem),
    )(x_cm, w1, sb1)

    # Depth-to-space phase interleave: one XLA transpose pass on the bf16
    # channel-major intermediate (lane-dense on both the producing store and
    # the consuming DMA).
    h_cm = (o1.reshape(N, sh, sw, Cout, H, W)
              .transpose(0, 3, 4, 1, 5, 2)
              .reshape(N, Cout, Mo))

    # ---- kernel 2: fused concat + ConvBlockRes chain ------------------------
    conv_ws, vec_rows, has_sc = [], [], []
    for blk in params["blocks"]:
        sc_flag = "w_sc" in blk
        has_sc.append(sc_flag)
        if sc_flag:
            conv_ws.append(_conv1x1_weight(blk["w_sc"]))
            vec_rows.append(blk["b_sc"])
        sa, ba = _fold_bn(blk["bn_a"])
        sb, bb = _fold_bn(blk["bn_b"])
        conv_ws.append(_conv3x3_weight(blk["w1"]))
        conv_ws.append(_conv3x3_weight(blk["w2"]))
        vec_rows += [sa, ba, sb, bb]
    vecs = jnp.stack([v.astype(jnp.float32) for v in vec_rows], axis=0)  # (NV, Cout)

    in_specs = [
        pl.BlockSpec((1, Cout, Mo), lambda n: (n, 0, 0)),
        pl.BlockSpec((1, Cout, Mo), lambda n: (n, 0, 0)),
        pl.BlockSpec(vecs.shape, lambda n: (0, 0)),
    ]
    for w in conv_ws:
        in_specs.append(pl.BlockSpec(w.shape, lambda n: (0, 0)))

    out_cm = pl.pallas_call(
        functools.partial(_res_blocks_kernel, Ho=Ho, Wo=Wo, Cout=Cout,
                          has_sc=tuple(has_sc)),
        grid=(N,),
        in_specs=in_specs,
        out_specs=pl.BlockSpec((1, Cout, Mo), lambda n: (n, 0, 0)),
        out_shape=jax.ShapeDtypeStruct((N, Cout, Mo), jnp.float32),
        compiler_params=pltpu.CompilerParams(
            dimension_semantics=("parallel",), vmem_limit_bytes=vmem),
    )(h_cm, skip_cm, vecs, *conv_ws)

    return out_cm.reshape(N, Cout, Ho, Wo)                # NCHW view, no copy


# ----------------------------------------------------------------------------
# Pure-XLA reference with the SAME numerics discipline (bf16 conv operands,
# f32 accumulation, f32 epilogue) so the kernels can be checked tightly.
# ----------------------------------------------------------------------------
def res_decoder_block_reference(x_nchw, concat_nchw, params, stride):
    bf16, f32 = jnp.bfloat16, jnp.float32
    sh, sw = stride

    def conv(x, w_hwio, padding, lhs_dilation=(1, 1)):
        return jax.lax.conv_general_dilated(
            x.astype(bf16), w_hwio.astype(bf16), window_strides=(1, 1),
            padding=padding, lhs_dilation=lhs_dilation,
            dimension_numbers=("NHWC", "HWIO", "NHWC"),
            preferred_element_type=f32)

    x = jnp.transpose(x_nchw, (0, 2, 3, 1))
    skip = jnp.transpose(concat_nchw, (0, 2, 3, 1)).astype(f32)

    op = (0, 1) if stride == (1, 2) else (1, 1)
    wt = params["conv1_w"]                                     # (Cin, Cout, 3, 3)
    w1 = jnp.transpose(wt[:, :, ::-1, ::-1], (2, 3, 0, 1))     # flipped, HWIO
    s1, b1 = _fold_bn(params["bn1"])
    y = conv(x, w1, ((1, 1 + op[0]), (1, 1 + op[1])), lhs_dilation=(sh, sw))
    h = jnp.maximum(y * s1 + b1, 0.0)

    cur = jnp.concatenate([h, skip], axis=-1)
    for blk in params["blocks"]:
        if "w_sc" in blk:
            sc = conv(cur, jnp.transpose(blk["w_sc"], (2, 3, 1, 0)),
                      ((0, 0), (0, 0))) + blk["b_sc"]
        else:
            sc = cur
        sa, ba = _fold_bn(blk["bn_a"])
        sb, bb = _fold_bn(blk["bn_b"])
        t = jnp.maximum(conv(cur, jnp.transpose(blk["w1"], (2, 3, 1, 0)),
                             ((1, 1), (1, 1))) * sa + ba, 0.0)
        u = jnp.maximum(conv(t, jnp.transpose(blk["w2"], (2, 3, 1, 0)),
                             ((1, 1), (1, 1))) * sb + bb, 0.0)
        cur = u + sc
    return jnp.transpose(cur, (0, 3, 1, 2))


# ----------------------------------------------------------------------------
# Deterministic parameter init (eval-mode BN running stats included).
# ----------------------------------------------------------------------------
def init_res_decoder_block(key, in_ch, out_ch, n_blocks=1):
    keys = iter(jax.random.split(key, 64))

    def conv_w(shape):
        return 0.1 * jax.random.normal(next(keys), shape, jnp.float32)

    def bn(c):
        return dict(
            gamma=1.0 + 0.1 * jax.random.normal(next(keys), (c,), jnp.float32),
            beta=0.1 * jax.random.normal(next(keys), (c,), jnp.float32),
            mean=0.1 * jax.random.normal(next(keys), (c,), jnp.float32),
            var=1.0 + 0.1 * jax.random.uniform(next(keys), (c,), jnp.float32),
        )

    params = dict(
        conv1_w=conv_w((in_ch, out_ch, 3, 3)),   # ConvTranspose2d: (I, O, kh, kw)
        bn1=bn(out_ch),
        blocks=[],
    )
    for i in range(n_blocks):
        cin = 2 * out_ch if i == 0 else out_ch
        blk = dict(
            w1=conv_w((out_ch, cin, 3, 3)),      # Conv2d: (O, I, kh, kw)
            bn_a=bn(out_ch),
            w2=conv_w((out_ch, out_ch, 3, 3)),
            bn_b=bn(out_ch),
        )
        if cin != out_ch:                        # ConvBlockRes 1x1 shortcut (bias)
            blk["w_sc"] = conv_w((out_ch, cin, 1, 1))
            blk["b_sc"] = 0.1 * jax.random.normal(next(keys), (out_ch,), jnp.float32)
        params["blocks"].append(blk)
    return params


if __name__ == "__main__":
    key = jax.random.PRNGKey(0)
    configs = [
        # (in_ch, out_ch, stride, n_blocks, N, H, W)
        (16, 8, (2, 2), 1, 2, 8, 16),
        (16, 8, (1, 2), 2, 2, 8, 16),
    ]
    for ci, (in_ch, out_ch, stride, n_blocks, N, H, W) in enumerate(configs):
        kx, ks, kp = jax.random.split(jax.random.fold_in(key, ci), 3)
        sh, sw = stride
        Ho, Wo = H * sh, W * sw

        x = jax.random.normal(kx, (N, in_ch, H, W), jnp.float32)
        concat_tensor = jax.random.normal(ks, (N, out_ch, Ho, Wo), jnp.float32)
        params = init_res_decoder_block(kp, in_ch, out_ch, n_blocks=n_blocks)

        fwd = jax.jit(functools.partial(res_decoder_block_forward, stride=stride))
        ref_fn = jax.jit(functools.partial(res_decoder_block_reference, stride=stride))

        out = jax.block_until_ready(fwd(x, concat_tensor, params))
        assert out.shape == (N, out_ch, Ho, Wo), out.shape

        ref = jax.block_until_ready(ref_fn(x, concat_tensor, params))
        diff = jnp.abs(out - ref)
        max_err = float(jnp.max(diff))
        mean_err = float(jnp.mean(diff))
        # Both paths use bf16 matmul operands + f32 accumulation; the residual
        # differences are f32 summation-order noise plus (rarely) a one-ulp
        # bf16 flip of an intermediate, so the mean error must be tiny and the
        # max stays well below a bf16 ulp cascade.
        assert mean_err < 1e-3, f"config {ci}: mean_err={mean_err}"
        assert max_err < 5e-2, f"config {ci}: max_err={max_err}"

    print("KERNEL_OK")
</pallas_src>

<mosaic_0001>
module attributes {stable_mosaic.version = 11 : i64} {
  func.func @_conv1_phase_kernel(%arg0: i32, %arg1: memref<1x16x128xf32, #tpu.memory_space<vmem>>, %arg2: memref<64x32xbf16, #tpu.memory_space<vmem>>, %arg3: memref<2x32xf32, #tpu.memory_space<vmem>>, %arg4: memref<1x32x128xbf16, #tpu.memory_space<vmem>>) attributes {dimension_semantics = [#tpu.dimension_semantics<parallel>], iteration_bounds = array<i64: 2>, scalar_prefetch = 0 : i64, scratch_operands = 0 : i64, tpu.core_type = #tpu.core_type<tc>, window_params = [{transform_indices = @transform_0, window_bounds = array<i64: 1, 16, 128>}, {pipeline_mode = #tpu.pipeline_mode<synchronous>, transform_indices = @transform_1, window_bounds = array<i64: 64, 32>}, {pipeline_mode = #tpu.pipeline_mode<synchronous>, transform_indices = @transform_2, window_bounds = array<i64: 2, 32>}, {transform_indices = @transform_3, window_bounds = array<i64: 1, 32, 128>}]} {
    %c0 = arith.constant 0 : index
    %c0_0 = arith.constant 0 : index
    %c0_1 = arith.constant 0 : index
    %0 = vector.load %arg1[%c0, %c0_0, %c0_1] : memref<1x16x128xf32, #tpu.memory_space<vmem>>, vector<1x16x128xf32>
    %1 = vector.shape_cast %0 : vector<1x16x128xf32> to vector<16x128xf32>
    %2 = tpu.transpose %1, [1, 0] : vector<16x128xf32> -> vector<128x16xf32>
    %3 = vector.shape_cast %2 : vector<128x16xf32> to vector<8x16x16xf32>
    %4 = arith.truncf %3 : vector<8x16x16xf32> to vector<8x16x16xbf16>
    %cst = arith.constant 0.000000e+00 : bf16
    %5 = vector.broadcast %cst : bf16 to vector<8x1x16xbf16>
    %6 = tpu.concatenate %5, %4, %5 in 1 : vector<8x1x16xbf16>, vector<8x16x16xbf16>, vector<8x1x16xbf16> -> vector<8x18x16xbf16>
    %cst_2 = arith.constant 0.000000e+00 : bf16
    %7 = vector.broadcast %cst_2 : bf16 to vector<1x18x16xbf16>
    %8 = tpu.concatenate %7, %6, %7 in 0 : vector<1x18x16xbf16>, vector<8x18x16xbf16>, vector<1x18x16xbf16> -> vector<10x18x16xbf16>
    %9 = vector.extract_strided_slice %8 {offsets = [1, 1, 0], sizes = [8, 16, 16], strides = [1, 1, 1]} : vector<10x18x16xbf16> to vector<8x16x16xbf16>
    %10 = vector.extract_strided_slice %8 {offsets = [1, 2, 0], sizes = [8, 16, 16], strides = [1, 1, 1]} : vector<10x18x16xbf16> to vector<8x16x16xbf16>
    %11 = vector.extract_strided_slice %8 {offsets = [2, 1, 0], sizes = [8, 16, 16], strides = [1, 1, 1]} : vector<10x18x16xbf16> to vector<8x16x16xbf16>
    %12 = vector.extract_strided_slice %8 {offsets = [2, 2, 0], sizes = [8, 16, 16], strides = [1, 1, 1]} : vector<10x18x16xbf16> to vector<8x16x16xbf16>
    %13 = tpu.concatenate %9, %10, %11, %12 in 2 : vector<8x16x16xbf16>, vector<8x16x16xbf16>, vector<8x16x16xbf16>, vector<8x16x16xbf16> -> vector<8x16x64xbf16>
    %14 = vector.shape_cast %13 : vector<8x16x64xbf16> to vector<128x64xbf16>
    %c0_3 = arith.constant 0 : index
    %c0_4 = arith.constant 0 : index
    %15 = vector.load %arg2[%c0_3, %c0_4] : memref<64x32xbf16, #tpu.memory_space<vmem>>, vector<64x32xbf16>
    %cst_5 = arith.constant dense<0.000000e+00> : vector<128x32xf32>
    %16 = tpu.matmul %14, %15, %cst_5 {dimension_numbers = #tpu.dot_dimension_numbers<[1], [0], [0], [1], [0, 0, 1, 1], [], []>} : vector<128x64xbf16>, vector<64x32xbf16>, vector<128x32xf32> -> vector<128x32xf32>
    %c0_6 = arith.constant 0 : index
    %c0_7 = arith.constant 0 : index
    %17 = vector.load %arg3[%c0_6, %c0_7] : memref<2x32xf32, #tpu.memory_space<vmem>>, vector<1x32xf32>
    %18 = vector.broadcast %17 : vector<1x32xf32> to vector<128x32xf32>
    %19 = arith.mulf %16, %18 : vector<128x32xf32>
    %c1 = arith.constant 1 : index
    %c0_8 = arith.constant 0 : index
    %20 = vector.load %arg3[%c1, %c0_8] : memref<2x32xf32, #tpu.memory_space<vmem>>, vector<1x32xf32>
    %21 = vector.broadcast %20 : vector<1x32xf32> to vector<128x32xf32>
    %22 = arith.addf %19, %21 : vector<128x32xf32>
    %cst_9 = arith.constant 0.000000e+00 : f32
    %23 = vector.broadcast %cst_9 : f32 to vector<128x32xf32>
    %24 = arith.maximumf %22, %23 : vector<128x32xf32>
    %25 = tpu.transpose %24, [1, 0] : vector<128x32xf32> -> vector<32x128xf32>
    %26 = arith.truncf %25 : vector<32x128xf32> to vector<32x128xbf16>
    %c0_10 = arith.constant 0 : index
    %c0_11 = arith.constant 0 : index
    %c0_12 = arith.constant 0 : index
    %27 = vector.load %arg4[%c0_10, %c0_11, %c0_12] : memref<1x32x128xbf16, #tpu.memory_space<vmem>>, vector<1x32x128xbf16>
    %28 = vector.shape_cast %27 : vector<1x32x128xbf16> to vector<32x128xbf16>
    %29 = vector.shape_cast %26 : vector<32x128xbf16> to vector<1x32x128xbf16>
    tpu.vector_store %arg4[%c0_10, %c0_11, %c0_12], %29 {strides = array<i32>} : memref<1x32x128xbf16, #tpu.memory_space<vmem>>, vector<1x32x128xbf16>,
    return
  }
  func.func @transform_0(%arg0: i32) -> (i32, i32, i32) {
    %c0_i32 = arith.constant 0 : i32
    %c0_i32_0 = arith.constant 0 : i32
    %c0_i32_1 = arith.constant 0 : i32
    return %arg0, %c0_i32, %c0_i32_0 : i32, i32, i32
  }
  func.func @transform_1(%arg0: i32) -> (i32, i32) {
    %c0_i32 = arith.constant 0 : i32
    %c0_i32_0 = arith.constant 0 : i32
    %c0_i32_1 = arith.constant 0 : i32
    return %c0_i32, %c0_i32_0 : i32, i32
  }
  func.func @transform_2(%arg0: i32) -> (i32, i32) {
    %c0_i32 = arith.constant 0 : i32
    %c0_i32_0 = arith.constant 0 : i32
    %c0_i32_1 = arith.constant 0 : i32
    return %c0_i32, %c0_i32_0 : i32, i32
  }
  func.func @transform_3(%arg0: i32) -> (i32, i32, i32) {
    %c0_i32 = arith.constant 0 : i32
    %c0_i32_0 = arith.constant 0 : i32
    %c0_i32_1 = arith.constant 0 : i32
    return %arg0, %c0_i32, %c0_i32_0 : i32, i32, i32
  }
}

module attributes {stable_mosaic.version = 11 : i64} {
  func.func @_res_blocks_kernel(%arg0: i32, %arg1: memref<1x8x512xbf16, #tpu.memory_space<vmem>>, %arg2: memref<1x8x512xf32, #tpu.memory_space<vmem>>, %arg3: memref<5x8xf32, #tpu.memory_space<vmem>>, %arg4: memref<16x8xbf16, #tpu.memory_space<vmem>>, %arg5: memref<144x8xbf16, #tpu.memory_space<vmem>>, %arg6: memref<72x8xbf16, #tpu.memory_space<vmem>>, %arg7: memref<1x8x512xf32, #tpu.memory_space<vmem>>) attributes {dimension_semantics = [#tpu.dimension_semantics<parallel>], iteration_bounds = array<i64: 2>, scalar_prefetch = 0 : i64, scratch_operands = 0 : i64, tpu.core_type = #tpu.core_type<tc>, window_params = [{transform_indices = @transform_0, window_bounds = array<i64: 1, 8, 512>}, {transform_indices = @transform_1, window_bounds = array<i64: 1, 8, 512>}, {pipeline_mode = #tpu.pipeline_mode<synchronous>, transform_indices = @transform_2, window_bounds = array<i64: 5, 8>}, {pipeline_mode = #tpu.pipeline_mode<synchronous>, transform_indices = @transform_3, window_bounds = array<i64: 16, 8>}, {pipeline_mode = #tpu.pipeline_mode<synchronous>, transform_indices = @transform_4, window_bounds = array<i64: 144, 8>}, {pipeline_mode = #tpu.pipeline_mode<synchronous>, transform_indices = @transform_5, window_bounds = array<i64: 72, 8>}, {transform_indices = @transform_6, window_bounds = array<i64: 1, 8, 512>}]} {
    %c0 = arith.constant 0 : index
    %c0_0 = arith.constant 0 : index
    %c0_1 = arith.constant 0 : index
    %0 = vector.load %arg1[%c0, %c0_0, %c0_1] : memref<1x8x512xbf16, #tpu.memory_space<vmem>>, vector<1x8x512xbf16>
    %1 = vector.shape_cast %0 : vector<1x8x512xbf16> to vector<8x512xbf16>
    %2 = arith.extf %1 : vector<8x512xbf16> to vector<8x512xf32>
    %c0_2 = arith.constant 0 : index
    %c0_3 = arith.constant 0 : index
    %c0_4 = arith.constant 0 : index
    %3 = vector.load %arg2[%c0_2, %c0_3, %c0_4] : memref<1x8x512xf32, #tpu.memory_space<vmem>>, vector<1x8x512xf32>
    %4 = vector.shape_cast %3 : vector<1x8x512xf32> to vector<8x512xf32>
    %5 = tpu.concatenate %2, %4 in 0 : vector<8x512xf32>, vector<8x512xf32> -> vector<16x512xf32>
    %6 = tpu.transpose %5, [1, 0] : vector<16x512xf32> -> vector<512x16xf32>
    %7 = arith.truncf %6 : vector<512x16xf32> to vector<512x16xbf16>
    %8 = vector.shape_cast %7 : vector<512x16xbf16> to vector<16x32x16xbf16>
    %c0_5 = arith.constant 0 : index
    %c0_6 = arith.constant 0 : index
    %9 = vector.load %arg4[%c0_5, %c0_6] : memref<16x8xbf16, #tpu.memory_space<vmem>>, vector<16x8xbf16>
    %c0_7 = arith.constant 0 : index
    %c0_8 = arith.constant 0 : index
    %10 = vector.load %arg3[%c0_7, %c0_8] : memref<5x8xf32, #tpu.memory_space<vmem>>, vector<1x8xf32>
    %11 = vector.shape_cast %8 : vector<16x32x16xbf16> to vector<512x16xbf16>
    %cst = arith.constant dense<0.000000e+00> : vector<512x8xf32>
    %12 = tpu.matmul %11, %9, %cst {dimension_numbers = #tpu.dot_dimension_numbers<[1], [0], [0], [1], [0, 0, 1, 1], [], []>} : vector<512x16xbf16>, vector<16x8xbf16>, vector<512x8xf32> -> vector<512x8xf32>
    %13 = vector.broadcast %10 : vector<1x8xf32> to vector<512x8xf32>
    %14 = arith.addf %12, %13 : vector<512x8xf32>
    %c0_9 = arith.constant 0 : index
    %c0_10 = arith.constant 0 : index
    %15 = vector.load %arg5[%c0_9, %c0_10] : memref<144x8xbf16, #tpu.memory_space<vmem>>, vector<144x8xbf16>
    %c0_11 = arith.constant 0 : index
    %c0_12 = arith.constant 0 : index
    %16 = vector.load %arg6[%c0_11, %c0_12] : memref<72x8xbf16, #tpu.memory_space<vmem>>, vector<72x8xbf16>
    %c1 = arith.constant 1 : index
    %c0_13 = arith.constant 0 : index
    %17 = vector.load %arg3[%c1, %c0_13] : memref<5x8xf32, #tpu.memory_space<vmem>>, vector<1x8xf32>
    %c2 = arith.constant 2 : index
    %c0_14 = arith.constant 0 : index
    %18 = vector.load %arg3[%c2, %c0_14] : memref<5x8xf32, #tpu.memory_space<vmem>>, vector<1x8xf32>
    %c3 = arith.constant 3 : index
    %c0_15 = arith.constant 0 : index
    %19 = vector.load %arg3[%c3, %c0_15] : memref<5x8xf32, #tpu.memory_space<vmem>>, vector<1x8xf32>
    %c4 = arith.constant 4 : index
    %c0_16 = arith.constant 0 : index
    %20 = vector.load %arg3[%c4, %c0_16] : memref<5x8xf32, #tpu.memory_space<vmem>>, vector<1x8xf32>
    %cst_17 = arith.constant 0.000000e+00 : bf16
    %21 = vector.broadcast %cst_17 : bf16 to vector<16x1x16xbf16>
    %22 = tpu.concatenate %21, %8, %21 in 1 : vector<16x1x16xbf16>, vector<16x32x16xbf16>, vector<16x1x16xbf16> -> vector<16x34x16xbf16>
    %cst_18 = arith.constant 0.000000e+00 : bf16
    %23 = vector.broadcast %cst_18 : bf16 to vector<1x34x16xbf16>
    %24 = tpu.concatenate %23, %22, %23 in 0 : vector<1x34x16xbf16>, vector<16x34x16xbf16>, vector<1x34x16xbf16> -> vector<18x34x16xbf16>
    %25 = vector.extract_strided_slice %24 {offsets = [0, 0, 0], sizes = [16, 32, 16], strides = [1, 1, 1]} : vector<18x34x16xbf16> to vector<16x32x16xbf16>
    %26 = vector.extract_strided_slice %24 {offsets = [0, 1, 0], sizes = [16, 32, 16], strides = [1, 1, 1]} : vector<18x34x16xbf16> to vector<16x32x16xbf16>
    %27 = vector.extract_strided_slice %24 {offsets = [0, 2, 0], sizes = [16, 32, 16], strides = [1, 1, 1]} : vector<18x34x16xbf16> to vector<16x32x16xbf16>
    %28 = vector.extract_strided_slice %24 {offsets = [1, 0, 0], sizes = [16, 32, 16], strides = [1, 1, 1]} : vector<18x34x16xbf16> to vector<16x32x16xbf16>
    %29 = vector.extract_strided_slice %24 {offsets = [1, 1, 0], sizes = [16, 32, 16], strides = [1, 1, 1]} : vector<18x34x16xbf16> to vector<16x32x16xbf16>
    %30 = vector.extract_strided_slice %24 {offsets = [1, 2, 0], sizes = [16, 32, 16], strides = [1, 1, 1]} : vector<18x34x16xbf16> to vector<16x32x16xbf16>
    %31 = vector.extract_strided_slice %24 {offsets = [2, 0, 0], sizes = [16, 32, 16], strides = [1, 1, 1]} : vector<18x34x16xbf16> to vector<16x32x16xbf16>
    %32 = vector.extract_strided_slice %24 {offsets = [2, 1, 0], sizes = [16, 32, 16], strides = [1, 1, 1]} : vector<18x34x16xbf16> to vector<16x32x16xbf16>
    %33 = vector.extract_strided_slice %24 {offsets = [2, 2, 0], sizes = [16, 32, 16], strides = [1, 1, 1]} : vector<18x34x16xbf16> to vector<16x32x16xbf16>
    %34 = tpu.concatenate %25, %26, %27, %28, %29, %30, %31, %32, %33 in 2 : vector<16x32x16xbf16>, vector<16x32x16xbf16>, vector<16x32x16xbf16>, vector<16x32x16xbf16>, vector<16x32x16xbf16>, vector<16x32x16xbf16>, vector<16x32x16xbf16>, vector<16x32x16xbf16>, vector<16x32x16xbf16> -> vector<16x32x144xbf16>
    %35 = vector.shape_cast %34 : vector<16x32x144xbf16> to vector<512x144xbf16>
    %cst_19 = arith.constant dense<0.000000e+00> : vector<512x8xf32>
    %36 = tpu.matmul %35, %15, %cst_19 {dimension_numbers = #tpu.dot_dimension_numbers<[1], [0], [0], [1], [0, 0, 1, 1], [], []>} : vector<512x144xbf16>, vector<144x8xbf16>, vector<512x8xf32> -> vector<512x8xf32>
    %37 = vector.broadcast %17 : vector<1x8xf32> to vector<512x8xf32>
    %38 = arith.mulf %36, %37 : vector<512x8xf32>
    %39 = vector.broadcast %18 : vector<1x8xf32> to vector<512x8xf32>
    %40 = arith.addf %38, %39 : vector<512x8xf32>
    %cst_20 = arith.constant 0.000000e+00 : f32
    %41 = vector.broadcast %cst_20 : f32 to vector<512x8xf32>
    %42 = arith.maximumf %40, %41 : vector<512x8xf32>
    %43 = vector.shape_cast %42 : vector<512x8xf32> to vector<16x32x8xf32>
    %44 = arith.truncf %43 : vector<16x32x8xf32> to vector<16x32x8xbf16>
    %cst_21 = arith.constant 0.000000e+00 : bf16
    %45 = vector.broadcast %cst_21 : bf16 to vector<16x1x8xbf16>
    %46 = tpu.concatenate %45, %44, %45 in 1 : vector<16x1x8xbf16>, vector<16x32x8xbf16>, vector<16x1x8xbf16> -> vector<16x34x8xbf16>
    %cst_22 = arith.constant 0.000000e+00 : bf16
    %47 = vector.broadcast %cst_22 : bf16 to vector<1x34x8xbf16>
    %48 = tpu.concatenate %47, %46, %47 in 0 : vector<1x34x8xbf16>, vector<16x34x8xbf16>, vector<1x34x8xbf16> -> vector<18x34x8xbf16>
    %49 = vector.extract_strided_slice %48 {offsets = [0, 0, 0], sizes = [16, 32, 8], strides = [1, 1, 1]} : vector<18x34x8xbf16> to vector<16x32x8xbf16>
    %50 = vector.extract_strided_slice %48 {offsets = [0, 1, 0], sizes = [16, 32, 8], strides = [1, 1, 1]} : vector<18x34x8xbf16> to vector<16x32x8xbf16>
    %51 = vector.extract_strided_slice %48 {offsets = [0, 2, 0], sizes = [16, 32, 8], strides = [1, 1, 1]} : vector<18x34x8xbf16> to vector<16x32x8xbf16>
    %52 = vector.extract_strided_slice %48 {offsets = [1, 0, 0], sizes = [16, 32, 8], strides = [1, 1, 1]} : vector<18x34x8xbf16> to vector<16x32x8xbf16>
    %53 = vector.extract_strided_slice %48 {offsets = [1, 1, 0], sizes = [16, 32, 8], strides = [1, 1, 1]} : vector<18x34x8xbf16> to vector<16x32x8xbf16>
    %54 = vector.extract_strided_slice %48 {offsets = [1, 2, 0], sizes = [16, 32, 8], strides = [1, 1, 1]} : vector<18x34x8xbf16> to vector<16x32x8xbf16>
    %55 = vector.extract_strided_slice %48 {offsets = [2, 0, 0], sizes = [16, 32, 8], strides = [1, 1, 1]} : vector<18x34x8xbf16> to vector<16x32x8xbf16>
    %56 = vector.extract_strided_slice %48 {offsets = [2, 1, 0], sizes = [16, 32, 8], strides = [1, 1, 1]} : vector<18x34x8xbf16> to vector<16x32x8xbf16>
    %57 = vector.extract_strided_slice %48 {offsets = [2, 2, 0], sizes = [16, 32, 8], strides = [1, 1, 1]} : vector<18x34x8xbf16> to vector<16x32x8xbf16>
    %58 = tpu.concatenate %49, %50, %51, %52, %53, %54, %55, %56, %57 in 2 : vector<16x32x8xbf16>, vector<16x32x8xbf16>, vector<16x32x8xbf16>, vector<16x32x8xbf16>, vector<16x32x8xbf16>, vector<16x32x8xbf16>, vector<16x32x8xbf16>, vector<16x32x8xbf16>, vector<16x32x8xbf16> -> vector<16x32x72xbf16>
    %59 = vector.shape_cast %58 : vector<16x32x72xbf16> to vector<512x72xbf16>
    %cst_23 = arith.constant dense<0.000000e+00> : vector<512x8xf32>
    %60 = tpu.matmul %59, %16, %cst_23 {dimension_numbers = #tpu.dot_dimension_numbers<[1], [0], [0], [1], [0, 0, 1, 1], [], []>} : vector<512x72xbf16>, vector<72x8xbf16>, vector<512x8xf32> -> vector<512x8xf32>
    %61 = vector.broadcast %19 : vector<1x8xf32> to vector<512x8xf32>
    %62 = arith.mulf %60, %61 : vector<512x8xf32>
    %63 = vector.broadcast %20 : vector<1x8xf32> to vector<512x8xf32>
    %64 = arith.addf %62, %63 : vector<512x8xf32>
    %cst_24 = arith.constant 0.000000e+00 : f32
    %65 = vector.broadcast %cst_24 : f32 to vector<512x8xf32>
    %66 = arith.maximumf %64, %65 : vector<512x8xf32>
    %67 = arith.addf %66, %14 : vector<512x8xf32>
    %68 = tpu.transpose %67, [1, 0] : vector<512x8xf32> -> vector<8x512xf32>
    %c0_25 = arith.constant 0 : index
    %c0_26 = arith.constant 0 : index
    %c0_27 = arith.constant 0 : index
    %69 = vector.load %arg7[%c0_25, %c0_26, %c0_27] : memref<1x8x512xf32, #tpu.memory_space<vmem>>, vector<1x8x512xf32>
    %70 = vector.shape_cast %69 : vector<1x8x512xf32> to vector<8x512xf32>
    %71 = vector.shape_cast %68 : vector<8x512xf32> to vector<1x8x512xf32>
    tpu.vector_store %arg7[%c0_25, %c0_26, %c0_27], %71 {strides = array<i32>} : memref<1x8x512xf32, #tpu.memory_space<vmem>>, vector<1x8x512xf32>,
    return
  }
  func.func @transform_0(%arg0: i32) -> (i32, i32, i32) {
    %c0_i32 = arith.constant 0 : i32
    %c0_i32_0 = arith.constant 0 : i32
    %c0_i32_1 = arith.constant 0 : i32
    return %arg0, %c0_i32, %c0_i32_0 : i32, i32, i32
  }
  func.func @transform_1(%arg0: i32) -> (i32, i32, i32) {
    %c0_i32 = arith.constant 0 : i32
    %c0_i32_0 = arith.constant 0 : i32
    %c0_i32_1 = arith.constant 0 : i32
    return %arg0, %c0_i32, %c0_i32_0 : i32, i32, i32
  }
  func.func @transform_2(%arg0: i32) -> (i32, i32) {
    %c0_i32 = arith.constant 0 : i32
    %c0_i32_0 = arith.constant 0 : i32
    %c0_i32_1 = arith.constant 0 : i32
    return %c0_i32, %c0_i32_0 : i32, i32
  }
  func.func @transform_3(%arg0: i32) -> (i32, i32) {
    %c0_i32 = arith.constant 0 : i32
    %c0_i32_0 = arith.constant 0 : i32
    %c0_i32_1 = arith.constant 0 : i32
    return %c0_i32, %c0_i32_0 : i32, i32
  }
  func.func @transform_4(%arg0: i32) -> (i32, i32) {
    %c0_i32 = arith.constant 0 : i32
    %c0_i32_0 = arith.constant 0 : i32
    %c0_i32_1 = arith.constant 0 : i32
    return %c0_i32, %c0_i32_0 : i32, i32
  }
  func.func @transform_5(%arg0: i32) -> (i32, i32) {
    %c0_i32 = arith.constant 0 : i32
    %c0_i32_0 = arith.constant 0 : i32
    %c0_i32_1 = arith.constant 0 : i32
    return %c0_i32, %c0_i32_0 : i32, i32
  }
  func.func @transform_6(%arg0: i32) -> (i32, i32, i32) {
    %c0_i32 = arith.constant 0 : i32
    %c0_i32_0 = arith.constant 0 : i32
    %c0_i32_1 = arith.constant 0 : i32
    return %arg0, %c0_i32, %c0_i32_0 : i32, i32, i32
  }
}

</mosaic_0001>

<bundles_post_ra>
// kernel: tile.18
= control target key start
LH: loop header
LB: loop body
LE: loop exit
PB: predicated region body
PF: predicated region fallthrough
CT: control target
= control target key end

     0   :  { %vm7_vm0 = vcmask 64512   ;;  %s37_s8 = smov 8   ;;  %s38_s9 = smov 16   ;;  %vm13_vm1 = vcmask 261312   ;;  %vm19_vm2 = vcmask 195712   ;;  %vm25_vm3 = vcmask 130112   ;;  %s55_s0 = inlined_call_operand.vmem [shape: f32[4,8], index: 0, kind: input, shape index: {}]   ;;  %s56_s1 = inlined_call_operand.vmem [shape: f32[1,32], index: 1, kind: output, shape index: {}]  }
   0x1   :  { %v4_v0 = vld [vmem:[%s55_s0] sm:$0xf]  ;;  %s36_s0 = smov 24  }
   0x2   :  { %5 = vst [vmem:[#allocation1] sm:$0xf] %v4_v0 }
   0x9   :  { %v10_v1 = vld [vmem:[#allocation1 + $0x3] sm:$0x1]   ;;  %v22_v2 = vld [vmem:[#allocation1 + $0x1] sm:$0x1]   ;;  %v6_v3 = vld [vmem:[#allocation1] sm:$0x1]  }
   0xa   :  { %11 = vrot.lane.b32.xlu0 %v10_v1, %s36_s0  ;;  %23 = vrot.lane.b32.xlu1 %v22_v2, %s37_s8  ;;  %v16_v4 = vld [vmem:[#allocation1 + $0x2] sm:$0x1]   ;;  %8 = vst.msk [vmem:[#allocation0] sm:$0x1] %vm7_vm0, %v6_v3  }
   0xe   :  { %17 = vrot.lane.b32.xlu0 %v16_v4, %s38_s9 }
  0x7c   :  { %v12_v5 = vpop.permute.xlu0 %11   ;;  %v24_v6 = vpop.permute.xlu1 %23  }
  0x7d   :  { %14 = vst.msk [vmem:[#allocation0] sm:$0x1] %vm13_vm1, %v12_v5  }
  0x80   :  { %v18_v7 = vpop.permute.xlu0 %17  }
  0x81   :  { %20 = vst.msk [vmem:[#allocation0] sm:$0x1] %vm19_vm2, %v18_v7  }
  0x82   :  { %26 = vst.msk [vmem:[#allocation0] sm:$0x1] %vm25_vm3, %v24_v6  }
  0x89   :  { %v30_v8 = vld [vmem:[#allocation0] sm:$0x1] }
  0x8a   :  { %32 = vst [vmem:[%s56_s1] sm:$0x1] %v30_v8 }

// kernel: tile.13
= control target key start
LH: loop header
LB: loop body
LE: loop exit
PB: predicated region body
PF: predicated region fallthrough
CT: control target
= control target key end

     0   :  { %s22_s0 = inlined_call_operand.vmem [shape: f32[8], index: 0, kind: input, shape index: {}]   ;;  %s23_s1 = inlined_call_operand.vmem [shape: f32[4,8], index: 1, kind: output, shape index: {}]  }
   0x1   :  { %v4_v0 = vld [vmem:[%s22_s0] ss:$0 sm:$0xff] }
   0x2   :  { %5 = vst [vmem:[%s23_s1] sm:$0xf] %v4_v0 }

// kernel: res_decoder_block_forward.2
= control target key start
LH: loop header
LB: loop body
LE: loop exit
PB: predicated region body
PF: predicated region fallthrough
CT: control target
= control target key end

     0   :  { %8 = vsyncpa [#allocation3], 0  ;;  %s2042_s0 = inlined_call_operand.hbm [shape: f32[2,16,128], index: 0, kind: input, shape index: {}]   ;;  %s2043_s1 = inlined_call_operand.hbm [shape: bf16[64,32], index: 1, kind: input, shape index: {}]   ;;  %s2044_s2 = inlined_call_operand.hbm [shape: f32[2,32], index: 2, kind: input, shape index: {}]   ;;  %s2045_s3 = inlined_call_operand.hbm [shape: bf16[2,32,128], index: 3, kind: output, shape index: {}]  }
   0x1   :  { %10 = vsyncpa [#allocation3 + $0x1], 0 }
   0x2   :  { %11 = vsyncpa [#allocation6], 0 }
   0x3   :  { %12 = vsyncpa [#allocation4], 0 }
   0x4   :  { %14 = vsyncpa [#allocation4 + $0x1], 0  ;;  %s1499_s12 = smov 0   ;;  %s1501_s13 = smov 0  }
   0x5   :  { %s1503_s14 = smov 0   ;;  %s1505_s15 = smov 0  }
   0x6 LB: > { %s1520_s16 = sadd.s32 4294967295, %s1463_s15   ;;  %s1128_s17 = sadd.s32 4294967294, %s1463_s15   ;;  %s1463_s15 = sphi %s1505_s15, %s2067_s15   ;;  %s1459_s14 = sphi %s1503_s14, %s2066_s14   ;;  %s1455_s13 = sphi %s1501_s13, %s2065_s13   ;;  %s1451_s12 = sphi %s1499_s12, %s2064_s12  }
   0x7   : > { %p40_p0 = scmp.ne.s32.totalorder %s1455_s13, %s1451_s12  ;;  %p2046_p1 = scmp.eq.s32.totalorder %s1520_s16, 0 }
   0x8   : > { %p112_p3 = scmp.eq.s32.totalorder %s1128_s17, 1  ;;  %p1129_p5 = scmp.ge.s32.totalorder %s1463_s15, 1 }
   0x9   : > { %p1529_p4 = por %p2046_p1, %p40_p0  ;;  %p119_p7 = scmp.lt.s32.totalorder %s1463_s15, 3 }
   0xa   : > { %p1534_p6 = por %p112_p3, %p40_p0  ;;  %s1465_s21 = smov [#allocation5]  }
   0xb   : > { %s2049_s18 = scalar_select %p1529_p4, 1, 0 }
   0xc   : > { %s2050_s19 = scalar_select %p1534_p6, 1, 0 }
   0xd   : > { %p1539_p8 = pnand %p1129_p5, %p119_p7  ;;  %s131_s22 = sshll.u32 %s1465_s21, 4  ;;  %s1543_s22 = int_to_ptr.vmem [resolvable:$true] %s131_s22 }
   0xe   : > { %s1466_s24 = smov [#allocation7]   ;;  %s1307_s28 = scalar_lea.hbm %s2043_s1, 512 }
   0xf   : > { %p1237_p9 = pneg %p1539_p8  ;;  %s145_s25 = sshll.u32 %s1466_s24, 4  ;;  %s1554_s25 = int_to_ptr.vmem [resolvable:$true] %s145_s25 }
  0x10   : > { %p1308_p12 = scmp.ne.s32.totalorder %s2043_s1, %s1307_s28  ;;  %p1314_p5 = scmp.lt.u32.totalorder %s1307_s28, %s2043_s1 }
  0x11   : > { %p1550_p11 = pnand %p1237_p9, %p2046_p1 }
  0x13   : > { %p1309_p13 = pneg %p1550_p11 }
  0x15   : > { %p1310_p0 = pnand %p1309_p13, %p1308_p12 }
  0x17   : > { %p1311_p3 = pneg %p1310_p0 }
  0x19   : > { %p1316_p7 = pnand %p1314_p5, %p1311_p3 }
  0x1b   : > { %1319 = shalt.err (!%p1316_p7)
}
  0x1c   : > { %s1320_s6 = scalar_lea.vmem %s1543_s22, 512  ;;  %p1328_p2 = scmp.lt.s32.totalorder %s1543_s22, %s1543_s22 }
  0x1d   : > { %p1321_p9 = scmp.ne.s32.totalorder %s1543_s22, %s1320_s6  ;;  %p1329_p12 = scmp.lt.s32.totalorder %s1320_s6, %s1320_s6 }
  0x1f   : > { %p1323_p10 = pnand %p1321_p9, %p1309_p13  ;;  %p1330_p0 = por %p1329_p12, %p1328_p2 }
  0x21   : > { %p1324_p1 = pneg %p1323_p10 }
  0x23   : > { %p1331_p6 = pnand %p1330_p0, %p1324_p1 }
  0x25   : > { %1334 = shalt.err (!%p1331_p6)
}
  0x26   : > { %s1467_s7 = smov 64   ;;  %s1468_s8 = smov 4  }
  0x27   : > { %1240 = dma.hbm_to_vmem [thread:$0]  (!%p1550_p11), %s2043_s1, 512, %s1543_s22, [#allocation6], %s1467_s7, %s1467_s7, %s1468_s8  }
  0x28   : > { %s1335_s21 = scalar_lea.hbm %s2044_s2, 32 }
  0x29   : > { %p1336_p2 = scmp.ne.s32.totalorder %s2044_s2, %s1335_s21  ;;  %p1342_p10 = scmp.lt.u32.totalorder %s1335_s21, %s2044_s2 }
  0x2b   : > { %p1338_p1 = pnand %p1336_p2, %p1309_p13 }
  0x2d   : > { %p1339_p6 = pneg %p1338_p1 }
  0x2f   : > { %p1344_p3 = pnand %p1342_p10, %p1339_p6 }
  0x31   : > { %1347 = shalt.err (!%p1344_p3)
}
  0x32   : > { %s1348_s22 = scalar_lea.vmem %s1554_s25, 32  ;;  %p1356_p12 = scmp.lt.s32.totalorder %s1554_s25, %s1554_s25 }
  0x33   : > { %p1349_p5 = scmp.ne.s32.totalorder %s1554_s25, %s1348_s22  ;;  %p1357_p0 = scmp.lt.s32.totalorder %s1348_s22, %s1348_s22 }
  0x35   : > { %p1351_p7 = pnand %p1349_p5, %p1309_p13  ;;  %p1358_p2 = por %p1357_p0, %p1356_p12 }
  0x37   : > { %p1352_p9 = pneg %p1351_p7 }
  0x39   : > { %p1359_p1 = pnand %p1358_p2, %p1352_p9 }
  0x3b   : > { %1362 = shalt.err (!%p1359_p1)
}
  0x3c   : > { %1243 = dma.hbm_to_vmem [thread:$0]  (!%p1550_p11), %s2044_s2, 32, %s1554_s25, [#allocation6]  }
  0x3d   : > { %s1609_s4 = sadd.s32 1, %s1463_s15   ;;  %s27_s23 = sadd.s32 1, %s1459_s14 }
  0x3e   : > { %s24_s5 = ssub.s32 %s1463_s15, %s1609_s4  ;;  %p34_p13 = scmp.ne.s32.totalorder %s1459_s14, %s1455_s13 }
  0x3f   : > { %p25_p6 = scmp.eq.s32.totalorder %s24_s5, 0  ;;  %p35_p10 = scmp.eq.s32.totalorder %s1463_s15, 0 }
  0x40   : > { %p2053_p3 = scmp.eq.s32.totalorder %s1520_s16, 1  ;;  %p1254_p7 = scmp.lt.s32.totalorder %s1463_s15, 2 }
  0x41   : > { %s1625_s7 = scalar_select %p25_p6, %s1459_s14, %s27_s23  }
  0x42   : > { %p1619_p5 = por %p2053_p3, %p34_p13  ;;  %p36_p9 = por %p35_p10, %p34_p13 }
  0x43   : > { %s156_s8 = sand.u32 1, %s1459_s14   ;;  %s1164_s25 = sshll.u32 %s1463_s15, 8 }
  0x44   : > { %s2054_s6 = scalar_select %p1619_p5, 1, 0 }
  0x45   : > { %s1133_s9 = sshll.u32 %s156_s8, 4  ;;  %s1632_s17 = scalar_lea.hbm %s2042_s0, %s1164_s25 }
  0x46   : > { %s160_s21 = scalar_lea.vmem [#allocation2], %s1133_s9  ;;  %p1636_p11 = pnand %p1254_p7, %p36_p9 }
  0x47   : > { %s167_s24 = sshll.u32 %s160_s21, 4  ;;  %s1640_s27 = scalar_lea.sflag [#allocation3], %s156_s8  ;;  %s1634_s24 = int_to_ptr.vmem [resolvable:$true] %s167_s24 }
  0x48   : > { %s1363_s28 = scalar_lea.hbm %s1632_s17, 256  ;;  %p1365_p0 = pneg %p1636_p11 }
  0x49   : > { %p1364_p12 = scmp.ne.s32.totalorder %s1632_s17, %s1363_s28  ;;  %s1368_s30 = scalar_lea.hbm %s2042_s0, 512 }
  0x4a   : > { %p1369_p13 = scmp.lt.u32.totalorder %s1632_s17, %s2042_s0  ;;  %p1370_p6 = scmp.lt.u32.totalorder %s1368_s30, %s1363_s28 }
  0x4b   : > { %p1366_p2 = pnand %p1365_p0, %p1364_p12  ;;  %p1372_p3 = scmp.lt.u32.totalorder %s1363_s28, %s1632_s17 }
  0x4c   : > { %p1371_p10 = por %p1370_p6, %p1369_p13 }
  0x4d   : > { %p1367_p1 = pneg %p1366_p2 }
  0x4e   : > { %p1373_p7 = por %p1372_p3, %p1371_p10 }
  0x50   : > { %p1374_p9 = pnand %p1373_p7, %p1367_p1 }
  0x52   : > { %1377 = shalt.err (!%p1374_p9)
}
  0x53   : > { %s1378_s8 = scalar_lea.vmem %s1634_s24, 256  ;;  %s1469_s9 = smov [#allocation2]  }
  0x54   : > { %p1379_p12 = scmp.ne.s32.totalorder %s1634_s24, %s1378_s8  ;;  %s1383_s25 = sshll.u32 %s1469_s9, 4  ;;  %s1384_s25 = int_to_ptr.vmem [resolvable:$false] %s1383_s25 }
  0x55   : > { %s1385_s10 = scalar_lea.vmem %s1384_s25, 512  ;;  %p1386_p4 = scmp.lt.s32.totalorder %s1634_s24, %s1384_s25 }
  0x56   : > { %p1381_p2 = pnand %p1379_p12, %p1365_p0  ;;  %p1387_p13 = scmp.lt.s32.totalorder %s1385_s10, %s1378_s8 }
  0x58   : > { %p1382_p5 = pneg %p1381_p2  ;;  %p1388_p6 = por %p1387_p13, %p1386_p4 }
  0x5a   : > { %p1389_p10 = pnand %p1388_p6, %p1382_p5 }
  0x5c   : > { %1392 = shalt.err (!%p1389_p10)
}
  0x5d   : > { %s1470_s11 = smov 128   ;;  %s1471_s21 = smov 8  }
  0x5e   : > { %1247 = dma.hbm_to_vmem [thread:$0]  (!%p1636_p11), %s1632_s17, 256, %s1634_s24, %s1640_s27, %s1470_s11, %s1470_s11, %s1471_s21  }
  0x5f   : > { %179 = sbr.rel (%p1539_p8) target bundleno = 842 (0x34a), region = 32  ;;  %s1671_s28 = sand.u32 (!%p1539_p8), 1, %s1455_s13  }
  0x60   : > { %s1137_s22 = sshll.u32 (!%p1539_p8), %s1671_s28, 4  ;;  %s182_s29 = scalar_lea.sflag (!%p1539_p8), [#allocation3], %s1671_s28 }
  0x61   : > { %s185_s30 = scalar_lea.vmem (!%p1539_p8), [#allocation2], %s1137_s22  ;;  %p2056_p4 = scmp.ne.s32.totalorder (!%p1539_p8), %s2049_s18, 0 }
  0x66   : > { %1438 = dma.done.wait (%p2056_p4), %s182_s29, 256  }
  0x67   : > { %1440 = vsyncadd (%p2056_p4), %s182_s29, 4294967040  ;;  %p2057_p5 = scmp.eq.s32.totalorder %s1520_s16, 0 }
  0x69   : > { %1442 = dma.done.wait (%p2057_p5), [#allocation6], 544   ;;  %p2058_p8 = pmov %p2057_p5 }
  0x6a   : > { %v217_v0 = vld [vmem:[%s185_s30] sm:$0xff]  ;;  %v218_v1 = vld [vmem:[%s185_s30 + $0x8] sm:$0xff]  ;;  %vm331_vm0 = vcmask 1040384   ;;  %vm332_vm1 = vsmask.f32 256  ;;  %s1472_s18 = smov 16  }
  0x6b   : > { %1444 = vsyncadd (%p2058_p8), [#allocation6], 4294966752  ;;  %219 = vxpose.xlu0.b32.start [1/2] (short) %v217_v0, 128  ;;  %s1473_s20 = smov 32   ;;  %vm350_vm3 = vsmask.f32 7424  ;;  %v1474_v34 = vmov 0  }
  0x6c   : > { %vm1685_vm2 = vmand %vm331_vm0, %vm332_vm1  ;;  %v545_v35 = vrot.slane %v1474_v34, 1  ;;  %s1475_s17 = smov 48   ;;  %v1303_v51 = vld [vmem:[#allocation5] sm:$0xff]   ;;  %v1304_v55 = vld [vmem:[#allocation5 + $0x8] sm:$0xff]   ;;  %vm580_vm4 = vcmask 130048   ;;  %vm613_vm5 = vcmask 261120  }
  0x6d   : > { %1193 = vmatprep.subr.bf16.mxu0 %v1303_v51  ;;  %1217 = vmatprep.subr.bf16.mxu1 %v1303_v51  ;;  %v1305_v62 = vld [vmem:[#allocation5 + $0x10] sm:$0xff]   ;;  %vm645_vm6 = vcmask 392192   ;;  %vm790_vm7 = vcmask 523264   ;;  %s215_s24 = scalar_lea.vmem [#allocation8], %s1137_s22  ;;  %s1169_s27 = sshll.u32 %s1520_s16, 8 }
  0x6e   : > { %1194 = vmatpush3.bf16.msra.mxu0 %v1303_v51  ;;  %1221 = vmatpush3.bf16.msra.mxu1 %v1303_v51  ;;  %s1036_s26 = sshll.u32 %s215_s24, 4  ;;  %s1998_s8 = scalar_lea.hbm %s2045_s3, %s1169_s27  ;;  %s1993_s26 = int_to_ptr.vmem [resolvable:$true] %s1036_s26 }
  0x6f   : > { %220 = vxpose.xlu0.b32.end [2/2] (short) %v218_v1, 128  ;;  %1195 = vmatprep.subr.bf16.mxu0 %v1304_v55  ;;  %s1023_s9 = scalar_lea.sflag [#allocation4], %s1671_s28  ;;  %s1393_s25 = scalar_lea.vmem %s1993_s26, 256 }
  0x70   : > { %1218 = vmatprep.subr.bf16.mxu1 %v1304_v55  ;;  %p1394_p11 = scmp.ne.s32.totalorder %s1993_s26, %s1393_s25  ;;  %p2061_p0 = scmp.ne.s32.totalorder %s2054_s6, 0 }
  0x71   : > { %s1476_s16 = smov [#allocation8]  }
  0x72   : > { %1196 = vmatpush3.bf16.msra.mxu0 %v1304_v55  ;;  %1222 = vmatpush3.bf16.msra.mxu1 %v1304_v55  ;;  %p1395_p1 = pnand %p1394_p11, %p2061_p0  ;;  %s1397_s10 = sshll.u32 %s1476_s16, 4  ;;  %s1398_s10 = int_to_ptr.vmem [resolvable:$false] %s1397_s10 }
  0x73   : > { %1197 = vmatprep.subr.bf16.mxu0 %v1305_v62  ;;  %1219 = vmatprep.subr.bf16.mxu1 %v1305_v62  ;;  %s1399_s11 = scalar_lea.vmem %s1398_s10, 512  ;;  %p1400_p7 = scmp.lt.s32.totalorder %s1993_s26, %s1398_s10 }
  0x74   : > { %p1396_p3 = pneg %p1395_p1  ;;  %p1401_p9 = scmp.lt.s32.totalorder %s1399_s11, %s1393_s25 }
  0x76   : > { %1198 = vmatpush3.bf16.msra.mxu0 %v1305_v62  ;;  %1223 = vmatpush3.bf16.msra.mxu1 %v1305_v62  ;;  %p1402_p12 = por %p1401_p9, %p1400_p7 }
  0x78   : > { %p1403_p2 = pnand %p1402_p12, %p1396_p3 }
  0xeb   : > { %v235_v2 = vpop.trf.xlu0 }
  0xef   : > { %v236_v3 = vpop.trf.xlu0 }
  0xf0   : > { %v251_v4 = vpack.c.bf16 %v236_v3, %v235_v2 }
  0xf2   : > { %v260_v5 = vshrl.u32 %v251_v4, 16  ;;  %v263_v9 = vshll.u32 %v251_v4, 16 }
  0xf3   : > { %v237_v7 = vpop.trf.xlu0 }
  0xf4   : > { %v262_v8 = vrot.slane %v260_v5, 7 }
  0xf6   : > { %v265_v10 = vor.u32 %v263_v9, %v262_v8  ;;  %v1691_v11 = vsel %vm1685_vm2, %v262_v8, 0  ;;  %v1306_v9 = vld [vmem:[#allocation5 + $0x18] sm:$0xff]  }
  0xf7   : > { %v238_v12 = vpop.trf.xlu0  ;;  %v363_v13 = vshrl.u32 %v1691_v11, 16  ;;  %v359_v22 = vshll.u32 %v1691_v11, 16  ;;  %1199 = vmatprep.subr.bf16.mxu0 %v1306_v9  ;;  %1220 = vmatprep.subr.bf16.mxu1 %v1306_v9 }
  0xf8   : > { %v1696_v14 = vsel %vm1685_vm2, 0, %v265_v10  ;;  %v252_v15 = vpack.c.bf16 %v238_v12, %v237_v7  ;;  %1200 = vmatpush3.bf16.msra.mxu0 %v1306_v9  ;;  %1224 = vmatpush3.bf16.msra.mxu1 %v1306_v9 }
  0xf9   : > { %465 = vrot.lane.b32.xlu1 %v363_v13, %s1472_s18  ;;  %v354_v16 = vshll.u32 %v1696_v14, 16  ;;  %v352_v23 = vshrl.u32 %v1696_v14, 16  ;;  %v361_v29 = vrot.slane %v359_v22, 1 }
  0xfa   : > { %v267_v17 = vshrl.u32 %v252_v15, 16  ;;  %v270_v21 = vshll.u32 %v252_v15, 16 }
  0xfb   : > { %v239_v18 = vpop.trf.xlu0  ;;  %v356_v19 = vrot.slane %v354_v16, 1 }
  0xfc   : > { %v269_v20 = vrot.slane %v267_v17, 7 }
  0xfd   : > { %v357_v26 = vor.u32 %v356_v19, %v352_v23 }
  0xfe   : > { %v272_v24 = vor.u32 %v270_v21, %v269_v20  ;;  %v1704_v25 = vsel %vm1685_vm2, %v269_v20, 0 }
  0xff   : > { %512 = vrot.lane.b32.xlu1 %v1704_v25, %s1473_s20  ;;  %v240_v27 = vpop.trf.xlu0  ;;  %v362_v30 = vsel %vm350_vm3, %v357_v26, %v361_v29  ;;  %v377_v33 = vshrl.u32 %v1704_v25, 16  ;;  %v373_v43 = vshll.u32 %v1704_v25, 16 }
 0x100   : > { %v1710_v28 = vsel %vm1685_vm2, 0, %v272_v24  ;;  %v253_v32 = vpack.c.bf16 %v240_v27, %v239_v18 }
 0x101   : > { %510 = vrot.lane.b32.xlu0 %v1710_v28, %s1473_s20  ;;  %v368_v36 = vshll.u32 %v1710_v28, 16  ;;  %v366_v42 = vshrl.u32 %v1710_v28, 16  ;;  %v375_v47 = vrot.slane %v373_v43, 1 }
 0x102   : > { %v274_v38 = vshrl.u32 %v253_v32, 16  ;;  %v277_v48 = vshll.u32 %v253_v32, 16 }
 0x103   : > { %463 = vrot.lane.b32.xlu1 %v362_v30, %s1472_s18  ;;  %v241_v31 = vpop.trf.xlu0  ;;  %v370_v39 = vrot.slane %v368_v36, 1 }
 0x104   : > { %v276_v41 = vrot.slane %v274_v38, 7 }
 0x105   : > { %538 = vrot.lane.b32.xlu0 %v1474_v34, %s1473_s20  ;;  %v371_v45 = vor.u32 %v370_v39, %v366_v42 }
 0x106   : > { %v1730_v44 = vsel %vm1685_vm2, %v276_v41, 0  ;;  %v279_v52 = vor.u32 %v277_v48, %v276_v41 }
 0x107   : > { %469 = vrot.lane.b32.xlu1 %v377_v33, %s1472_s18  ;;  %v242_v37 = vpop.trf.xlu0  ;;  %v376_v49 = vsel %vm350_vm3, %v371_v45, %v375_v47  ;;  %v391_v63 = vshrl.u32 %v1730_v44, 16  ;;  %v387_v10 = vshll.u32 %v1730_v44, 16 }
 0x108   : > { %v1741_v58 = vsel %vm1685_vm2, 0, %v279_v52  ;;  %v254_v60 = vpack.c.bf16 %v242_v37, %v241_v31 }
 0x109   : > { %576 = vrot.lane.b32.xlu0 %v545_v35, %s1475_s17  ;;  %v382_v2 = vshll.u32 %v1741_v58, 16  ;;  %v380_v12 = vshrl.u32 %v1741_v58, 16  ;;  %v389_v20 = vrot.slane %v387_v10, 1 }
 0x10a   : > { %v281_v5 = vshrl.u32 %v254_v60, 16 }
 0x10b   : > { %550 = vrot.lane.b32.xlu1 %v377_v33, %s1475_s17  ;;  %v1724_v40 = vpop.trf.xlu0  ;;  %v384_v13 = vrot.slane %v382_v2, 1  ;;  %v284_v33 = vshll.u32 %v254_v60, 16 }
 0x10c   : > { %v283_v18 = vrot.slane %v281_v5, 7 }
 0x10d   : > { %v385_v24 = vor.u32 %v384_v13, %v380_v12 }
 0x10e   : > { %v1768_v23 = vsel %vm1685_vm2, %v283_v18, 0  ;;  %v286_v43 = vor.u32 %v284_v33, %v283_v18 }
 0x10f   : > { %516 = vrot.lane.b32.xlu1 %v1730_v44, %s1473_s20  ;;  %v1734_v46 = vpop.trf.xlu0  ;;  %v390_v35 = vsel %vm350_vm3, %v385_v24, %v389_v20  ;;  %v405_v51 = vshrl.u32 %v1768_v23, 16 }
 0x110   : > { %v1788_v48 = vsel %vm1685_vm2, 0, %v286_v43 }
 0x113   : > { %467 = vrot.lane.b32.xlu1 %v376_v49, %s1472_s18  ;;  %v245_v50 = vpop.trf.xlu0 }
 0x117   : > { %548 = vrot.lane.b32.xlu1 %v376_v49, %s1475_s17  ;;  %v246_v53 = vpop.trf.xlu0  ;;  %v255_v49 = vpack.c.bf16 %v1734_v46, %v1724_v40  ;;  %v394_v46 = vshrl.u32 %v1788_v48, 16 }
 0x118   : > { %v256_v54 = vpack.c.bf16 %v246_v53, %v245_v50  ;;  %v396_v53 = vshll.u32 %v1788_v48, 16 }
 0x119   : > { %v291_v62 = vshll.u32 %v255_v49, 16 }
 0x11a   : > { %v295_v56 = vshrl.u32 %v256_v54, 16  ;;  %v298_v57 = vshll.u32 %v256_v54, 16  ;;  %v288_v54 = vshrl.u32 %v255_v49, 16  ;;  %v398_v55 = vrot.slane %v396_v53, 1 }
 0x11b   : > { %514 = vrot.lane.b32.xlu1 %v1741_v58, %s1473_s20  ;;  %v247_v59 = vpop.trf.xlu0 }
 0x11c   : > { %v297_v61 = vrot.slane %v295_v56, 7  ;;  %v401_v56 = vshll.u32 %v1768_v23, 16  ;;  %v399_v60 = vor.u32 %v398_v55, %v394_v46 }
 0x11e   : > { %v300_v0 = vor.u32 %v298_v57, %v297_v61  ;;  %v1748_v1 = vsel %vm1685_vm2, %v297_v61, 0  ;;  %v290_v57 = vrot.slane %v288_v54, 7  ;;  %v403_v61 = vrot.slane %v401_v56, 1 }
 0x11f   : > { %554 = vrot.lane.b32.xlu1 %v391_v63, %s1475_s17  ;;  %v248_v3 = vpop.trf.xlu0  ;;  %v433_v4 = vshrl.u32 %v1748_v1, 16 }
 0x120   : > { %v257_v7 = vpack.c.bf16 %v248_v3, %v247_v59  ;;  %v1755_v8 = vsel %vm1685_vm2, 0, %v300_v0  ;;  %v1817_v59 = vsel %vm1685_vm2, %v290_v57, 0  ;;  %v293_v0 = vor.u32 %v291_v62, %v290_v57 }
 0x121   : > { %485 = vrot.lane.b32.xlu0 %v433_v4, %s1472_s18  ;;  %v419_v3 = vshrl.u32 %v1817_v59, 16  ;;  %v424_v12 = vshll.u32 %v1755_v8, 16  ;;  %v422_v13 = vshrl.u32 %v1755_v8, 16 }
 0x122   : > { %v302_v15 = vshrl.u32 %v257_v7, 16  ;;  %v305_v16 = vshll.u32 %v257_v7, 16  ;;  %v1828_v2 = vsel %vm1685_vm2, 0, %v293_v0  ;;  %v415_v7 = vshll.u32 %v1817_v59, 16 }
 0x123   : > { %473 = vrot.lane.b32.xlu1 %v391_v63, %s1472_s18  ;;  %v249_v17 = vpop.trf.xlu0  ;;  %v404_v63 = vsel %vm350_vm3, %v399_v60, %v403_v61 }
 0x124   : > { %v304_v19 = vrot.slane %v302_v15, 7  ;;  %v417_v6 = vrot.slane %v415_v7, 1  ;;  %v426_v15 = vrot.slane %v424_v12, 1 }
 0x125   : > { %566 = vrot.lane.b32.xlu0 %v433_v4, %s1475_s17  ;;  %v410_v4 = vshll.u32 %v1828_v2, 16 }
 0x126   : > { %v307_v21 = vor.u32 %v305_v16, %v304_v19  ;;  %v1764_v22 = vsel %vm1685_vm2, %v304_v19, 0  ;;  %v429_v16 = vshll.u32 %v1748_v1, 16 }
 0x127   : > { %520 = vrot.lane.b32.xlu1 %v1768_v23, %s1473_s20  ;;  %v250_v26 = vpop.trf.xlu0  ;;  %v443_v27 = vshll.u32 %v1764_v22, 16  ;;  %v412_v5 = vrot.slane %v410_v4, 1  ;;  %v447_v24 = vshrl.u32 %v1764_v22, 16 }
 0x128   : > { %v1775_v29 = vsel %vm1685_vm2, 0, %v307_v21  ;;  %v258_v30 = vpack.c.bf16 %v250_v26, %v249_v17  ;;  %v427_v17 = vor.u32 %v426_v15, %v422_v13  ;;  %v431_v18 = vrot.slane %v429_v16, 1 }
 0x129   : > { %530 = vrot.lane.b32.xlu0 %v1775_v29, %s1473_s20  ;;  %v436_v31 = vshrl.u32 %v1775_v29, 16  ;;  %v438_v32 = vshll.u32 %v1775_v29, 16  ;;  %v445_v38 = vrot.slane %v443_v27, 1 }
 0x12a   : > { %v309_v36 = vshrl.u32 %v258_v30, 16  ;;  %v312_v41 = vshll.u32 %v258_v30, 16  ;;  %v432_v19 = vsel %vm350_vm3, %v427_v17, %v431_v18 }
 0x12b   : > { %552 = vrot.lane.b32.xlu1 %v390_v35, %s1475_s17  ;;  %v440_v37 = vrot.slane %v438_v32, 1 }
 0x12c   : > { %v311_v39 = vrot.slane %v309_v36, 7 }
 0x12d   : > { %v441_v42 = vor.u32 %v440_v37, %v436_v31 }
 0x12e   : > { %v314_v47 = vor.u32 %v312_v41, %v311_v39  ;;  %v1797_v50 = vsel %vm1685_vm2, %v311_v39, 0 }
 0x12f   : > { %471 = vrot.lane.b32.xlu1 %v390_v35, %s1472_s18  ;;  %v446_v45 = vsel %vm350_vm3, %v441_v42, %v445_v38  ;;  %v461_v40 = vshrl.u32 %v1797_v50, 16  ;;  %v457_v32 = vshll.u32 %v1797_v50, 16 }
 0x130   : > { %568 = vrot.lane.b32.xlu0 %v446_v45, %s1475_s17  ;;  %v1802_v52 = vsel %vm1685_vm2, 0, %v314_v47 }
 0x131   : > { %v452_v26 = vshll.u32 %v1802_v52, 16  ;;  %v450_v30 = vshrl.u32 %v1802_v52, 16  ;;  %v459_v36 = vrot.slane %v457_v32, 1 }
 0x133   : > { %518 = vrot.lane.b32.xlu1 %v1788_v48, %s1473_s20  ;;  %v454_v31 = vrot.slane %v452_v26, 1 }
 0x134   : > { %487 = vrot.lane.b32.xlu0 %v446_v45, %s1472_s18 }
 0x135   : > { %v455_v35 = vor.u32 %v454_v31, %v450_v30 }
 0x137   : > { %477 = vrot.lane.b32.xlu1 %v405_v51, %s1472_s18  ;;  %v460_v38 = vsel %vm350_vm3, %v455_v35, %v459_v36 }
 0x138   : > { %534 = vrot.lane.b32.xlu0 %v1802_v52, %s1473_s20 }
 0x13b   : > { %558 = vrot.lane.b32.xlu1 %v405_v51, %s1475_s17 }
 0x13c   : > { %493 = vrot.lane.b32.xlu0 %v461_v40, %s1472_s18 }
 0x13f   : > { %524 = vrot.lane.b32.xlu1 %v1817_v59, %s1473_s20 }
 0x140   : > { %578 = vrot.lane.b32.xlu0 %v1474_v34, %s1475_s17  ;;  %v408_v34 = vshrl.u32 %v1828_v2, 16 }
 0x142   : > { %v413_v9 = vor.u32 %v412_v5, %v408_v34 }
 0x143   : > { %475 = vrot.lane.b32.xlu1 %v404_v63, %s1472_s18 }
 0x144   : > { %v418_v10 = vsel %vm350_vm3, %v413_v9, %v417_v6 }
 0x147   : > { %556 = vrot.lane.b32.xlu1 %v404_v63, %s1475_s17 }
 0x14b   : > { %522 = vrot.lane.b32.xlu1 %v1828_v2, %s1473_s20 }
 0x14f   : > { %562 = vrot.lane.b32.xlu1 %v419_v3, %s1475_s17 }
 0x153   : > { %481 = vrot.lane.b32.xlu1 %v419_v3, %s1472_s18 }
 0x157   : > { %528 = vrot.lane.b32.xlu1 %v1748_v1, %s1473_s20 }
 0x15b   : > { %560 = vrot.lane.b32.xlu1 %v418_v10, %s1475_s17 }
 0x15f   : > { %479 = vrot.lane.b32.xlu1 %v418_v10, %s1472_s18 }
 0x163   : > { %526 = vrot.lane.b32.xlu1 %v1755_v8, %s1473_s20 }
 0x167   : > { %532 = vrot.lane.b32.xlu1 %v1764_v22, %s1473_s20 }
 0x16b   : > { %483 = vrot.lane.b32.xlu1 %v432_v19, %s1472_s18  ;;  %v466_v20 = vpop.permute.xlu1 %465 }
 0x16c   : > { %v584_v42 = vsel %vm580_vm4, %v1691_v11, %v466_v20 }
 0x16f   : > { %564 = vrot.lane.b32.xlu1 %v432_v19, %s1475_s17 }
 0x171   : > { %v513_v21 = vpop.permute.xlu1 %512 }
 0x172   : > { %v617_v45 = vsel %vm613_vm5, %v584_v42, %v513_v21 }
 0x173   : > { %570 = vrot.lane.b32.xlu1 %v447_v24, %s1475_s17  ;;  %v511_v47 = vpop.permute.xlu0 %510 }
 0x175   : > { %v464_v27 = vpop.permute.xlu1 %463 }
 0x176   : > { %v582_v43 = vsel %vm580_vm4, %v1696_v14, %v464_v27 }
 0x177   : > { %489 = vrot.lane.b32.xlu1 %v447_v24, %s1472_s18  ;;  %v615_v53 = vsel %vm613_vm5, %v582_v43, %v511_v47 }
 0x179   : > { %v470_v33 = vpop.permute.xlu1 %469 }
 0x17a   : > { %v588_v0 = vsel %vm580_vm4, %v1704_v25, %v470_v33 }
 0x17b   : > { %536 = vrot.lane.b32.xlu1 %v1797_v50, %s1473_s20 }
 0x17d   : > { %v551_v37 = vpop.permute.xlu1 %550 }
 0x17e   : > { %v649_v49 = vsel %vm645_vm6, %v617_v45, %v551_v37 }
 0x17f   : > { %491 = vrot.lane.b32.xlu1 %v460_v38, %s1472_s18  ;;  %v684_v46 = vshll.u32 %v649_v49, 16 }
 0x181   : > { %v517_v39 = vpop.permute.xlu1 %516  ;;  %v686_v14 = vrot.slane %v684_v46, 1 }
 0x182   : > { %v621_v3 = vsel %vm613_vm5, %v588_v0, %v517_v39 }
 0x183   : > { %572 = vrot.lane.b32.xlu1 %v460_v38, %s1475_s17 }
 0x185   : > { %v468_v41 = vpop.permute.xlu1 %467 }
 0x186   : > { %v586_v4 = vsel %vm580_vm4, %v1710_v28, %v468_v41 }
 0x187   : > { %574 = vrot.lane.b32.xlu1 %v461_v40, %s1475_s17 }
 0x189   : > { %v549_v51 = vpop.permute.xlu1 %548 }
 0x18a   : > { %v647_v54 = vsel %vm645_vm6, %v615_v53, %v549_v51 }
 0x18b   : > { %v680_v55 = vshll.u32 %v647_v54, 16  ;;  %v678_v11 = vshrl.u32 %v647_v54, 16 }
 0x18d   : > { %v682_v56 = vrot.slane %v680_v55, 1  ;;  %v515_v57 = vpop.permute.xlu1 %514 }
 0x18e   : > { %v619_v5 = vsel %vm613_vm5, %v586_v4, %v515_v57 }
 0x18f   : > { %v683_v60 = vor.u32 %v682_v56, %v678_v11 }
 0x191   : > { %v555_v61 = vpop.permute.xlu1 %554  ;;  %v687_v62 = vsel %vm350_vm3, %v683_v60, %v686_v14 }
 0x192   : > { %1201 = vmatprep.mubr.msk.bf16.mxu0 %vm790_vm7, %v687_v62  ;;  %v653_v34 = vsel %vm645_vm6, %v621_v3, %v555_v61 }
 0x193   : > { %v694_v6 = vshll.u32 %v653_v34, 16 }
 0x195   : > { %v474_v40 = vpop.permute.xlu1 %473  ;;  %v696_v16 = vrot.slane %v694_v6, 1 }
 0x196   : > { %v592_v24 = vsel %vm580_vm4, %v1730_v44, %v474_v40  ;;  %v1895_v44 = vpop.permute.xlu0 %538 }
 0x199   : > { %v521_v63 = vpop.permute.xlu1 %520 }
 0x19a   : > { %v625_v26 = vsel %vm613_vm5, %v592_v24, %v521_v63  ;;  %v1899_v47 = vpop.permute.xlu0 %576 }
 0x19d   : > { %v553_v7 = vpop.permute.xlu1 %552 }
 0x19e   : > { %v651_v9 = vsel %vm645_vm6, %v619_v5, %v553_v7  ;;  %v486_v54 = vpop.permute.xlu0 %485 }
 0x19f   : > { %v690_v10 = vshll.u32 %v651_v9, 16  ;;  %v688_v12 = vshrl.u32 %v651_v9, 16 }
 0x1a1   : > { %v692_v13 = vrot.slane %v690_v10, 1  ;;  %v472_v15 = vpop.permute.xlu1 %471 }
 0x1a2   : > { %v590_v27 = vsel %vm580_vm4, %v1741_v58, %v472_v15  ;;  %v567_v61 = vpop.permute.xlu0 %566 }
 0x1a3   : > { %v693_v17 = vor.u32 %v692_v13, %v688_v12 }
 0x1a5   : > { %v519_v25 = vpop.permute.xlu1 %518  ;;  %v697_v18 = vsel %vm350_vm3, %v693_v17, %v696_v16 }
 0x1a6   : > { %1202 = vmatmul.mubr.msk.bf16.vlgmr.msra.gmra.mrb[0].mxu0 %vm790_vm7, %v697_v18  ;;  %v623_v31 = vsel %vm613_vm5, %v590_v27, %v519_v25  ;;  %v531_v34 = vpop.permute.xlu0 %530 }
 0x1a9   : > { %v478_v28 = vpop.permute.xlu1 %477 }
 0x1aa   : > { %v596_v51 = vsel %vm580_vm4, %v1768_v23, %v478_v28  ;;  %v569_v5 = vpop.permute.xlu0 %568 }
 0x1ad   : > { %v559_v19 = vpop.permute.xlu1 %558 }
 0x1ae   : > { %v657_v30 = vsel %vm645_vm6, %v625_v26, %v559_v19 }
 0x1af   : > { %v704_v35 = vshll.u32 %v657_v30, 16 }
 0x1b1   : > { %v525_v20 = vpop.permute.xlu1 %524  ;;  %v706_v41 = vrot.slane %v704_v35, 1 }
 0x1b2   : > { %v629_v53 = vsel %vm613_vm5, %v596_v51, %v525_v20 }
 0x1b5   : > { %v476_v21 = vpop.permute.xlu1 %475 }
 0x1b6   : > { %v594_v46 = vsel %vm580_vm4, %v1788_v48, %v476_v21 }
 0x1b9   : > { %v557_v32 = vpop.permute.xlu1 %556 }
 0x1ba   : > { %v655_v33 = vsel %vm645_vm6, %v623_v31, %v557_v32 }
 0x1bb   : > { %v700_v36 = vshll.u32 %v655_v33, 16  ;;  %v698_v37 = vshrl.u32 %v655_v33, 16 }
 0x1bd   : > { %v702_v38 = vrot.slane %v700_v36, 1  ;;  %v523_v39 = vpop.permute.xlu1 %522 }
 0x1be   : > { %v627_v11 = vsel %vm613_vm5, %v594_v46, %v523_v39 }
 0x1bf   : > { %v703_v42 = vor.u32 %v702_v38, %v698_v37 }
 0x1c1   : > { %v563_v43 = vpop.permute.xlu1 %562  ;;  %v707_v45 = vsel %vm350_vm3, %v703_v42, %v706_v41 }
 0x1c2   : > { %1205 = vmatprep.mubr.msk.bf16.mxu0 %vm790_vm7, %v707_v45  ;;  %v661_v55 = vsel %vm645_vm6, %v629_v53, %v563_v43 }
 0x1c3   : > { %v714_v14 = vshll.u32 %v661_v55, 16 }
 0x1c5   : > { %v482_v58 = vpop.permute.xlu1 %481  ;;  %v716_v23 = vrot.slane %v714_v14, 1 }
 0x1c6   : > { %v600_v7 = vsel %vm580_vm4, %v1817_v59, %v482_v58  ;;  %v488_v59 = vpop.permute.xlu0 %487 }
 0x1c7   : > { %v606_v53 = vsel %vm580_vm4, %v1775_v29, %v488_v59 }
 0x1c9   : > { %v529_v49 = vpop.permute.xlu1 %528 }
 0x1ca   : > { %v633_v9 = vsel %vm613_vm5, %v600_v7, %v529_v49  ;;  %v535_v36 = vpop.permute.xlu0 %534  ;;  %v1954_v7 = vld [vmem:[#allocation7] ss:$0 sm:$0xff] }
 0x1cb   : > { %v665_v13 = vsel %vm645_vm6, %v633_v9, %v567_v61  ;;  %v639_v55 = vsel %vm613_vm5, %v606_v53, %v535_v36 }
 0x1cc   : > { %v724_v19 = vshll.u32 %v665_v13, 16 }
 0x1cd   : > { %v561_v56 = vpop.permute.xlu1 %560 }
 0x1ce   : > { %v659_v57 = vsel %vm645_vm6, %v627_v11, %v561_v56  ;;  %v726_v31 = vrot.slane %v724_v19, 1  ;;  %v494_v43 = vpop.permute.xlu0 %493 }
 0x1cf   : > { %v710_v60 = vshll.u32 %v659_v57, 16  ;;  %v708_v62 = vshrl.u32 %v659_v57, 16  ;;  %v612_v49 = vsel %vm580_vm4, %v1797_v50, %v494_v43 }
 0x1d1   : > { %v712_v40 = vrot.slane %v710_v60, 1  ;;  %v480_v63 = vpop.permute.xlu1 %479 }
 0x1d2   : > { %v598_v15 = vsel %vm580_vm4, %v1828_v2, %v480_v63 }
 0x1d3   : > { %v713_v0 = vor.u32 %v712_v40, %v708_v62 }
 0x1d5   : > { %v527_v3 = vpop.permute.xlu1 %526  ;;  %v717_v4 = vsel %vm350_vm3, %v713_v0, %v716_v23 }
 0x1d6   : > { %1206 = vmatmul.mubr.msk.bf16.gmra.mrb[4].mxu0 %vm790_vm7, %v717_v4  ;;  %v631_v17 = vsel %vm613_vm5, %v598_v15, %v527_v3 }
 0x1d9   : > { %v533_v48 = vpop.permute.xlu1 %532 }
 0x1dd   : > { %v484_v6 = vpop.permute.xlu1 %483 }
 0x1de   : > { %v602_v10 = vsel %vm580_vm4, %v1755_v8, %v484_v6  ;;  %v604_v8 = vsel %vm580_vm4, %v1748_v1, %v486_v54  ;;  %v579_v54 = vpop.permute.xlu0 %578  ;;  %v1956_v6 = vld [vmem:[#allocation7 + $0x1] ss:$0 sm:$0xff] }
 0x1df   : > { %v635_v12 = vsel %vm613_vm5, %v602_v10, %v531_v34  ;;  %v637_v21 = vsel %vm613_vm5, %v604_v8, %v533_v48 }
 0x1e0   : > { %v667_v16 = vsel %vm645_vm6, %v635_v12, %v569_v5 }
 0x1e1   : > { %v730_v25 = vshll.u32 %v667_v16, 16  ;;  %v565_v18 = vpop.permute.xlu1 %564  ;;  %v728_v32 = vshrl.u32 %v667_v16, 16 }
 0x1e2   : > { %v663_v28 = vsel %vm645_vm6, %v631_v17, %v565_v18 }
 0x1e3   : > { %v720_v20 = vshll.u32 %v663_v28, 16  ;;  %v732_v24 = vrot.slane %v730_v25, 1  ;;  %v718_v26 = vshrl.u32 %v663_v28, 16 }
 0x1e5   : > { %v722_v27 = vrot.slane %v720_v20, 1  ;;  %v571_v2 = vpop.permute.xlu1 %570  ;;  %v733_v41 = vor.u32 %v732_v24, %v728_v32 }
 0x1e6   : > { %v669_v30 = vsel %vm645_vm6, %v637_v21, %v571_v2 }
 0x1e7   : > { %v723_v33 = vor.u32 %v722_v27, %v718_v26  ;;  %v734_v35 = vshll.u32 %v669_v30, 16 }
 0x1e9   : > { %v736_v37 = vrot.slane %v734_v35, 1  ;;  %v490_v38 = vpop.permute.xlu1 %489  ;;  %v727_v39 = vsel %vm350_vm3, %v723_v33, %v726_v31 }
 0x1ea   : > { %1209 = vmatprep.mubr.msk.bf16.mxu1 %vm790_vm7, %v727_v39  ;;  %v608_v60 = vsel %vm580_vm4, %v1764_v22, %v490_v38 }
 0x1eb   : > { %v737_v1 = vsel %vm350_vm3, %v733_v41, %v736_v37 }
 0x1ec   : > { %1210 = vmatmul.mubr.msk.bf16.vlgmr.msra.gmra.mrb[0].mxu1 %vm790_vm7, %v737_v1 }
 0x1ed   : > { %v537_v42 = vpop.permute.xlu1 %536 }
 0x1ee   : > { %v641_v61 = vsel %vm613_vm5, %v608_v60, %v537_v42 }
 0x1f1   : > { %v492_v45 = vpop.permute.xlu1 %491 }
 0x1f2   : > { %v610_v58 = vsel %vm580_vm4, %v1802_v52, %v492_v45  ;;  %v644_v52 = vsel %vm613_vm5, %v612_v49, %v1895_v44 }
 0x1f3   : > { %v643_v51 = vsel %vm613_vm5, %v610_v58, %v1895_v44  ;;  %v677_v50 = vsel %vm645_vm6, %v644_v52, %v579_v54 }
 0x1f4   : > { %v675_v46 = vsel %vm645_vm6, %v643_v51, %v1899_v47  ;;  %v754_v40 = vshll.u32 %v677_v50, 16 }
 0x1f5   : > { %v750_v11 = vshll.u32 %v675_v46, 16  ;;  %v573_v56 = vpop.permute.xlu1 %572  ;;  %v748_v63 = vshrl.u32 %v675_v46, 16 }
 0x1f6   : > { %v671_v57 = vsel %vm645_vm6, %v639_v55, %v573_v56  ;;  %v756_v48 = vrot.slane %v754_v40, 1 }
 0x1f7   : > { %v740_v14 = vshll.u32 %v671_v57, 16  ;;  %v752_v29 = vrot.slane %v750_v11, 1  ;;  %v738_v0 = vshrl.u32 %v671_v57, 16 }
 0x1f9   : > { %v742_v62 = vrot.slane %v740_v14, 1  ;;  %v575_v47 = vpop.permute.xlu1 %574  ;;  %v753_v44 = vor.u32 %v752_v29, %v748_v63 }
 0x1fa   : > { %v673_v23 = vsel %vm645_vm6, %v641_v61, %v575_v47 }
 0x1fb   : > { %v744_v3 = vshll.u32 %v673_v23, 16  ;;  %v743_v4 = vor.u32 %v742_v62, %v738_v0  ;;  %v757_v22 = vsel %vm350_vm3, %v753_v44, %v756_v48 }
 0x1fd   : > { %v746_v34 = vrot.slane %v744_v3, 1 }
 0x1ff   : > { %v747_v5 = vsel %vm350_vm3, %v743_v4, %v746_v34 }
 0x200   : > { %1213 = vmatprep.mubr.msk.bf16.mxu1 %vm790_vm7, %v747_v5 }
 0x201   : > { %1214 = vmatmul.mubr.msk.bf16.gmra.mrb[4].mxu1 %vm790_vm7, %v757_v22 }
 0x279   : > { %v1203_v9 = vpop.f32.mrb[0].mxu0 }
 0x27a   : > { %v849_v10 = vpop.f32.mrb[1].mxu0  ;;  %v919_v25 = vmul.f32 %v1203_v9, %v1954_v7 }
 0x27b   : > { %v917_v12 = vmul.f32 %v1954_v7, %v849_v10  ;;  %v1204_v13 = vpop.f32.mrb[2].mxu0 }
 0x27c   : > { %v852_v15 = vpop.f32.mrb[3].mxu0  ;;  %v940_v28 = vadd.f32 %v1956_v6, %v919_v25  ;;  %v920_v19 = vmul.f32 %v1204_v13, %v1954_v7 }
 0x27d   : > { %v918_v16 = vmul.f32 %v1954_v7, %v852_v15  ;;  %v938_v17 = vadd.f32 %v1956_v6, %v917_v12 }
 0x27e   : > { %v956_v8 = vmax.f32 %v940_v28, 0.0  ;;  %v941_v21 = vadd.f32 %v1956_v6, %v920_v19 }
 0x27f   : > { %v939_v18 = vadd.f32 %v1956_v6, %v918_v16  ;;  %v954_v59 = vmax.f32 %v938_v17, 0.0 }
 0x280   : > { %v957_v24 = vmax.f32 %v941_v21, 0.0 }
 0x281   : > { %970 = vxpose.xlu1.b32.start [1/16] (narrow) %v954_v59, 32  ;;  %v955_v20 = vmax.f32 %v939_v18, 0.0 }
 0x285   : > { %971 = vxpose.xlu1.b32.cont [2/16] (narrow) %v955_v20, 32 }
 0x289   : > { %972 = vxpose.xlu1.b32.cont [3/16] (narrow) %v956_v8, 32 }
 0x28d   : > { %973 = vxpose.xlu1.b32.cont [4/16] (narrow) %v957_v24, 32 }
 0x2a9   : > { %v1207_v26 = vpop.f32.mrb[4].mxu0 }
 0x2aa   : > { %v865_v27 = vpop.f32.mrb[5].mxu0  ;;  %v923_v35 = vmul.f32 %v1207_v26, %v1954_v7 }
 0x2ab   : > { %v921_v2 = vmul.f32 %v1954_v7, %v865_v27  ;;  %v1208_v30 = vpop.f32.mrb[6].mxu0 }
 0x2ac   : > { %v868_v31 = vpop.f32.mrb[7].mxu0  ;;  %v944_v38 = vadd.f32 %v1956_v6, %v923_v35  ;;  %v924_v39 = vmul.f32 %v1208_v30, %v1954_v7 }
 0x2ad   : > { %v942_v32 = vadd.f32 %v1956_v6, %v921_v2  ;;  %v922_v33 = vmul.f32 %v1954_v7, %v868_v31 }
 0x2ae   : > { %v960_v1 = vmax.f32 %v944_v38, 0.0  ;;  %v945_v42 = vadd.f32 %v1956_v6, %v924_v39 }
 0x2af   : > { %v958_v36 = vmax.f32 %v942_v32, 0.0  ;;  %v943_v37 = vadd.f32 %v1956_v6, %v922_v33 }
 0x2b0   : > { %v961_v43 = vmax.f32 %v945_v42, 0.0 }
 0x2b1   : > { %974 = vxpose.xlu1.b32.cont [5/16] (narrow) %v958_v36, 32  ;;  %v959_v41 = vmax.f32 %v943_v37, 0.0 }
 0x2b5   : > { %975 = vxpose.xlu1.b32.cont [6/16] (narrow) %v959_v41, 32 }
 0x2b9   : > { %976 = vxpose.xlu1.b32.cont [7/16] (narrow) %v960_v1, 32 }
 0x2bd   : > { %977 = vxpose.xlu1.b32.cont [8/16] (narrow) %v961_v43, 32 }
 0x2bf   : > { %v1211_v45 = vpop.f32.mrb[0].mxu1 }
 0x2c0   : > { %v881_v58 = vpop.f32.mrb[1].mxu1  ;;  %v927_v55 = vmul.f32 %v1211_v45, %v1954_v7 }
 0x2c1   : > { %v925_v49 = vmul.f32 %v1954_v7, %v881_v58  ;;  %v1212_v51 = vpop.f32.mrb[2].mxu1 }
 0x2c2   : > { %v884_v53 = vpop.f32.mrb[3].mxu1  ;;  %v948_v52 = vadd.f32 %v1956_v6, %v927_v55  ;;  %v928_v57 = vmul.f32 %v1212_v51, %v1954_v7 }
 0x2c3   : > { %v946_v54 = vadd.f32 %v1956_v6, %v925_v49  ;;  %v926_v46 = vmul.f32 %v1954_v7, %v884_v53 }
 0x2c4   : > { %v964_v14 = vmax.f32 %v948_v52, 0.0  ;;  %v949_v60 = vadd.f32 %v1956_v6, %v928_v57 }
 0x2c5   : > { %v962_v11 = vmax.f32 %v946_v54, 0.0  ;;  %v947_v56 = vadd.f32 %v1956_v6, %v926_v46 }
 0x2c6   : > { %v965_v29 = vmax.f32 %v949_v60, 0.0 }
 0x2c7   : > { %978 = vxpose.xlu1.b32.cont [9/16] (narrow) %v962_v11, 32  ;;  %v963_v50 = vmax.f32 %v947_v56, 0.0 }
 0x2cb   : > { %979 = vxpose.xlu1.b32.cont [10/16] (narrow) %v963_v50, 32 }
 0x2cf   : > { %980 = vxpose.xlu1.b32.cont [11/16] (narrow) %v964_v14, 32 }
 0x2d3   : > { %981 = vxpose.xlu1.b32.cont [12/16] (narrow) %v965_v29, 32 }
 0x2d4   : > { %v1215_v61 = vpop.f32.mrb[4].mxu1 }
 0x2d5   : > { %v897_v62 = vpop.f32.mrb[5].mxu1  ;;  %v931_v3 = vmul.f32 %v1215_v61, %v1954_v7 }
 0x2d6   : > { %v929_v47 = vmul.f32 %v1954_v7, %v897_v62  ;;  %v1216_v40 = vpop.f32.mrb[6].mxu1 }
 0x2d7   : > { %v900_v63 = vpop.f32.mrb[7].mxu1  ;;  %v952_v34 = vadd.f32 %v1956_v6, %v931_v3  ;;  %v932_v48 = vmul.f32 %v1216_v40, %v1954_v7 }
 0x2d8   : > { %v950_v23 = vadd.f32 %v1956_v6, %v929_v47  ;;  %v930_v0 = vmul.f32 %v1954_v7, %v900_v63 }
 0x2d9   : > { %v968_v22 = vmax.f32 %v952_v34, 0.0  ;;  %v953_v9 = vadd.f32 %v1956_v6, %v932_v48 }
 0x2da   : > { %v966_v44 = vmax.f32 %v950_v23, 0.0  ;;  %v951_v4 = vadd.f32 %v1956_v6, %v930_v0 }
 0x2db   : > { %v969_v10 = vmax.f32 %v953_v9, 0.0 }
 0x2dc   : > { %982 = vxpose.xlu1.b32.cont [13/16] (narrow) %v966_v44, 32  ;;  %v967_v5 = vmax.f32 %v951_v4, 0.0 }
 0x2e0   : > { %983 = vxpose.xlu1.b32.cont [14/16] (narrow) %v967_v5, 32 }
 0x2e4   : > { %984 = vxpose.xlu1.b32.cont [15/16] (narrow) %v968_v22, 32 }
 0x2e8   : > { %985 = vxpose.xlu1.b32.end [16/16] (narrow) %v969_v10, 32 }
 0x32c   : > { %v986_v12 = vpop.trf.xlu1 }
 0x330   : > { %v987_v13 = vpop.trf.xlu1 }
 0x331   : > { %v1173_v15 = vpack.c.bf16 %v987_v13, %v986_v12 }
 0x333   : > { %1174 = vst [vmem:[%s215_s24] sm:$0xff] %v1173_v15  }
 0x334   : > { %v988_v16 = vpop.trf.xlu1 }
 0x338   : > { %v989_v7 = vpop.trf.xlu1 }
 0x339   : > { %v1178_v6 = vpack.c.bf16 %v989_v7, %v988_v16 }
 0x33b   : > { %1180 = vst [vmem:[%s215_s24 + $0x8] sm:$0xff] %v1178_v6  }
 0x33c   : > { %1406 = shalt.err (!%p1403_p2)
}
 0x33d   : > { %s1407_s21 = scalar_lea.hbm %s1998_s8, 256  ;;  %s1411_s30 = scalar_lea.hbm %s2045_s3, 512 }
 0x33e   : > { %p1408_p13 = scmp.ne.s32.totalorder %s1998_s8, %s1407_s21  ;;  %p1412_p4 = scmp.lt.u32.totalorder %s1998_s8, %s2045_s3 }
 0x33f   : > { %p1413_p5 = scmp.lt.u32.totalorder %s1411_s30, %s1407_s21  ;;  %p1415_p11 = scmp.lt.u32.totalorder %s1407_s21, %s1998_s8 }
 0x340   : > { %p1409_p6 = pnand %p1408_p13, %p2061_p0 }
 0x341   : > { %p1414_p8 = por %p1413_p5, %p1412_p4 }
 0x342   : > { %p1410_p10 = pneg %p1409_p6 }
 0x343   : > { %p1416_p1 = por %p1415_p11, %p1414_p8 }
 0x345   : > { %p1417_p3 = pnand %p1416_p1, %p1410_p10 }
 0x347   : > { %1420 = shalt.err (!%p1417_p3)
}
 0x348   : > { %s1477_s17 = smov 64   ;;  %s1478_s24 = smov 4  }
 0x349   : > { %1235 = dma.vmem_to_hbm [thread:$0]  (%p2061_p0), %s1993_s26, 256, %s1998_s8, %s1023_s9, %s1477_s17, %s1477_s17, %s1478_s24  }
 0x34a PF: > { %s1051_s27 = sand.u32 1, %s1451_s12   ;;  %p2062_p7 = scmp.ne.s32.totalorder %s2050_s19, 0 }
 0x34b   : > { %p2063_p9 = scmp.ge.s32.totalorder %s1463_s15, 2  ;;  %s1052_s23 = scalar_lea.sflag [#allocation4], %s1051_s27 }
 0x34d   : > { %p1249_p12 = pnand %p2063_p9, %p2062_p7 }
 0x34f   : > { %1446 = dma.done.wait (!%p1249_p12), %s1052_s23, 256  }
 0x350   : > { %1448 = vsyncadd (!%p1249_p12), %s1052_s23, 4294967040  ;;  %p17_p2 = scmp.ge.s32.totalorder %s1609_s4, 4   ;;  %s2064_s12 = smov %s1455_s13 }
 0x351   : > { %s2065_s13 = smov %s1459_s14  ;;  %s2066_s14 = smov %s1625_s7 }
 0x352   : > { %s2067_s15 = smov %s1609_s4  ;;  %19 = sbr.rel (!%p17_p2) target bundleno = 6 (0x6), region = 85 }
 0x359   :  { %1057 = vsyncpa [#allocation3], 1 }
 0x35a   :  { %1059 = vsyncpa [#allocation3 + $0x1], 1 }
 0x35b   :  { %1060 = vsyncpa [#allocation6], 1 }
 0x35c   :  { %1061 = vsyncpa [#allocation4], 1 }
 0x35d   :  { %1063 = vsyncpa [#allocation4 + $0x1], 1 }

// kernel: res_decoder_block_forward.3
= control target key start
LH: loop header
LB: loop body
LE: loop exit
PB: predicated region body
PF: predicated region fallthrough
CT: control target
= control target key end

     0   :  { %s11357_s0 = inlined_call_operand.hbm [shape: bf16[2,8,512], index: 0, kind: input, shape index: {}]   ;;  %s11358_s1 = inlined_call_operand.hbm [shape: f32[2,8,512], index: 1, kind: input, shape index: {}]   ;;  %s11359_s2 = inlined_call_operand.hbm [shape: f32[5,8], index: 2, kind: input, shape index: {}]   ;;  %s11360_s3 = inlined_call_operand.hbm [shape: bf16[16,8], index: 3, kind: input, shape index: {}]   ;;  %s11361_s4 = inlined_call_operand.hbm [shape: bf16[144,8], index: 4, kind: input, shape index: {}]   ;;  %s11362_s5 = inlined_call_operand.hbm [shape: bf16[72,8], index: 5, kind: input, shape index: {}]   ;;  %s11363_s6 = inlined_call_operand.hbm [shape: f32[2,8,512], index: 6, kind: output, shape index: {}]  }
   0x1   :  { %11633 = sst [smem:[#allocation205_spill]] %s11357_s0 }
   0x2   :  { %11634 = sst [smem:[#allocation206_spill]] %s11359_s2 }
   0x3   :  { %11 = vsyncpa [#allocation3], 0 }
   0x4   :  { %13 = vsyncpa [#allocation3 + $0x1], 0 }
   0x5   :  { %14 = vsyncpa [#allocation6], 0 }
   0x6   :  { %16 = vsyncpa [#allocation6 + $0x1], 0 }
   0x7   :  { %17 = vsyncpa [#allocation9], 0 }
   0x8   :  { %18 = vsyncpa [#allocation12], 0 }
   0x9   :  { %19 = vsyncpa [#allocation4], 0 }
   0xa   :  { %21 = vsyncpa [#allocation4 + $0x1], 0  ;;  %s6908_s21 = smov 0   ;;  %s6910_s22 = smov 0  }
   0xb   :  { %s6912_s23 = smov 0   ;;  %s6914_s24 = smov 0  }
   0xc LB: > { %s6852_s25 = smov [#allocation7]   ;;  %s6929_s27 = sadd.s32 4294967295, %s6850_s24   ;;  %s6850_s24 = sphi %s6914_s24, %s12399_s24   ;;  %s6846_s23 = sphi %s6912_s23, %s12398_s23   ;;  %s6842_s22 = sphi %s6910_s22, %s12397_s22   ;;  %s6838_s21 = sphi %s6908_s21, %s12396_s21  }
   0xd   : > { %s207_s26 = sshll.u32 %s6852_s25, 4  ;;  %p5946_p0 = scmp.ge.s32.totalorder %s6850_s24, 1  ;;  %s208_s26 = int_to_ptr.vmem [resolvable:$true] %s207_s26 }
   0xe   : > { %p11364_p1 = scmp.eq.s32.totalorder %s6929_s27, 0  ;;  %p194_p2 = scmp.lt.s32.totalorder %s6850_s24, 3 }
   0xf   : > { %s6853_s29 = smov [#allocation8]   ;;  %s6854_s8 = smov [#allocation10]  }
  0x10   : > { %p6934_p3 = pnand %p5946_p0, %p194_p2  ;;  %s217_s30 = sshll.u32 %s6853_s29, 4  ;;  %s6941_s30 = int_to_ptr.vmem [resolvable:$true] %s217_s30 }
  0x11   : > { %s230_s9 = sshll.u32 %s6854_s8, 4  ;;  %s11637_s2 = sld [smem:[#allocation206_spill]]  ;;  %s6949_s9 = int_to_ptr.vmem [resolvable:$true] %s230_s9 }
  0x12   : > { %s11635_s28 = scalar_select %p6934_p3, 1, 0 }
  0x13   : > { %p6323_p5 = pneg %p6934_p3 }
  0x15   : > { %p6945_p6 = pnand %p6323_p5, %p11364_p1 }
  0x17   : > { %s6596_s12 = scalar_lea.hbm %s11637_s2, 128  ;;  %p6959_p8 = pneg %p6945_p6 }
  0x18   : > { %p6597_p7 = scmp.ne.s32.totalorder %s11637_s2, %s6596_s12  ;;  %p6603_p11 = scmp.lt.u32.totalorder %s6596_s12, %s11637_s2 }
  0x1a   : > { %p6599_p9 = pnand %p6959_p8, %p6597_p7 }
  0x1c   : > { %p6600_p10 = pneg %p6599_p9 }
  0x1e   : > { %p6605_p12 = pnand %p6603_p11, %p6600_p10 }
  0x20   : > { %6608 = shalt.err (!%p6605_p12)
}
  0x21   : > { %s6609_s18 = scalar_lea.vmem %s208_s26, 128  ;;  %p6617_p5 = scmp.lt.s32.totalorder %s208_s26, %s208_s26 }
  0x22   : > { %p6610_p13 = scmp.ne.s32.totalorder %s208_s26, %s6609_s18  ;;  %p6618_p4 = scmp.lt.s32.totalorder %s6609_s18, %s6609_s18 }
  0x24   : > { %p6612_p0 = pnand %p6610_p13, %p6959_p8  ;;  %p6619_p1 = por %p6618_p4, %p6617_p5 }
  0x26   : > { %p6613_p2 = pneg %p6612_p0 }
  0x28   : > { %p6620_p3 = pnand %p6619_p1, %p6613_p2 }
  0x2a   : > { %6623 = shalt.err (!%p6620_p3)
}
  0x2b   : > { %6326 = dma.hbm_to_vmem [thread:$0]  (!%p6945_p6), %s11637_s2, 128, %s208_s26, [#allocation6]  }
  0x2c   : > { %s6624_s8 = scalar_lea.hbm %s11360_s3, 128 }
  0x2d   : > { %p6625_p7 = scmp.ne.s32.totalorder %s11360_s3, %s6624_s8  ;;  %p6631_p1 = scmp.lt.u32.totalorder %s6624_s8, %s11360_s3 }
  0x2f   : > { %p6627_p9 = pnand %p6625_p7, %p6959_p8 }
  0x31   : > { %p6628_p4 = pneg %p6627_p9 }
  0x33   : > { %p6633_p3 = pnand %p6631_p1, %p6628_p4 }
  0x35   : > { %6636 = shalt.err (!%p6633_p3)
}
  0x36   : > { %s6637_s26 = scalar_lea.vmem %s6941_s30, 128  ;;  %p6645_p13 = scmp.lt.s32.totalorder %s6941_s30, %s6941_s30 }
  0x37   : > { %p6638_p10 = scmp.ne.s32.totalorder %s6941_s30, %s6637_s26  ;;  %p6646_p0 = scmp.lt.s32.totalorder %s6637_s26, %s6637_s26 }
  0x39   : > { %p6640_p11 = pnand %p6638_p10, %p6959_p8  ;;  %p6647_p2 = por %p6646_p0, %p6645_p13 }
  0x3b   : > { %p6641_p12 = pneg %p6640_p11 }
  0x3d   : > { %p6648_p5 = pnand %p6647_p2, %p6641_p12 }
  0x3f   : > { %6651 = shalt.err (!%p6648_p5)
}
  0x40   : > { %s6855_s14 = smov 64   ;;  %s6856_s16 = smov 4  }
  0x41   : > { %6329 = dma.hbm_to_vmem [thread:$0]  (!%p6945_p6), %s11360_s3, 128, %s6941_s30, [#allocation9], %s6855_s14, %s6855_s14, %s6856_s16  }
  0x42   : > { %s6652_s25 = scalar_lea.hbm %s11361_s4, 1152 }
  0x43   : > { %p6653_p7 = scmp.ne.s32.totalorder %s11361_s4, %s6652_s25  ;;  %p6659_p1 = scmp.lt.u32.totalorder %s6652_s25, %s11361_s4 }
  0x45   : > { %p6655_p9 = pnand %p6653_p7, %p6959_p8 }
  0x47   : > { %p6656_p4 = pneg %p6655_p9 }
  0x49   : > { %p6661_p3 = pnand %p6659_p1, %p6656_p4 }
  0x4b   : > { %6664 = shalt.err (!%p6661_p3)
}
  0x4c   : > { %s6665_s30 = scalar_lea.vmem %s6949_s9, 1152  ;;  %p6673_p13 = scmp.lt.s32.totalorder %s6949_s9, %s6949_s9 }
  0x4d   : > { %p6666_p10 = scmp.ne.s32.totalorder %s6949_s9, %s6665_s30  ;;  %p6674_p0 = scmp.lt.s32.totalorder %s6665_s30, %s6665_s30 }
  0x4f   : > { %p6668_p11 = pnand %p6666_p10, %p6959_p8  ;;  %p6675_p2 = por %p6674_p0, %p6673_p13 }
  0x51   : > { %p6669_p12 = pneg %p6668_p11 }
  0x53   : > { %p6676_p5 = pnand %p6675_p2, %p6669_p12 }
  0x55   : > { %6679 = shalt.err (!%p6676_p5)
}
  0x56   : > { %6332 = dma.hbm_to_vmem [thread:$0]  (!%p6945_p6), %s11361_s4, 1152, %s6949_s9, [#allocation9], %s6855_s14, %s6855_s14, %s6856_s16  }
  0x57   : > { %s6857_s26 = smov [#allocation11]   ;;  %s6680_s20 = scalar_lea.hbm %s11362_s5, 576 }
  0x58   : > { %s243_s17 = sshll.u32 %s6857_s26, 4  ;;  %p6681_p7 = scmp.ne.s32.totalorder %s11362_s5, %s6680_s20  ;;  %s244_s17 = int_to_ptr.vmem [resolvable:$true] %s243_s17 }
  0x59   : > { %p6687_p1 = scmp.lt.u32.totalorder %s6680_s20, %s11362_s5 }
  0x5a   : > { %p6683_p9 = pnand %p6681_p7, %p6959_p8 }
  0x5c   : > { %p6684_p4 = pneg %p6683_p9 }
  0x5e   : > { %p6689_p3 = pnand %p6687_p1, %p6684_p4 }
  0x60   : > { %6692 = shalt.err (!%p6689_p3)
}
  0x61   : > { %s6693_s9 = scalar_lea.vmem %s244_s17, 576  ;;  %p6701_p13 = scmp.lt.s32.totalorder %s244_s17, %s244_s17 }
  0x62   : > { %p6694_p10 = scmp.ne.s32.totalorder %s244_s17, %s6693_s9  ;;  %p6702_p0 = scmp.lt.s32.totalorder %s6693_s9, %s6693_s9 }
  0x64   : > { %p6696_p11 = pnand %p6694_p10, %p6959_p8  ;;  %p6703_p2 = por %p6702_p0, %p6701_p13 }
  0x66   : > { %p6697_p12 = pneg %p6696_p11 }
  0x68   : > { %p6704_p5 = pnand %p6703_p2, %p6697_p12 }
  0x6a   : > { %6707 = shalt.err (!%p6704_p5)
}
  0x6b   : > { %6335 = dma.hbm_to_vmem [thread:$0]  (!%p6945_p6), %s11362_s5, 576, %s244_s17, [#allocation12], %s6855_s14, %s6855_s14, %s6856_s16  }
  0x6c   : > { %s5945_s7 = sadd.s32 4294967294, %s6850_s24   ;;  %s7050_s15 = sadd.s32 1, %s6850_s24  }
  0x6d   : > { %s31_s12 = ssub.s32 %s6850_s24, %s7050_s15  ;;  %s34_s13 = sadd.s32 1, %s6846_s23 }
  0x6e   : > { %p32_p8 = scmp.eq.s32.totalorder %s31_s12, 0  ;;  %p41_p7 = scmp.ne.s32.totalorder %s6846_s23, %s6842_s22 }
  0x6f   : > { %p42_p9 = scmp.eq.s32.totalorder %s6850_s24, 0  ;;  %p47_p4 = scmp.ne.s32.totalorder %s6842_s22, %s6838_s21 }
  0x70   : > { %s7061_s26 = scalar_select %p32_p8, %s6846_s23, %s34_s13  }
  0x71   : > { %p7063_p1 = por %p42_p9, %p41_p7  ;;  %p11640_p3 = scmp.eq.s32.totalorder %s6929_s27, 0 }
  0x72   : > { %p181_p10 = scmp.eq.s32.totalorder %s6929_s27, 1  ;;  %p187_p11 = scmp.eq.s32.totalorder %s5945_s7, 1 }
  0x73   : > { %p7069_p6 = por %p11640_p3, %p47_p4  ;;  %p6351_p12 = scmp.lt.s32.totalorder %s6850_s24, 2 }
  0x74   : > { %s7076_s16 = sand.u32 1, %s6846_s23   ;;  %p7078_p13 = por %p181_p10, %p41_p7 }
  0x75   : > { %s11641_s14 = scalar_select %p7069_p6, 1, 0 }
  0x76   : > { %s11642_s17 = scalar_select %p7078_p13, 1, 0 }
  0x77   : > { %p7082_p0 = por %p187_p11, %p47_p4  ;;  %s5952_s20 = sshll.u32 %s7076_s16, 4 }
  0x78   : > { %s6087_s25 = sshll.u32 %s6850_s24, 8  ;;  %s11644_s0 = sld [smem:[#allocation205_spill]] }
  0x79   : > { %s11643_s19 = scalar_select %p7082_p0, 1, 0 }
  0x7a   : > { %s261_s9 = scalar_lea.vmem [#allocation2], %s5952_s20  ;;  %p7097_p2 = pnand %p6351_p12, %p7063_p1 }
  0x7b   : > { %s269_s11 = sshll.u32 %s261_s9, 4  ;;  %s5955_s12 = sshll.u32 %s7076_s16, 5  ;;  %s7093_s11 = int_to_ptr.vmem [resolvable:$true] %s269_s11 }
  0x7c   : > { %s258_s13 = scalar_lea.sflag [#allocation3], %s7076_s16  ;;  %p6710_p8 = pneg %p7097_p2 }
  0x7e   : > { %s7091_s10 = scalar_lea.hbm %s11644_s0, %s6087_s25  ;;  %s6713_s18 = scalar_lea.hbm %s11644_s0, 512 }
  0x7f   : > { %s6708_s25 = scalar_lea.hbm %s7091_s10, 256  ;;  %p6714_p4 = scmp.lt.u32.totalorder %s7091_s10, %s11644_s0 }
  0x80   : > { %p6709_p5 = scmp.ne.s32.totalorder %s7091_s10, %s6708_s25  ;;  %p6715_p1 = scmp.lt.u32.totalorder %s6713_s18, %s6708_s25 }
  0x81   : > { %p6717_p10 = scmp.lt.u32.totalorder %s6708_s25, %s7091_s10 }
  0x82   : > { %p6711_p7 = pnand %p6710_p8, %p6709_p5  ;;  %p6716_p3 = por %p6715_p1, %p6714_p4 }
  0x84   : > { %p6712_p9 = pneg %p6711_p7  ;;  %p6718_p11 = por %p6717_p10, %p6716_p3 }
  0x86   : > { %p6719_p12 = pnand %p6718_p11, %p6712_p9 }
  0x88   : > { %6722 = shalt.err (!%p6719_p12)
}
  0x89   : > { %s6723_s7 = scalar_lea.vmem %s7093_s11, 256  ;;  %s6858_s20 = smov [#allocation2]  }
  0x8a   : > { %p6724_p5 = scmp.ne.s32.totalorder %s7093_s11, %s6723_s7  ;;  %s6728_s29 = sshll.u32 %s6858_s20, 4  ;;  %s6729_s29 = int_to_ptr.vmem [resolvable:$false] %s6728_s29 }
  0x8b   : > { %s6730_s8 = scalar_lea.vmem %s6729_s29, 512  ;;  %p6731_p13 = scmp.lt.s32.totalorder %s7093_s11, %s6729_s29 }
  0x8c   : > { %p6726_p7 = pnand %p6724_p5, %p6710_p8  ;;  %p6732_p4 = scmp.lt.s32.totalorder %s6730_s8, %s6723_s7 }
  0x8e   : > { %p6727_p0 = pneg %p6726_p7  ;;  %p6733_p1 = por %p6732_p4, %p6731_p13 }
  0x90   : > { %p6734_p3 = pnand %p6733_p1, %p6727_p0 }
  0x92   : > { %6737 = shalt.err (!%p6734_p3)
}
  0x93   : > { %6339 = dma.hbm_to_vmem [thread:$0]  (!%p7097_p2), %s7091_s10, 256, %s7093_s11, %s258_s13  }
  0x94   : > { %s6088_s25 = sshll.u32 %s6850_s24, 9  ;;  %s280_s7 = scalar_lea.vmem [#allocation5], %s5955_s12 }
  0x95   : > { %s7133_s20 = scalar_lea.hbm %s11358_s1, %s6088_s25  ;;  %s288_s29 = sshll.u32 %s280_s7, 4  ;;  %s289_s29 = int_to_ptr.vmem [resolvable:$true] %s288_s29 }
  0x96   : > { %s11646_s8 = sand.u32 1, %s6850_s24   ;;  %s6738_s2 = scalar_lea.hbm %s7133_s20, 512 }
  0x97   : > { %s277_s0 = scalar_lea.sflag [#allocation6], %s11646_s8  ;;  %p6739_p13 = scmp.ne.s32.totalorder %s7133_s20, %s6738_s2 }
  0x98   : > { %s6743_s13 = scalar_lea.hbm %s11358_s1, 1024  ;;  %p6744_p10 = scmp.lt.u32.totalorder %s7133_s20, %s11358_s1 }
  0x99   : > { %p6741_p0 = pnand %p6739_p13, %p6710_p8  ;;  %p6745_p11 = scmp.lt.u32.totalorder %s6743_s13, %s6738_s2 }
  0x9a   : > { %p6747_p5 = scmp.lt.u32.totalorder %s6738_s2, %s7133_s20 }
  0x9b   : > { %p6742_p9 = pneg %p6741_p0  ;;  %p6746_p12 = por %p6745_p11, %p6744_p10 }
  0x9d   : > { %p6748_p7 = por %p6747_p5, %p6746_p12 }
  0x9f   : > { %p6749_p4 = pnand %p6748_p7, %p6742_p9 }
  0xa1   : > { %6752 = shalt.err (!%p6749_p4)
}
  0xa2   : > { %s6753_s12 = scalar_lea.vmem %s289_s29, 512  ;;  %s6859_s18 = smov [#allocation5]  }
  0xa3   : > { %p6754_p1 = scmp.ne.s32.totalorder %s289_s29, %s6753_s12  ;;  %s6758_s9 = sshll.u32 %s6859_s18, 4  ;;  %s6759_s9 = int_to_ptr.vmem [resolvable:$false] %s6758_s9 }
  0xa4   : > { %s6760_s7 = scalar_lea.vmem %s6759_s9, 1024  ;;  %p6761_p0 = scmp.lt.s32.totalorder %s289_s29, %s6759_s9 }
  0xa5   : > { %p6756_p3 = pnand %p6754_p1, %p6710_p8  ;;  %p6762_p6 = scmp.lt.s32.totalorder %s6760_s7, %s6753_s12 }
  0xa7   : > { %p6757_p13 = pneg %p6756_p3  ;;  %p6763_p10 = por %p6762_p6, %p6761_p0 }
  0xa9   : > { %p6764_p11 = pnand %p6763_p10, %p6757_p13 }
  0xab   : > { %6767 = shalt.err (!%p6764_p11)
}
  0xac   : > { %6342 = dma.hbm_to_vmem [thread:$0]  (!%p7097_p2), %s7133_s20, 512, %s289_s29, %s277_s0  }
  0xad   : > { %p11647_p9 = scmp.ne.s32.totalorder %s11635_s28, 0 }
  0xaf   : > { %297 = sbr.rel (%p11647_p9) target bundleno = 1961 (0x7a9), region = 44 }
  0xb6   : > { %s7161_s2 = sand.u32 1, %s6842_s22   ;;  %p11648_p8 = scmp.ne.s32.totalorder %s11641_s14, 0 }
  0xb7   : > { %s5959_s8 = sshll.u32 %s7161_s2, 4  ;;  %s300_s10 = scalar_lea.sflag [#allocation3], %s7161_s2 }
  0xb8   : > { %s303_s11 = scalar_lea.vmem [#allocation2], %s5959_s8 }
  0xb9   : > { %6813 = dma.done.wait (%p11648_p8), %s300_s10, 256  }
  0xba   : > { %6815 = vsyncadd (%p11648_p8), %s300_s10, 4294967040  ;;  %s308_s0 = sand.u32 1, %s6929_s27   ;;  %s5960_s28 = sshll.u32 %s7161_s2, 5 }
  0xbb   : > { %s309_s30 = scalar_lea.sflag [#allocation6], %s308_s0  ;;  %s312_s20 = scalar_lea.vmem [#allocation5], %s5960_s28 }
  0xbc   : > { %6817 = dma.done.wait (%p11648_p8), %s309_s30, 512  }
  0xbd   : > { %6819 = vsyncadd (%p11648_p8), %s309_s30, 4294966784  ;;  %p11649_p6 = scmp.eq.s32.totalorder %s6929_s27, 0 }
  0xbf   : > { %6821 = dma.done.wait (%p11649_p6), [#allocation6], 128   ;;  %p11650_p2 = pmov %p11649_p6 }
  0xc1   : > { %6823 = vsyncadd (%p11650_p2), [#allocation6], 4294967168  ;;  %p11651_p12 = pmov %p11650_p2 }
  0xc2   : > { %p11652_p5 = pmov %p11650_p2 }
  0xc3   : > { %6825 = dma.done.wait (%p11651_p12), [#allocation9], 1280  }
  0xc4   : > { %6827 = vsyncadd (%p11652_p5), [#allocation9], 4294966016  ;;  %p11653_p7 = pmov %p11650_p2 }
  0xc5   : > { %p11654_p4 = pmov %p11650_p2 }
  0xc6   : > { %6829 = dma.done.wait (%p11653_p7), [#allocation12], 576  }
  0xc7   : > { %6831 = vsyncadd (%p11654_p4), [#allocation12], 4294966720  ;;  %v364_v0 = vld [vmem:[%s303_s11 + $0x8] sm:$0xff]  ;;  %v363_v1 = vld [vmem:[%s303_s11] sm:$0xff]  ;;  %v11368_v15 = vmov 0   ;;  %s6861_s14 = smov 16  }
  0xc8   : > { %v371_v2 = vld [vmem:[%s312_s20 + $0x10] sm:$0xff]  ;;  %v367_v3 = vunpack.c.l.bf16 %v364_v0  ;;  %v368_v4 = vunpack.c.h.bf16 %v364_v0  ;;  %v365_v5 = vunpack.c.l.bf16 %v363_v1  ;;  %v366_v6 = vunpack.c.h.bf16 %v363_v1  ;;  %v372_v7 = vld [vmem:[%s312_s20 + $0x18] sm:$0xff]  ;;  %v369_v8 = vld [vmem:[%s312_s20] sm:$0xff]  ;;  %2750 = vmatprep.subr.bf16.mxu1 %v11368_v15  ;;  %s6862_s29 = smov 32   ;;  %s6863_s13 = smov 48  }
  0xc9   : > { %v370_v9 = vld [vmem:[%s312_s20 + $0x8] sm:$0xff]  ;;  %v6494_v12 = vpack.i.bf16 %v372_v7, %v371_v2  ;;  %v7191_v16 = vrot.slane %v11368_v15, 1  ;;  %vm546_vm0 = vcmask 130048   ;;  %vm963_vm1 = vsmask.f32 256  ;;  %s6864_s16 = smov 64  }
  0xca   : > { %v6492_v10 = vpack.i.bf16 %v368_v4, %v367_v3  ;;  %v6408_v11 = vpack.i.bf16 %v366_v6, %v365_v5  ;;  %v6410_v13 = vpack.i.bf16 %v370_v9, %v369_v8  ;;  %v6576_v14 = vld [vmem:[#allocation8] sm:$0xff]   ;;  %vm1204_vm2 = vcmask 1040384   ;;  %s6865_s25 = smov 96   ;;  %s6866_s12 = smov 80  }
  0xcb   : > { %6160 = vmatprep.subr.bf16.mxu0 %v6576_v14  ;;  %11655 = vst [vmem:[#allocation20_spill] sm:$0xff] %v7191_v16  ;;  %vm7229_vm3 = vmand %vm1204_vm2, %vm963_vm1  ;;  %v11658_v63 = vmov 0  ;;  %vm1238_vm4 = vsmask.f32 7424  ;;  %vm1640_vm5 = vcmask 1046528   ;;  %s6867_s18 = smov 112  }
  0xcc   : > { %6493 = vxpose.xlu1.b32.start [1/2] (short) %v6492_v10, 128  ;;  %6409 = vxpose.xlu0.b32.start [1/2] (short) %v6408_v11, 128  ;;  %v11659_v63 = vsel %vm7229_vm3, 4294967295, %v11658_v63  ;;  %vm2185_vm6 = vcmask 261120   ;;  %vm2248_vm7 = vcmask 392192   ;;  %vm2378_vm8 = vcmask 654336   ;;  %s6868_s9 = smov 8   ;;  %s6869_s7 = smov 24  }
  0xcd   : > { %6161 = vmatpush3.bf16.msra.mxu0 %v6576_v14  ;;  %11660 = vst [vmem:[#allocation23_spill] sm:$0xff] %v11659_v63  ;;  %vm2313_vm9 = vcmask 523264   ;;  %vm2443_vm10 = vcmask 785408   ;;  %vm2507_vm11 = vcmask 916480   ;;  %vm5110_vm12 = vcmask 1043456   ;;  %s6870_s8 = smov 40  }
  0xce   : > { %s6871_s10 = smov 56   ;;  %vm4509_vm13 = vcmask 64512   ;;  %vm4634_vm14 = vcmask 195584   ;;  %vm4763_vm15 = vcmask 326656   ;;  %vm5045_vm2 = vcmask 588800   ;;  %s11230_s11 = scalar_lea.vmem [#allocation13], %s5960_s28 }
  0xcf   : > { %s5814_s0 = sshll.u32 %s11230_s11, 4  ;;  %s6089_s28 = sshll.u32 %s6929_s27, 9  ;;  %s11309_s0 = int_to_ptr.vmem [resolvable:$true] %s5814_s0 }
  0xd0   : > { %6495 = vxpose.xlu1.b32.end [2/2] (short) %v6494_v12, 128  ;;  %6411 = vxpose.xlu0.b32.end [2/2] (short) %v6410_v13, 128  ;;  %p12393_p3 = scmp.ne.s32.totalorder %s11642_s17, 0 }
 0x131   : > { %1547 = vrot.lane.b32.xlu0 %v7191_v16, %s6861_s14 }
 0x14c   : > { %v6496_v17 = vpop.trf.xlu1  ;;  %v6412_v18 = vpop.trf.xlu0 }
 0x14d   : > { %v6500_v19 = vunpack.i.h.bf16 %v6496_v17  ;;  %v6497_v20 = vunpack.i.l.bf16 %v6496_v17  ;;  %v6413_v23 = vunpack.i.l.bf16 %v6412_v18  ;;  %v6416_v28 = vunpack.i.h.bf16 %v6412_v18 }
 0x150   : > { %v6501_v21 = vpop.trf.xlu1  ;;  %v6417_v22 = vpop.trf.xlu0 }
 0x151   : > { %v6505_v24 = vunpack.i.h.bf16 %v6501_v21  ;;  %v6502_v25 = vunpack.i.l.bf16 %v6501_v21  ;;  %v6421_v26 = vunpack.i.h.bf16 %v6417_v22  ;;  %v6418_v27 = vunpack.i.l.bf16 %v6417_v22 }
 0x153   : > { %v7195_v29 = vpack.c.bf16 %v6502_v25, %v6497_v20  ;;  %v7197_v30 = vpack.c.bf16 %v6505_v24, %v6500_v19  ;;  %v501_v33 = vpack.c.bf16 %v6418_v27, %v6413_v23  ;;  %v7201_v36 = vpack.c.bf16 %v6421_v26, %v6416_v28 }
 0x154   : > { %v6506_v31 = vpop.trf.xlu1  ;;  %v6422_v32 = vpop.trf.xlu0 }
 0x155   : > { %11656 = vst [vmem:[#allocation21_spill] sm:$0xff] %v7197_v30  ;;  %v1068_v34 = vshrl.u32 %v7195_v29, 16  ;;  %v1120_v35 = vshrl.u32 %v7197_v30, 16  ;;  %6162 = vmatprep.mubr.msk.bf16.mxu0 %vm546_vm0, %v501_v33  ;;  %v1071_v37 = vshll.u32 %v7195_v29, 16  ;;  %v1123_v38 = vshll.u32 %v7197_v30, 16 }
 0x156   : > { %v6510_v39 = vunpack.i.h.bf16 %v6506_v31  ;;  %v1016_v44 = vshrl.u32 %v7201_v36, 16  ;;  %v964_v45 = vshrl.u32 %v501_v33, 16  ;;  %v6507_v46 = vunpack.i.l.bf16 %v6506_v31 }
 0x157   : > { %v7206_v42 = vrot.slane %v1068_v34, 7  ;;  %v7208_v43 = vrot.slane %v1120_v35, 7  ;;  %v6426_v47 = vunpack.i.h.bf16 %v6422_v32  ;;  %v967_v52 = vshll.u32 %v501_v33, 16 }
 0x158   : > { %v6511_v40 = vpop.trf.xlu1  ;;  %v6427_v41 = vpop.trf.xlu0  ;;  %v7211_v49 = vrot.slane %v964_v45, 7  ;;  %v7215_v56 = vrot.slane %v1016_v44, 7  ;;  %v1019_v62 = vshll.u32 %v7201_v36, 16  ;;  %v6423_v1 = vunpack.i.l.bf16 %v6422_v32 }
 0x159   : > { %v6515_v48 = vunpack.i.h.bf16 %v6511_v40  ;;  %v6512_v50 = vunpack.i.l.bf16 %v6511_v40  ;;  %v6431_v51 = vunpack.i.h.bf16 %v6427_v41  ;;  %v6428_v59 = vunpack.i.l.bf16 %v6427_v41 }
 0x15a   : > { %v969_v58 = vor.u32 %v967_v52, %v7211_v49  ;;  %v7221_v60 = vor.u32 %v1071_v37, %v7206_v42  ;;  %v7224_v61 = vor.u32 %v1123_v38, %v7208_v43  ;;  %v1021_v7 = vor.u32 %v1019_v62, %v7215_v56 }
 0x15b   : > { %v7213_v53 = vpack.c.bf16 %v6515_v48, %v6510_v39  ;;  %v7217_v57 = vpack.c.bf16 %v6431_v51, %v6426_v47  ;;  %v7233_v0 = vpack.c.bf16 %v6512_v50, %v6507_v46  ;;  %v502_v11 = vpack.c.bf16 %v6428_v59, %v6423_v1 }
 0x15c   : > { %v6516_v54 = vpop.trf.xlu1  ;;  %v6432_v55 = vpop.trf.xlu0  ;;  %v7241_v9 = vsel %vm7229_vm3, 0, %v969_v58 }
 0x15d   : > { %11657 = vst [vmem:[#allocation22_spill] sm:$0xff] %v7213_v53  ;;  %v1126_v2 = vshrl.u32 %v7213_v53, 16  ;;  %v1022_v3 = vshrl.u32 %v7217_v57, 16  ;;  %v6520_v4 = vunpack.i.h.bf16 %v6516_v54  ;;  %v1129_v8 = vshll.u32 %v7213_v53, 16  ;;  %6163 = vmatmul.mubr.msk.bf16.vlgmr.msra.gmra.mrb[0].mxu0 %vm546_vm0, %v502_v11 }
 0x15e   : > { %v6517_v10 = vunpack.i.l.bf16 %v6516_v54  ;;  %v1074_v13 = vshrl.u32 %v7233_v0, 16  ;;  %v6436_v14 = vunpack.i.h.bf16 %v6432_v55  ;;  %v970_v22 = vshrl.u32 %v502_v11, 16 }
 0x15f   : > { %v7244_v17 = vrot.slane %v1126_v2, 7  ;;  %v7246_v18 = vrot.slane %v1022_v3, 7  ;;  %v1025_v25 = vshll.u32 %v7217_v57, 16  ;;  %v6433_v26 = vunpack.i.l.bf16 %v6432_v55 }
 0x160   : > { %v6521_v5 = vpop.trf.xlu1  ;;  %v6437_v6 = vpop.trf.xlu0  ;;  %v7259_v33 = vrot.slane %v1074_v13, 7  ;;  %v1077_v34 = vshll.u32 %v7233_v0, 16  ;;  %v972_v39 = vrot.slane %v970_v22, 7  ;;  %v973_v40 = vshll.u32 %v502_v11, 16 }
 0x161   : > { %v6525_v12 = vunpack.i.h.bf16 %v6521_v5  ;;  %v6522_v19 = vunpack.i.l.bf16 %v6521_v5  ;;  %v6441_v23 = vunpack.i.h.bf16 %v6437_v6  ;;  %v6438_v28 = vunpack.i.l.bf16 %v6437_v6 }
 0x162   : > { %v7263_v35 = vor.u32 %v1129_v8, %v7244_v17  ;;  %v1027_v37 = vor.u32 %v1025_v25, %v7246_v18  ;;  %v975_v5 = vor.u32 %v973_v40, %v972_v39  ;;  %v1250_v40 = vshll.u32 %v7241_v9, 16 }
 0x163   : > { %v7249_v20 = vpack.c.bf16 %v6525_v12, %v6520_v4  ;;  %v7254_v27 = vpack.c.bf16 %v6522_v19, %v6517_v10  ;;  %v7257_v32 = vpack.c.bf16 %v6441_v23, %v6436_v14  ;;  %v7271_v50 = vpack.c.bf16 %v6438_v28, %v6433_v26 }
 0x164   : > { %v6526_v21 = vpop.trf.xlu1  ;;  %v7251_v24 = vpop.trf.xlu0  ;;  %v1079_v4 = vor.u32 %v1077_v34, %v7259_v33  ;;  %v7299_v13 = vsel %vm963_vm1, %v7215_v56, %v1027_v37 }
 0x165   : > { %11661 = vst [vmem:[#allocation24_spill] sm:$0xff] %v7249_v20  ;;  %11662 = vst [vmem:[#allocation25_spill] sm:$0xff] %v7254_v27  ;;  %v1133_v31 = vshrl.u32 %v7249_v20, 16  ;;  %v1081_v41 = vshrl.u32 %v7254_v27, 16  ;;  %v1029_v44 = vshrl.u32 %v7257_v32, 16  ;;  %v1136_v45 = vshll.u32 %v7249_v20, 16  ;;  %6166 = vmatprep.mubr.msk.bf16.mxu0 %vm546_vm0, %v7271_v50 }
 0x166   : > { %v6530_v46 = vunpack.i.h.bf16 %v6526_v21  ;;  %v6527_v48 = vunpack.i.l.bf16 %v6526_v21  ;;  %v6446_v54 = vunpack.i.h.bf16 %v7251_v24  ;;  %v1084_v59 = vshll.u32 %v7254_v27, 16  ;;  %11665 = vst [vmem:[#allocation28_spill] sm:$0xff] %v7299_v13 }
 0x167   : > { %v7269_v47 = vrot.slane %v1133_v31, 7  ;;  %v7276_v58 = vrot.slane %v1081_v41, 7  ;;  %v7279_v62 = vrot.slane %v1029_v44, 7  ;;  %v977_v1 = vshrl.u32 %v7271_v50, 16 }
 0x168   : > { %v6531_v38 = vpop.trf.xlu1  ;;  %v7273_v52 = vpop.trf.xlu0  ;;  %v1032_v6 = vshll.u32 %v7257_v32, 16  ;;  %v6443_v11 = vunpack.i.l.bf16 %v7251_v24  ;;  %v7309_v21 = vsel %vm7229_vm3, 0, %v1021_v7  ;;  %v1335_v22 = vshll.u32 %v7299_v13, 16 }
 0x169   : > { %v6535_v51 = vunpack.i.h.bf16 %v6531_v38  ;;  %v6532_v55 = vunpack.i.l.bf16 %v6531_v38  ;;  %v6451_v3 = vunpack.i.h.bf16 %v7273_v52  ;;  %v7292_v10 = vor.u32 %v1136_v45, %v7269_v47  ;;  %11666 = vst [vmem:[#allocation29_spill] sm:$0xff] %v7309_v21 }
 0x16a   : > { %v7302_v14 = vor.u32 %v1084_v59, %v7276_v58  ;;  %v7305_v19 = vor.u32 %v1032_v6, %v7279_v62  ;;  %v7312_v23 = vrot.slane %v977_v1, 7  ;;  %v980_v24 = vshll.u32 %v7271_v50, 16 }
 0x16b   : > { %v7284_v2 = vpack.c.bf16 %v6535_v51, %v6530_v46  ;;  %v7289_v8 = vpack.c.bf16 %v6532_v55, %v6527_v48  ;;  %v7295_v12 = vpack.c.bf16 %v6451_v3, %v6446_v54  ;;  %v6448_v28 = vunpack.i.l.bf16 %v7273_v52 }
 0x16c   : > { %v1330_v31 = vshll.u32 %v7309_v21, 16  ;;  %v7322_v7 = vsel %vm963_vm1, %v7211_v49, %v975_v5  ;;  %v1328_v38 = vshrl.u32 %v7309_v21, 16  ;;  %v6536_v41 = vpop.trf.xlu1  ;;  %v7328_v45 = vrot.slane %v1335_v22, 1  ;;  %v7333_v51 = vpop.trf.xlu0 }
 0x16d   : > { %11663 = vst [vmem:[#allocation26_spill] sm:$0xff] %v7284_v2  ;;  %11664 = vst [vmem:[#allocation27_spill] sm:$0xff] %v7289_v8  ;;  %v1139_v25 = vshrl.u32 %v7284_v2, 16  ;;  %v1087_v26 = vshrl.u32 %v7289_v8, 16  ;;  %v1035_v37 = vshrl.u32 %v7295_v12, 16  ;;  %v1255_v46 = vshll.u32 %v7322_v7, 16 }
 0x16e   : > { %v1332_v44 = vrot.slane %v1330_v31, 1  ;;  %v1038_v48 = vshll.u32 %v7295_v12, 16  ;;  %v1248_v50 = vshrl.u32 %v7241_v9, 16  ;;  %v1252_v49 = vrot.slane %v1250_v40, 1 }
 0x16f   : > { %v1257_v54 = vrot.slane %v1255_v46, 1  ;;  %v6540_v55 = vunpack.i.h.bf16 %v6536_v41  ;;  %v6537_v1 = vunpack.i.l.bf16 %v6536_v41  ;;  %v7337_v3 = vsel %vm963_vm1, %v7206_v42, %v1079_v4 }
 0x170   : > { %v1333_v52 = vor.u32 %v1332_v44, %v1328_v38  ;;  %v1253_v59 = vor.u32 %v1252_v49, %v1248_v50  ;;  %11667 = vst [vmem:[#allocation30_spill] sm:$0xff] %v7337_v3  ;;  %v7346_v6 = vsel %vm7229_vm3, 0, %v7221_v60  ;;  %v1415_v22 = vshll.u32 %v7337_v3, 16  ;;  %v6541_v60 = vpop.trf.xlu1 }
 0x171   : > { %11669 = vst [vmem:[#allocation32_spill] sm:$0xff] %v7346_v6  ;;  %v7351_v31 = vsel %vm7229_vm3, %v972_v39, 0  ;;  %v1408_v4 = vshrl.u32 %v7346_v6, 16  ;;  %v1410_v38 = vshll.u32 %v7346_v6, 16  ;;  %v1259_v40 = vshrl.u32 %v7322_v7, 16 }
 0x172   : > { %v7341_v5 = vsel %vm1238_vm4, %v1333_v52, %v7328_v45  ;;  %v7356_v42 = vsel %vm1238_vm4, %v1253_v59, %v1257_v54  ;;  %v7363_v41 = vrot.slane %v1415_v22, 1  ;;  %v1263_v39 = vshll.u32 %v7351_v31, 16  ;;  %v6457_v52 = vpop.trf.xlu0 }
 0x173   : > { %11668 = vst [vmem:[#allocation31_spill] sm:$0xff] %v7341_v5  ;;  %1565 = vrot.lane.b32.xlu0 %v7341_v5, %s6861_s14  ;;  %11670 = vst [vmem:[#allocation33_spill] sm:$0xff] %v7356_v42  ;;  %1549 = vrot.lane.b32.xlu1 %v7356_v42, %s6861_s14  ;;  %v504_v44 = vpack.c.bf16 %v6448_v28, %v6443_v11  ;;  %v6545_v46 = vunpack.i.h.bf16 %v6541_v60  ;;  %v1412_v50 = vrot.slane %v1410_v38, 1  ;;  %v7366_v59 = vrot.slane %v1035_v37, 7 }
 0x174   : > { %v1261_v49 = vor.u32 %v1259_v40, %v1257_v54  ;;  %v1265_v15 = vrot.slane %v1263_v39, 1  ;;  %v6542_v34 = vunpack.i.l.bf16 %v6541_v60  ;;  %v6456_v5 = vunpack.i.h.bf16 %v7333_v51 }
 0x175   : > { %6167 = vmatmul.mubr.msk.bf16.gmra.mrb[4].mxu0 %vm546_vm0, %v504_v44  ;;  %v983_v56 = vshrl.u32 %v504_v44, 16  ;;  %v1413_v20 = vor.u32 %v1412_v50, %v1408_v4  ;;  %v7370_v42 = vpack.c.bf16 %v6545_v46, %v6540_v55  ;;  %v6461_v28 = vunpack.i.h.bf16 %v6457_v52 }
 0x176   : > { %v7373_v22 = vsel %vm1238_vm4, %v1261_v49, %v1265_v15  ;;  %v7375_v11 = vpack.c.bf16 %v6542_v34, %v6537_v1  ;;  %v982_v54 = vor.u32 %v980_v24, %v7312_v23  ;;  %v7378_v37 = vrot.slane %v1087_v26, 7 }
 0x177   : > { %11671 = vst [vmem:[#allocation34_spill] sm:$0xff] %v7370_v42  ;;  %11672 = vst [vmem:[#allocation35_spill] sm:$0xff] %v7373_v22  ;;  %v7380_v38 = vrot.slane %v1139_v25, 7  ;;  %v7384_v40 = vsel %vm1238_vm4, %v1413_v20, %v7363_v41  ;;  %1551 = vrot.lane.b32.xlu1 %v7373_v22, %s6861_s14  ;;  %v7389_v55 = vor.u32 %v1038_v48, %v7366_v59  ;;  %v6453_v15 = vunpack.i.l.bf16 %v7333_v51 }
 0x178   : > { %11673 = vst [vmem:[#allocation36_spill] sm:$0xff] %v7375_v11  ;;  %11674 = vst [vmem:[#allocation37_spill] sm:$0xff] %v7384_v40  ;;  %1581 = vrot.lane.b32.xlu0 %v7384_v40, %s6861_s14  ;;  %v7394_v24 = vrot.slane %v983_v56, 7  ;;  %v1146_v25 = vshrl.u32 %v7370_v42, 16  ;;  %v986_v26 = vshll.u32 %v504_v44, 16  ;;  %v7400_v20 = vsel %vm963_vm1, %v7208_v43, %v7263_v35  ;;  %v6546_v56 = vpop.trf.xlu1 }
 0x179   : > { %11675 = vst [vmem:[#allocation38_spill] sm:$0xff] %v7400_v20  ;;  %v7405_v34 = vsel %vm7229_vm3, 0, %v7224_v61  ;;  %v7410_v48 = vsel %vm7229_vm3, %v7246_v18, 0  ;;  %v1094_v51 = vshrl.u32 %v7375_v11, 16  ;;  %v1149_v1 = vshll.u32 %v7370_v42, 16 }
 0x17a   : > { %11676 = vst [vmem:[#allocation39_spill] sm:$0xff] %v7405_v34  ;;  %11677 = vst [vmem:[#allocation40_spill] sm:$0xff] %v7410_v48  ;;  %v6458_v4 = vunpack.i.l.bf16 %v6457_v52  ;;  %v7414_v60 = vpack.c.bf16 %v6461_v28, %v6456_v5  ;;  %v1488_v43 = vshrl.u32 %v7405_v34, 16  ;;  %v1490_v35 = vshll.u32 %v7405_v34, 16  ;;  %v7428_v28 = vpop.trf.xlu0 }
 0x17b   : > { %v1495_v61 = vshll.u32 %v7400_v20, 16  ;;  %v1339_v39 = vshrl.u32 %v7299_v13, 16  ;;  %v988_v44 = vor.u32 %v986_v26, %v7394_v24  ;;  %v1097_v18 = vshll.u32 %v7375_v11, 16 }
 0x17c   : > { %v7422_v46 = vrot.slane %v1146_v25, 7  ;;  %v1343_v50 = vshll.u32 %v7410_v48, 16  ;;  %v1492_v49 = vrot.slane %v1490_v35, 1  ;;  %v7430_v40 = vrot.slane %v1094_v51, 7  ;;  %v6551_v25 = vpop.trf.xlu1 }
 0x17d   : > { %v7425_v5 = vrot.slane %v1495_v61, 1  ;;  %v1341_v52 = vor.u32 %v1339_v39, %v7328_v45  ;;  %v1042_v22 = vshrl.u32 %v7414_v60, 16  ;;  %v1045_v26 = vshll.u32 %v7414_v60, 16 }
 0x17e   : > { %v1345_v34 = vrot.slane %v1343_v50, 1  ;;  %v1493_v42 = vor.u32 %v1492_v49, %v1488_v43  ;;  %v6550_v6 = vunpack.i.h.bf16 %v6546_v56  ;;  %v7440_v35 = vsel %vm7229_vm3, %v7259_v33, 0 }
 0x17f   : > { %11679 = vst [vmem:[#allocation42_spill] sm:$0xff] %v7440_v35  ;;  %v1419_v45 = vshrl.u32 %v7337_v3, 16  ;;  %v1423_v43 = vshll.u32 %v7440_v35, 16  ;;  %v505_v61 = vpack.c.bf16 %v6458_v4, %v6453_v15  ;;  %v7459_v39 = vsel %vm7229_vm3, 0, %v982_v54  ;;  %v6467_v4 = vpop.trf.xlu0 }
 0x180   : > { %v7435_v53 = vsel %vm1238_vm4, %v1341_v52, %v1345_v34  ;;  %v7445_v51 = vsel %vm1238_vm4, %v1493_v42, %v7425_v5  ;;  %v7452_v34 = vsel %vm963_vm1, %v7312_v23, %v988_v44  ;;  %11681 = vst [vmem:[#allocation44_spill] sm:$0xff] %v7459_v39  ;;  %v6555_v50 = vunpack.i.h.bf16 %v6551_v25 }
 0x181   : > { %11678 = vst [vmem:[#allocation41_spill] sm:$0xff] %v7435_v53  ;;  %11680 = vst [vmem:[#allocation43_spill] sm:$0xff] %v7445_v51  ;;  %1567 = vrot.lane.b32.xlu1 %v7435_v53, %s6861_s14  ;;  %1597 = vrot.lane.b32.xlu0 %v7445_v51, %s6861_s14  ;;  %v1421_v33 = vor.u32 %v1419_v45, %v7363_v41  ;;  %v11385_v42 = vrot.slane %v7452_v34, 1  ;;  %v6547_v49 = vunpack.i.l.bf16 %v6546_v56  ;;  %v1425_v52 = vrot.slane %v1423_v43, 1 }
 0x182   : > { %6170 = vmatprep.mubr.msk.bf16.mxu0 %vm546_vm0, %v505_v61  ;;  %v990_v15 = vshrl.u32 %v505_v61, 16  ;;  %v1648_v23 = vrot.slane %v7459_v39, 1  ;;  %v7464_v44 = vrot.slane %v1042_v22, 7  ;;  %v6552_v51 = vunpack.i.l.bf16 %v6551_v25 }
 0x183   : > { %v6466_v41 = vunpack.i.h.bf16 %v7428_v28  ;;  %v7468_v45 = vsel %vm1238_vm4, %v1421_v33, %v1425_v52  ;;  %v7475_v56 = vpack.c.bf16 %v6555_v50, %v6550_v6  ;;  %v993_v22 = vshll.u32 %v505_v61, 16 }
 0x184   : > { %11682 = vst [vmem:[#allocation45_spill] sm:$0xff] %v7468_v45  ;;  %v7473_v54 = vsel %vm1640_vm5, %v1648_v23, %v11385_v42  ;;  %v7479_v43 = vrot.slane %v990_v15, 7  ;;  %v6471_v25 = vunpack.i.h.bf16 %v6467_v4  ;;  %v11684_v33 = vshll.u32 %v7289_v8, 16 }
 0x185   : > { %11683 = vst [vmem:[#allocation46_spill] sm:$0xff] %v7475_v56  ;;  %1583 = vrot.lane.b32.xlu1 %v7468_v45, %s6861_s14  ;;  %6009 = vmatprep.mubr.msk.bf16.mxu1 %vm546_vm0, %v7473_v54  ;;  %v11685_v23 = vshll.u32 %v7284_v2, 16  ;;  %v7491_v6 = vpack.c.bf16 %v6552_v51, %v6547_v49  ;;  %v7494_v50 = vor.u32 %v1097_v18, %v7430_v40  ;;  %v6463_v45 = vunpack.i.l.bf16 %v7428_v28 }
 0x186   : > { %v1092_v52 = vor.u32 %v11684_v33, %v7378_v37  ;;  %v7497_v61 = vor.u32 %v1149_v1, %v7422_v46  ;;  %v7500_v15 = vor.u32 %v1045_v26, %v7464_v44  ;;  %v7505_v33 = vsel %vm963_vm1, %v7279_v62, %v7389_v55 }
 0x187   : > { %v7489_v42 = vor.u32 %v11685_v23, %v7380_v38  ;;  %11686 = vst [vmem:[#allocation47_spill] sm:$0xff] %v7491_v6  ;;  %11687 = vst [vmem:[#allocation48_spill] sm:$0xff] %v7505_v33  ;;  %v1152_v23 = vshrl.u32 %v7475_v56, 16  ;;  %v1155_v51 = vshll.u32 %v7475_v56, 16  ;;  %v7513_v18 = vsel %vm7229_vm3, 0, %v7305_v19  ;;  %v7527_v19 = vpop.trf.xlu0 }
 0x188   : > { %11688 = vst [vmem:[#allocation49_spill] sm:$0xff] %v7513_v18  ;;  %v995_v1 = vor.u32 %v993_v22, %v7479_v43  ;;  %v6468_v26 = vunpack.i.l.bf16 %v6467_v4  ;;  %v7516_v49 = vpack.c.bf16 %v6471_v25, %v6466_v41  ;;  %v1350_v53 = vshll.u32 %v7513_v18, 16 }
 0x189   : > { %v1100_v62 = vshrl.u32 %v7491_v6, 16  ;;  %v1355_v55 = vshll.u32 %v7505_v33, 16  ;;  %v7524_v28 = vsel %vm7229_vm3, %v7244_v17, 0  ;;  %v1499_v56 = vshrl.u32 %v7400_v20, 16 }
 0x18a   : > { %11689 = vst [vmem:[#allocation50_spill] sm:$0xff] %v7524_v28  ;;  %v1103_v22 = vshll.u32 %v7491_v6, 16  ;;  %v1348_v4 = vshrl.u32 %v7513_v18, 16  ;;  %v1352_v41 = vrot.slane %v1350_v53, 1  ;;  %v1503_v25 = vshll.u32 %v7524_v28, 16 }
 0x18b   : > { %v7532_v2 = vrot.slane %v1152_v23, 7  ;;  %v7534_v30 = vrot.slane %v1355_v55, 1  ;;  %v1501_v35 = vor.u32 %v1499_v56, %v7425_v5  ;;  %v7539_v17 = vsel %vm7229_vm3, 0, %v995_v1 }
 0x18c   : > { %v1353_v20 = vor.u32 %v1352_v41, %v1348_v4  ;;  %v1505_v3 = vrot.slane %v1503_v25, 1  ;;  %v7543_v6 = vsel %vm963_vm1, %v7276_v58, %v1092_v52  ;;  %v7548_v53 = vsel %vm7229_vm3, 0, %v7302_v14  ;;  %v7567_v41 = vpop.trf.xlu1 }
 0x18d   : > { %11690 = vst [vmem:[#allocation51_spill] sm:$0xff] %v7543_v6  ;;  %11691 = vst [vmem:[#allocation52_spill] sm:$0xff] %v7548_v53  ;;  %v1268_v23 = vshrl.u32 %v7459_v39, 16  ;;  %v1270_v55 = vshll.u32 %v7459_v39, 16  ;;  %v1428_v1 = vshrl.u32 %v7548_v53, 16  ;;  %v1430_v58 = vshll.u32 %v7548_v53, 16 }
 0x18e   : > { %v7554_v5 = vsel %vm1238_vm4, %v1353_v20, %v7534_v30  ;;  %v7557_v56 = vsel %vm1238_vm4, %v1501_v35, %v1505_v3  ;;  %v1435_v14 = vshll.u32 %v7543_v6, 16  ;;  %v1275_v4 = vshll.u32 %v7452_v34, 16  ;;  %11694 = vst [vmem:[#allocation55_spill] sm:$0xff] %v7567_v41  ;;  %v7569_v3 = vpop.trf.xlu0 }
 0x18f   : > { %11692 = vst [vmem:[#allocation53_spill] sm:$0xff] %v7554_v5  ;;  %11693 = vst [vmem:[#allocation54_spill] sm:$0xff] %v7557_v56  ;;  %1569 = vrot.lane.b32.xlu0 %v7554_v5, %s6861_s14  ;;  %1599 = vrot.lane.b32.xlu1 %v7557_v56, %s6861_s14  ;;  %v1272_v52 = vrot.slane %v1270_v55, 1  ;;  %v506_v20 = vpack.c.bf16 %v6468_v26, %v6463_v45  ;;  %v6476_v35 = vunpack.i.h.bf16 %v7527_v19  ;;  %v1432_v25 = vrot.slane %v1430_v58, 1 }
 0x190   : > { %v1048_v39 = vshrl.u32 %v7516_v49, 16  ;;  %v7573_v28 = vrot.slane %v1435_v14, 1  ;;  %v1277_v53 = vrot.slane %v1275_v4, 1  ;;  %v1051_v55 = vshll.u32 %v7516_v49, 16 }
 0x191   : > { %v1273_v5 = vor.u32 %v1272_v52, %v1268_v23  ;;  %6171 = vmatmul.mubr.msk.bf16.gmra.mrb[8].mxu0 %vm546_vm0, %v506_v20  ;;  %v1433_v56 = vor.u32 %v1432_v25, %v1428_v1  ;;  %v996_v18 = vshrl.u32 %v506_v20, 16  ;;  %v6481_v45 = vunpack.i.h.bf16 %v7569_v3 }
 0x192   : > { %v7578_v26 = vrot.slane %v1100_v62, 7  ;;  %v7584_v58 = vor.u32 %v1155_v51, %v7532_v2  ;;  %v7597_v62 = vsel %vm963_vm1, %v7269_v47, %v7489_v42  ;;  %v7599_v1 = vrot.slane %v1048_v39, 7  ;;  %v7614_v52 = vpop.trf.xlu0 }
 0x193   : > { %v7581_v21 = vsel %vm1238_vm4, %v1273_v5, %v1277_v53  ;;  %v7588_v23 = vsel %vm1238_vm4, %v1433_v56, %v7573_v28  ;;  %v7592_v14 = vpack.c.bf16 %v6481_v45, %v6476_v35  ;;  %11697 = vst [vmem:[#allocation58_spill] sm:$0xff] %v7597_v62  ;;  %v7606_v51 = vsel %vm7229_vm3, 0, %v7292_v10  ;;  %v7620_v35 = vpop.trf.xlu1 }
 0x194   : > { %11695 = vst [vmem:[#allocation56_spill] sm:$0xff] %v7581_v21  ;;  %11696 = vst [vmem:[#allocation57_spill] sm:$0xff] %v7588_v23  ;;  %1553 = vrot.lane.b32.xlu1 %v7581_v21, %s6861_s14  ;;  %1585 = vrot.lane.b32.xlu0 %v7588_v23, %s6861_s14  ;;  %v1515_v5 = vshll.u32 %v7597_v62, 16  ;;  %v7612_v56 = vsel %vm7229_vm3, %v7394_v24, 0  ;;  %v7616_v47 = vrot.slane %v996_v18, 7  ;;  %v999_v39 = vshll.u32 %v506_v20, 16 }
 0x195   : > { %11698 = vst [vmem:[#allocation59_spill] sm:$0xff] %v7606_v51  ;;  %v1508_v42 = vshrl.u32 %v7606_v51, 16  ;;  %v1510_v4 = vshll.u32 %v7606_v51, 16  ;;  %11699 = vst [vmem:[#allocation60_spill] sm:$0xff] %v7620_v35  ;;  %v7623_v10 = vor.u32 %v1103_v22, %v7578_v26  ;;  %v1055_v25 = vshrl.u32 %v7592_v14, 16 }
 0x196   : > { %v1279_v45 = vshrl.u32 %v7452_v34, 16  ;;  %v1283_v24 = vshll.u32 %v7612_v56, 16  ;;  %v7628_v21 = vrot.slane %v1515_v5, 1  ;;  %v6557_v18 = vunpack.i.l.bf16 %v7567_v41 }
 0x197   : > { %v1512_v23 = vrot.slane %v1510_v4, 1  ;;  %v6562_v51 = vunpack.i.l.bf16 %v7620_v35  ;;  %v1001_v8 = vor.u32 %v999_v39, %v7616_v47  ;;  %v7633_v22 = vrot.slane %v1055_v25, 7  ;;  %v7644_v4 = vpop.trf.xlu0 }
 0x198   : > { %v1281_v20 = vor.u32 %v1279_v45, %v1277_v53  ;;  %v1285_v11 = vrot.slane %v1283_v24, 1  ;;  %v1058_v13 = vshll.u32 %v7592_v14, 16  ;;  %v7642_v5 = vsel %vm7229_vm3, %v7366_v59, 0 }
 0x199   : > { %v1513_v48 = vor.u32 %v1512_v23, %v1508_v42  ;;  %11701 = vst [vmem:[#allocation62_spill] sm:$0xff] %v7642_v5  ;;  %v6486_v23 = vunpack.i.h.bf16 %v7614_v52  ;;  %v1359_v39 = vshrl.u32 %v7505_v33, 16  ;;  %v7655_v42 = vpop.trf.xlu1  ;;  %v1053_v59 = vor.u32 %v1051_v55, %v7599_v1 }
 0x19a   : > { %v7637_v27 = vsel %vm1238_vm4, %v1281_v20, %v1285_v11  ;;  %v1363_v11 = vshll.u32 %v7642_v5, 16  ;;  %v7660_v25 = vpack.c.bf16 %v6562_v51, %v6557_v18  ;;  %v6491_v20 = vunpack.i.h.bf16 %v7644_v4 }
 0x19b   : > { %11700 = vst [vmem:[#allocation61_spill] sm:$0xff] %v7637_v27  ;;  %v7648_v53 = vsel %vm1238_vm4, %v1513_v48, %v7628_v21  ;;  %1555 = vrot.lane.b32.xlu1 %v7637_v27, %s6861_s14  ;;  %v6473_v48 = vunpack.i.l.bf16 %v7527_v19  ;;  %v1361_v45 = vor.u32 %v1359_v39, %v7534_v30  ;;  %v6478_v27 = vunpack.i.l.bf16 %v7569_v3 }
 0x19c   : > { %11702 = vst [vmem:[#allocation63_spill] sm:$0xff] %v7648_v53  ;;  %1601 = vrot.lane.b32.xlu0 %v7648_v53, %s6861_s14  ;;  %v1365_v24 = vrot.slane %v1363_v11, 1  ;;  %v7667_v35 = vor.u32 %v1058_v13, %v7633_v22  ;;  %v6483_v41 = vunpack.i.l.bf16 %v7614_v52  ;;  %v7673_v53 = vpack.c.bf16 %v6491_v20, %v6486_v23 }
 0x19d   : > { %v7677_v19 = vsel %vm963_vm1, %v7479_v43, %v1001_v8  ;;  %v1107_v30 = vshrl.u32 %v7660_v25, 16  ;;  %v1290_v3 = vshll.u32 %v7539_v17, 16  ;;  %v7687_v51 = vsel %vm7229_vm3, %v7378_v37, 0  ;;  %v7693_v23 = vpop.trf.xlu1 }
 0x19e   : > { %v7671_v55 = vsel %vm1238_vm4, %v1361_v45, %v1365_v24  ;;  %v1295_v13 = vshll.u32 %v7677_v19, 16  ;;  %11704 = vst [vmem:[#allocation65_spill] sm:$0xff] %v7687_v51  ;;  %v1288_v18 = vshrl.u32 %v7539_v17, 16  ;;  %v1439_v8 = vshrl.u32 %v7543_v6, 16 }
 0x19f   : > { %11703 = vst [vmem:[#allocation64_spill] sm:$0xff] %v7671_v55  ;;  %1571 = vrot.lane.b32.xlu1 %v7671_v55, %s6861_s14  ;;  %v1443_v43 = vshll.u32 %v7687_v51, 16  ;;  %v1061_v39 = vshrl.u32 %v7673_v53, 16  ;;  %v1292_v11 = vrot.slane %v1290_v3, 1  ;;  %v6567_v24 = vunpack.i.l.bf16 %v7655_v42 }
 0x1a0   : > { %v1297_v45 = vrot.slane %v1295_v13, 1  ;;  %v1441_v20 = vor.u32 %v1439_v8, %v7573_v28  ;;  %v6572_v52 = vunpack.i.l.bf16 %v7693_v23  ;;  %v507_v5 = vpack.c.bf16 %v6478_v27, %v6473_v48 }
 0x1a1   : > { %v1445_v37 = vrot.slane %v1443_v43, 1  ;;  %v1293_v55 = vor.u32 %v1292_v11, %v1288_v18  ;;  %v7701_v6 = vsel %vm963_vm1, %v7464_v44, %v1053_v59  ;;  %v6488_v51 = vunpack.i.l.bf16 %v7644_v4 }
 0x1a2   : > { %11705 = vst [vmem:[#allocation66_spill] sm:$0xff] %v7701_v6  ;;  %v7710_v3 = vsel %vm7229_vm3, 0, %v7500_v15  ;;  %v1375_v28 = vshll.u32 %v7701_v6, 16  ;;  %v7713_v13 = vrot.slane %v1061_v39, 7  ;;  %v1064_v27 = vshll.u32 %v7673_v53, 16  ;;  %6174 = vmatprep.mubr.msk.bf16.mxu0 %vm546_vm0, %v507_v5 }
 0x1a3   : > { %v7705_v33 = vsel %vm1238_vm4, %v1441_v20, %v1445_v37  ;;  %11707 = vst [vmem:[#allocation68_spill] sm:$0xff] %v7710_v3  ;;  %v7717_v48 = vsel %vm1238_vm4, %v1293_v55, %v1297_v45  ;;  %v1003_v44 = vshrl.u32 %v507_v5, 16  ;;  %v7722_v4 = vrot.slane %v1107_v30, 7 }
 0x1a4   : > { %11706 = vst [vmem:[#allocation67_spill] sm:$0xff] %v7705_v33  ;;  %1587 = vrot.lane.b32.xlu1 %v7705_v33, %s6861_s14  ;;  %1557 = vrot.lane.b32.xlu0 %v7717_v48, %s6861_s14  ;;  %v7726_v15 = vpack.c.bf16 %v6572_v52, %v6567_v24  ;;  %v1006_v59 = vshll.u32 %v507_v5, 16  ;;  %v1370_v18 = vshll.u32 %v7710_v3, 16  ;;  %v1368_v55 = vshrl.u32 %v7710_v3, 16 }
 0x1a5   : > { %v1005_v8 = vrot.slane %v1003_v44, 7  ;;  %v7733_v43 = vsel %vm7229_vm3, %v7380_v38, 0  ;;  %v1519_v39 = vshrl.u32 %v7597_v62, 16  ;;  %v1377_v11 = vrot.slane %v1375_v28, 1 }
 0x1a6   : > { %v1372_v30 = vrot.slane %v1370_v18, 1  ;;  %v1523_v20 = vshll.u32 %v7733_v43, 16  ;;  %v508_v37 = vpack.c.bf16 %v6488_v51, %v6483_v41  ;;  %v7738_v52 = vor.u32 %v1064_v27, %v7713_v13 }
 0x1a7   : > { %v1521_v5 = vor.u32 %v1519_v39, %v7628_v21  ;;  %v7744_v24 = vsel %vm963_vm1, %v7430_v40, %v7623_v10  ;;  %v7749_v38 = vsel %vm7229_vm3, 0, %v7494_v50  ;;  %v1113_v27 = vshrl.u32 %v7726_v15, 16 }
 0x1a8   : > { %v1373_v44 = vor.u32 %v1372_v30, %v1368_v55  ;;  %v1525_v28 = vrot.slane %v1523_v20, 1  ;;  %6175 = vmatmul.mubr.msk.bf16.gmra.mrb[12].mxu0 %vm546_vm0, %v508_v37  ;;  %v1009_v41 = vshrl.u32 %v508_v37, 16  ;;  %v1012_v51 = vshll.u32 %v508_v37, 16 }
 0x1a9   : > { %v1008_v18 = vor.u32 %v1006_v59, %v1005_v8  ;;  %6178 = vmatprep.mubr.msk.bf16.mxu0 %vm546_vm0, %v7201_v36  ;;  %v1448_v21 = vshrl.u32 %v7749_v38, 16  ;;  %v1450_v40 = vshll.u32 %v7749_v38, 16  ;;  %v1455_v39 = vshll.u32 %v7744_v24, 16 }
 0x1aa   : > { %v7758_v10 = vsel %vm1238_vm4, %v1373_v44, %v1377_v11  ;;  %v7761_v50 = vsel %vm1238_vm4, %v1521_v5, %v1525_v28  ;;  %v7763_v55 = vrot.slane %v1009_v41, 7  ;;  %v7773_v59 = vsel %vm7229_vm3, %v7616_v47, 0 }
 0x1ab   : > { %11708 = vst [vmem:[#allocation69_spill] sm:$0xff] %v7761_v50  ;;  %1573 = vrot.lane.b32.xlu0 %v7758_v10, %s6861_s14  ;;  %1603 = vrot.lane.b32.xlu1 %v7761_v50, %s6861_s14  ;;  %v1452_v36 = vrot.slane %v1450_v40, 1  ;;  %v1299_v30 = vshrl.u32 %v7677_v19, 16  ;;  %v7779_v20 = vsel %vm963_vm1, %v7422_v46, %v7584_v58  ;;  %v1457_v5 = vrot.slane %v1455_v39, 1 }
 0x1ac   : > { %11709 = vst [vmem:[#allocation70_spill] sm:$0xff] %v7779_v20  ;;  %v1014_v37 = vor.u32 %v1012_v51, %v7763_v55  ;;  %v1303_v44 = vshll.u32 %v7773_v59, 16  ;;  %v7786_v28 = vsel %vm7229_vm3, 0, %v7497_v61  ;;  %v1535_v46 = vshll.u32 %v7779_v20, 16 }
 0x1ad   : > { %11710 = vst [vmem:[#allocation71_spill] sm:$0xff] %v7786_v28  ;;  %v1453_v41 = vor.u32 %v1452_v36, %v1448_v21  ;;  %v1301_v47 = vor.u32 %v1299_v30, %v1297_v45  ;;  %v1528_v40 = vshrl.u32 %v7786_v28, 16  ;;  %v1530_v50 = vshll.u32 %v7786_v28, 16 }
 0x1ae   : > { %v1305_v33 = vrot.slane %v1303_v44, 1  ;;  %v7794_v58 = vsel %vm7229_vm3, %v7599_v1, 0  ;;  %v1379_v51 = vshrl.u32 %v7701_v6, 16  ;;  %v7799_v61 = vsel %vm7229_vm3, 0, %v1008_v18 }
 0x1af   : > { %11711 = vst [vmem:[#allocation72_spill] sm:$0xff] %v7799_v61  ;;  %v7802_v45 = vsel %vm1238_vm4, %v1453_v41, %v1457_v5  ;;  %v1532_v21 = vrot.slane %v1530_v50, 1  ;;  %v1383_v39 = vshll.u32 %v7794_v58, 16  ;;  %v1537_v1 = vrot.slane %v1535_v46, 1 }
 0x1b0   : > { %11712 = vst [vmem:[#allocation73_spill] sm:$0xff] %v7802_v45  ;;  %1589 = vrot.lane.b32.xlu0 %v7802_v45, %s6861_s14  ;;  %v7808_v36 = vsel %vm1238_vm4, %v1301_v47, %v1305_v33  ;;  %v1381_v30 = vor.u32 %v1379_v51, %v1377_v11  ;;  %6179 = vmatmul.mubr.msk.bf16.gmra.mrb[16].mxu0 %vm546_vm0, %v7217_v57  ;;  %v7815_v18 = vsel %vm7229_vm3, %v7578_v26, 0  ;;  %v1116_v50 = vshll.u32 %v7726_v15, 16 }
 0x1b1   : > { %1559 = vrot.lane.b32.xlu1 %v7808_v36, %s6861_s14  ;;  %v1533_v44 = vor.u32 %v1532_v21, %v1528_v40  ;;  %6182 = vmatprep.mubr.msk.bf16.mxu0 %vm546_vm0, %v7257_v32  ;;  %v1463_v33 = vshll.u32 %v7815_v18, 16  ;;  %v7824_v11 = vsel %vm963_vm1, %v1005_v8, %v1014_v37  ;;  %v7826_v57 = vrot.slane %v1113_v27, 7 }
 0x1b2   : > { %11713 = vst [vmem:[#allocation74_spill] sm:$0xff] %v7824_v11  ;;  %v1385_v41 = vrot.slane %v1383_v39, 1  ;;  %v1459_v26 = vshrl.u32 %v7744_v24, 16  ;;  %v1310_v47 = vshll.u32 %v7799_v61, 16  ;;  %v11714_v46 = vshll.u32 %v7660_v25, 16 }
 0x1b3   : > { %v7834_v40 = vsel %vm1238_vm4, %v1533_v44, %v1537_v1  ;;  %v1315_v32 = vshll.u32 %v7824_v11, 16  ;;  %v7840_v8 = vsel %vm7229_vm3, %v7532_v2, 0  ;;  %v1465_v21 = vrot.slane %v1463_v33, 1 }
 0x1b4   : > { %v1112_v51 = vor.u32 %v11714_v46, %v7722_v4  ;;  %11715 = vst [vmem:[#allocation75_spill] sm:$0xff] %v7834_v40  ;;  %1605 = vrot.lane.b32.xlu0 %v7834_v40, %s6861_s14  ;;  %v7845_v27 = vsel %vm1238_vm4, %v1381_v30, %v1385_v41  ;;  %v1461_v37 = vor.u32 %v1459_v26, %v1457_v5  ;;  %v1543_v39 = vshll.u32 %v7840_v8, 16 }
 0x1b5   : > { %1575 = vrot.lane.b32.xlu1 %v7845_v27, %s6861_s14  ;;  %v1308_v44 = vshrl.u32 %v7799_v61, 16  ;;  %v1312_v46 = vrot.slane %v1310_v47, 1  ;;  %v7854_v2 = vsel %vm963_vm1, %v7633_v22, %v7738_v52  ;;  %v7859_v30 = vsel %vm7229_vm3, 0, %v7667_v35 }
 0x1b6   : > { %11716 = vst [vmem:[#allocation76_spill] sm:$0xff] %v7854_v2  ;;  %11717 = vst [vmem:[#allocation77_spill] sm:$0xff] %v7859_v30  ;;  %v1118_v5 = vor.u32 %v1116_v50, %v7826_v57  ;;  %v1539_v33 = vshrl.u32 %v7779_v20, 16  ;;  %v1317_v41 = vrot.slane %v1315_v32, 1  ;;  %v1390_v26 = vshll.u32 %v7859_v30, 16 }
 0x1b7   : > { %v1395_v40 = vshll.u32 %v7854_v2, 16  ;;  %v7868_v22 = vsel %vm1238_vm4, %v1461_v37, %v1465_v21  ;;  %v1545_v47 = vrot.slane %v1543_v39, 1  ;;  %v7874_v35 = vsel %vm7229_vm3, 0, %v1112_v51 }
 0x1b8   : > { %1718 = vrot.lane.b32.xlu0 %v7191_v16, %s6862_s29  ;;  %11718 = vst [vmem:[#allocation78_spill] sm:$0xff] %v7868_v22  ;;  %v1541_v52 = vor.u32 %v1539_v33, %v1537_v1  ;;  %6183 = vmatmul.mubr.msk.bf16.gmra.mrb[20].mxu0 %vm546_vm0, %v7295_v12  ;;  %v1313_v50 = vor.u32 %v1312_v46, %v1308_v44  ;;  %v1388_v32 = vshrl.u32 %v7859_v30, 16  ;;  %v1392_v37 = vrot.slane %v1390_v26, 1 }
 0x1b9   : > { %1591 = vrot.lane.b32.xlu1 %v7868_v22, %s6861_s14  ;;  %6186 = vmatprep.mubr.msk.bf16.mxu0 %vm546_vm0, %v7414_v60  ;;  %v7883_v1 = vsel %vm963_vm1, %v7722_v4, %v1118_v5  ;;  %v1470_v12 = vshll.u32 %v7874_v35, 16  ;;  %v1397_v51 = vrot.slane %v1395_v40, 1  ;;  %v1468_v39 = vshrl.u32 %v7874_v35, 16  ;;  %v11744_v22 = vld [vmem:[#allocation65_spill] sm:$0xff] }
 0x1ba   : > { %11719 = vst [vmem:[#allocation79_spill] sm:$0xff] %v7883_v1  ;;  %v7887_v21 = vsel %vm1238_vm4, %v1313_v50, %v1317_v41  ;;  %v1225_v44 = vsel %vm7229_vm3, %v7763_v55, 0  ;;  %v7896_v60 = vsel %vm1238_vm4, %v1541_v52, %v1545_v47  ;;  %v1644_v4 = vrot.slane %v7322_v7, 1 }
 0x1bb   : > { %11720 = vst [vmem:[#allocation80_spill] sm:$0xff] %v7896_v60  ;;  %v1472_v46 = vrot.slane %v1470_v12, 1  ;;  %v1323_v5 = vshll.u32 %v1225_v44, 16  ;;  %v1393_v40 = vor.u32 %v1392_v37, %v1388_v32  ;;  %v1475_v33 = vshll.u32 %v7883_v1, 16 }
 0x1bc   : > { %1561 = vrot.lane.b32.xlu0 %v7887_v21, %s6861_s14  ;;  %v1643_v26 = vrot.slane %v7241_v9, 1  ;;  %v1319_v55 = vshrl.u32 %v7824_v11, 16  ;;  %v7910_v52 = vsel %vm7229_vm3, %v7713_v13, 0  ;;  %v1399_v13 = vshrl.u32 %v7854_v2, 16 }
 0x1bd   : > { %1607 = vrot.lane.b32.xlu1 %v7896_v60, %s6861_s14  ;;  %v7905_v50 = vsel %vm1238_vm4, %v1393_v40, %v1397_v51  ;;  %v1473_v16 = vor.u32 %v1472_v46, %v1468_v39  ;;  %v1325_v37 = vrot.slane %v1323_v5, 1  ;;  %v1403_v12 = vshll.u32 %v7910_v52, 16 }
 0x1be   : > { %v7915_v47 = vsel %vm1640_vm5, %v1643_v26, %v1644_v4  ;;  %v1321_v32 = vor.u32 %v1319_v55, %v1317_v41  ;;  %v1477_v39 = vrot.slane %v1475_v33, 1  ;;  %v7928_v46 = vsel %vm7229_vm3, %v7826_v57, 0 }
 0x1bf   : > { %v1405_v40 = vrot.slane %v1403_v12, 1  ;;  %v1483_v33 = vshll.u32 %v7928_v46, 16  ;;  %v1646_v57 = vrot.slane %v7351_v31, 1  ;;  %v11722_v31 = vrot.slane %v7452_v34, 1 }
 0x1c0   : > { %1577 = vrot.lane.b32.xlu0 %v7905_v50, %s6861_s14  ;;  %6187 = vmatmul.mubr.msk.bf16.gmra.mrb[24].mxu0 %vm546_vm0, %v7516_v49  ;;  %v7931_v41 = vsel %vm1238_vm4, %v1473_v16, %v1477_v39  ;;  %v1401_v49 = vor.u32 %v1399_v13, %v1397_v51  ;;  %v7936_v5 = vsel %vm1238_vm4, %v1321_v32, %v1325_v37  ;;  %v1651_v32 = vrot.slane %v7612_v56, 1 }
 0x1c1   : > { %1720 = vrot.lane.b32.xlu1 %v7915_v47, %s6862_s29  ;;  %6190 = vmatprep.mubr.msk.bf16.mxu0 %vm546_vm0, %v7592_v14  ;;  %11721 = vst [vmem:[#allocation81_spill] sm:$0xff] %v7931_v41  ;;  %v1479_v14 = vshrl.u32 %v7883_v1, 16  ;;  %v7944_v16 = vsel %vm1640_vm5, %v1644_v4, %v1646_v57  ;;  %v1485_v55 = vrot.slane %v1483_v33, 1  ;;  %v1654_v37 = vrot.slane %v7677_v19, 1 }
 0x1c2   : > { %v7949_v51 = vsel %vm1238_vm4, %v1401_v49, %v1405_v40  ;;  %v7961_v4 = vsel %vm1640_vm5, %v11722_v31, %v1651_v32  ;;  %v1656_v12 = vrot.slane %v7773_v59, 1  ;;  %v1659_v56 = vrot.slane %v7824_v11, 1  ;;  %v11724_v59 = vld [vmem:[#allocation25_spill] sm:$0xff]  ;;  %v11725_v40 = vld [vmem:[#allocation28_spill] sm:$0xff] }
 0x1c3   : > { %v1481_v26 = vor.u32 %v1479_v14, %v1477_v39  ;;  %v1661_v39 = vrot.slane %v1225_v44, 1  ;;  %v1653_v13 = vrot.slane %v7539_v17, 1  ;;  %v1664_v14 = vrot.slane %v11725_v40, 1 }
 0x1c4   : > { %1593 = vrot.lane.b32.xlu0 %v7931_v41, %s6861_s14  ;;  %v1658_v57 = vrot.slane %v7799_v61, 1  ;;  %v1674_v60 = vrot.slane %v7701_v6, 1 }
 0x1c5   : > { %1563 = vrot.lane.b32.xlu1 %v7936_v5, %s6861_s14  ;;  %v7986_v49 = vsel %vm1640_vm5, %v1659_v56, %v1661_v39  ;;  %v7992_v44 = vsel %vm1640_vm5, %v1653_v13, %v1654_v37  ;;  %v11732_v13 = vld [vmem:[#allocation29_spill] sm:$0xff] }
 0x1c6   : > { %v8005_v31 = vsel %vm1640_vm5, %v1658_v57, %v1659_v56  ;;  %v1676_v56 = vrot.slane %v7794_v58, 1 }
 0x1c8   : > { %1722 = vrot.lane.b32.xlu0 %v7944_v16, %s6862_s29  ;;  %6191 = vmatmul.mubr.msk.bf16.gmra.mrb[28].mxu0 %vm546_vm0, %v7673_v53  ;;  %v7968_v53 = vsel %vm1238_vm4, %v1481_v26, %v1485_v55  ;;  %v11728_v55 = vld [vmem:[#allocation48_spill] sm:$0xff] }
 0x1c9   : > { %1579 = vrot.lane.b32.xlu1 %v7949_v51, %s6861_s14  ;;  %6194 = vmatprep.mubr.msk.bf16.mxu0 %vm546_vm0, %v7195_v29  ;;  %11723 = vst [vmem:[#allocation82_spill] sm:$0xff] %v7968_v53  ;;  %v7973_v29 = vsel %vm1640_vm5, %v1654_v37, %v1656_v12  ;;  %v1669_v32 = vrot.slane %v11728_v55, 1  ;;  %v11729_v37 = vld [vmem:[#allocation27_spill] sm:$0xff]  ;;  %v11730_v12 = vld [vmem:[#allocation62_spill] sm:$0xff] }
 0x1ca   : > { %v1671_v39 = vrot.slane %v11730_v12, 1 }
 0x1cc   : > { %1726 = vrot.lane.b32.xlu0 %v7961_v4, %s6862_s29 }
 0x1cd   : > { %1595 = vrot.lane.b32.xlu1 %v7968_v53, %s6861_s14  ;;  %v1681_v53 = vrot.slane %v7910_v52, 1  ;;  %v11739_v52 = vld [vmem:[#allocation30_spill] sm:$0xff] }
 0x1ce   : > { %v1684_v41 = vrot.slane %v11739_v52, 1 }
 0x1d0   : > { %1730 = vrot.lane.b32.xlu0 %v7973_v29, %s6862_s29  ;;  %6195 = vmatmul.mubr.msk.bf16.gmra.mrb[32].mxu0 %vm546_vm0, %v7233_v0  ;;  %v11726_v0 = vld [vmem:[#allocation40_spill] sm:$0xff] }
 0x1d1   : > { %1724 = vrot.lane.b32.xlu1 %v7473_v54, %s6862_s29  ;;  %6198 = vmatprep.mubr.msk.bf16.mxu0 %vm546_vm0, %v11724_v59  ;;  %v1666_v33 = vrot.slane %v11726_v0, 1  ;;  %v11731_v59 = vld [vmem:[#allocation36_spill] sm:$0xff]  ;;  %v1663_v0 = vrot.slane %v11732_v13, 1 }
 0x1d3   : > { %v7999_v26 = vsel %vm1640_vm5, %v1664_v14, %v1666_v33  ;;  %v8016_v33 = vsel %vm1640_vm5, %v1669_v32, %v1671_v39  ;;  %v8023_v57 = vsel %vm1640_vm5, %v1663_v0, %v1664_v14  ;;  %v1679_v39 = vrot.slane %v7854_v2, 1  ;;  %v11737_v14 = vld [vmem:[#allocation47_spill] sm:$0xff] }
 0x1d4   : > { %1734 = vrot.lane.b32.xlu0 %v7986_v49, %s6862_s29  ;;  %11727 = vst [vmem:[#allocation25_spill] sm:$0xff] %v7999_v26  ;;  %11733 = vst [vmem:[#allocation40_spill] sm:$0xff] %v8016_v33  ;;  %v1673_v0 = vrot.slane %v7710_v3, 1 }
 0x1d5   : > { %1728 = vrot.lane.b32.xlu1 %v7992_v44, %s6862_s29 }
 0x1d8   : > { %1738 = vrot.lane.b32.xlu0 %v7999_v26, %s6862_s29  ;;  %6199 = vmatmul.mubr.msk.bf16.gmra.mrb[36].mxu0 %vm546_vm0, %v11729_v37  ;;  %v11734_v37 = vld [vmem:[#allocation49_spill] sm:$0xff] }
 0x1d9   : > { %1732 = vrot.lane.b32.xlu1 %v8005_v31, %s6862_s29  ;;  %6202 = vmatprep.mubr.msk.bf16.mxu0 %vm546_vm0, %v11731_v59  ;;  %v1668_v12 = vrot.slane %v11734_v37, 1  ;;  %v8029_v59 = vsel %vm1640_vm5, %v1674_v60, %v1676_v56  ;;  %v8046_v56 = vsel %vm1640_vm5, %v1679_v39, %v1681_v53  ;;  %v11743_v53 = vld [vmem:[#allocation51_spill] sm:$0xff] }
 0x1da   : > { %11735 = vst [vmem:[#allocation27_spill] sm:$0xff] %v8029_v59  ;;  %11738 = vst [vmem:[#allocation36_spill] sm:$0xff] %v8046_v56 }
 0x1db   : > { %v8036_v58 = vsel %vm1640_vm5, %v1668_v12, %v1669_v32  ;;  %v8053_v32 = vsel %vm1640_vm5, %v1673_v0, %v1674_v60 }
 0x1dc   : > { %1742 = vrot.lane.b32.xlu0 %v8016_v33, %s6862_s29  ;;  %11736 = vst [vmem:[#allocation62_spill] sm:$0xff] %v8036_v58  ;;  %11741 = vst [vmem:[#allocation47_spill] sm:$0xff] %v8053_v32 }
 0x1dd   : > { %1736 = vrot.lane.b32.xlu1 %v8023_v57, %s6862_s29 }
 0x1e0   : > { %1746 = vrot.lane.b32.xlu0 %v8029_v59, %s6862_s29  ;;  %6203 = vmatmul.mubr.msk.bf16.gmra.mrb[40].mxu0 %vm546_vm0, %v11737_v14  ;;  %v11740_v59 = vld [vmem:[#allocation42_spill] sm:$0xff]  ;;  %v1689_v14 = vrot.slane %v11743_v53, 1 }
 0x1e1   : > { %1740 = vrot.lane.b32.xlu1 %v8036_v58, %s6862_s29  ;;  %6206 = vmatprep.mubr.msk.bf16.mxu0 %vm546_vm0, %v7660_v25  ;;  %v1686_v33 = vrot.slane %v11740_v59, 1  ;;  %v1678_v25 = vrot.slane %v7859_v30, 1  ;;  %v1691_v58 = vrot.slane %v11744_v22, 1  ;;  %v11748_v59 = vld [vmem:[#allocation32_spill] sm:$0xff] }
 0x1e2   : > { %v1683_v0 = vrot.slane %v11748_v59, 1 }
 0x1e3   : > { %v8059_v12 = vsel %vm1640_vm5, %v1684_v41, %v1686_v33  ;;  %v8068_v60 = vsel %vm1640_vm5, %v1678_v25, %v1679_v39  ;;  %v11747_v33 = vld [vmem:[#allocation21_spill] sm:$0xff]  ;;  %v8078_v22 = vsel %vm1640_vm5, %v1689_v14, %v1691_v58  ;;  %v11751_v39 = vld [vmem:[#allocation52_spill] sm:$0xff] }
 0x1e4   : > { %1750 = vrot.lane.b32.xlu0 %v8046_v56, %s6862_s29  ;;  %11742 = vst [vmem:[#allocation30_spill] sm:$0xff] %v8059_v12  ;;  %11746 = vst [vmem:[#allocation51_spill] sm:$0xff] %v8068_v60  ;;  %v1688_v25 = vrot.slane %v11751_v39, 1  ;;  %v1699_v56 = vrot.slane %v7883_v1, 1 }
 0x1e5   : > { %1744 = vrot.lane.b32.xlu1 %v8053_v32, %s6862_s29  ;;  %v8063_v45 = vpop.permute.xlu1 %1549  ;;  %11749 = vst [vmem:[#allocation65_spill] sm:$0xff] %v8078_v22  ;;  %v11771_v32 = vld [vmem:[#allocation60_spill] sm:$0xff] }
 0x1e6   : > { %11745 = vst [vmem:[#allocation42_spill] sm:$0xff] %v8063_v45  ;;  %v1694_v45 = vrot.slane %v7744_v24, 1 }
 0x1e8   : > { %1754 = vrot.lane.b32.xlu0 %v8059_v12, %s6862_s29  ;;  %6207 = vmatmul.mubr.msk.bf16.gmra.mrb[44].mxu0 %vm546_vm0, %v7726_v15  ;;  %v1696_v12 = vrot.slane %v7815_v18, 1  ;;  %v8085_v15 = vsel %vm1640_vm5, %v1683_v0, %v1684_v41  ;;  %v1701_v18 = vrot.slane %v7928_v46, 1  ;;  %v8100_v41 = vsel %vm1640_vm5, %v1688_v25, %v1689_v14  ;;  %v11760_v14 = vld [vmem:[#allocation50_spill] sm:$0xff] }
 0x1e9   : > { %1748 = vrot.lane.b32.xlu1 %v8068_v60, %s6862_s29  ;;  %6210 = vmatprep.mubr.msk.bf16.mxu0 %vm546_vm0, %v11747_v33  ;;  %11750 = vst [vmem:[#allocation21_spill] sm:$0xff] %v8085_v15  ;;  %v8090_v33 = vpop.permute.xlu1 %1551  ;;  %11754 = vst [vmem:[#allocation84_spill] sm:$0xff] %v8100_v41  ;;  %v1693_v0 = vrot.slane %v7749_v38, 1  ;;  %v1706_v25 = vrot.slane %v11760_v14, 1  ;;  %v1709_v14 = vrot.slane %v7597_v62, 1 }
 0x1ea   : > { %11752 = vst [vmem:[#allocation52_spill] sm:$0xff] %v8090_v33  ;;  %v8093_v58 = vsel %vm1640_vm5, %v1694_v45, %v1696_v12  ;;  %v11756_v12 = vld [vmem:[#allocation24_spill] sm:$0xff]  ;;  %v8109_v33 = vpop.permute.xlu0 %1547  ;;  %v8112_v46 = vsel %vm1640_vm5, %v1699_v56, %v1701_v18 }
 0x1eb   : > { %11753 = vst [vmem:[#allocation83_spill] sm:$0xff] %v8093_v58  ;;  %11758 = vst [vmem:[#allocation24_spill] sm:$0xff] %v8112_v46 }
 0x1ec   : > { %1758 = vrot.lane.b32.xlu0 %v8078_v22, %s6862_s29  ;;  %v11755_v22 = vld [vmem:[#allocation22_spill] sm:$0xff] }
 0x1ed   : > { %1752 = vrot.lane.b32.xlu1 %v8085_v15, %s6862_s29  ;;  %11757 = vst [vmem:[#allocation22_spill] sm:$0xff] %v8109_v33 }
 0x1f0   : > { %1762 = vrot.lane.b32.xlu0 %v8093_v58, %s6862_s29  ;;  %6211 = vmatmul.mubr.msk.bf16.gmra.mrb[48].mxu0 %vm546_vm0, %v11755_v22  ;;  %v11759_v58 = vld [vmem:[#allocation38_spill] sm:$0xff]  ;;  %v8121_v22 = vsel %vm1640_vm5, %v1693_v0, %v1694_v45 }
 0x1f1   : > { %1756 = vrot.lane.b32.xlu1 %v8100_v41, %s6862_s29  ;;  %6214 = vmatprep.mubr.msk.bf16.mxu0 %vm546_vm0, %v11756_v12  ;;  %v1704_v15 = vrot.slane %v11759_v58, 1  ;;  %11762 = vst [vmem:[#allocation85_spill] sm:$0xff] %v8121_v22  ;;  %v1698_v41 = vrot.slane %v7874_v35, 1  ;;  %v8129_v12 = vpop.permute.xlu0 %1565  ;;  %v11766_v0 = vld [vmem:[#allocation26_spill] sm:$0xff] }
 0x1f2   : > { %11764 = vst [vmem:[#allocation87_spill] sm:$0xff] %v8129_v12 }
 0x1f3   : > { %v8116_v60 = vpop.permute.xlu1 %1567  ;;  %v8127_v18 = vsel %vm1640_vm5, %v1704_v15, %v1706_v25  ;;  %v8136_v45 = vsel %vm1640_vm5, %v1698_v41, %v1699_v56  ;;  %v11767_v25 = vld [vmem:[#allocation34_spill] sm:$0xff]  ;;  %v1714_v41 = vrot.slane %v7779_v20, 1 }
 0x1f4   : > { %11761 = vst [vmem:[#allocation50_spill] sm:$0xff] %v8116_v60  ;;  %1766 = vrot.lane.b32.xlu0 %v8112_v46, %s6862_s29  ;;  %11763 = vst [vmem:[#allocation86_spill] sm:$0xff] %v8127_v18  ;;  %v1711_v60 = vrot.slane %v7733_v43, 1  ;;  %v11769_v46 = vld [vmem:[#allocation55_spill] sm:$0xff] }
 0x1f5   : > { %1760 = vrot.lane.b32.xlu1 %v8121_v22, %s6862_s29  ;;  %11765 = vst [vmem:[#allocation88_spill] sm:$0xff] %v8136_v45  ;;  %v6560_v22 = vunpack.i.h.bf16 %v11769_v46  ;;  %v11770_v43 = vld [vmem:[#allocation39_spill] sm:$0xff]  ;;  %v8162_v46 = vpop.permute.xlu0 %1581 }
 0x1f6   : > { %v1703_v33 = vrot.slane %v11770_v43, 1  ;;  %v8150_v56 = vsel %vm1640_vm5, %v1709_v14, %v1711_v60  ;;  %11775 = vst [vmem:[#allocation60_spill] sm:$0xff] %v8162_v46 }
 0x1f7   : > { %v8144_v12 = vpop.permute.xlu1 %1583  ;;  %11772 = vst [vmem:[#allocation34_spill] sm:$0xff] %v8150_v56 }
 0x1f8   : > { %1770 = vrot.lane.b32.xlu0 %v8127_v18, %s6862_s29  ;;  %6215 = vmatmul.mubr.msk.bf16.gmra.mrb[52].mxu0 %vm546_vm0, %v11766_v0  ;;  %11768 = vst [vmem:[#allocation26_spill] sm:$0xff] %v8144_v12  ;;  %v6565_v18 = vunpack.i.h.bf16 %v11771_v32  ;;  %v1716_v0 = vrot.slane %v7840_v8, 1  ;;  %v11774_v12 = vld [vmem:[#allocation59_spill] sm:$0xff] }
 0x1f9   : > { %1764 = vrot.lane.b32.xlu1 %v8136_v45, %s6862_s29  ;;  %6218 = vmatprep.mubr.msk.bf16.mxu0 %vm546_vm0, %v11767_v25  ;;  %v8157_v25 = vsel %vm1640_vm5, %v1703_v33, %v1704_v15  ;;  %v1708_v45 = vrot.slane %v11774_v12, 1  ;;  %v1713_v15 = vrot.slane %v7786_v28, 1  ;;  %v11779_v33 = vld [vmem:[#allocation46_spill] sm:$0xff] }
 0x1fa   : > { %11773 = vst [vmem:[#allocation55_spill] sm:$0xff] %v8157_v25  ;;  %v8165_v32 = vsel %vm1640_vm5, %v1714_v41, %v1716_v0  ;;  %v8167_v60 = vpack.c.bf16 %v6565_v18, %v6560_v22  ;;  %v6570_v22 = vunpack.i.h.bf16 %v7655_v42  ;;  %v6575_v18 = vunpack.i.h.bf16 %v7693_v23  ;;  %v8185_v0 = vpop.permute.xlu0 %1597  ;;  %v11783_v23 = vld [vmem:[#allocation44_spill] sm:$0xff] }
 0x1fb   : > { %11776 = vst [vmem:[#allocation89_spill] sm:$0xff] %v8165_v32  ;;  %v8174_v8 = vsel %vm1640_vm5, %v1708_v45, %v1709_v14  ;;  %11780 = vst [vmem:[#allocation46_spill] sm:$0xff] %v8185_v0  ;;  %v8190_v14 = vsel %vm1640_vm5, %v1713_v15, %v1714_v41 }
 0x1fc   : > { %1774 = vrot.lane.b32.xlu0 %v8150_v56, %s6862_s29  ;;  %11778 = vst [vmem:[#allocation91_spill] sm:$0xff] %v8174_v8  ;;  %11781 = vst [vmem:[#allocation92_spill] sm:$0xff] %v8190_v14 }
 0x1fd   : > { %1768 = vrot.lane.b32.xlu1 %v8157_v25, %s6862_s29 }
 0x200   : > { %1778 = vrot.lane.b32.xlu0 %v8165_v32, %s6862_s29  ;;  %6219 = vmatmul.mubr.msk.bf16.gmra.mrb[56].mxu0 %vm546_vm0, %v11779_v33  ;;  %v8196_v33 = vpack.c.bf16 %v6575_v18, %v6570_v22 }
 0x201   : > { %v8169_v26 = vpop.permute.xlu1 %1599  ;;  %1772 = vrot.lane.b32.xlu1 %v8174_v8, %s6862_s29  ;;  %6222 = vmatprep.mubr.msk.bf16.mxu0 %vm546_vm0, %v8167_v60 }
 0x202   : > { %11777 = vst [vmem:[#allocation90_spill] sm:$0xff] %v8169_v26  ;;  %v8198_v26 = vpop.permute.xlu0 %1569  ;;  %v1168_v25 = vshll.u32 %v8196_v33, 16 }
 0x203   : > { %11782 = vst [vmem:[#allocation93_spill] sm:$0xff] %v8198_v26 }
 0x204   : > { %1783 = vrot.lane.b32.xlu0 %v7322_v7, %s6863_s13 }
 0x205   : > { %1776 = vrot.lane.b32.xlu1 %v8190_v14, %s6862_s29 }
 0x206   : > { %v8194_v45 = vpop.permute.xlu1 %1553  ;;  %v8212_v41 = vpop.permute.xlu0 %1585 }
 0x207   : > { %11784 = vst [vmem:[#allocation44_spill] sm:$0xff] %v8212_v41 }
 0x208   : > { %1787 = vrot.lane.b32.xlu0 %v7452_v34, %s6863_s13  ;;  %6223 = vmatmul.mubr.msk.bf16.gmra.mrb[60].mxu0 %vm546_vm0, %v8196_v33 }
 0x209   : > { %1781 = vrot.lane.b32.xlu1 %v7241_v9, %s6863_s13 }
 0x20c   : > { %1791 = vrot.lane.b32.xlu0 %v7677_v19, %s6863_s13 }
 0x20d   : > { %v8206_v42 = vpop.permute.xlu1 %1555  ;;  %1785 = vrot.lane.b32.xlu1 %v11783_v23, %s6863_s13 }
 0x20e   : > { %v8220_v22 = vpop.permute.xlu0 %1601 }
 0x20f   : > { %11786 = vst [vmem:[#allocation95_spill] sm:$0xff] %v8220_v22 }
 0x210   : > { %1795 = vrot.lane.b32.xlu0 %v7824_v11, %s6863_s13 }
 0x211   : > { %1789 = vrot.lane.b32.xlu1 %v7539_v17, %s6863_s13  ;;  %v8218_v15 = vpop.permute.xlu1 %1571 }
 0x212   : > { %11785 = vst [vmem:[#allocation94_spill] sm:$0xff] %v8218_v15 }
 0x214   : > { %1799 = vrot.lane.b32.xlu0 %v11725_v40, %s6863_s13 }
 0x215   : > { %1793 = vrot.lane.b32.xlu1 %v7799_v61, %s6863_s13 }
 0x216   : > { %v8226_v18 = vpop.permute.xlu0 %1557  ;;  %v8228_v0 = vpop.permute.xlu1 %1587 }
 0x217   : > { %11787 = vst [vmem:[#allocation96_spill] sm:$0xff] %v8228_v0 }
 0x218   : > { %1803 = vrot.lane.b32.xlu0 %v11728_v55, %s6863_s13 }
 0x219   : > { %1797 = vrot.lane.b32.xlu1 %v11732_v13, %s6863_s13 }
 0x21c   : > { %1807 = vrot.lane.b32.xlu0 %v7701_v6, %s6863_s13 }
 0x21d   : > { %1801 = vrot.lane.b32.xlu1 %v11734_v37, %s6863_s13  ;;  %v8238_v22 = vpop.permute.xlu0 %1573  ;;  %v8240_v41 = vpop.permute.xlu1 %1603 }
 0x21e   : > { %11788 = vst [vmem:[#allocation97_spill] sm:$0xff] %v8238_v22  ;;  %11789 = vst [vmem:[#allocation98_spill] sm:$0xff] %v8240_v41 }
 0x220   : > { %1811 = vrot.lane.b32.xlu0 %v7854_v2, %s6863_s13 }
 0x221   : > { %1805 = vrot.lane.b32.xlu1 %v7710_v3, %s6863_s13 }
 0x222   : > { %v8246_v0 = vpop.permute.xlu0 %1589 }
 0x223   : > { %11790 = vst [vmem:[#allocation99_spill] sm:$0xff] %v8246_v0  ;;  %v8248_v46 = vpop.permute.xlu1 %1559 }
 0x224   : > { %11791 = vst [vmem:[#allocation100_spill] sm:$0xff] %v8248_v46  ;;  %1815 = vrot.lane.b32.xlu0 %v11739_v52, %s6863_s13 }
 0x225   : > { %1809 = vrot.lane.b32.xlu1 %v7859_v30, %s6863_s13 }
 0x226   : > { %v8254_v15 = vpop.permute.xlu0 %1605 }
 0x227   : > { %11792 = vst [vmem:[#allocation101_spill] sm:$0xff] %v8254_v15  ;;  %v8256_v22 = vpop.permute.xlu1 %1575 }
 0x228   : > { %11793 = vst [vmem:[#allocation102_spill] sm:$0xff] %v8256_v22  ;;  %1819 = vrot.lane.b32.xlu0 %v11743_v53, %s6863_s13  ;;  %v11802_v22 = vmov 0  }
 0x229   : > { %1813 = vrot.lane.b32.xlu1 %v11748_v59, %s6863_s13 }
 0x22a   : > { %v8266_v26 = vpop.permute.xlu0 %1718 }
 0x22b   : > { %v8270_v32 = vpop.permute.xlu1 %1591 }
 0x22c   : > { %11797 = vst [vmem:[#allocation106_spill] sm:$0xff] %v8270_v32  ;;  %1823 = vrot.lane.b32.xlu0 %v7744_v24, %s6863_s13 }
 0x22d   : > { %1817 = vrot.lane.b32.xlu1 %v11751_v39, %s6863_s13 }
 0x22f   : > { %v8280_v15 = vpop.permute.xlu1 %1607 }
 0x230   : > { %v8260_v41 = vpop.f32.mrb[0].mxu0  ;;  %11800 = vst [vmem:[#allocation109_spill] sm:$0xff] %v8280_v15  ;;  %1827 = vrot.lane.b32.xlu0 %v7883_v1, %s6863_s13  ;;  %v6578_v15 = vld [vmem:[#allocation10 + $0x8] sm:$0xff]  }
 0x231   : > { %11794 = vst [vmem:[#allocation103_spill] sm:$0xff] %v8260_v41  ;;  %v8264_v0 = vpop.f32.mrb[1].mxu0  ;;  %v8278_v41 = vpop.permute.xlu0 %1561  ;;  %1821 = vrot.lane.b32.xlu1 %v7749_v38, %s6863_s13 }
 0x232   : > { %11795 = vst [vmem:[#allocation104_spill] sm:$0xff] %v8264_v0  ;;  %v8268_v14 = vpop.f32.mrb[2].mxu0  ;;  %11799 = vst [vmem:[#allocation108_spill] sm:$0xff] %v8278_v41 }
 0x233   : > { %11796 = vst [vmem:[#allocation105_spill] sm:$0xff] %v8268_v14  ;;  %v8272_v8 = vpop.f32.mrb[3].mxu0  ;;  %v6577_v14 = vld [vmem:[#allocation10] sm:$0xff]   ;;  %v8289_v32 = vpop.permute.xlu1 %1720 }
 0x234   : > { %11798 = vst [vmem:[#allocation107_spill] sm:$0xff] %v8272_v8  ;;  %v1165_v8 = vshrl.u32 %v8196_v33, 16  ;;  %2751 = vmatpush1.bf16.msra.mxu1 %v6577_v14  ;;  %1831 = vrot.lane.b32.xlu0 %v11759_v58, %s6863_s13  ;;  %v1159_v14 = vshrl.u32 %v8167_v60, 16  ;;  %v6579_v58 = vld [vmem:[#allocation10 + $0x10] sm:$0xff]  }
 0x235   : > { %v8286_v0 = vpop.permute.xlu0 %1577  ;;  %2752 = vmatprep.subr.bf16.mxu1 %v11802_v22  ;;  %1825 = vrot.lane.b32.xlu1 %v7874_v35, %s6863_s13 }
 0x236   : > { %11801 = vst [vmem:[#allocation110_spill] sm:$0xff] %v8286_v0  ;;  %v8301_v0 = vrot.slane %v1165_v8, 7  ;;  %v1161_v8 = vrot.slane %v1159_v14, 7 }
 0x237   : > { %v8299_v41 = vpop.permute.xlu1 %1563 }
 0x238   : > { %11804 = vst [vmem:[#allocation112_spill] sm:$0xff] %v8299_v41  ;;  %2753 = vmatpush1.bf16.msra.mxu1 %v6578_v15  ;;  %1835 = vrot.lane.b32.xlu0 %v7597_v62, %s6863_s13  ;;  %v1170_v33 = vor.u32 %v1168_v25, %v8301_v0  ;;  %v1162_v15 = vshll.u32 %v8167_v60, 16  ;;  %v6580_v62 = vld [vmem:[#allocation10 + $0x18] sm:$0xff]   ;;  %v6581_v60 = vld [vmem:[#allocation10 + $0x20] sm:$0xff]  }
 0x239   : > { %v8296_v56 = vpop.permute.xlu0 %1593  ;;  %2754 = vmatprep.subr.bf16.mxu1 %v11802_v22  ;;  %1829 = vrot.lane.b32.xlu1 %v11770_v43, %s6863_s13 }
 0x23a   : > { %11803 = vst [vmem:[#allocation111_spill] sm:$0xff] %v8296_v56 }
 0x23b   : > { %v8311_v56 = vpop.permute.xlu1 %1579 }
 0x23c   : > { %11805 = vst [vmem:[#allocation113_spill] sm:$0xff] %v8311_v56  ;;  %2755 = vmatpush1.bf16.msra.mxu1 %v6579_v58  ;;  %1839 = vrot.lane.b32.xlu0 %v7779_v20, %s6863_s13  ;;  %v8325_v56 = vsel %vm963_vm1, %v1161_v8, %v1170_v33  ;;  %v1164_v58 = vor.u32 %v1162_v15, %v1161_v8 }
 0x23d   : > { %v8309_v46 = vpop.permute.xlu0 %1722  ;;  %2756 = vmatprep.subr.bf16.mxu1 %v11802_v22  ;;  %1833 = vrot.lane.b32.xlu1 %v11774_v12, %s6863_s13  ;;  %v6584_v12 = vld [vmem:[#allocation10 + $0x38] sm:$0xff]  }
 0x23e   : > { %v8346_v8 = vsel %vm7229_vm3, 0, %v1164_v58  ;;  %v11816_v58 = vld [vmem:[#allocation33_spill] sm:$0xff] }
 0x23f   : > { %v8322_v43 = vpop.permute.xlu1 %1595 }
 0x240   : > { %11806 = vst [vmem:[#allocation114_spill] sm:$0xff] %v8322_v43  ;;  %2757 = vmatpush1.bf16.msra.mxu1 %v6580_v62  ;;  %1843 = vrot.lane.b32.xlu0 %v8325_v56, %s6863_s13  ;;  %v11811_v62 = vld [vmem:[#allocation35_spill] sm:$0xff] }
 0x241   : > { %v8320_v41 = vpop.permute.xlu0 %1726  ;;  %2758 = vmatprep.subr.bf16.mxu1 %v11802_v22  ;;  %1837 = vrot.lane.b32.xlu1 %v7786_v28, %s6863_s13 }
 0x243   : > { %v8338_v43 = vpop.permute.xlu1 %1724 }
 0x244   : > { %2759 = vmatpush1.bf16.msra.mxu1 %v6581_v60  ;;  %1867 = vrot.lane.b32.xlu0 %v11811_v62, %s6864_s16  ;;  %v11815_v60 = vld [vmem:[#allocation61_spill] sm:$0xff] }
 0x245   : > { %v8334_v14 = vpop.permute.xlu0 %1730  ;;  %2760 = vmatprep.subr.bf16.mxu1 %v11802_v22  ;;  %1841 = vrot.lane.b32.xlu1 %v8346_v8, %s6863_s13  ;;  %v6583_v62 = vld [vmem:[#allocation10 + $0x30] sm:$0xff]  }
 0x246   : > { %11808 = vst [vmem:[#allocation116_spill] sm:$0xff] %v8334_v14 }
 0x248   : > { %v8332_v25 = vpop.f32.mrb[4].mxu0  ;;  %1871 = vrot.lane.b32.xlu0 %v11815_v60, %s6864_s16 }
 0x249   : > { %11807 = vst [vmem:[#allocation115_spill] sm:$0xff] %v8332_v25  ;;  %v8336_v20 = vpop.f32.mrb[5].mxu0  ;;  %v8353_v25 = vpop.permute.xlu0 %1734  ;;  %1865 = vrot.lane.b32.xlu1 %v11816_v58, %s6864_s16  ;;  %v6585_v58 = vld [vmem:[#allocation10 + $0x40] sm:$0xff]  }
 0x24a   : > { %11809 = vst [vmem:[#allocation117_spill] sm:$0xff] %v8336_v20  ;;  %v8340_v33 = vpop.f32.mrb[6].mxu0  ;;  %v6582_v20 = vld [vmem:[#allocation10 + $0x28] sm:$0xff]   ;;  %11813 = vst [vmem:[#allocation119_spill] sm:$0xff] %v8353_v25 }
 0x24b   : > { %11810 = vst [vmem:[#allocation118_spill] sm:$0xff] %v8340_v33  ;;  %v8348_v15 = vpop.f32.mrb[7].mxu0  ;;  %v8355_v33 = vpop.permute.xlu1 %1728  ;;  %2761 = vmatpush1.bf16.msra.mxu1 %v6582_v20  ;;  %v11819_v20 = vld [vmem:[#allocation56_spill] sm:$0xff] }
 0x24c   : > { %11812 = vst [vmem:[#allocation35_spill] sm:$0xff] %v8348_v15  ;;  %11814 = vst [vmem:[#allocation120_spill] sm:$0xff] %v8355_v33  ;;  %2762 = vmatprep.subr.bf16.mxu1 %v11802_v22  ;;  %1875 = vrot.lane.b32.xlu0 %v7808_v36, %s6864_s16 }
 0x24d   : > { %v8362_v15 = vpop.permute.xlu0 %1738  ;;  %1869 = vrot.lane.b32.xlu1 %v11819_v20, %s6864_s16 }
 0x24e   : > { %11817 = vst [vmem:[#allocation61_spill] sm:$0xff] %v8362_v15 }
 0x24f   : > { %v8364_v28 = vpop.permute.xlu1 %1732  ;;  %2763 = vmatpush1.bf16.msra.mxu1 %v6583_v62 }
 0x250   : > { %11818 = vst [vmem:[#allocation33_spill] sm:$0xff] %v8364_v28  ;;  %2764 = vmatprep.subr.bf16.mxu1 %v11802_v22  ;;  %1879 = vrot.lane.b32.xlu0 %v7936_v5, %s6864_s16  ;;  %v11824_v28 = vld [vmem:[#allocation41_spill] sm:$0xff] }
 0x251   : > { %v8371_v25 = vpop.permute.xlu0 %1742  ;;  %1873 = vrot.lane.b32.xlu1 %v7717_v48, %s6864_s16 }
 0x252   : > { %11820 = vst [vmem:[#allocation56_spill] sm:$0xff] %v8371_v25 }
 0x253   : > { %v8373_v14 = vpop.permute.xlu1 %1736  ;;  %2765 = vmatpush1.bf16.msra.mxu1 %v6584_v12 }
 0x254   : > { %11821 = vst [vmem:[#allocation121_spill] sm:$0xff] %v8373_v14  ;;  %2766 = vmatprep.subr.bf16.mxu1 %v11802_v22  ;;  %1883 = vrot.lane.b32.xlu0 %v11824_v28, %s6864_s16  ;;  %v11827_v22 = vld [vmem:[#allocation31_spill] sm:$0xff] }
 0x255   : > { %v8380_v62 = vpop.permute.xlu0 %1746  ;;  %1877 = vrot.lane.b32.xlu1 %v7887_v21, %s6864_s16 }
 0x256   : > { %11822 = vst [vmem:[#allocation122_spill] sm:$0xff] %v8380_v62 }
 0x257   : > { %v8382_v15 = vpop.permute.xlu1 %1740  ;;  %2767 = vmatpush1.bf16.msra.mxu1 %v6585_v58 }
 0x258   : > { %11823 = vst [vmem:[#allocation123_spill] sm:$0xff] %v8382_v15  ;;  %1999 = vrot.lane.b32.xlu0 %v11783_v23, %s6865_s25  ;;  %v11830_v15 = vld [vmem:[#allocation53_spill] sm:$0xff] }
 0x259   : > { %v8388_v12 = vpop.permute.xlu0 %1750  ;;  %1881 = vrot.lane.b32.xlu1 %v11827_v22, %s6864_s16 }
 0x25a   : > { %11825 = vst [vmem:[#allocation41_spill] sm:$0xff] %v8388_v12 }
 0x25b   : > { %v8390_v25 = vpop.permute.xlu1 %1744 }
 0x25c   : > { %11826 = vst [vmem:[#allocation124_spill] sm:$0xff] %v8390_v25  ;;  %1885 = vrot.lane.b32.xlu0 %v11830_v15, %s6864_s16 }
 0x25d   : > { %v8396_v62 = vpop.permute.xlu0 %1754  ;;  %1935 = vrot.lane.b32.xlu1 %v7915_v47, %s6866_s12 }
 0x25e   : > { %11828 = vst [vmem:[#allocation31_spill] sm:$0xff] %v8396_v62 }
 0x25f   : > { %v8398_v58 = vpop.permute.xlu1 %1748 }
 0x260   : > { %11829 = vst [vmem:[#allocation125_spill] sm:$0xff] %v8398_v58  ;;  %2001 = vrot.lane.b32.xlu0 %v7452_v34, %s6865_s25 }
 0x261   : > { %v8404_v12 = vpop.permute.xlu0 %1758  ;;  %2061 = vrot.lane.b32.xlu1 %v11819_v20, %s6867_s18 }
 0x262   : > { %11831 = vst [vmem:[#allocation53_spill] sm:$0xff] %v8404_v12 }
 0x263   : > { %v8406_v25 = vpop.permute.xlu1 %1752 }
 0x264   : > { %11832 = vst [vmem:[#allocation126_spill] sm:$0xff] %v8406_v25  ;;  %v8410_v14 = vpop.f32.mrb[8].mxu0  ;;  %v11839_v25 = vld [vmem:[#allocation64_spill] sm:$0xff] }
 0x265   : > { %11833 = vst [vmem:[#allocation127_spill] sm:$0xff] %v8410_v14  ;;  %v8414_v62 = vpop.f32.mrb[9].mxu0  ;;  %v8416_v58 = vpop.permute.xlu0 %1762  ;;  %1887 = vrot.lane.b32.xlu0 %v11839_v25, %s6864_s16  ;;  %1937 = vrot.lane.b32.xlu1 %v7944_v16, %s6866_s12 }
 0x266   : > { %11834 = vst [vmem:[#allocation128_spill] sm:$0xff] %v8414_v62  ;;  %11835 = vst [vmem:[#allocation129_spill] sm:$0xff] %v8416_v58  ;;  %v8418_v1 = vpop.f32.mrb[10].mxu0 }
 0x267   : > { %11836 = vst [vmem:[#allocation130_spill] sm:$0xff] %v8418_v1  ;;  %v8420_v47 = vpop.permute.xlu1 %1756  ;;  %v8422_v12 = vpop.f32.mrb[11].mxu0 }
 0x268   : > { %11837 = vst [vmem:[#allocation131_spill] sm:$0xff] %v8420_v47  ;;  %11838 = vst [vmem:[#allocation132_spill] sm:$0xff] %v8422_v12 }
 0x269   : > { %v8428_v14 = vpop.permute.xlu0 %1766  ;;  %2003 = vrot.lane.b32.xlu0 %v7539_v17, %s6865_s25  ;;  %2063 = vrot.lane.b32.xlu1 %v11815_v60, %s6867_s18 }
 0x26a   : > { %11840 = vst [vmem:[#allocation64_spill] sm:$0xff] %v8428_v14 }
 0x26b   : > { %v8430_v33 = vpop.permute.xlu1 %1760 }
 0x26c   : > { %11841 = vst [vmem:[#allocation133_spill] sm:$0xff] %v8430_v33 }
 0x26d   : > { %v8436_v20 = vpop.permute.xlu0 %1770  ;;  %1889 = vrot.lane.b32.xlu0 %v7758_v10, %s6864_s16  ;;  %1939 = vrot.lane.b32.xlu1 %v7473_v54, %s6866_s12 }
 0x26e   : > { %11842 = vst [vmem:[#allocation134_spill] sm:$0xff] %v8436_v20 }
 0x26f   : > { %v8438_v1 = vpop.permute.xlu1 %1764 }
 0x270   : > { %11843 = vst [vmem:[#allocation135_spill] sm:$0xff] %v8438_v1 }
 0x271   : > { %v8444_v16 = vpop.permute.xlu0 %1774  ;;  %2005 = vrot.lane.b32.xlu0 %v7677_v19, %s6865_s25  ;;  %2065 = vrot.lane.b32.xlu1 %v7717_v48, %s6867_s18 }
 0x272   : > { %11844 = vst [vmem:[#allocation136_spill] sm:$0xff] %v8444_v16 }
 0x273   : > { %v8446_v12 = vpop.permute.xlu1 %1768 }
 0x274   : > { %11845 = vst [vmem:[#allocation137_spill] sm:$0xff] %v8446_v12 }
 0x275   : > { %v8452_v60 = vpop.permute.xlu0 %1778  ;;  %1891 = vrot.lane.b32.xlu0 %v7845_v27, %s6864_s16  ;;  %1941 = vrot.lane.b32.xlu1 %v7961_v4, %s6866_s12 }
 0x276   : > { %11846 = vst [vmem:[#allocation138_spill] sm:$0xff] %v8452_v60 }
 0x277   : > { %v8454_v62 = vpop.permute.xlu1 %1772 }
 0x278   : > { %11847 = vst [vmem:[#allocation139_spill] sm:$0xff] %v8454_v62 }
 0x279   : > { %v8460_v54 = vpop.permute.xlu0 %1783  ;;  %2007 = vrot.lane.b32.xlu0 %v7799_v61, %s6865_s25  ;;  %2067 = vrot.lane.b32.xlu1 %v7808_v36, %s6867_s18 }
 0x27b   : > { %v8462_v16 = vpop.permute.xlu1 %1776  ;;  %v8472_v62 = vpop.f32.mrb[12].mxu0 }
 0x27c   : > { %11848 = vst [vmem:[#allocation140_spill] sm:$0xff] %v8462_v16  ;;  %11849 = vst [vmem:[#allocation141_spill] sm:$0xff] %v8472_v62  ;;  %v8476_v20 = vpop.f32.mrb[13].mxu0 }
 0x27d   : > { %v8468_v48 = vpop.permute.xlu0 %1787  ;;  %1893 = vrot.lane.b32.xlu0 %v7905_v50, %s6864_s16  ;;  %11850 = vst [vmem:[#allocation142_spill] sm:$0xff] %v8476_v20  ;;  %1943 = vrot.lane.b32.xlu1 %v7992_v44, %s6866_s12  ;;  %v8480_v16 = vpop.f32.mrb[14].mxu0 }
 0x27e   : > { %11851 = vst [vmem:[#allocation143_spill] sm:$0xff] %v8480_v16  ;;  %v8484_v14 = vpop.f32.mrb[15].mxu0 }
 0x27f   : > { %v8470_v60 = vpop.permute.xlu1 %1781  ;;  %11852 = vst [vmem:[#allocation144_spill] sm:$0xff] %v8484_v14 }
 0x281   : > { %v8482_v12 = vpop.permute.xlu0 %1791  ;;  %2009 = vrot.lane.b32.xlu0 %v7824_v11, %s6865_s25  ;;  %2069 = vrot.lane.b32.xlu1 %v7887_v21, %s6867_s18 }
 0x283   : > { %v8486_v36 = vpop.permute.xlu1 %1785  ;;  %v8496_v1 = vpop.f32.mrb[16].mxu0 }
 0x284   : > { %11853 = vst [vmem:[#allocation145_spill] sm:$0xff] %v8496_v1  ;;  %v8500_v16 = vpop.f32.mrb[17].mxu0 }
 0x285   : > { %v8492_v62 = vpop.permute.xlu0 %1795  ;;  %1895 = vrot.lane.b32.xlu0 %v7949_v51, %s6864_s16  ;;  %11854 = vst [vmem:[#allocation146_spill] sm:$0xff] %v8500_v16  ;;  %1945 = vrot.lane.b32.xlu1 %v7973_v29, %s6866_s12  ;;  %v8504_v14 = vpop.f32.mrb[18].mxu0 }
 0x286   : > { %11855 = vst [vmem:[#allocation147_spill] sm:$0xff] %v8504_v14  ;;  %v8508_v33 = vpop.f32.mrb[19].mxu0  ;;  %v11861_v14 = vld [vmem:[#allocation37_spill] sm:$0xff] }
 0x287   : > { %v8494_v20 = vpop.permute.xlu1 %1789  ;;  %11857 = vst [vmem:[#allocation149_spill] sm:$0xff] %v8508_v33 }
 0x289   : > { %v8506_v58 = vpop.permute.xlu0 %1799  ;;  %2011 = vrot.lane.b32.xlu0 %v11732_v13, %s6865_s25  ;;  %2071 = vrot.lane.b32.xlu1 %v7936_v5, %s6867_s18 }
 0x28a   : > { %11856 = vst [vmem:[#allocation148_spill] sm:$0xff] %v8506_v58 }
 0x28b   : > { %v8510_v21 = vpop.permute.xlu1 %1793  ;;  %v8520_v47 = vpop.f32.mrb[20].mxu0 }
 0x28c   : > { %11860 = vst [vmem:[#allocation152_spill] sm:$0xff] %v8520_v47  ;;  %v8524_v58 = vpop.f32.mrb[21].mxu0 }
 0x28d   : > { %v8516_v1 = vpop.permute.xlu0 %1803  ;;  %1897 = vrot.lane.b32.xlu0 %v11861_v14, %s6864_s16  ;;  %11862 = vst [vmem:[#allocation37_spill] sm:$0xff] %v8524_v58  ;;  %1947 = vrot.lane.b32.xlu1 %v8005_v31, %s6866_s12  ;;  %v8528_v33 = vpop.f32.mrb[22].mxu0 }
 0x28e   : > { %11858 = vst [vmem:[#allocation150_spill] sm:$0xff] %v8516_v1  ;;  %11863 = vst [vmem:[#allocation153_spill] sm:$0xff] %v8528_v33  ;;  %v8532_v11 = vpop.f32.mrb[23].mxu0  ;;  %v11870_v33 = vld [vmem:[#allocation45_spill] sm:$0xff] }
 0x28f   : > { %v8518_v16 = vpop.permute.xlu1 %1797  ;;  %11865 = vst [vmem:[#allocation155_spill] sm:$0xff] %v8532_v11 }
 0x290   : > { %11859 = vst [vmem:[#allocation151_spill] sm:$0xff] %v8518_v16 }
 0x291   : > { %v8530_v13 = vpop.permute.xlu0 %1807  ;;  %2013 = vrot.lane.b32.xlu0 %v11725_v40, %s6865_s25  ;;  %2073 = vrot.lane.b32.xlu1 %v11827_v22, %s6867_s18 }
 0x292   : > { %11864 = vst [vmem:[#allocation154_spill] sm:$0xff] %v8530_v13 }
 0x293   : > { %v8534_v5 = vpop.permute.xlu1 %1801  ;;  %v8544_v1 = vpop.f32.mrb[24].mxu0 }
 0x294   : > { %11866 = vst [vmem:[#allocation156_spill] sm:$0xff] %v8534_v5  ;;  %11869 = vst [vmem:[#allocation159_spill] sm:$0xff] %v8544_v1  ;;  %v8548_v13 = vpop.f32.mrb[25].mxu0 }
 0x295   : > { %v8540_v47 = vpop.permute.xlu0 %1811  ;;  %1899 = vrot.lane.b32.xlu0 %v11870_v33, %s6864_s16  ;;  %11871 = vst [vmem:[#allocation45_spill] sm:$0xff] %v8548_v13  ;;  %1949 = vrot.lane.b32.xlu1 %v7986_v49, %s6866_s12  ;;  %v8552_v11 = vpop.f32.mrb[26].mxu0 }
 0x296   : > { %11867 = vst [vmem:[#allocation157_spill] sm:$0xff] %v8540_v47  ;;  %11872 = vst [vmem:[#allocation160_spill] sm:$0xff] %v8552_v11  ;;  %v8556_v5 = vpop.f32.mrb[27].mxu0  ;;  %v11879_v11 = vld [vmem:[#allocation57_spill] sm:$0xff] }
 0x297   : > { %v8542_v58 = vpop.permute.xlu1 %1805  ;;  %11874 = vst [vmem:[#allocation162_spill] sm:$0xff] %v8556_v5 }
 0x298   : > { %11868 = vst [vmem:[#allocation158_spill] sm:$0xff] %v8542_v58 }
 0x299   : > { %v8554_v40 = vpop.permute.xlu0 %1815  ;;  %2015 = vrot.lane.b32.xlu0 %v11734_v37, %s6865_s25  ;;  %2075 = vrot.lane.b32.xlu1 %v11824_v28, %s6867_s18 }
 0x29a   : > { %11873 = vst [vmem:[#allocation161_spill] sm:$0xff] %v8554_v40 }
 0x29b   : > { %v8558_v22 = vpop.permute.xlu1 %1809  ;;  %v8568_v47 = vpop.f32.mrb[28].mxu0 }
 0x29c   : > { %11875 = vst [vmem:[#allocation163_spill] sm:$0xff] %v8558_v22  ;;  %11878 = vst [vmem:[#allocation166_spill] sm:$0xff] %v8568_v47  ;;  %v8572_v40 = vpop.f32.mrb[29].mxu0 }
 0x29d   : > { %v8564_v1 = vpop.permute.xlu0 %1819  ;;  %1901 = vrot.lane.b32.xlu0 %v11879_v11, %s6864_s16  ;;  %11880 = vst [vmem:[#allocation57_spill] sm:$0xff] %v8572_v40  ;;  %1951 = vrot.lane.b32.xlu1 %v8023_v57, %s6866_s12  ;;  %v8576_v5 = vpop.f32.mrb[30].mxu0 }
 0x29e   : > { %11876 = vst [vmem:[#allocation164_spill] sm:$0xff] %v8564_v1  ;;  %11881 = vst [vmem:[#allocation167_spill] sm:$0xff] %v8576_v5  ;;  %v8580_v58 = vpop.f32.mrb[31].mxu0  ;;  %v11888_v5 = vld [vmem:[#allocation67_spill] sm:$0xff] }
 0x29f   : > { %v8566_v13 = vpop.permute.xlu1 %1813  ;;  %11883 = vst [vmem:[#allocation169_spill] sm:$0xff] %v8580_v58  ;;  %v11890_v58 = vld [vmem:[#allocation25_spill] sm:$0xff] }
 0x2a0   : > { %11877 = vst [vmem:[#allocation165_spill] sm:$0xff] %v8566_v13 }
 0x2a1   : > { %v8578_v22 = vpop.permute.xlu0 %1823  ;;  %2017 = vrot.lane.b32.xlu0 %v11728_v55, %s6865_s25  ;;  %2077 = vrot.lane.b32.xlu1 %v11830_v15, %s6867_s18 }
 0x2a2   : > { %11882 = vst [vmem:[#allocation168_spill] sm:$0xff] %v8578_v22 }
 0x2a3   : > { %v8582_v28 = vpop.permute.xlu1 %1817  ;;  %v8592_v1 = vpop.f32.mrb[32].mxu0 }
 0x2a4   : > { %11884 = vst [vmem:[#allocation170_spill] sm:$0xff] %v8582_v28  ;;  %11887 = vst [vmem:[#allocation173_spill] sm:$0xff] %v8592_v1  ;;  %v8596_v22 = vpop.f32.mrb[33].mxu0 }
 0x2a5   : > { %v8588_v47 = vpop.permute.xlu0 %1827  ;;  %1903 = vrot.lane.b32.xlu0 %v11888_v5, %s6864_s16  ;;  %11889 = vst [vmem:[#allocation67_spill] sm:$0xff] %v8596_v22  ;;  %1953 = vrot.lane.b32.xlu1 %v11890_v58, %s6866_s12  ;;  %v8600_v28 = vpop.f32.mrb[34].mxu0 }
 0x2a6   : > { %11885 = vst [vmem:[#allocation171_spill] sm:$0xff] %v8588_v47  ;;  %11891 = vst [vmem:[#allocation25_spill] sm:$0xff] %v8600_v28  ;;  %v8604_v55 = vpop.f32.mrb[35].mxu0  ;;  %v11898_v28 = vld [vmem:[#allocation73_spill] sm:$0xff] }
 0x2a7   : > { %v8590_v40 = vpop.permute.xlu1 %1821  ;;  %11893 = vst [vmem:[#allocation175_spill] sm:$0xff] %v8604_v55  ;;  %v11900_v55 = vld [vmem:[#allocation62_spill] sm:$0xff] }
 0x2a8   : > { %11886 = vst [vmem:[#allocation172_spill] sm:$0xff] %v8590_v40 }
 0x2a9   : > { %v8602_v13 = vpop.permute.xlu0 %1831  ;;  %2019 = vrot.lane.b32.xlu0 %v7710_v3, %s6865_s25  ;;  %2079 = vrot.lane.b32.xlu1 %v11839_v25, %s6867_s18 }
 0x2aa   : > { %11892 = vst [vmem:[#allocation174_spill] sm:$0xff] %v8602_v13 }
 0x2ab   : > { %v8606_v15 = vpop.permute.xlu1 %1825  ;;  %v8616_v47 = vpop.f32.mrb[36].mxu0 }
 0x2ac   : > { %11894 = vst [vmem:[#allocation176_spill] sm:$0xff] %v8606_v15  ;;  %11897 = vst [vmem:[#allocation179_spill] sm:$0xff] %v8616_v47  ;;  %v8620_v13 = vpop.f32.mrb[37].mxu0 }
 0x2ad   : > { %v8612_v1 = vpop.permute.xlu0 %1835  ;;  %1905 = vrot.lane.b32.xlu0 %v11898_v28, %s6864_s16  ;;  %11899 = vst [vmem:[#allocation73_spill] sm:$0xff] %v8620_v13  ;;  %1955 = vrot.lane.b32.xlu1 %v11900_v55, %s6866_s12  ;;  %v8624_v15 = vpop.f32.mrb[38].mxu0 }
 0x2ae   : > { %11895 = vst [vmem:[#allocation177_spill] sm:$0xff] %v8612_v1  ;;  %11901 = vst [vmem:[#allocation180_spill] sm:$0xff] %v8624_v15  ;;  %v8628_v3 = vpop.f32.mrb[39].mxu0  ;;  %v11908_v15 = vld [vmem:[#allocation78_spill] sm:$0xff] }
 0x2af   : > { %v8614_v22 = vpop.permute.xlu1 %1829  ;;  %11903 = vst [vmem:[#allocation182_spill] sm:$0xff] %v8628_v3  ;;  %v11910_v3 = vld [vmem:[#allocation40_spill] sm:$0xff] }
 0x2b0   : > { %11896 = vst [vmem:[#allocation178_spill] sm:$0xff] %v8614_v22 }
 0x2b1   : > { %v8626_v40 = vpop.permute.xlu0 %1839  ;;  %2021 = vrot.lane.b32.xlu0 %v7701_v6, %s6865_s25  ;;  %2081 = vrot.lane.b32.xlu1 %v7758_v10, %s6867_s18 }
 0x2b2   : > { %11902 = vst [vmem:[#allocation181_spill] sm:$0xff] %v8626_v40 }
 0x2b3   : > { %v8630_v25 = vpop.permute.xlu1 %1833  ;;  %v8640_v1 = vpop.f32.mrb[40].mxu0 }
 0x2b4   : > { %11904 = vst [vmem:[#allocation183_spill] sm:$0xff] %v8630_v25  ;;  %11907 = vst [vmem:[#allocation186_spill] sm:$0xff] %v8640_v1  ;;  %v8644_v40 = vpop.f32.mrb[41].mxu0 }
 0x2b5   : > { %v8636_v47 = vpop.permute.xlu0 %1843  ;;  %1907 = vrot.lane.b32.xlu0 %v11908_v15, %s6864_s16  ;;  %11909 = vst [vmem:[#allocation78_spill] sm:$0xff] %v8644_v40  ;;  %1957 = vrot.lane.b32.xlu1 %v11910_v3, %s6866_s12  ;;  %v8648_v25 = vpop.f32.mrb[42].mxu0 }
 0x2b6   : > { %11905 = vst [vmem:[#allocation184_spill] sm:$0xff] %v8636_v47  ;;  %11911 = vst [vmem:[#allocation187_spill] sm:$0xff] %v8648_v25  ;;  %v8652_v6 = vpop.f32.mrb[43].mxu0 }
 0x2b7   : > { %v8638_v13 = vpop.permute.xlu1 %1837  ;;  %11912 = vst [vmem:[#allocation188_spill] sm:$0xff] %v8652_v6  ;;  %v11917_v6 = vld [vmem:[#allocation47_spill] sm:$0xff] }
 0x2b8   : > { %11906 = vst [vmem:[#allocation185_spill] sm:$0xff] %v8638_v13  ;;  %v11915_v13 = vld [vmem:[#allocation81_spill] sm:$0xff] }
 0x2b9   : > { %v8650_v22 = vpop.permute.xlu0 %1867  ;;  %2023 = vrot.lane.b32.xlu0 %v7859_v30, %s6865_s25  ;;  %2083 = vrot.lane.b32.xlu1 %v7845_v27, %s6867_s18 }
 0x2bb   : > { %v8654_v10 = vpop.permute.xlu1 %1841  ;;  %v8662_v47 = vpop.f32.mrb[44].mxu0 }
 0x2bc   : > { %11913 = vst [vmem:[#allocation189_spill] sm:$0xff] %v8654_v10  ;;  %11914 = vst [vmem:[#allocation190_spill] sm:$0xff] %v8662_v47  ;;  %v8666_v25 = vpop.f32.mrb[45].mxu0 }
 0x2bd   : > { %v8660_v1 = vpop.permute.xlu0 %1871  ;;  %1909 = vrot.lane.b32.xlu0 %v11915_v13, %s6864_s16  ;;  %11916 = vst [vmem:[#allocation81_spill] sm:$0xff] %v8666_v25  ;;  %1959 = vrot.lane.b32.xlu1 %v11917_v6, %s6866_s12  ;;  %v8670_v10 = vpop.f32.mrb[46].mxu0 }
 0x2be   : > { %11918 = vst [vmem:[#allocation191_spill] sm:$0xff] %v8670_v10  ;;  %v8674_v30 = vpop.f32.mrb[47].mxu0  ;;  %v11921_v10 = vld [vmem:[#allocation82_spill] sm:$0xff] }
 0x2bf   : > { %v1866_v40 = vpop.permute.xlu1 %1865  ;;  %11919 = vst [vmem:[#allocation192_spill] sm:$0xff] %v8674_v30  ;;  %v11923_v30 = vld [vmem:[#allocation27_spill] sm:$0xff] }
 0x2c1   : > { %v8672_v37 = vpop.permute.xlu0 %1875  ;;  %2025 = vrot.lane.b32.xlu0 %v7854_v2, %s6865_s25  ;;  %2085 = vrot.lane.b32.xlu1 %v7905_v50, %s6867_s18 }
 0x2c3   : > { %v8676_v27 = vpop.permute.xlu1 %1869  ;;  %v8686_v3 = vpop.f32.mrb[48].mxu0 }
 0x2c4   : > { %11920 = vst [vmem:[#allocation193_spill] sm:$0xff] %v8686_v3  ;;  %v8690_v6 = vpop.f32.mrb[49].mxu0 }
 0x2c5   : > { %v8682_v47 = vpop.permute.xlu0 %1879  ;;  %1911 = vrot.lane.b32.xlu0 %v11921_v10, %s6864_s16  ;;  %11922 = vst [vmem:[#allocation194_spill] sm:$0xff] %v8690_v6  ;;  %1961 = vrot.lane.b32.xlu1 %v11923_v30, %s6866_s12  ;;  %v8694_v55 = vpop.f32.mrb[50].mxu0  ;;  %v11929_v30 = vld [vmem:[#allocation22_spill] sm:$0xff] }
 0x2c6   : > { %11924 = vst [vmem:[#allocation195_spill] sm:$0xff] %v8694_v55  ;;  %v8698_v16 = vpop.f32.mrb[51].mxu0  ;;  %v2124_v55 = vsel %vm546_vm0, 0, %v11929_v30 }
 0x2c7   : > { %v8684_v25 = vpop.permute.xlu1 %1873  ;;  %11926 = vst [vmem:[#allocation197_spill] sm:$0xff] %v8698_v16 }
 0x2c9   : > { %v8696_v2 = vpop.permute.xlu0 %1883  ;;  %2027 = vrot.lane.b32.xlu0 %v11748_v59, %s6865_s25  ;;  %2087 = vrot.lane.b32.xlu1 %v7949_v51, %s6867_s18  ;;  %v2187_v59 = vsel %vm2185_vm6, %v2124_v55, %v8266_v26  ;;  %v11932_v51 = vld [vmem:[#allocation51_spill] sm:$0xff] }
 0x2ca   : > { %11925 = vst [vmem:[#allocation196_spill] sm:$0xff] %v8696_v2  ;;  %v11930_v2 = vld [vmem:[#allocation43_spill] sm:$0xff] }
 0x2cb   : > { %v8700_v50 = vpop.permute.xlu1 %1877  ;;  %v8708_v61 = vpop.f32.mrb[52].mxu0 }
 0x2cc   : > { %11928 = vst [vmem:[#allocation199_spill] sm:$0xff] %v8708_v61  ;;  %v8714_v16 = vpop.f32.mrb[53].mxu0  ;;  %v2250_v61 = vsel %vm2248_vm7, %v2187_v59, %v8470_v60 }
 0x2cd   : > { %v2000_v3 = vpop.permute.xlu0 %1999  ;;  %1913 = vrot.lane.b32.xlu0 %v11930_v2, %s6864_s16  ;;  %11931 = vst [vmem:[#allocation22_spill] sm:$0xff] %v8714_v16  ;;  %1963 = vrot.lane.b32.xlu1 %v11932_v51, %s6866_s12  ;;  %v8720_v10 = vpop.f32.mrb[54].mxu0  ;;  %v2315_v16 = vsel %vm2313_vm9, %v2250_v61, %v1866_v40  ;;  %v11938_v40 = vld [vmem:[#allocation36_spill] sm:$0xff] }
 0x2ce   : > { %11933 = vst [vmem:[#allocation200_spill] sm:$0xff] %v8720_v10 }
 0x2cf   : > { %v8706_v6 = vpop.permute.xlu1 %1881 }
 0x2d0   : > { %11927 = vst [vmem:[#allocation198_spill] sm:$0xff] %v8706_v6  ;;  %v8726_v6 = vpop.f32.mrb[55].mxu0 }
 0x2d1   : > { %v8724_v30 = vpop.permute.xlu0 %1885  ;;  %11934 = vst [vmem:[#allocation201_spill] sm:$0xff] %v8726_v6  ;;  %2029 = vrot.lane.b32.xlu0 %v11739_v52, %s6865_s25  ;;  %2089 = vrot.lane.b32.xlu1 %v11861_v14, %s6867_s18  ;;  %v11936_v6 = vld [vmem:[#allocation54_spill] sm:$0xff]  ;;  %v2252_v14 = vsel %vm2248_vm7, %v2187_v59, %v8460_v54 }
 0x2d3   : > { %v1936_v2 = vpop.permute.xlu1 %1935  ;;  %v8735_v51 = vpop.f32.mrb[56].mxu0 }
 0x2d4   : > { %v2380_v26 = vsel %vm2378_vm8, %v2315_v16, %v1936_v2  ;;  %11935 = vst [vmem:[#allocation202_spill] sm:$0xff] %v8735_v51  ;;  %v8740_v2 = vpop.f32.mrb[57].mxu0 }
 0x2d5   : > { %v2002_v55 = vpop.permute.xlu0 %2001  ;;  %v2445_v10 = vsel %vm2443_vm10, %v2380_v26, %v2000_v3  ;;  %1915 = vrot.lane.b32.xlu0 %v11936_v6, %s6864_s16  ;;  %11937 = vst [vmem:[#allocation54_spill] sm:$0xff] %v8740_v2  ;;  %1965 = vrot.lane.b32.xlu1 %v11938_v40, %s6866_s12  ;;  %v8744_v16 = vpop.f32.mrb[58].mxu0 }
 0x2d6   : > { %11939 = vst [vmem:[#allocation36_spill] sm:$0xff] %v8744_v16  ;;  %v8752_v26 = vpop.f32.mrb[59].mxu0  ;;  %v11942_v16 = vld [vmem:[#allocation42_spill] sm:$0xff] }
 0x2d7   : > { %v2062_v60 = vpop.permute.xlu1 %2061  ;;  %11940 = vst [vmem:[#allocation203_spill] sm:$0xff] %v8752_v26  ;;  %v2126_v26 = vsel %vm546_vm0, %v7241_v9, %v11942_v16 }
 0x2d8   : > { %v2509_v61 = vsel %vm2507_vm11, %v2445_v10, %v2062_v60  ;;  %v2317_v10 = vsel %vm2313_vm9, %v2252_v14, %v8650_v22  ;;  %v11943_v22 = vld [vmem:[#allocation63_spill] sm:$0xff] }
 0x2d9   : > { %2783 = vmatmul.mubr.bf16.vlgmr.msra.gmra.mrb[0].mxu1 %v2509_v61  ;;  %v8750_v3 = vpop.permute.xlu0 %1887  ;;  %2031 = vrot.lane.b32.xlu0 %v11751_v39, %s6865_s25 }
 0x2da   : > { %6010 = vmatprep.mubr.msk.bf16.mxu1 %vm546_vm0, %v7961_v4  ;;  %2091 = vrot.lane.b32.xlu1 %v11870_v33, %s6867_s18  ;;  %v2189_v33 = vsel %vm2185_vm6, %v2126_v26, %v8289_v32 }
 0x2db   : > { %v1938_v60 = vpop.permute.xlu1 %1937  ;;  %v8762_v61 = vpop.f32.mrb[60].mxu0 }
 0x2dc   : > { %v2382_v2 = vsel %vm2378_vm8, %v2317_v10, %v1938_v60  ;;  %11941 = vst [vmem:[#allocation204_spill] sm:$0xff] %v8762_v61  ;;  %v8770_v10 = vpop.f32.mrb[61].mxu0  ;;  %v11945_v60 = vld [vmem:[#allocation21_spill] sm:$0xff] }
 0x2dd   : > { %v2004_v59 = vpop.permute.xlu0 %2003  ;;  %v2447_v4 = vsel %vm2443_vm10, %v2382_v2, %v2002_v55  ;;  %1917 = vrot.lane.b32.xlu0 %v11943_v22, %s6864_s16  ;;  %11944 = vst [vmem:[#allocation42_spill] sm:$0xff] %v8770_v10  ;;  %v8776_v55 = vpop.f32.mrb[62].mxu0  ;;  %v2254_v2 = vsel %vm2248_vm7, %v2189_v33, %v8486_v36 }
 0x2de   : > { %1967 = vrot.lane.b32.xlu1 %v11945_v60, %s6866_s12  ;;  %11946 = vst [vmem:[#allocation63_spill] sm:$0xff] %v8776_v55  ;;  %v8784_v16 = vpop.f32.mrb[63].mxu0 }
 0x2df   : > { %v2064_v54 = vpop.permute.xlu1 %2063  ;;  %11947 = vst [vmem:[#allocation21_spill] sm:$0xff] %v8784_v16  ;;  %v11949_v16 = vld [vmem:[#allocation69_spill] sm:$0xff] }
 0x2e0   : > { %v2512_v14 = vsel %vm2507_vm11, %v2447_v4, %v2064_v54  ;;  %v2319_v54 = vsel %vm2313_vm9, %v2254_v2, %v8676_v27 }
 0x2e1   : > { %2791 = vmatmul.mubr.bf16.gmra.mrb[4].mxu1 %v2512_v14  ;;  %v8782_v9 = vpop.permute.xlu0 %1889  ;;  %2033 = vrot.lane.b32.xlu0 %v11743_v53, %s6865_s25  ;;  %v11948_v14 = vld [vmem:[#allocation52_spill] sm:$0xff] }
 0x2e2   : > { %6011 = vmatprep.mubr.msk.bf16.mxu1 %vm546_vm0, %v7992_v44  ;;  %2093 = vrot.lane.b32.xlu1 %v11879_v11, %s6867_s18  ;;  %v2128_v33 = vsel %vm546_vm0, %v7322_v7, %v11948_v14 }
 0x2e3   : > { %v1940_v32 = vpop.permute.xlu1 %1939  ;;  %v2191_v2 = vsel %vm2185_vm6, %v2128_v33, %v8309_v46  ;;  %v11952_v33 = vld [vmem:[#allocation84_spill] sm:$0xff] }
 0x2e4   : > { %v2384_v26 = vsel %vm2378_vm8, %v2319_v54, %v1940_v32  ;;  %v11950_v54 = vld [vmem:[#allocation30_spill] sm:$0xff]  ;;  %v2256_v11 = vsel %vm2248_vm7, %v2191_v2, %v8468_v48 }
 0x2e5   : > { %v2006_v36 = vpop.permute.xlu0 %2005  ;;  %v2449_v44 = vsel %vm2443_vm10, %v2384_v26, %v2004_v59  ;;  %1919 = vrot.lane.b32.xlu0 %v11949_v16, %s6864_s16  ;;  %v2321_v7 = vsel %vm2313_vm9, %v2256_v11, %v8660_v1  ;;  %v1846_v11 = vshrl.u32 %v8346_v8, 16 }
 0x2e6   : > { %1969 = vrot.lane.b32.xlu1 %v11950_v54, %s6866_s12 }
 0x2e7   : > { %v2066_v4 = vpop.permute.xlu1 %2065 }
 0x2e8   : > { %v2515_v27 = vsel %vm2507_vm11, %v2449_v44, %v2066_v4  ;;  %v11951_v44 = vld [vmem:[#allocation75_spill] sm:$0xff] }
 0x2e9   : > { %2799 = vmatmul.mubr.bf16.gmra.mrb[8].mxu1 %v2515_v27  ;;  %v8808_v59 = vpop.permute.xlu0 %1891  ;;  %2035 = vrot.lane.b32.xlu0 %v7749_v38, %s6865_s25  ;;  %v1848_v27 = vshll.u32 %v8346_v8, 16 }
 0x2ea   : > { %6012 = vmatprep.mubr.msk.bf16.mxu1 %vm546_vm0, %v7973_v29  ;;  %2095 = vrot.lane.b32.xlu1 %v11888_v5, %s6867_s18  ;;  %v2130_v29 = vsel %vm546_vm0, %v11783_v23, %v8194_v45 }
 0x2eb   : > { %v1942_v32 = vpop.permute.xlu1 %1941  ;;  %v2193_v14 = vsel %vm2185_vm6, %v2130_v29, %v8338_v43 }
 0x2ec   : > { %v2386_v26 = vsel %vm2378_vm8, %v2321_v7, %v1942_v32  ;;  %v2258_v5 = vsel %vm2248_vm7, %v2193_v14, %v8494_v20  ;;  %v1850_v7 = vrot.slane %v1848_v27, 1  ;;  %v11953_v32 = vld [vmem:[#allocation80_spill] sm:$0xff]  ;;  %v8869_v14 = vsel %vm7229_vm3, %v8301_v0, 0 }
 0x2ed   : > { %v2008_v46 = vpop.permute.xlu0 %2007  ;;  %v2451_v48 = vsel %vm2443_vm10, %v2386_v26, %v2006_v36  ;;  %1921 = vrot.lane.b32.xlu0 %v11951_v44, %s6864_s16  ;;  %v2323_v45 = vsel %vm2313_vm9, %v2258_v5, %v8684_v25  ;;  %v2132_v25 = vsel %vm546_vm0, %v7452_v34, %v8206_v42  ;;  %v1861_v27 = vshll.u32 %v8869_v14, 16 }
 0x2ee   : > { %1971 = vrot.lane.b32.xlu1 %v11952_v33, %s6866_s12  ;;  %v2134_v0 = vsel %vm546_vm0, %v7539_v17, %v8226_v18 }
 0x2ef   : > { %v2068_v4 = vpop.permute.xlu1 %2067 }
 0x2f0   : > { %v2518_v1 = vsel %vm2507_vm11, %v2451_v48, %v2068_v4  ;;  %v2195_v4 = vsel %vm2185_vm6, %v2132_v25, %v8320_v41  ;;  %v1863_v25 = vrot.slane %v1861_v27, 1  ;;  %v11962_v27 = vld [vmem:[#allocation82_spill] sm:$0xff] }
 0x2f1   : > { %2807 = vmatmul.mubr.bf16.gmra.mrb[12].mxu1 %v2518_v1  ;;  %v8832_v36 = vpop.permute.xlu0 %1893  ;;  %2037 = vrot.lane.b32.xlu0 %v7744_v24, %s6865_s25  ;;  %v2260_v48 = vsel %vm2248_vm7, %v2195_v4, %v8482_v12  ;;  %v1851_v1 = vor.u32 %v1850_v7, %v1846_v11  ;;  %v11957_v4 = vld [vmem:[#allocation79_spill] sm:$0xff] }
 0x2f2   : > { %6013 = vmatprep.mubr.msk.bf16.mxu1 %vm546_vm0, %v8005_v31  ;;  %2097 = vrot.lane.b32.xlu1 %v11898_v28, %s6867_s18  ;;  %v11954_v28 = vld [vmem:[#allocation65_spill] sm:$0xff]  ;;  %v2325_v42 = vsel %vm2313_vm9, %v2260_v48, %v8672_v37 }
 0x2f3   : > { %v1944_v23 = vpop.permute.xlu1 %1943 }
 0x2f4   : > { %v2388_v43 = vsel %vm2378_vm8, %v2323_v45, %v1944_v23  ;;  %v1857_v23 = vshrl.u32 %v8325_v56, 16 }
 0x2f5   : > { %v2010_v20 = vpop.permute.xlu0 %2009  ;;  %v2453_v31 = vsel %vm2443_vm10, %v2388_v43, %v2008_v46  ;;  %1923 = vrot.lane.b32.xlu0 %v11953_v32, %s6864_s16  ;;  %v1853_v46 = vshll.u32 %v8325_v56, 16  ;;  %v11955_v43 = vld [vmem:[#allocation120_spill] sm:$0xff] }
 0x2f6   : > { %1973 = vrot.lane.b32.xlu1 %v11954_v28, %s6866_s12 }
 0x2f7   : > { %v2070_v2 = vpop.permute.xlu1 %2069 }
 0x2f8   : > { %v2521_v26 = vsel %vm2507_vm11, %v2453_v31, %v2070_v2  ;;  %v2197_v2 = vsel %vm2185_vm6, %v2134_v0, %v11955_v43  ;;  %v11956_v31 = vld [vmem:[#allocation85_spill] sm:$0xff]  ;;  %v11963_v43 = vld [vmem:[#allocation108_spill] sm:$0xff] }
 0x2f9   : > { %2815 = vmatmul.mubr.bf16.gmra.mrb[16].mxu1 %v2521_v26  ;;  %v8859_v34 = vpop.permute.xlu0 %1895  ;;  %2039 = vrot.lane.b32.xlu0 %v7874_v35, %s6865_s25 }
 0x2fa   : > { %6014 = vmatprep.mubr.msk.bf16.mxu1 %vm546_vm0, %v7986_v49  ;;  %2099 = vrot.lane.b32.xlu1 %v11908_v15, %s6867_s18  ;;  %v1855_v49 = vrot.slane %v1853_v46, 1 }
 0x2fb   : > { %v1946_v29 = vpop.permute.xlu1 %1945 }
 0x2fc   : > { %v2390_v41 = vsel %vm2378_vm8, %v2325_v42, %v1946_v29  ;;  %v8874_v37 = vsel %vm1238_vm4, %v1851_v1, %v1855_v49  ;;  %v1859_v7 = vor.u32 %v1857_v23, %v1855_v49  ;;  %v11958_v42 = vld [vmem:[#allocation100_spill] sm:$0xff]  ;;  %v11961_v23 = vld [vmem:[#allocation39_spill] sm:$0xff] }
 0x2fd   : > { %v2012_v12 = vpop.permute.xlu0 %2011  ;;  %v2455_v45 = vsel %vm2443_vm10, %v2390_v41, %v2010_v20  ;;  %1925 = vrot.lane.b32.xlu0 %v8874_v37, %s6864_s16  ;;  %v2262_v20 = vsel %vm2248_vm7, %v2197_v2, %v8510_v21  ;;  %v11959_v1 = vld [vmem:[#allocation116_spill] sm:$0xff] }
 0x2fe   : > { %1975 = vrot.lane.b32.xlu1 %v11956_v31, %s6866_s12  ;;  %v2327_v17 = vsel %vm2313_vm9, %v2262_v20, %v8700_v50  ;;  %v2136_v50 = vsel %vm546_vm0, %v7677_v19, %v11958_v42  ;;  %v11965_v20 = vld [vmem:[#allocation24_spill] sm:$0xff] }
 0x2ff   : > { %v2072_v5 = vpop.permute.xlu1 %2071  ;;  %v2199_v41 = vsel %vm2185_vm6, %v2136_v50, %v11959_v1  ;;  %v11971_v1 = vld [vmem:[#allocation43_spill] sm:$0xff] }
 0x300   : > { %v2524_v15 = vsel %vm2507_vm11, %v2455_v45, %v2072_v5  ;;  %v2264_v49 = vsel %vm2248_vm7, %v2199_v41, %v8492_v62 }
 0x301   : > { %2823 = vmatmul.mubr.bf16.gmra.mrb[20].mxu1 %v2524_v15  ;;  %v8893_v11 = vpop.permute.xlu0 %1897  ;;  %2041 = vrot.lane.b32.xlu0 %v11957_v4, %s6865_s25  ;;  %v2329_v19 = vsel %vm2313_vm9, %v2264_v49, %v8682_v47 }
 0x302   : > { %6015 = vmatprep.mubr.msk.bf16.mxu1 %vm546_vm0, %v8023_v57  ;;  %2101 = vrot.lane.b32.xlu1 %v11915_v13, %s6867_s18  ;;  %v8903_v57 = vsel %vm1238_vm4, %v1859_v7, %v1863_v25  ;;  %v11960_v13 = vld [vmem:[#allocation83_spill] sm:$0xff]  ;;  %v11967_v7 = vld [vmem:[#allocation88_spill] sm:$0xff] }
 0x303   : > { %v1948_v18 = vpop.permute.xlu1 %1947  ;;  %v11968_v25 = vld [vmem:[#allocation151_spill] sm:$0xff] }
 0x304   : > { %v2392_v26 = vsel %vm2378_vm8, %v2327_v17, %v1948_v18  ;;  %v11966_v17 = vld [vmem:[#allocation33_spill] sm:$0xff] }
 0x305   : > { %v2014_v21 = vpop.permute.xlu0 %2013  ;;  %v2457_v48 = vsel %vm2443_vm10, %v2392_v26, %v2012_v12  ;;  %1927 = vrot.lane.b32.xlu0 %v8903_v57, %s6864_s16 }
 0x306   : > { %1977 = vrot.lane.b32.xlu1 %v11960_v13, %s6866_s12 }
 0x307   : > { %v2074_v46 = vpop.permute.xlu1 %2073 }
 0x308   : > { %v2527_v29 = vsel %vm2507_vm11, %v2457_v48, %v2074_v46  ;;  %v11970_v48 = vld [vmem:[#allocation198_spill] sm:$0xff] }
 0x309   : > { %2831 = vmatmul.mubr.bf16.gmra.mrb[24].mxu1 %v2527_v29  ;;  %v8920_v12 = vpop.permute.xlu0 %1899  ;;  %2043 = vrot.lane.b32.xlu0 %v11961_v23, %s6865_s25 }
 0x30a   : > { %6016 = vmatprep.mubr.msk.bf16.mxu1 %vm546_vm0, %v11890_v58  ;;  %2103 = vrot.lane.b32.xlu1 %v11962_v27, %s6867_s18  ;;  %v11964_v58 = vld [vmem:[#allocation72_spill] sm:$0xff] }
 0x30b   : > { %v1950_v5 = vpop.permute.xlu1 %1949  ;;  %v2138_v2 = vsel %vm546_vm0, %v11964_v58, %v11963_v43  ;;  %v11975_v43 = vld [vmem:[#allocation119_spill] sm:$0xff] }
 0x30c   : > { %v2394_v45 = vsel %vm2378_vm8, %v2329_v19, %v1950_v5  ;;  %v2201_v18 = vsel %vm2185_vm6, %v2138_v2, %v11966_v17  ;;  %v11972_v5 = vld [vmem:[#allocation112_spill] sm:$0xff] }
 0x30d   : > { %v2016_v0 = vpop.permute.xlu0 %2015  ;;  %v2459_v62 = vsel %vm2443_vm10, %v2394_v45, %v2014_v21  ;;  %1981 = vrot.lane.b32.xlu0 %v11965_v20, %s6866_s12  ;;  %v2266_v26 = vsel %vm2248_vm7, %v2201_v18, %v11968_v25  ;;  %v11969_v21 = vld [vmem:[#allocation62_spill] sm:$0xff]  ;;  %v11977_v2 = vld [vmem:[#allocation148_spill] sm:$0xff] }
 0x30e   : > { %1979 = vrot.lane.b32.xlu1 %v11967_v7, %s6866_s12  ;;  %v2331_v42 = vsel %vm2313_vm9, %v2266_v26, %v11970_v48  ;;  %v11973_v45 = vld [vmem:[#allocation74_spill] sm:$0xff]  ;;  %v11979_v18 = vld [vmem:[#allocation196_spill] sm:$0xff]  ;;  %v11980_v48 = vld [vmem:[#allocation55_spill] sm:$0xff] }
 0x30f   : > { %v2076_v15 = vpop.permute.xlu1 %2075  ;;  %v2140_v27 = vsel %vm546_vm0, %v11973_v45, %v11972_v5  ;;  %v11983_v5 = vld [vmem:[#allocation34_spill] sm:$0xff] }
 0x310   : > { %v2530_v47 = vsel %vm2507_vm11, %v2459_v62, %v2076_v15  ;;  %v11974_v15 = vld [vmem:[#allocation86_spill] sm:$0xff]  ;;  %v2203_v58 = vsel %vm2185_vm6, %v2140_v27, %v11975_v43  ;;  %v11984_v27 = vld [vmem:[#allocation121_spill] sm:$0xff]  ;;  %v11986_v43 = vld [vmem:[#allocation156_spill] sm:$0xff] }
 0x311   : > { %2839 = vmatmul.mubr.bf16.gmra.mrb[28].mxu1 %v2530_v47  ;;  %v8944_v46 = vpop.permute.xlu0 %1901  ;;  %2107 = vrot.lane.b32.xlu0 %v11936_v6, %s6867_s18  ;;  %v11976_v6 = vld [vmem:[#allocation38_spill] sm:$0xff]  ;;  %v2268_v47 = vsel %vm2248_vm7, %v2203_v58, %v11977_v2 }
 0x312   : > { %6017 = vmatprep.mubr.msk.bf16.mxu1 %vm546_vm0, %v11969_v21  ;;  %2105 = vrot.lane.b32.xlu1 %v11971_v1, %s6867_s18  ;;  %v2333_v25 = vsel %vm2313_vm9, %v2268_v47, %v11979_v18  ;;  %v11981_v1 = vld [vmem:[#allocation87_spill] sm:$0xff] }
 0x313   : > { %v1952_v50 = vpop.permute.xlu1 %1951 }
 0x314   : > { %v2396_v29 = vsel %vm2378_vm8, %v2331_v42, %v1952_v50 }
 0x315   : > { %v2018_v41 = vpop.permute.xlu0 %2017  ;;  %v2461_v19 = vsel %vm2443_vm10, %v2396_v29, %v2016_v0  ;;  %1985 = vrot.lane.b32.xlu0 %v11974_v15, %s6866_s12  ;;  %v11978_v0 = vld [vmem:[#allocation40_spill] sm:$0xff] }
 0x316   : > { %2045 = vrot.lane.b32.xlu1 %v11976_v6, %s6865_s25 }
 0x317   : > { %v2078_v49 = vpop.permute.xlu1 %2077 }
 0x318   : > { %v2533_v62 = vsel %vm2507_vm11, %v2461_v19, %v2078_v49  ;;  %v11982_v49 = vld [vmem:[#allocation29_spill] sm:$0xff] }
 0x319   : > { %2847 = vmatmul.mubr.bf16.gmra.mrb[32].mxu1 %v2533_v62  ;;  %v8968_v17 = vpop.permute.xlu0 %1903  ;;  %2109 = vrot.lane.b32.xlu0 %v11943_v22, %s6867_s18  ;;  %v2142_v19 = vsel %vm546_vm0, %v11982_v49, %v11981_v1  ;;  %v11985_v22 = vld [vmem:[#allocation59_spill] sm:$0xff]  ;;  %v11990_v1 = vld [vmem:[#allocation28_spill] sm:$0xff] }
 0x31a   : > { %6018 = vmatprep.mubr.msk.bf16.mxu1 %vm546_vm0, %v11978_v0  ;;  %1983 = vrot.lane.b32.xlu1 %v11980_v48, %s6866_s12  ;;  %v2205_v62 = vsel %vm2185_vm6, %v2142_v19, %v11984_v27  ;;  %v11991_v19 = vld [vmem:[#allocation89_spill] sm:$0xff] }
 0x31b   : > { %v1954_v26 = vpop.permute.xlu1 %1953  ;;  %v2270_v58 = vsel %vm2248_vm7, %v2205_v62, %v11986_v43  ;;  %v11994_v62 = vld [vmem:[#allocation150_spill] sm:$0xff] }
 0x31c   : > { %v2398_v21 = vsel %vm2378_vm8, %v2333_v25, %v1954_v26  ;;  %v2335_v47 = vsel %vm2313_vm9, %v2270_v58, %v8724_v30  ;;  %v11988_v25 = vld [vmem:[#allocation91_spill] sm:$0xff] }
 0x31d   : > { %v2020_v42 = vpop.permute.xlu0 %2019  ;;  %v2463_v29 = vsel %vm2443_vm10, %v2398_v21, %v2018_v41  ;;  %1989 = vrot.lane.b32.xlu0 %v11983_v5, %s6866_s12  ;;  %v11987_v41 = vld [vmem:[#allocation47_spill] sm:$0xff] }
 0x31e   : > { %2047 = vrot.lane.b32.xlu1 %v11985_v22, %s6865_s25 }
 0x31f   : > { %v2080_v50 = vpop.permute.xlu1 %2079 }
 0x320   : > { %v2536_v45 = vsel %vm2507_vm11, %v2463_v29, %v2080_v50  ;;  %v11989_v29 = vld [vmem:[#allocation50_spill] sm:$0xff] }
 0x321   : > { %2855 = vmatmul.mubr.bf16.gmra.mrb[36].mxu1 %v2536_v45  ;;  %v8992_v2 = vpop.permute.xlu0 %1905  ;;  %2111 = vrot.lane.b32.xlu0 %v11949_v16, %s6867_s18  ;;  %v2144_v49 = vsel %vm546_vm0, %v11990_v1, %v11989_v29  ;;  %v11992_v45 = vld [vmem:[#allocation61_spill] sm:$0xff]  ;;  %v11993_v16 = vld [vmem:[#allocation58_spill] sm:$0xff] }
 0x322   : > { %6019 = vmatprep.mubr.msk.bf16.mxu1 %vm546_vm0, %v11987_v41  ;;  %1987 = vrot.lane.b32.xlu1 %v11988_v25, %s6866_s12  ;;  %v2207_v27 = vsel %vm2185_vm6, %v2144_v49, %v11992_v45  ;;  %v11998_v45 = vld [vmem:[#allocation49_spill] sm:$0xff] }
 0x323   : > { %v1956_v0 = vpop.permute.xlu1 %1955  ;;  %v2272_v43 = vsel %vm2248_vm7, %v2207_v27, %v11994_v62  ;;  %v11999_v62 = vld [vmem:[#allocation123_spill] sm:$0xff] }
 0x324   : > { %v2400_v18 = vsel %vm2378_vm8, %v2335_v47, %v1956_v0  ;;  %v2337_v41 = vsel %vm2313_vm9, %v2272_v43, %v8750_v3  ;;  %v1931_v0 = vrot.slane %v8325_v56, 1 }
 0x325   : > { %v2022_v26 = vpop.permute.xlu0 %2021  ;;  %v2465_v50 = vsel %vm2443_vm10, %v2400_v18, %v2020_v42  ;;  %1993 = vrot.lane.b32.xlu0 %v11991_v19, %s6866_s12  ;;  %v11995_v42 = vld [vmem:[#allocation27_spill] sm:$0xff]  ;;  %v1933_v18 = vrot.slane %v8869_v14, 1 }
 0x326   : > { %2049 = vrot.lane.b32.xlu1 %v11993_v16, %s6865_s25 }
 0x327   : > { %v2082_v21 = vpop.permute.xlu1 %2081  ;;  %v9028_v49 = vsel %vm1640_vm5, %v1931_v0, %v1933_v18 }
 0x328   : > { %v2539_v30 = vsel %vm2507_vm11, %v2465_v50, %v2082_v21  ;;  %v11996_v50 = vld [vmem:[#allocation92_spill] sm:$0xff] }
 0x329   : > { %2863 = vmatmul.mubr.bf16.gmra.mrb[40].mxu1 %v2539_v30  ;;  %v9016_v58 = vpop.permute.xlu0 %1907  ;;  %2113 = vrot.lane.b32.xlu0 %v11951_v44, %s6867_s18  ;;  %v11997_v30 = vld [vmem:[#allocation93_spill] sm:$0xff]  ;;  %v1930_v44 = vrot.slane %v8346_v8, 1 }
 0x32a   : > { %6020 = vmatprep.mubr.msk.bf16.mxu1 %vm546_vm0, %v11995_v42  ;;  %1991 = vrot.lane.b32.xlu1 %v11996_v50, %s6866_s12  ;;  %v2146_v27 = vsel %vm546_vm0, %v11998_v45, %v11997_v30  ;;  %v12000_v42 = vld [vmem:[#allocation71_spill] sm:$0xff] }
 0x32b   : > { %v1958_v47 = vpop.permute.xlu1 %1957  ;;  %v2209_v43 = vsel %vm2185_vm6, %v2146_v27, %v11999_v62  ;;  %v9054_v30 = vsel %vm1640_vm5, %v1930_v44, %v1931_v0  ;;  %v12003_v62 = vld [vmem:[#allocation94_spill] sm:$0xff] }
 0x32c   : > { %v2402_v21 = vsel %vm2378_vm8, %v2337_v41, %v1958_v47  ;;  %v12001_v41 = vld [vmem:[#allocation158_spill] sm:$0xff]  ;;  %v12002_v47 = vld [vmem:[#allocation51_spill] sm:$0xff] }
 0x32d   : > { %v2024_v29 = vpop.permute.xlu0 %2023  ;;  %v2467_v3 = vsel %vm2443_vm10, %v2402_v21, %v2022_v26  ;;  %1997 = vrot.lane.b32.xlu0 %v9028_v49, %s6866_s12  ;;  %v2274_v26 = vsel %vm2248_vm7, %v2209_v43, %v12001_v41  ;;  %v12004_v43 = vld [vmem:[#allocation48_spill] sm:$0xff]  ;;  %v12006_v44 = vld [vmem:[#allocation70_spill] sm:$0xff] }
 0x32e   : > { %2051 = vrot.lane.b32.xlu1 %v12000_v42, %s6865_s25  ;;  %v2339_v21 = vsel %vm2313_vm9, %v2274_v26, %v8782_v9  ;;  %v2148_v9 = vsel %vm546_vm0, %v12004_v43, %v12003_v62  ;;  %v12007_v26 = vld [vmem:[#allocation154_spill] sm:$0xff]  ;;  %v12008_v62 = vld [vmem:[#allocation97_spill] sm:$0xff] }
 0x32f   : > { %v2084_v1 = vpop.permute.xlu1 %2083 }
 0x330   : > { %v2542_v14 = vsel %vm2507_vm11, %v2467_v3, %v2084_v1 }
 0x331   : > { %2871 = vmatmul.mubr.bf16.gmra.mrb[44].mxu1 %v2542_v14  ;;  %v9046_v18 = vpop.permute.xlu0 %1909  ;;  %2115 = vrot.lane.b32.xlu0 %v11953_v32, %s6867_s18  ;;  %v12005_v32 = vld [vmem:[#allocation56_spill] sm:$0xff] }
 0x332   : > { %6021 = vmatprep.mubr.msk.bf16.mxu1 %vm546_vm0, %v12002_v47  ;;  %1995 = vrot.lane.b32.xlu1 %v9054_v30, %s6866_s12  ;;  %v2211_v0 = vsel %vm2185_vm6, %v2148_v9, %v12005_v32 }
 0x333   : > { %v1960_v1 = vpop.permute.xlu1 %1959  ;;  %v2276_v47 = vsel %vm2248_vm7, %v2211_v0, %v12007_v26 }
 0x334   : > { %v2404_v3 = vsel %vm2378_vm8, %v2339_v21, %v1960_v1 }
 0x335   : > { %v2026_v45 = vpop.permute.xlu0 %2025  ;;  %v2469_v14 = vsel %vm2443_vm10, %v2404_v3, %v2024_v29  ;;  %2057 = vrot.lane.b32.xlu0 %v8325_v56, %s6865_s25  ;;  %v2341_v56 = vsel %vm2313_vm9, %v2276_v47, %v8808_v59  ;;  %v12010_v59 = vld [vmem:[#allocation20_spill] sm:$0xff] }
 0x336   : > { %2053 = vrot.lane.b32.xlu1 %v12006_v44, %s6865_s25 }
 0x337   : > { %v2086_v27 = vpop.permute.xlu1 %2085 }
 0x338   : > { %v2545_v41 = vsel %vm2507_vm11, %v2469_v14, %v2086_v27 }
 0x339   : > { %2879 = vmatmul.mubr.bf16.gmra.mrb[48].mxu1 %v2545_v41  ;;  %v9073_v29 = vpop.permute.xlu0 %1911  ;;  %2117 = vrot.lane.b32.xlu0 %v8874_v37, %s6867_s18  ;;  %v12011_v41 = vld [vmem:[#allocation124_spill] sm:$0xff]  ;;  %v12012_v37 = vmov 0  }
 0x33a   : > { %6022 = vmatprep.mubr.msk.bf16.mxu1 %vm546_vm0, %v11938_v40  ;;  %2055 = vrot.lane.b32.xlu1 %v8346_v8, %s6865_s25  ;;  %v12009_v40 = vld [vmem:[#allocation68_spill] sm:$0xff]  ;;  %v12013_v8 = vld [vmem:[#allocation163_spill] sm:$0xff] }
 0x33b   : > { %v1962_v21 = vpop.permute.xlu1 %1961  ;;  %v2150_v43 = vsel %vm546_vm0, %v12009_v40, %v12008_v62  ;;  %v12015_v62 = vld [vmem:[#allocation66_spill] sm:$0xff] }
 0x33c   : > { %v2406_v1 = vsel %vm2378_vm8, %v2341_v56, %v1962_v21  ;;  %v2213_v32 = vsel %vm2185_vm6, %v2150_v43, %v12011_v41  ;;  %v12016_v43 = vld [vmem:[#allocation122_spill] sm:$0xff] }
 0x33d   : > { %v2028_v3 = vpop.permute.xlu0 %2027  ;;  %v2471_v14 = vsel %vm2443_vm10, %v2406_v1, %v2026_v45  ;;  %2121 = vrot.lane.b32.xlu0 %v12010_v59, %s6867_s18  ;;  %v2278_v0 = vsel %vm2248_vm7, %v2213_v32, %v12013_v8 }
 0x33e   : > { %2059 = vrot.lane.b32.xlu1 %v12012_v37, %s6865_s25  ;;  %v2343_v26 = vsel %vm2313_vm9, %v2278_v0, %v8832_v36  ;;  %v12017_v36 = vld [vmem:[#allocation157_spill] sm:$0xff] }
 0x33f   : > { %v2088_v27 = vpop.permute.xlu1 %2087 }
 0x340   : > { %v2548_v9 = vsel %vm2507_vm11, %v2471_v14, %v2088_v27  ;;  %v12014_v14 = vld [vmem:[#allocation102_spill] sm:$0xff] }
 0x341   : > { %2887 = vmatmul.mubr.bf16.gmra.mrb[52].mxu1 %v2548_v9  ;;  %v9097_v45 = vpop.permute.xlu0 %1913  ;;  %v2152_v40 = vsel %vm546_vm0, %v12015_v62, %v12014_v14  ;;  %v12020_v62 = vld [vmem:[#allocation125_spill] sm:$0xff] }
 0x342   : > { %6023 = vmatprep.mubr.msk.bf16.mxu1 %vm546_vm0, %v11945_v60  ;;  %2119 = vrot.lane.b32.xlu1 %v8903_v57, %s6867_s18  ;;  %v2215_v9 = vsel %vm2185_vm6, %v2152_v40, %v12016_v43  ;;  %v12021_v40 = vld [vmem:[#allocation165_spill] sm:$0xff] }
 0x343   : > { %v1964_v47 = vpop.permute.xlu1 %1963  ;;  %v2280_v41 = vsel %vm2248_vm7, %v2215_v9, %v12017_v36 }
 0x344   : > { %v2408_v56 = vsel %vm2378_vm8, %v2343_v26, %v1964_v47 }
 0x345   : > { %v2030_v21 = vpop.permute.xlu0 %2029  ;;  %v2473_v27 = vsel %vm2443_vm10, %v2408_v56, %v2028_v3  ;;  %v2345_v3 = vsel %vm2313_vm9, %v2280_v41, %v8859_v34  ;;  %v12018_v56 = vld [vmem:[#allocation110_spill] sm:$0xff] }
 0x346   : > { %3875 = vrot.lane.b32.xlu1 %v12010_v59, %s6868_s9 }
 0x347   : > { %v2090_v1 = vpop.permute.xlu1 %2089 }
 0x348   : > { %v2551_v60 = vsel %vm2507_vm11, %v2473_v27, %v2090_v1  ;;  %v12019_v1 = vld [vmem:[#allocation77_spill] sm:$0xff] }
 0x349   : > { %2895 = vmatmul.mubr.bf16.gmra.mrb[56].mxu1 %v2551_v60  ;;  %v9115_v57 = vpop.permute.xlu0 %1915  ;;  %v2154_v27 = vsel %vm546_vm0, %v12019_v1, %v12018_v56  ;;  %v12025_v56 = vld [vmem:[#allocation161_spill] sm:$0xff] }
 0x34a   : > { %6024 = vmatprep.mubr.msk.bf16.mxu1 %vm546_vm0, %v11950_v54  ;;  %v2217_v54 = vsel %vm2185_vm6, %v2154_v27, %v12020_v62 }
 0x34b   : > { %v1966_v32 = vpop.permute.xlu1 %1965  ;;  %v2282_v34 = vsel %vm2248_vm7, %v2217_v54, %v12021_v40 }
 0x34c   : > { %v2410_v8 = vsel %vm2378_vm8, %v2345_v3, %v1966_v32  ;;  %v12022_v32 = vld [vmem:[#allocation113_spill] sm:$0xff] }
 0x34d   : > { %v2032_v0 = vpop.permute.xlu0 %2031  ;;  %v2475_v47 = vsel %vm2443_vm10, %v2410_v8, %v2030_v21  ;;  %v2347_v21 = vsel %vm2313_vm9, %v2282_v34, %v8893_v11  ;;  %v12023_v8 = vld [vmem:[#allocation76_spill] sm:$0xff] }
 0x34f   : > { %v2092_v26 = vpop.permute.xlu1 %2091 }
 0x350   : > { %v2554_v14 = vsel %vm2507_vm11, %v2475_v47, %v2092_v26  ;;  %v12024_v47 = vld [vmem:[#allocation41_spill] sm:$0xff] }
 0x351   : > { %2903 = vmatmul.mubr.bf16.gmra.mrb[60].mxu1 %v2554_v14  ;;  %v9131_v60 = vpop.permute.xlu0 %1917 }
 0x352   : > { %6025 = vmatprep.mubr.msk.bf16.mxu1 %vm546_vm0, %v11952_v33  ;;  %v2156_v33 = vsel %vm546_vm0, %v12023_v8, %v12022_v32  ;;  %v12029_v32 = vld [vmem:[#allocation170_spill] sm:$0xff] }
 0x353   : > { %v1968_v43 = vpop.permute.xlu1 %1967  ;;  %v2219_v11 = vsel %vm2185_vm6, %v2156_v33, %v12024_v47 }
 0x354   : > { %v2412_v9 = vsel %vm2378_vm8, %v2347_v21, %v1968_v43  ;;  %v2284_v1 = vsel %vm2248_vm7, %v2219_v11, %v12025_v56  ;;  %v12026_v21 = vld [vmem:[#allocation60_spill] sm:$0xff] }
 0x355   : > { %v2034_v36 = vpop.permute.xlu0 %2033  ;;  %v2477_v3 = vsel %vm2443_vm10, %v2412_v9, %v2032_v0  ;;  %v2349_v0 = vsel %vm2313_vm9, %v2284_v1, %v8920_v12  ;;  %v12027_v43 = vld [vmem:[#allocation32_spill] sm:$0xff]  ;;  %v12030_v1 = vld [vmem:[#allocation26_spill] sm:$0xff] }
 0x356   : > { %v2158_v9 = vsel %vm546_vm0, %v12027_v43, %v12026_v21 }
 0x357   : > { %v2094_v41 = vpop.permute.xlu1 %2093 }
 0x358   : > { %v2557_v26 = vsel %vm2507_vm11, %v2477_v3, %v2094_v41  ;;  %v12028_v3 = vld [vmem:[#allocation126_spill] sm:$0xff] }
 0x359   : > { %2911 = vmatmul.mubr.bf16.gmra.mrb[64].mxu1 %v2557_v26  ;;  %v9149_v27 = vpop.permute.xlu0 %1919 }
 0x35a   : > { %6026 = vmatprep.mubr.msk.bf16.mxu1 %vm546_vm0, %v11954_v28  ;;  %v2221_v28 = vsel %vm2185_vm6, %v2158_v9, %v12028_v3  ;;  %v12033_v3 = vld [vmem:[#allocation44_spill] sm:$0xff] }
 0x35b   : > { %v1970_v14 = vpop.permute.xlu1 %1969  ;;  %v2286_v12 = vsel %vm2248_vm7, %v2221_v28, %v12029_v32  ;;  %v2162_v28 = vsel %vm546_vm0, %v11751_v39, %v12033_v3 }
 0x35c   : > { %v2414_v62 = vsel %vm2378_vm8, %v2349_v0, %v1970_v14  ;;  %v2160_v0 = vsel %vm546_vm0, %v11739_v52, %v12030_v1 }
 0x35d   : > { %v2036_v54 = vpop.permute.xlu0 %2035  ;;  %v2479_v34 = vsel %vm2443_vm10, %v2414_v62, %v2034_v36  ;;  %v2351_v36 = vsel %vm2313_vm9, %v2286_v12, %v8944_v46  ;;  %v12031_v62 = vld [vmem:[#allocation31_spill] sm:$0xff] }
 0x35e   : > { %v12034_v12 = vld [vmem:[#allocation131_spill] sm:$0xff] }
 0x35f   : > { %v2096_v40 = vpop.permute.xlu1 %2095 }
 0x360   : > { %v2560_v41 = vsel %vm2507_vm11, %v2479_v34, %v2096_v40  ;;  %v12032_v40 = vld [vmem:[#allocation164_spill] sm:$0xff] }
 0x361   : > { %2919 = vmatmul.mubr.bf16.gmra.mrb[68].mxu1 %v2560_v41  ;;  %v9165_v8 = vpop.permute.xlu0 %1921 }
 0x362   : > { %6027 = vmatprep.mubr.msk.bf16.mxu1 %vm546_vm0, %v11956_v31  ;;  %v2223_v31 = vsel %vm2185_vm6, %v2160_v0, %v12031_v62  ;;  %v12036_v0 = vld [vmem:[#allocation96_spill] sm:$0xff] }
 0x363   : > { %v1972_v33 = vpop.permute.xlu1 %1971  ;;  %v2288_v46 = vsel %vm2248_vm7, %v2223_v31, %v12032_v40  ;;  %v12037_v31 = vld [vmem:[#allocation53_spill] sm:$0xff]  ;;  %v12038_v40 = vld [vmem:[#allocation168_spill] sm:$0xff] }
 0x364   : > { %v2416_v26 = vsel %vm2378_vm8, %v2351_v36, %v1972_v33  ;;  %v12035_v36 = vld [vmem:[#allocation172_spill] sm:$0xff] }
 0x365   : > { %v2038_v47 = vpop.permute.xlu0 %2037  ;;  %v2481_v56 = vsel %vm2443_vm10, %v2416_v26, %v2036_v54  ;;  %v2353_v54 = vsel %vm2313_vm9, %v2288_v46, %v8968_v17 }
 0x367   : > { %v2098_v11 = vpop.permute.xlu1 %2097 }
 0x368   : > { %v2563_v14 = vsel %vm2507_vm11, %v2481_v56, %v2098_v11 }
 0x369   : > { %2927 = vmatmul.mubr.bf16.gmra.mrb[72].mxu1 %v2563_v14  ;;  %v9181_v34 = vpop.permute.xlu0 %1923  ;;  %v2164_v14 = vsel %vm546_vm0, %v11743_v53, %v12036_v0  ;;  %v12043_v0 = vld [vmem:[#allocation129_spill] sm:$0xff] }
 0x36a   : > { %6028 = vmatprep.mubr.msk.bf16.mxu1 %vm546_vm0, %v11960_v13  ;;  %v2225_v13 = vsel %vm2185_vm6, %v2162_v28, %v12034_v12  ;;  %v12041_v12 = vld [vmem:[#allocation176_spill] sm:$0xff] }
 0x36b   : > { %v1974_v21 = vpop.permute.xlu1 %1973  ;;  %v2290_v17 = vsel %vm2248_vm7, %v2225_v13, %v12035_v36 }
 0x36c   : > { %v2418_v52 = vsel %vm2378_vm8, %v2353_v54, %v1974_v21  ;;  %v2355_v26 = vsel %vm2313_vm9, %v2290_v17, %v8992_v2 }
 0x36d   : > { %v2040_v43 = vpop.permute.xlu0 %2039  ;;  %v2483_v41 = vsel %vm2443_vm10, %v2418_v52, %v2038_v47 }
 0x36f   : > { %v2100_v9 = vpop.permute.xlu1 %2099 }
 0x370   : > { %v2566_v32 = vsel %vm2507_vm11, %v2483_v41, %v2100_v9  ;;  %v12039_v41 = vld [vmem:[#allocation99_spill] sm:$0xff] }
 0x371   : > { %2935 = vmatmul.mubr.bf16.gmra.mrb[76].mxu1 %v2566_v32  ;;  %v9197_v33 = vpop.permute.xlu0 %1925  ;;  %v2166_v3 = vsel %vm546_vm0, %v7749_v38, %v12039_v41  ;;  %v12040_v32 = vld [vmem:[#allocation133_spill] sm:$0xff] }
 0x372   : > { %6029 = vmatprep.mubr.msk.bf16.mxu1 %vm546_vm0, %v11967_v7  ;;  %v2227_v7 = vsel %vm2185_vm6, %v2164_v14, %v12037_v31  ;;  %v12044_v14 = vld [vmem:[#allocation171_spill] sm:$0xff] }
 0x373   : > { %v1976_v47 = vpop.permute.xlu1 %1975  ;;  %v2292_v2 = vsel %vm2248_vm7, %v2227_v7, %v12038_v40 }
 0x374   : > { %v2420_v39 = vsel %vm2378_vm8, %v2355_v26, %v1976_v47  ;;  %v2357_v54 = vsel %vm2313_vm9, %v2292_v2, %v9016_v58 }
 0x375   : > { %v2042_v11 = vpop.permute.xlu0 %2041  ;;  %v2485_v1 = vsel %vm2443_vm10, %v2420_v39, %v2040_v43 }
 0x377   : > { %v2102_v56 = vpop.permute.xlu1 %2101 }
 0x378   : > { %v2569_v62 = vsel %vm2507_vm11, %v2485_v1, %v2102_v56 }
 0x379   : > { %2943 = vmatmul.mubr.bf16.gmra.mrb[80].mxu1 %v2569_v62  ;;  %v9213_v46 = vpop.permute.xlu0 %1927 }
 0x37a   : > { %6030 = vmatprep.mubr.msk.bf16.mxu1 %vm546_vm0, %v11965_v20  ;;  %v2229_v20 = vsel %vm2185_vm6, %v2166_v3, %v12040_v32 }
 0x37b   : > { %v1978_v21 = vpop.permute.xlu1 %1977  ;;  %v2294_v58 = vsel %vm2248_vm7, %v2229_v20, %v12041_v12 }
 0x37c   : > { %v2422_v53 = vsel %vm2378_vm8, %v2357_v54, %v1978_v21  ;;  %v2359_v36 = vsel %vm2313_vm9, %v2294_v58, %v9046_v18  ;;  %v12045_v21 = vld [vmem:[#allocation111_spill] sm:$0xff]  ;;  %v12048_v58 = vld [vmem:[#allocation114_spill] sm:$0xff] }
 0x37d   : > { %v2044_v52 = vpop.permute.xlu0 %2043  ;;  %v2487_v9 = vsel %vm2443_vm10, %v2422_v53, %v2042_v11  ;;  %v12042_v11 = vld [vmem:[#allocation106_spill] sm:$0xff]  ;;  %v2170_v53 = vsel %vm546_vm0, %v7874_v35, %v12045_v21 }
 0x37e   : > { %v2168_v56 = vsel %vm546_vm0, %v7744_v24, %v12042_v11 }
 0x37f   : > { %v2104_v43 = vpop.permute.xlu1 %2103 }
 0x380   : > { %v2572_v28 = vsel %vm2507_vm11, %v2487_v9, %v2104_v43  ;;  %v12046_v43 = vld [vmem:[#allocation135_spill] sm:$0xff]  ;;  %v12047_v9 = vld [vmem:[#allocation178_spill] sm:$0xff] }
 0x381   : > { %2951 = vmatmul.mubr.bf16.gmra.mrb[84].mxu1 %v2572_v28  ;;  %v1982_v13 = vpop.permute.xlu0 %1981 }
 0x382   : > { %6031 = vmatprep.mubr.msk.bf16.mxu1 %vm546_vm0, %v11980_v48  ;;  %v2231_v48 = vsel %vm2185_vm6, %v2168_v56, %v12043_v0  ;;  %v12051_v0 = vld [vmem:[#allocation46_spill] sm:$0xff] }
 0x383   : > { %v1980_v17 = vpop.permute.xlu1 %1979  ;;  %v2296_v18 = vsel %vm2248_vm7, %v2231_v48, %v12044_v14  ;;  %v2174_v48 = vsel %vm546_vm0, %v11961_v23, %v12051_v0 }
 0x384   : > { %v2424_v26 = vsel %vm2378_vm8, %v2359_v36, %v1980_v17  ;;  %v2361_v31 = vsel %vm2313_vm9, %v2296_v18, %v9073_v29  ;;  %v12049_v17 = vld [vmem:[#allocation64_spill] sm:$0xff]  ;;  %v12052_v18 = vld [vmem:[#allocation137_spill] sm:$0xff] }
 0x385   : > { %v2108_v38 = vpop.permute.xlu0 %2107  ;;  %v2489_v39 = vsel %vm2443_vm10, %v2424_v26, %v2044_v52  ;;  %v2426_v40 = vsel %vm2378_vm8, %v2361_v31, %v1982_v13  ;;  %v2172_v13 = vsel %vm546_vm0, %v11957_v4, %v12048_v58  ;;  %v12050_v26 = vld [vmem:[#allocation174_spill] sm:$0xff]  ;;  %v12053_v31 = vld [vmem:[#allocation183_spill] sm:$0xff] }
 0x387   : > { %v2106_v47 = vpop.permute.xlu1 %2105 }
 0x388   : > { %v2575_v1 = vsel %vm2507_vm11, %v2489_v39, %v2106_v47 }
 0x389   : > { %2959 = vmatmul.mubr.bf16.gmra.mrb[88].mxu1 %v2575_v1  ;;  %v1986_v62 = vpop.permute.xlu0 %1985 }
 0x38a   : > { %6032 = vmatprep.mubr.msk.bf16.mxu1 %vm546_vm0, %v11974_v15  ;;  %v2233_v15 = vsel %vm2185_vm6, %v2170_v53, %v12046_v43 }
 0x38b   : > { %v2046_v7 = vpop.permute.xlu1 %2045  ;;  %v2298_v29 = vsel %vm2248_vm7, %v2233_v15, %v12047_v9  ;;  %v9305_v9 = vld [vmem:[#allocation7 + $0x1] ss:$0 sm:$0xff] }
 0x38c   : > { %v2491_v24 = vsel %vm2443_vm10, %v2426_v40, %v2046_v7  ;;  %v2363_v3 = vsel %vm2313_vm9, %v2298_v29, %v9097_v45 }
 0x38d   : > { %v2110_v2 = vpop.permute.xlu0 %2109  ;;  %v2578_v52 = vsel %vm2507_vm11, %v2491_v24, %v2108_v38 }
 0x38f   : > { %v1984_v54 = vpop.permute.xlu1 %1983 }
 0x390   : > { %v2428_v32 = vsel %vm2378_vm8, %v2363_v3, %v1984_v54  ;;  %v12054_v54 = vld [vmem:[#allocation90_spill] sm:$0xff] }
 0x391   : > { %2967 = vmatmul.mubr.bf16.gmra.mrb[92].mxu1 %v2578_v52  ;;  %v1990_v41 = vpop.permute.xlu0 %1989  ;;  %v2176_v21 = vsel %vm546_vm0, %v11976_v6, %v12054_v54  ;;  %v12055_v52 = vld [vmem:[#allocation134_spill] sm:$0xff] }
 0x392   : > { %6033 = vmatprep.mubr.msk.bf16.mxu1 %vm546_vm0, %v11988_v25  ;;  %v2235_v25 = vsel %vm2185_vm6, %v2172_v13, %v12049_v17 }
 0x393   : > { %v2048_v28 = vpop.permute.xlu1 %2047  ;;  %v2300_v45 = vsel %vm2248_vm7, %v2235_v25, %v12050_v26  ;;  %v12057_v25 = vld [vmem:[#allocation95_spill] sm:$0xff] }
 0x394   : > { %v2493_v35 = vsel %vm2443_vm10, %v2428_v32, %v2048_v28  ;;  %v2365_v47 = vsel %vm2313_vm9, %v2300_v45, %v9115_v57  ;;  %v9310_v28 = vld [vmem:[#allocation7 + $0x2] ss:$0 sm:$0xff]  ;;  %v12058_v26 = vld [vmem:[#allocation139_spill] sm:$0xff] }
 0x395   : > { %v2112_v20 = vpop.permute.xlu0 %2111  ;;  %v2581_v36 = vsel %vm2507_vm11, %v2493_v35, %v2110_v2  ;;  %v2430_v4 = vsel %vm2378_vm8, %v2365_v47, %v1986_v62 }
 0x397   : > { %v1988_v12 = vpop.permute.xlu1 %1987 }
 0x399   : > { %2975 = vmatmul.mubr.bf16.gmra.mrb[96].mxu1 %v2581_v36  ;;  %v9271_v38 = vpop.permute.xlu0 %1993 }
 0x39a   : > { %6034 = vmatprep.mubr.msk.bf16.mxu1 %vm546_vm0, %v11983_v5  ;;  %v2237_v5 = vsel %vm2185_vm6, %v2174_v48, %v12052_v18 }
 0x39b   : > { %v2050_v39 = vpop.permute.xlu1 %2049  ;;  %v2302_v57 = vsel %vm2248_vm7, %v2237_v5, %v12053_v31 }
 0x39c   : > { %v2495_v11 = vsel %vm2443_vm10, %v2430_v4, %v2050_v39  ;;  %v2367_v62 = vsel %vm2313_vm9, %v2302_v57, %v9131_v60  ;;  %v12056_v60 = vld [vmem:[#allocation177_spill] sm:$0xff] }
 0x39d   : > { %v2114_v56 = vpop.permute.xlu0 %2113  ;;  %v2584_v14 = vsel %vm2507_vm11, %v2495_v11, %v2112_v20  ;;  %v2432_v23 = vsel %vm2378_vm8, %v2367_v62, %v1988_v12  ;;  %v12059_v4 = vld [vmem:[#allocation185_spill] sm:$0xff] }
 0x39f   : > { %v1992_v1 = vpop.permute.xlu1 %1991 }
 0x3a1   : > { %2983 = vmatmul.mubr.bf16.gmra.mrb[100].mxu1 %v2584_v14  ;;  %v9289_v7 = vpop.permute.xlu0 %1997 }
 0x3a2   : > { %6035 = vmatprep.mubr.msk.bf16.mxu1 %vm546_vm0, %v11996_v50  ;;  %v2239_v50 = vsel %vm2185_vm6, %v2176_v21, %v12055_v52 }
 0x3a3   : > { %v2052_v40 = vpop.permute.xlu1 %2051  ;;  %v2304_v15 = vsel %vm2248_vm7, %v2239_v50, %v12056_v60  ;;  %v12060_v50 = vld [vmem:[#allocation98_spill] sm:$0xff]  ;;  %v12061_v60 = vld [vmem:[#allocation136_spill] sm:$0xff] }
 0x3a4   : > { %v2497_v24 = vsel %vm2443_vm10, %v2432_v23, %v2052_v40  ;;  %v2369_v29 = vsel %vm2313_vm9, %v2304_v15, %v9149_v27  ;;  %v2178_v27 = vsel %vm546_vm0, %v11985_v22, %v12057_v25 }
 0x3a5   : > { %v2587_v53 = vsel %vm2507_vm11, %v2497_v24, %v2114_v56  ;;  %v2116_v43 = vpop.permute.xlu0 %2115  ;;  %v2434_v6 = vsel %vm2378_vm8, %v2369_v29, %v1990_v41  ;;  %v2241_v45 = vsel %vm2185_vm6, %v2178_v27, %v12058_v26 }
 0x3a6   : > { %v2306_v11 = vsel %vm2248_vm7, %v2241_v45, %v12059_v4  ;;  %v12065_v4 = vld [vmem:[#allocation140_spill] sm:$0xff] }
 0x3a7   : > { %v9293_v2 = vpop.permute.xlu1 %1995  ;;  %v2371_v56 = vsel %vm2313_vm9, %v2306_v11, %v9165_v8 }
 0x3a8   : > { %v2436_v48 = vsel %vm2378_vm8, %v2371_v56, %v1992_v1 }
 0x3a9   : > { %2991 = vmatmul.mubr.bf16.gmra.mrb[104].mxu1 %v2587_v53  ;;  %v2058_v13 = vpop.permute.xlu0 %2057 }
 0x3aa   : > { %6036 = vmatprep.mubr.msk.bf16.mxu1 %vm546_vm0, %v11991_v19 }
 0x3ab   : > { %v2054_v3 = vpop.permute.xlu1 %2053 }
 0x3ac   : > { %v2784_v32 = vpop.f32.mrb[0].mxu1  ;;  %v2499_v35 = vsel %vm2443_vm10, %v2434_v6, %v2054_v3 }
 0x3ad   : > { %v3043_v20 = vmul.f32 %v9305_v9, %v2784_v32  ;;  %v2786_v12 = vpop.f32.mrb[1].mxu1  ;;  %v2590_v41 = vsel %vm2507_vm11, %v2499_v35, %v2116_v43  ;;  %v2118_v5 = vpop.permute.xlu0 %2117  ;;  %v2180_v43 = vsel %vm546_vm0, %v11993_v16, %v12060_v50  ;;  %v12062_v32 = vld [vmem:[#allocation181_spill] sm:$0xff] }
 0x3ae   : > { %v2787_v58 = vpop.f32.mrb[2].mxu1  ;;  %v2243_v15 = vsel %vm2185_vm6, %v2180_v43, %v12061_v60  ;;  %v12068_v60 = vld [vmem:[#allocation109_spill] sm:$0xff] }
 0x3af   : > { %v3111_v19 = vadd.f32 %v9310_v28, %v3043_v20  ;;  %v3044_v36 = vmul.f32 %v9305_v9, %v2787_v58  ;;  %v2789_v17 = vpop.f32.mrb[3].mxu1  ;;  %v2056_v39 = vpop.permute.xlu1 %2055  ;;  %v2308_v35 = vsel %vm2248_vm7, %v2243_v15, %v12062_v32  ;;  %v2184_v15 = vsel %vm546_vm0, %v12006_v44, %v12068_v60  ;;  %v12070_v44 = vld [vmem:[#allocation184_spill] sm:$0xff] }
 0x3b0   : > { %v2501_v31 = vsel %vm2443_vm10, %v2436_v48, %v2056_v39  ;;  %v2373_v12 = vsel %vm2313_vm9, %v2308_v35, %v9181_v34  ;;  %v12064_v17 = vld [vmem:[#allocation101_spill] sm:$0xff] }
 0x3b1   : > { %v3112_v47 = vadd.f32 %v9310_v28, %v3044_v36  ;;  %2999 = vmatmul.mubr.bf16.gmra.mrb[108].mxu1 %v2590_v41  ;;  %v3175_v0 = vmax.f32 %v3111_v19, 0.0  ;;  %v2593_v21 = vsel %vm2507_vm11, %v2501_v31, %v2118_v5  ;;  %v2182_v25 = vsel %vm546_vm0, %v12000_v42, %v12064_v17  ;;  %v12066_v42 = vld [vmem:[#allocation189_spill] sm:$0xff] }
 0x3b2   : > { %6037 = vmatprep.mubr.msk.bf16.mxu1 %vm546_vm0, %v9054_v30  ;;  %v2438_v27 = vsel %vm2378_vm8, %v2373_v12, %v9271_v38  ;;  %v2245_v11 = vsel %vm2185_vm6, %v2182_v25, %v12065_v4 }
 0x3b3   : > { %v3176_v22 = vmax.f32 %v3112_v47, 0.0  ;;  %v9332_v24 = vpop.permute.xlu1 %2059  ;;  %v2503_v26 = vsel %vm2443_vm10, %v2438_v27, %v2058_v13 }
 0x3b4   : > { %v2792_v14 = vpop.f32.mrb[4].mxu1 }
 0x3b5   : > { %v3239_v18 = vpack.c.bf16 %v3176_v22, %v3175_v0  ;;  %v3045_v57 = vmul.f32 %v9305_v9, %v2792_v14  ;;  %v2794_v62 = vpop.f32.mrb[5].mxu1  ;;  %v2310_v22 = vsel %vm2248_vm7, %v2245_v11, %v12066_v42 }
 0x3b6   : > { %v2795_v40 = vpop.f32.mrb[6].mxu1  ;;  %v2375_v14 = vsel %vm2313_vm9, %v2310_v22, %v9197_v33 }
 0x3b7   : > { %v3272_v23 = vshrl.u32 %v3239_v18, 16  ;;  %v3113_v30 = vadd.f32 %v9310_v28, %v3045_v57  ;;  %v3046_v8 = vmul.f32 %v9305_v9, %v2795_v40  ;;  %v2797_v54 = vpop.f32.mrb[7].mxu1  ;;  %v3275_v53 = vshll.u32 %v3239_v18, 16  ;;  %v2120_v19 = vpop.permute.xlu1 %2119 }
 0x3b8   : > { %v2596_v56 = vsel %vm2507_vm11, %v2503_v26, %v2120_v19  ;;  %v2440_v62 = vsel %vm2378_vm8, %v2375_v14, %v9293_v2 }
 0x3b9   : > { %v3274_v1 = vrot.slane %v3272_v23, 7  ;;  %v3114_v52 = vadd.f32 %v9310_v28, %v3046_v8  ;;  %3007 = vmatmul.mubr.bf16.gmra.mrb[112].mxu1 %v2593_v21  ;;  %v3177_v3 = vmax.f32 %v3113_v30, 0.0  ;;  %v2505_v30 = vsel %vm2443_vm10, %v2440_v62, %v9332_v24  ;;  %v2122_v8 = vpop.permute.xlu0 %2121 }
 0x3ba   : > { %6038 = vmatprep.mubr.msk.bf16.mxu1 %vm546_vm0, %v9028_v49  ;;  %v2599_v32 = vsel %vm2507_vm11, %v2505_v30, %v2122_v8 }
 0x3bb   : > { %v3277_v29 = vor.u32 %v3275_v53, %v3274_v1  ;;  %v3178_v6 = vmax.f32 %v3114_v52, 0.0 }
 0x3bc   : > { %v2800_v20 = vpop.f32.mrb[8].mxu1 }
 0x3bd   : > { %v9351_v58 = vsel %vm7229_vm3, 0, %v3277_v29  ;;  %v3240_v16 = vpack.c.bf16 %v3178_v6, %v3177_v3  ;;  %v3047_v49 = vmul.f32 %v9305_v9, %v2800_v20  ;;  %v2802_v36 = vpop.f32.mrb[9].mxu1 }
 0x3be   : > { %12063 = vst [vmem:[#allocation52_spill] sm:$0xff] %v9351_v58  ;;  %v2803_v41 = vpop.f32.mrb[10].mxu1  ;;  %v3578_v0 = vshll.u32 %v9351_v58, 16  ;;  %v3576_v50 = vshrl.u32 %v9351_v58, 16 }
 0x3bf   : > { %v3279_v34 = vshrl.u32 %v3240_v16, 16  ;;  %v3115_v45 = vadd.f32 %v9310_v28, %v3047_v49  ;;  %v3048_v47 = vmul.f32 %v9305_v9, %v2803_v41  ;;  %v2805_v39 = vpop.f32.mrb[11].mxu1  ;;  %v3282_v48 = vshll.u32 %v3240_v16, 16  ;;  %v12069_v16 = vld [vmem:[#allocation138_spill] sm:$0xff] }
 0x3c0   : > { %v3580_v23 = vrot.slane %v3578_v0, 1  ;;  %v2247_v19 = vsel %vm2185_vm6, %v2184_v15, %v12069_v16 }
 0x3c1   : > { %v3281_v38 = vrot.slane %v3279_v34, 7  ;;  %v3116_v13 = vadd.f32 %v9310_v28, %v3048_v47  ;;  %3015 = vmatmul.mubr.bf16.gmra.mrb[116].mxu1 %v2596_v56  ;;  %v3179_v5 = vmax.f32 %v3115_v45, 0.0  ;;  %v2312_v25 = vsel %vm2248_vm7, %v2247_v19, %v12070_v44 }
 0x3c2   : > { %6039 = vmatprep.mubr.msk.bf16.mxu1 %vm546_vm0, %v12010_v59  ;;  %v3581_v35 = vor.u32 %v3580_v23, %v3576_v50  ;;  %v2377_v34 = vsel %vm2313_vm9, %v2312_v25, %v9213_v46 }
 0x3c3   : > { %v3284_v18 = vor.u32 %v3282_v48, %v3281_v38  ;;  %v3180_v31 = vmax.f32 %v3116_v13, 0.0  ;;  %v9375_v57 = vsel %vm7229_vm3, %v3281_v38, 0  ;;  %v2442_v4 = vsel %vm2378_vm8, %v2377_v34, %v9289_v7 }
 0x3c4   : > { %v2808_v40 = vpop.f32.mrb[12].mxu1  ;;  %v3591_v2 = vshll.u32 %v9375_v57, 16  ;;  %v2506_v0 = vsel %vm2443_vm10, %v2442_v4, %v9332_v24 }
 0x3c5   : > { %v9382_v33 = vsel %vm963_vm1, %v3274_v1, %v3284_v18  ;;  %v3241_v54 = vpack.c.bf16 %v3180_v31, %v3179_v5  ;;  %v3049_v21 = vmul.f32 %v9305_v9, %v2808_v40  ;;  %v2810_v53 = vpop.f32.mrb[13].mxu1  ;;  %v2601_v24 = vsel %vm2507_vm11, %v2506_v0, %v2122_v8 }
 0x3c6   : > { %12067 = vst [vmem:[#allocation69_spill] sm:$0xff] %v9382_v33  ;;  %v2811_v52 = vpop.f32.mrb[14].mxu1  ;;  %v3583_v43 = vshll.u32 %v9382_v33, 16  ;;  %v3587_v12 = vshrl.u32 %v9382_v33, 16  ;;  %v3593_v26 = vrot.slane %v3591_v2, 1 }
 0x3c7   : > { %v3287_v29 = vshrl.u32 %v3241_v54, 16  ;;  %v3117_v3 = vadd.f32 %v9310_v28, %v3049_v21  ;;  %v3050_v1 = vmul.f32 %v9305_v9, %v2811_v52  ;;  %v2813_v6 = vpop.f32.mrb[15].mxu1  ;;  %v3290_v36 = vshll.u32 %v3241_v54, 16 }
 0x3c8   : > { %v3585_v20 = vrot.slane %v3583_v43, 1 }
 0x3c9   : > { %v3289_v49 = vrot.slane %v3287_v29, 7  ;;  %v3118_v17 = vadd.f32 %v9310_v28, %v3050_v1  ;;  %3023 = vmatmul.mubr.bf16.gmra.mrb[120].mxu1 %v2599_v32  ;;  %v3181_v47 = vmax.f32 %v3117_v3, 0.0 }
 0x3ca   : > { %v9401_v27 = vsel %vm1238_vm4, %v3581_v35, %v3585_v20  ;;  %v3589_v41 = vor.u32 %v3587_v12, %v3585_v20  ;;  %6040 = vmatprep.mubr.msk.bf16.mxu1 %vm546_vm0, %v12010_v59 }
 0x3cb   : > { %v3292_v45 = vor.u32 %v3290_v36, %v3289_v49  ;;  %v3182_v39 = vmax.f32 %v3118_v17, 0.0  ;;  %3877 = vrot.lane.b32.xlu0 %v9401_v27, %s6868_s9 }
 0x3cc   : > { %v2816_v11 = vpop.f32.mrb[16].mxu1  ;;  %v9412_v56 = vsel %vm1238_vm4, %v3589_v41, %v3593_v26 }
 0x3cd   : > { %v9418_v42 = vsel %vm7229_vm3, 0, %v3292_v45  ;;  %v3242_v46 = vpack.c.bf16 %v3182_v39, %v3181_v47  ;;  %v3051_v22 = vmul.f32 %v9305_v9, %v2816_v11  ;;  %v2818_v38 = vpop.f32.mrb[17].mxu1  ;;  %3879 = vrot.lane.b32.xlu1 %v9412_v56, %s6868_s9 }
 0x3ce   : > { %v2819_v48 = vpop.f32.mrb[18].mxu1  ;;  %v3598_v5 = vshll.u32 %v9418_v42, 16  ;;  %v3596_v15 = vshrl.u32 %v9418_v42, 16 }
 0x3cf   : > { %v3294_v7 = vshrl.u32 %v3242_v46, 16  ;;  %v3119_v13 = vadd.f32 %v9310_v28, %v3051_v22  ;;  %v3052_v14 = vmul.f32 %v9305_v9, %v2819_v48  ;;  %v2821_v18 = vpop.f32.mrb[19].mxu1  ;;  %v3297_v62 = vshll.u32 %v3242_v46, 16 }
 0x3d0   : > { %v3600_v52 = vrot.slane %v3598_v5, 1 }
 0x3d1   : > { %v3296_v31 = vrot.slane %v3294_v7, 7  ;;  %v3120_v40 = vadd.f32 %v9310_v28, %v3052_v14  ;;  %3031 = vmatmul.mubr.bf16.gmra.mrb[124].mxu1 %v2601_v24  ;;  %v3183_v30 = vmax.f32 %v3119_v13, 0.0 }
 0x3d2   : > { %v3601_v20 = vor.u32 %v3600_v52, %v3596_v15 }
 0x3d3   : > { %v3299_v23 = vor.u32 %v3297_v62, %v3296_v31  ;;  %v3184_v54 = vmax.f32 %v3120_v40, 0.0  ;;  %v9430_v21 = vsel %vm7229_vm3, %v3296_v31, 0 }
 0x3d4   : > { %v2824_v53 = vpop.f32.mrb[20].mxu1  ;;  %v3611_v3 = vshll.u32 %v9430_v21, 16 }
 0x3d5   : > { %v9433_v50 = vsel %vm963_vm1, %v3289_v49, %v3299_v23  ;;  %v3243_v8 = vpack.c.bf16 %v3184_v54, %v3183_v30  ;;  %v3053_v43 = vmul.f32 %v9305_v9, %v2824_v53  ;;  %v2826_v2 = vpop.f32.mrb[21].mxu1 }
 0x3d6   : > { %v2827_v60 = vpop.f32.mrb[22].mxu1  ;;  %v3603_v29 = vshll.u32 %v9433_v50, 16  ;;  %v3607_v16 = vshrl.u32 %v9433_v50, 16  ;;  %v3613_v25 = vrot.slane %v3611_v3, 1 }
 0x3d7   : > { %v3302_v1 = vshrl.u32 %v3243_v8, 16  ;;  %v3121_v6 = vadd.f32 %v9310_v28, %v3053_v43  ;;  %v3054_v32 = vmul.f32 %v9305_v9, %v2827_v60  ;;  %v2829_v35 = vpop.f32.mrb[23].mxu1  ;;  %v3305_v49 = vshll.u32 %v3243_v8, 16 }
 0x3d8   : > { %v3605_v12 = vrot.slane %v3603_v29, 1 }
 0x3d9   : > { %v3304_v19 = vrot.slane %v3302_v1, 7  ;;  %v3122_v36 = vadd.f32 %v9310_v28, %v3054_v32  ;;  %v3185_v26 = vmax.f32 %v3121_v6, 0.0 }
 0x3da   : > { %v9444_v17 = vsel %vm1238_vm4, %v3601_v20, %v3605_v12  ;;  %v3609_v44 = vor.u32 %v3607_v16, %v3605_v12 }
 0x3db   : > { %v3307_v41 = vor.u32 %v3305_v49, %v3304_v19  ;;  %v3186_v34 = vmax.f32 %v3122_v36, 0.0  ;;  %3881 = vrot.lane.b32.xlu0 %v9444_v17, %s6868_s9 }
 0x3dc   : > { %v2832_v45 = vpop.f32.mrb[24].mxu1  ;;  %v9449_v47 = vsel %vm1238_vm4, %v3609_v44, %v3613_v25 }
 0x3dd   : > { %v9453_v39 = vsel %vm7229_vm3, 0, %v3307_v41  ;;  %v3244_v4 = vpack.c.bf16 %v3186_v34, %v3185_v26  ;;  %v3055_v11 = vmul.f32 %v9305_v9, %v2832_v45  ;;  %3883 = vrot.lane.b32.xlu1 %v9449_v47, %s6868_s9  ;;  %v2834_v0 = vpop.f32.mrb[25].mxu1 }
 0x3de   : > { %v2835_v46 = vpop.f32.mrb[26].mxu1  ;;  %v3618_v13 = vshll.u32 %v9453_v39, 16  ;;  %v3616_v2 = vshrl.u32 %v9453_v39, 16 }
 0x3df   : > { %v3309_v22 = vshrl.u32 %v3244_v4, 16  ;;  %v3123_v38 = vadd.f32 %v9310_v28, %v3055_v11  ;;  %v3056_v48 = vmul.f32 %v9305_v9, %v2835_v46  ;;  %v2837_v7 = vpop.f32.mrb[27].mxu1  ;;  %v3312_v18 = vshll.u32 %v3244_v4, 16 }
 0x3e0   : > { %v3620_v30 = vrot.slane %v3618_v13, 1 }
 0x3e1   : > { %v3311_v14 = vrot.slane %v3309_v22, 7  ;;  %v3124_v24 = vadd.f32 %v9310_v28, %v3056_v48  ;;  %v3187_v31 = vmax.f32 %v3123_v38, 0.0 }
 0x3e2   : > { %v3621_v32 = vor.u32 %v3620_v30, %v3616_v2 }
 0x3e3   : > { %v3314_v5 = vor.u32 %v3312_v18, %v3311_v14  ;;  %v3188_v62 = vmax.f32 %v3124_v24, 0.0  ;;  %v9464_v40 = vsel %vm7229_vm3, %v3311_v14, 0 }
 0x3e4   : > { %v2840_v23 = vpop.f32.mrb[28].mxu1  ;;  %v3631_v15 = vshll.u32 %v9464_v40, 16 }
 0x3e5   : > { %v9467_v54 = vsel %vm963_vm1, %v3304_v19, %v3314_v5  ;;  %v3245_v53 = vpack.c.bf16 %v3188_v62, %v3187_v31  ;;  %v3057_v52 = vmul.f32 %v9305_v9, %v2840_v23  ;;  %v2842_v8 = vpop.f32.mrb[29].mxu1 }
 0x3e6   : > { %v2843_v43 = vpop.f32.mrb[30].mxu1  ;;  %v3623_v60 = vshll.u32 %v9467_v54, 16  ;;  %v3627_v20 = vshrl.u32 %v9467_v54, 16  ;;  %v3633_v44 = vrot.slane %v3631_v15, 1 }
 0x3e7   : > { %v3317_v29 = vshrl.u32 %v3245_v53, 16  ;;  %v3125_v3 = vadd.f32 %v9310_v28, %v3057_v52  ;;  %v3058_v1 = vmul.f32 %v9305_v9, %v2843_v43  ;;  %v2845_v6 = vpop.f32.mrb[31].mxu1  ;;  %v3320_v16 = vshll.u32 %v3245_v53, 16 }
 0x3e8   : > { %v3625_v35 = vrot.slane %v3623_v60, 1 }
 0x3e9   : > { %v3319_v12 = vrot.slane %v3317_v29, 7  ;;  %v3126_v19 = vadd.f32 %v9310_v28, %v3058_v1  ;;  %v3189_v41 = vmax.f32 %v3125_v3, 0.0 }
 0x3ea   : > { %v9478_v49 = vsel %vm1238_vm4, %v3621_v32, %v3625_v35  ;;  %v3629_v36 = vor.u32 %v3627_v20, %v3625_v35 }
 0x3eb   : > { %v3322_v25 = vor.u32 %v3320_v16, %v3319_v12  ;;  %v3190_v26 = vmax.f32 %v3126_v19, 0.0  ;;  %3885 = vrot.lane.b32.xlu0 %v9478_v49, %s6868_s9 }
 0x3ec   : > { %v2848_v34 = vpop.f32.mrb[32].mxu1  ;;  %v9483_v45 = vsel %vm1238_vm4, %v3629_v36, %v3633_v44 }
 0x3ed   : > { %v9487_v4 = vsel %vm7229_vm3, 0, %v3322_v25  ;;  %v3246_v11 = vpack.c.bf16 %v3190_v26, %v3189_v41  ;;  %v3059_v0 = vmul.f32 %v9305_v9, %v2848_v34  ;;  %3887 = vrot.lane.b32.xlu1 %v9483_v45, %s6868_s9  ;;  %v2850_v46 = vpop.f32.mrb[33].mxu1 }
 0x3ee   : > { %v2851_v22 = vpop.f32.mrb[34].mxu1  ;;  %v3638_v14 = vshll.u32 %v9487_v4, 16  ;;  %v3636_v29 = vshrl.u32 %v9487_v4, 16 }
 0x3ef   : > { %v3324_v38 = vshrl.u32 %v3246_v11, 16  ;;  %v3127_v48 = vadd.f32 %v9310_v28, %v3059_v0  ;;  %v3060_v7 = vmul.f32 %v9305_v9, %v2851_v22  ;;  %v2853_v13 = vpop.f32.mrb[35].mxu1  ;;  %v3327_v24 = vshll.u32 %v3246_v11, 16 }
 0x3f0   : > { %v3640_v52 = vrot.slane %v3638_v14, 1 }
 0x3f1   : > { %v3326_v18 = vrot.slane %v3324_v38, 7  ;;  %v3128_v5 = vadd.f32 %v9310_v28, %v3060_v7  ;;  %v3191_v62 = vmax.f32 %v3127_v48, 0.0 }
 0x3f2   : > { %v3641_v16 = vor.u32 %v3640_v52, %v3636_v29 }
 0x3f3   : > { %v3329_v31 = vor.u32 %v3327_v24, %v3326_v18  ;;  %v3192_v23 = vmax.f32 %v3128_v5, 0.0  ;;  %v9498_v30 = vsel %vm7229_vm3, %v3326_v18, 0 }
 0x3f4   : > { %v2856_v53 = vpop.f32.mrb[36].mxu1  ;;  %v3651_v1 = vshll.u32 %v9498_v30, 16 }
 0x3f5   : > { %v9501_v8 = vsel %vm963_vm1, %v3319_v12, %v3329_v31  ;;  %v3247_v43 = vpack.c.bf16 %v3192_v23, %v3191_v62  ;;  %v3061_v2 = vmul.f32 %v9305_v9, %v2856_v53  ;;  %v2858_v60 = vpop.f32.mrb[37].mxu1 }
 0x3f6   : > { %v2859_v15 = vpop.f32.mrb[38].mxu1  ;;  %v3643_v3 = vshll.u32 %v9501_v8, 16  ;;  %v3647_v19 = vshrl.u32 %v9501_v8, 16  ;;  %v3653_v34 = vrot.slane %v3651_v1, 1 }
 0x3f7   : > { %v3332_v6 = vshrl.u32 %v3247_v43, 16  ;;  %v3129_v32 = vadd.f32 %v9310_v28, %v3061_v2  ;;  %v3062_v35 = vmul.f32 %v9305_v9, %v2859_v15  ;;  %v2861_v20 = vpop.f32.mrb[39].mxu1  ;;  %v3335_v44 = vshll.u32 %v3247_v43, 16 }
 0x3f8   : > { %v3645_v12 = vrot.slane %v3643_v3, 1 }
 0x3f9   : > { %v3334_v36 = vrot.slane %v3332_v6, 7  ;;  %v3130_v25 = vadd.f32 %v9310_v28, %v3062_v35  ;;  %v3193_v0 = vmax.f32 %v3129_v32, 0.0 }
 0x3fa   : > { %v9512_v41 = vsel %vm1238_vm4, %v3641_v16, %v3645_v12  ;;  %v3649_v26 = vor.u32 %v3647_v19, %v3645_v12 }
 0x3fb   : > { %v3337_v11 = vor.u32 %v3335_v44, %v3334_v36  ;;  %v3194_v46 = vmax.f32 %v3130_v25, 0.0  ;;  %3889 = vrot.lane.b32.xlu0 %v9512_v41, %s6868_s9 }
 0x3fc   : > { %v2864_v22 = vpop.f32.mrb[40].mxu1  ;;  %v9517_v38 = vsel %vm1238_vm4, %v3649_v26, %v3653_v34 }
 0x3fd   : > { %v9521_v48 = vsel %vm7229_vm3, 0, %v3337_v11  ;;  %v3248_v7 = vpack.c.bf16 %v3194_v46, %v3193_v0  ;;  %v3063_v13 = vmul.f32 %v9305_v9, %v2864_v22  ;;  %3891 = vrot.lane.b32.xlu1 %v9517_v38, %s6868_s9  ;;  %v2866_v14 = vpop.f32.mrb[41].mxu1 }
 0x3fe   : > { %v2867_v18 = vpop.f32.mrb[42].mxu1  ;;  %v3658_v23 = vshll.u32 %v9521_v48, 16  ;;  %v3656_v12 = vshrl.u32 %v9521_v48, 16 }
 0x3ff   : > { %v3339_v24 = vshrl.u32 %v3248_v7, 16  ;;  %v3131_v5 = vadd.f32 %v9310_v28, %v3063_v13  ;;  %v3064_v31 = vmul.f32 %v9305_v9, %v2867_v18  ;;  %v2869_v62 = vpop.f32.mrb[43].mxu1  ;;  %v3342_v52 = vshll.u32 %v3248_v7, 16 }
 0x400   : > { %v3660_v1 = vrot.slane %v3658_v23, 1 }
 0x401   : > { %v3341_v53 = vrot.slane %v3339_v24, 7  ;;  %v3132_v43 = vadd.f32 %v9310_v28, %v3064_v31  ;;  %v3195_v60 = vmax.f32 %v3131_v5, 0.0 }
 0x402   : > { %v3661_v0 = vor.u32 %v3660_v1, %v3656_v12  ;;  %v3967_v1 = vrot.slane %v9351_v58, 1 }
 0x403   : > { %v3344_v2 = vor.u32 %v3342_v52, %v3341_v53  ;;  %v3196_v15 = vmax.f32 %v3132_v43, 0.0  ;;  %v9532_v29 = vsel %vm7229_vm3, %v3341_v53, 0  ;;  %v3968_v52 = vrot.slane %v9382_v33, 1 }
 0x404   : > { %v2872_v3 = vpop.f32.mrb[44].mxu1  ;;  %v3671_v44 = vshll.u32 %v9532_v29, 16 }
 0x405   : > { %v9535_v6 = vsel %vm963_vm1, %v3334_v36, %v3344_v2  ;;  %v3249_v32 = vpack.c.bf16 %v3196_v15, %v3195_v60  ;;  %v3065_v35 = vmul.f32 %v9305_v9, %v2872_v3  ;;  %v2874_v20 = vpop.f32.mrb[45].mxu1  ;;  %v9567_v12 = vsel %vm1640_vm5, %v3967_v1, %v3968_v52 }
 0x406   : > { %v2875_v16 = vpop.f32.mrb[46].mxu1  ;;  %v3663_v19 = vshll.u32 %v9535_v6, 16  ;;  %v3667_v46 = vshrl.u32 %v9535_v6, 16  ;;  %v3673_v24 = vrot.slane %v3671_v44, 1 }
 0x407   : > { %v3347_v25 = vshrl.u32 %v3249_v32, 16  ;;  %v3133_v26 = vadd.f32 %v9310_v28, %v3065_v35  ;;  %v3066_v34 = vmul.f32 %v9305_v9, %v2875_v16  ;;  %v2877_v11 = vpop.f32.mrb[47].mxu1  ;;  %v3350_v7 = vshll.u32 %v3249_v32, 16 }
 0x408   : > { %v3665_v36 = vrot.slane %v3663_v19, 1 }
 0x409   : > { %v3349_v22 = vrot.slane %v3347_v25, 7  ;;  %v3134_v13 = vadd.f32 %v9310_v28, %v3066_v34  ;;  %v3197_v31 = vmax.f32 %v3133_v26, 0.0 }
 0x40a   : > { %v9546_v14 = vsel %vm1238_vm4, %v3661_v0, %v3665_v36  ;;  %v3669_v18 = vor.u32 %v3667_v46, %v3665_v36 }
 0x40b   : > { %v3352_v5 = vor.u32 %v3350_v7, %v3349_v22  ;;  %v3198_v62 = vmax.f32 %v3134_v13, 0.0  ;;  %3893 = vrot.lane.b32.xlu0 %v9546_v14, %s6868_s9 }
 0x40c   : > { %v2880_v23 = vpop.f32.mrb[48].mxu1  ;;  %v9551_v53 = vsel %vm1238_vm4, %v3669_v18, %v3673_v24 }
 0x40d   : > { %v9556_v43 = vsel %vm7229_vm3, 0, %v3352_v5  ;;  %v3250_v2 = vpack.c.bf16 %v3198_v62, %v3197_v31  ;;  %v3067_v60 = vmul.f32 %v9305_v9, %v2880_v23  ;;  %3895 = vrot.lane.b32.xlu1 %v9551_v53, %s6868_s9  ;;  %v2882_v15 = vpop.f32.mrb[49].mxu1 }
 0x40e   : > { %12071 = vst [vmem:[#allocation30_spill] sm:$0xff] %v9556_v43  ;;  %v2883_v3 = vpop.f32.mrb[50].mxu1  ;;  %v3678_v19 = vshll.u32 %v9556_v43, 16  ;;  %v3676_v62 = vshrl.u32 %v9556_v43, 16 }
 0x40f   : > { %v3354_v32 = vshrl.u32 %v3250_v2, 16  ;;  %v3135_v35 = vadd.f32 %v9310_v28, %v3067_v60  ;;  %v3068_v20 = vmul.f32 %v9305_v9, %v2883_v3  ;;  %4042 = vrot.lane.b32.xlu0 %v12010_v59, %s6861_s14  ;;  %v2885_v16 = vpop.f32.mrb[51].mxu1  ;;  %v3357_v25 = vshll.u32 %v3250_v2, 16 }
 0x410   : > { %v3680_v7 = vrot.slane %v3678_v19, 1 }
 0x411   : > { %v3356_v44 = vrot.slane %v3354_v32, 7  ;;  %v3136_v26 = vadd.f32 %v9310_v28, %v3068_v20  ;;  %4044 = vrot.lane.b32.xlu1 %v9567_v12, %s6861_s14  ;;  %v3199_v11 = vmax.f32 %v3135_v35, 0.0 }
 0x412   : > { %v3681_v32 = vor.u32 %v3680_v7, %v3676_v62 }
 0x413   : > { %v3359_v34 = vor.u32 %v3357_v25, %v3356_v44  ;;  %v3200_v0 = vmax.f32 %v3136_v26, 0.0  ;;  %v9575_v36 = vsel %vm7229_vm3, %v3356_v44, 0 }
 0x414   : > { %v2888_v46 = vpop.f32.mrb[52].mxu1  ;;  %v3691_v2 = vshll.u32 %v9575_v36, 16 }
 0x415   : > { %v9578_v13 = vsel %vm963_vm1, %v3349_v22, %v3359_v34  ;;  %v3251_v18 = vpack.c.bf16 %v3200_v0, %v3199_v11  ;;  %v3069_v24 = vmul.f32 %v9305_v9, %v2888_v46  ;;  %v2890_v5 = vpop.f32.mrb[53].mxu1 }
 0x416   : > { %12072 = vst [vmem:[#allocation75_spill] sm:$0xff] %v9578_v13  ;;  %v2891_v31 = vpop.f32.mrb[54].mxu1  ;;  %v3683_v23 = vshll.u32 %v9578_v13, 16  ;;  %v3687_v35 = vshrl.u32 %v9578_v13, 16  ;;  %v3693_v26 = vrot.slane %v3691_v2, 1 }
 0x417   : > { %v3362_v60 = vshrl.u32 %v3251_v18, 16  ;;  %v3137_v15 = vadd.f32 %v9310_v28, %v3069_v24  ;;  %v3070_v3 = vmul.f32 %v9305_v9, %v2891_v31  ;;  %v2893_v1 = vpop.f32.mrb[55].mxu1  ;;  %v3365_v16 = vshll.u32 %v3251_v18, 16 }
 0x418   : > { %v3685_v22 = vrot.slane %v3683_v23, 1  ;;  %v3970_v24 = vrot.slane %v9375_v57, 1  ;;  %v3973_v18 = vrot.slane %v9433_v50, 1 }
 0x419   : > { %v3364_v20 = vrot.slane %v3362_v60, 7  ;;  %v3138_v19 = vadd.f32 %v9310_v28, %v3070_v3  ;;  %v3201_v11 = vmax.f32 %v3137_v15, 0.0  ;;  %v3972_v15 = vrot.slane %v9418_v42, 1 }
 0x41a   : > { %v9589_v44 = vsel %vm1238_vm4, %v3681_v32, %v3685_v22  ;;  %v3689_v25 = vor.u32 %v3687_v35, %v3685_v22  ;;  %v9606_v60 = vsel %vm1640_vm5, %v3968_v52, %v3970_v24  ;;  %v3975_v35 = vrot.slane %v9430_v21, 1 }
 0x41b   : > { %12073 = vst [vmem:[#allocation84_spill] sm:$0xff] %v9589_v44  ;;  %v3367_v34 = vor.u32 %v3365_v16, %v3364_v20  ;;  %v3202_v0 = vmax.f32 %v3138_v19, 0.0  ;;  %3897 = vrot.lane.b32.xlu0 %v9589_v44, %s6868_s9  ;;  %v9614_v22 = vsel %vm1640_vm5, %v3972_v15, %v3973_v18  ;;  %v3978_v16 = vrot.slane %v9467_v54, 1 }
 0x41c   : > { %v2896_v46 = vpop.f32.mrb[56].mxu1  ;;  %v9594_v7 = vsel %vm1238_vm4, %v3689_v25, %v3693_v26 }
 0x41d   : > { %12074 = vst [vmem:[#allocation80_spill] sm:$0xff] %v9594_v7  ;;  %v9600_v5 = vsel %vm7229_vm3, 0, %v3367_v34  ;;  %v3252_v31 = vpack.c.bf16 %v3202_v0, %v3201_v11  ;;  %v3071_v62 = vmul.f32 %v9305_v9, %v2896_v46  ;;  %3899 = vrot.lane.b32.xlu1 %v9594_v7, %s6868_s9  ;;  %v2898_v23 = vpop.f32.mrb[57].mxu1  ;;  %v9623_v34 = vsel %vm1640_vm5, %v3973_v18, %v3975_v35 }
 0x41e   : > { %12075 = vst [vmem:[#allocation65_spill] sm:$0xff] %v9600_v5  ;;  %v2899_v2 = vpop.f32.mrb[58].mxu1  ;;  %v3698_v52 = vshll.u32 %v9600_v5, 16  ;;  %v3977_v11 = vrot.slane %v9453_v39, 1  ;;  %v3980_v0 = vrot.slane %v9464_v40, 1  ;;  %v3983_v18 = vrot.slane %v9501_v8, 1 }
 0x41f   : > { %v3369_v57 = vshrl.u32 %v3252_v31, 16  ;;  %v3139_v3 = vadd.f32 %v9310_v28, %v3071_v62  ;;  %v3072_v1 = vmul.f32 %v9305_v9, %v2899_v2  ;;  %4046 = vrot.lane.b32.xlu0 %v9606_v60, %s6861_s14  ;;  %v2901_v32 = vpop.f32.mrb[59].mxu1  ;;  %v3372_v25 = vshll.u32 %v3252_v31, 16 }
 0x420   : > { %v9634_v23 = vsel %vm1640_vm5, %v3977_v11, %v3978_v16  ;;  %v3700_v2 = vrot.slane %v3698_v52, 1  ;;  %v3982_v35 = vrot.slane %v9487_v4, 1 }
 0x421   : > { %v3371_v19 = vrot.slane %v3369_v57, 7  ;;  %v3140_v26 = vadd.f32 %v9310_v28, %v3072_v1  ;;  %4048 = vrot.lane.b32.xlu1 %v9614_v22, %s6861_s14  ;;  %v3203_v21 = vmax.f32 %v3139_v3, 0.0  ;;  %v9644_v1 = vsel %vm1640_vm5, %v3978_v16, %v3980_v0 }
 0x422   : > { %v9655_v16 = vsel %vm1640_vm5, %v3982_v35, %v3983_v18 }
 0x423   : > { %v3374_v46 = vor.u32 %v3372_v25, %v3371_v19  ;;  %v3204_v24 = vmax.f32 %v3140_v26, 0.0  ;;  %4050 = vrot.lane.b32.xlu0 %v9623_v34, %s6861_s14  ;;  %v9631_v31 = vsel %vm7229_vm3, %v3371_v19, 0  ;;  %v3696_v19 = vshrl.u32 %v9600_v5, 16 }
 0x424   : > { %v2904_v62 = vpop.f32.mrb[60].mxu1 }
 0x425   : > { %v9638_v15 = vsel %vm963_vm1, %v3364_v20, %v3374_v46  ;;  %v3253_v40 = vpack.c.bf16 %v3204_v24, %v3203_v21  ;;  %v3073_v57 = vmul.f32 %v9305_v9, %v2904_v62  ;;  %4052 = vrot.lane.b32.xlu1 %v9634_v23, %s6861_s14  ;;  %v2906_v3 = vpop.f32.mrb[61].mxu1  ;;  %v3711_v20 = vshll.u32 %v9631_v31, 16 }
 0x426   : > { %v2907_v32 = vpop.f32.mrb[62].mxu1  ;;  %v3703_v52 = vshll.u32 %v9638_v15, 16  ;;  %v3701_v0 = vor.u32 %v3700_v2, %v3696_v19  ;;  %v3707_v24 = vshrl.u32 %v9638_v15, 16 }
 0x427   : > { %v3377_v25 = vshrl.u32 %v3253_v40, 16  ;;  %v3141_v26 = vadd.f32 %v9310_v28, %v3073_v57  ;;  %v3074_v11 = vmul.f32 %v9305_v9, %v2907_v32  ;;  %4054 = vrot.lane.b32.xlu0 %v9644_v1, %s6861_s14  ;;  %v2909_v46 = vpop.f32.mrb[63].mxu1  ;;  %v3380_v3 = vshll.u32 %v3253_v40, 16 }
 0x428   : > { %v3705_v21 = vrot.slane %v3703_v52, 1  ;;  %v3713_v10 = vrot.slane %v3711_v20, 1  ;;  %v3985_v40 = vrot.slane %v9498_v30, 1  ;;  %v3988_v52 = vrot.slane %v9535_v6, 1 }
 0x429   : > { %v3379_v62 = vrot.slane %v3377_v25, 7  ;;  %v3142_v55 = vadd.f32 %v9310_v28, %v3074_v11  ;;  %4056 = vrot.lane.b32.xlu1 %v9655_v16, %s6861_s14  ;;  %v3205_v61 = vmax.f32 %v3141_v26, 0.0 }
 0x42a   : > { %v9662_v57 = vsel %vm1238_vm4, %v3701_v0, %v3705_v21  ;;  %v3709_v32 = vor.u32 %v3707_v24, %v3705_v21  ;;  %v9679_v0 = vsel %vm1640_vm5, %v3983_v18, %v3985_v40 }
 0x42b   : > { %12076 = vst [vmem:[#allocation120_spill] sm:$0xff] %v9662_v57  ;;  %v3382_v46 = vor.u32 %v3380_v3, %v3379_v62  ;;  %v3206_v35 = vmax.f32 %v3142_v55, 0.0  ;;  %3901 = vrot.lane.b32.xlu0 %v9662_v57, %s6868_s9 }
 0x42c   : > { %v2912_v2 = vpop.f32.mrb[64].mxu1  ;;  %v9667_v19 = vsel %vm1238_vm4, %v3709_v32, %v3713_v10  ;;  %v3987_v10 = vrot.slane %v9521_v48, 1  ;;  %v3990_v32 = vrot.slane %v9532_v29, 1 }
 0x42d   : > { %12077 = vst [vmem:[#allocation85_spill] sm:$0xff] %v9667_v19  ;;  %v9673_v25 = vsel %vm7229_vm3, 0, %v3382_v46  ;;  %v3254_v11 = vpack.c.bf16 %v3206_v35, %v3205_v61  ;;  %v3075_v20 = vmul.f32 %v9305_v9, %v2912_v2  ;;  %3903 = vrot.lane.b32.xlu1 %v9667_v19, %s6868_s9  ;;  %v2914_v55 = vpop.f32.mrb[65].mxu1  ;;  %v3993_v46 = vrot.slane %v9578_v13, 1 }
 0x42e   : > { %12078 = vst [vmem:[#allocation79_spill] sm:$0xff] %v9673_v25  ;;  %v2915_v26 = vpop.f32.mrb[66].mxu1  ;;  %v9687_v3 = vsel %vm1640_vm5, %v3987_v10, %v3988_v52  ;;  %v3718_v18 = vshll.u32 %v9673_v25, 16  ;;  %v3992_v55 = vrot.slane %v9556_v43, 1  ;;  %v3716_v59 = vshrl.u32 %v9673_v25, 16 }
 0x42f   : > { %v3384_v30 = vshrl.u32 %v3254_v11, 16  ;;  %v3143_v21 = vadd.f32 %v9310_v28, %v3075_v20  ;;  %v3076_v24 = vmul.f32 %v9305_v9, %v2915_v26  ;;  %4058 = vrot.lane.b32.xlu0 %v9679_v0, %s6861_s14  ;;  %v2917_v61 = vpop.f32.mrb[67].mxu1  ;;  %v3387_v2 = vshll.u32 %v3254_v11, 16 }
 0x430   : > { %v9696_v20 = vsel %vm1640_vm5, %v3988_v52, %v3990_v32  ;;  %v3995_v26 = vrot.slane %v9575_v36, 1  ;;  %v3998_v52 = vrot.slane %v9638_v15, 1  ;;  %v3720_v32 = vrot.slane %v3718_v18, 1 }
 0x431   : > { %v3386_v35 = vrot.slane %v3384_v30, 7  ;;  %v3144_v40 = vadd.f32 %v9310_v28, %v3076_v24  ;;  %4060 = vrot.lane.b32.xlu1 %v9687_v3, %s6861_s14  ;;  %12079 = vst [vmem:[#allocation100_spill] sm:$0xff] %v9696_v20  ;;  %v3207_v29 = vmax.f32 %v3143_v21, 0.0  ;;  %v9707_v24 = vsel %vm1640_vm5, %v3992_v55, %v3993_v46 }
 0x432   : > { %12080 = vst [vmem:[#allocation116_spill] sm:$0xff] %v9707_v24  ;;  %v3997_v55 = vrot.slane %v9600_v5, 1 }
 0x433   : > { %v3389_v10 = vor.u32 %v3387_v2, %v3386_v35  ;;  %v3208_v61 = vmax.f32 %v3144_v40, 0.0  ;;  %4062 = vrot.lane.b32.xlu0 %v9696_v20, %s6861_s14  ;;  %v9704_v11 = vsel %vm7229_vm3, %v3386_v35, 0  ;;  %v9717_v35 = vsel %vm1640_vm5, %v3993_v46, %v3995_v26 }
 0x434   : > { %v2920_v30 = vpop.f32.mrb[68].mxu1  ;;  %12082 = vst [vmem:[#allocation39_spill] sm:$0xff] %v9717_v35  ;;  %v9728_v46 = vsel %vm1640_vm5, %v3997_v55, %v3998_v52  ;;  %v3721_v26 = vor.u32 %v3720_v32, %v3716_v59 }
 0x435   : > { %v9711_v51 = vsel %vm963_vm1, %v3379_v62, %v3389_v10  ;;  %v3255_v36 = vpack.c.bf16 %v3208_v61, %v3207_v29  ;;  %v3077_v21 = vmul.f32 %v9305_v9, %v2920_v30  ;;  %4064 = vrot.lane.b32.xlu1 %v9707_v24, %s6861_s14  ;;  %v2922_v2 = vpop.f32.mrb[69].mxu1  ;;  %v3731_v62 = vshll.u32 %v9704_v11, 16  ;;  %12083 = vst [vmem:[#allocation82_spill] sm:$0xff] %v9728_v46 }
 0x436   : > { %12081 = vst [vmem:[#allocation83_spill] sm:$0xff] %v9711_v51  ;;  %v2923_v40 = vpop.f32.mrb[70].mxu1  ;;  %v3723_v18 = vshll.u32 %v9711_v51, 16  ;;  %v3727_v37 = vshrl.u32 %v9711_v51, 16 }
 0x437   : > { %v3392_v10 = vshrl.u32 %v3255_v36, 16  ;;  %v3145_v29 = vadd.f32 %v9310_v28, %v3077_v21  ;;  %v3078_v61 = vmul.f32 %v9305_v9, %v2923_v40  ;;  %4066 = vrot.lane.b32.xlu0 %v9717_v35, %s6861_s14  ;;  %v2925_v30 = vpop.f32.mrb[71].mxu1  ;;  %v3395_v57 = vshll.u32 %v3255_v36, 16 }
 0x438   : > { %v3725_v2 = vrot.slane %v3723_v18, 1  ;;  %v3733_v35 = vrot.slane %v3731_v62, 1  ;;  %v4000_v36 = vrot.slane %v9631_v31, 1  ;;  %v4003_v18 = vrot.slane %v9711_v51, 1 }
 0x439   : > { %v3394_v19 = vrot.slane %v3392_v10, 7  ;;  %v3146_v24 = vadd.f32 %v9310_v28, %v3078_v61  ;;  %4068 = vrot.lane.b32.xlu1 %v9728_v46, %s6861_s14  ;;  %v3209_v7 = vmax.f32 %v3145_v29, 0.0 }
 0x43a   : > { %v9735_v21 = vsel %vm1238_vm4, %v3721_v26, %v3725_v2  ;;  %v3729_v40 = vor.u32 %v3727_v37, %v3725_v2  ;;  %v9752_v62 = vsel %vm1640_vm5, %v3998_v52, %v4000_v36  ;;  %v9763_v52 = vld [vmem:[#allocation7 + $0x2] ss:$0 sm:$0xff] }
 0x43b   : > { %12084 = vst [vmem:[#allocation108_spill] sm:$0xff] %v9735_v21  ;;  %v3397_v30 = vor.u32 %v3395_v57, %v3394_v19  ;;  %v3210_v55 = vmax.f32 %v3146_v24, 0.0  ;;  %3905 = vrot.lane.b32.xlu0 %v9735_v21, %s6868_s9  ;;  %12087 = vst [vmem:[#allocation33_spill] sm:$0xff] %v9752_v62 }
 0x43c   : > { %v2928_v59 = vpop.f32.mrb[72].mxu1  ;;  %v9740_v32 = vsel %vm1238_vm4, %v3729_v40, %v3733_v35  ;;  %v4002_v35 = vrot.slane %v9673_v25, 1  ;;  %v4005_v40 = vrot.slane %v9704_v11, 1 }
 0x43d   : > { %12085 = vst [vmem:[#allocation72_spill] sm:$0xff] %v9740_v32  ;;  %v3256_v10 = vpack.c.bf16 %v3210_v55, %v3209_v7  ;;  %v3079_v61 = vmul.f32 %v9305_v9, %v2928_v59  ;;  %3907 = vrot.lane.b32.xlu1 %v9740_v32, %s6868_s9  ;;  %v2930_v37 = vpop.f32.mrb[73].mxu1  ;;  %v9749_v57 = vsel %vm7229_vm3, 0, %v3397_v30 }
 0x43e   : > { %12086 = vst [vmem:[#allocation24_spill] sm:$0xff] %v9749_v57  ;;  %v2931_v24 = vpop.f32.mrb[74].mxu1  ;;  %v9760_v2 = vsel %vm1640_vm5, %v4002_v35, %v4003_v18 }
 0x43f   : > { %v3399_v31 = vshrl.u32 %v3256_v10, 16  ;;  %v3147_v29 = vadd.f32 %v9310_v28, %v3079_v61  ;;  %v3080_v7 = vmul.f32 %v9305_v9, %v2931_v24  ;;  %4070 = vrot.lane.b32.xlu0 %v9752_v62, %s6861_s14  ;;  %v2933_v26 = vpop.f32.mrb[75].mxu1  ;;  %12088 = vst [vmem:[#allocation88_spill] sm:$0xff] %v9760_v2  ;;  %v3402_v55 = vshll.u32 %v3256_v10, 16 }
 0x440   : > { %v3738_v9 = vshll.u32 %v9749_v57, 16  ;;  %v9770_v28 = vsel %vm1640_vm5, %v4003_v18, %v4005_v40  ;;  %v4007_v24 = vrot.slane %v9749_v57, 1 }
 0x441   : > { %v3401_v30 = vrot.slane %v3399_v31, 7  ;;  %v3148_v59 = vadd.f32 %v9763_v52, %v3080_v7  ;;  %4072 = vrot.lane.b32.xlu1 %v9760_v2, %s6861_s14  ;;  %12089 = vst [vmem:[#allocation151_spill] sm:$0xff] %v9770_v28  ;;  %v3211_v61 = vmax.f32 %v3147_v29, 0.0  ;;  %v9780_v7 = vld [vmem:[#allocation7 + $0x1] ss:$0 sm:$0xff] }
 0x442   : > { %v3740_v26 = vrot.slane %v3738_v9, 1 }
 0x443   : > { %v3404_v36 = vor.u32 %v3402_v55, %v3401_v30  ;;  %v3212_v37 = vmax.f32 %v3148_v59, 0.0  ;;  %4074 = vrot.lane.b32.xlu0 %v9770_v28, %s6861_s14  ;;  %v3567_v11 = vsel %vm7229_vm3, %v3401_v30, 0 }
 0x444   : > { %v2936_v10 = vpop.f32.mrb[76].mxu1  ;;  %v4010_v55 = vrot.slane %v3567_v11, 1  ;;  %v3751_v28 = vshll.u32 %v3567_v11, 16 }
 0x445   : > { %v9778_v35 = vsel %vm963_vm1, %v3394_v19, %v3404_v36  ;;  %v3257_v31 = vpack.c.bf16 %v3212_v37, %v3211_v61  ;;  %v3081_v18 = vmul.f32 %v9780_v7, %v2936_v10  ;;  %4105 = vrot.lane.b32.xlu1 %v9351_v58, %s6869_s7  ;;  %v2938_v29 = vpop.f32.mrb[77].mxu1  ;;  %v3736_v10 = vshrl.u32 %v9749_v57, 16 }
 0x446   : > { %12090 = vst [vmem:[#allocation62_spill] sm:$0xff] %v9778_v35  ;;  %v2939_v40 = vpop.f32.mrb[78].mxu1  ;;  %v4008_v30 = vrot.slane %v9778_v35, 1  ;;  %v3743_v59 = vshll.u32 %v9778_v35, 16  ;;  %v3747_v58 = vshrl.u32 %v9778_v35, 16 }
 0x447   : > { %v3407_v19 = vshrl.u32 %v3257_v31, 16  ;;  %v3149_v36 = vadd.f32 %v9763_v52, %v3081_v18  ;;  %v3082_v61 = vmul.f32 %v9780_v7, %v2939_v40  ;;  %v2941_v37 = vpop.f32.mrb[79].mxu1  ;;  %v3410_v21 = vshll.u32 %v3257_v31, 16 }
 0x448   : > { %v9791_v2 = vsel %vm1640_vm5, %v4008_v30, %v4010_v55  ;;  %v9794_v9 = vsel %vm1640_vm5, %v4007_v24, %v4008_v30  ;;  %v3745_v29 = vrot.slane %v3743_v59, 1  ;;  %v3753_v40 = vrot.slane %v3751_v28, 1 }
 0x449   : > { %12091 = vst [vmem:[#allocation198_spill] sm:$0xff] %v9791_v2  ;;  %12092 = vst [vmem:[#allocation43_spill] sm:$0xff] %v9794_v9  ;;  %v3409_v32 = vrot.slane %v3407_v19, 7  ;;  %v3150_v11 = vadd.f32 %v9763_v52, %v3082_v61  ;;  %4078 = vrot.lane.b32.xlu0 %v9791_v2, %s6861_s14  ;;  %4076 = vrot.lane.b32.xlu1 %v9794_v9, %s6861_s14  ;;  %v3741_v55 = vor.u32 %v3740_v26, %v3736_v10 }
 0x44a   : > { %v3749_v18 = vor.u32 %v3747_v58, %v3745_v29  ;;  %v3213_v62 = vmax.f32 %v3149_v36, 0.0 }
 0x44b   : > { %v3412_v37 = vor.u32 %v3410_v21, %v3409_v32  ;;  %v3214_v24 = vmax.f32 %v3150_v11, 0.0  ;;  %v9806_v31 = vsel %vm1238_vm4, %v3741_v55, %v3745_v29 }
 0x44c   : > { %v2944_v30 = vpop.f32.mrb[80].mxu1  ;;  %v9803_v59 = vsel %vm1238_vm4, %v3749_v18, %v3753_v40  ;;  %12094 = vst [vmem:[#allocation74_spill] sm:$0xff] %v9806_v31 }
 0x44d   : > { %12093 = vst [vmem:[#allocation112_spill] sm:$0xff] %v9803_v59  ;;  %v3258_v19 = vpack.c.bf16 %v3214_v24, %v3213_v62  ;;  %v3083_v61 = vmul.f32 %v9780_v7, %v2944_v30  ;;  %3911 = vrot.lane.b32.xlu1 %v9803_v59, %s6868_s9  ;;  %3909 = vrot.lane.b32.xlu0 %v9806_v31, %s6868_s9  ;;  %v2946_v58 = vpop.f32.mrb[81].mxu1  ;;  %v9815_v21 = vsel %vm7229_vm3, 0, %v3412_v37 }
 0x44e   : > { %12095 = vst [vmem:[#allocation86_spill] sm:$0xff] %v9815_v21  ;;  %v2947_v28 = vpop.f32.mrb[82].mxu1  ;;  %v3758_v40 = vshll.u32 %v9815_v21, 16  ;;  %v4012_v58 = vrot.slane %v9815_v21, 1 }
 0x44f   : > { %v3414_v26 = vshrl.u32 %v3258_v19, 16  ;;  %v3151_v36 = vadd.f32 %v9763_v52, %v3083_v61  ;;  %v3084_v10 = vmul.f32 %v9780_v7, %v2947_v28  ;;  %v2949_v62 = vpop.f32.mrb[83].mxu1  ;;  %v3417_v11 = vshll.u32 %v3258_v19, 16 }
 0x451   : > { %v3416_v29 = vrot.slane %v3414_v26, 7  ;;  %v3152_v18 = vadd.f32 %v9763_v52, %v3084_v10  ;;  %4109 = vrot.lane.b32.xlu1 %v9418_v42, %s6869_s7  ;;  %4107 = vrot.lane.b32.xlu0 %v9382_v33, %s6869_s7  ;;  %v3215_v37 = vmax.f32 %v3151_v36, 0.0  ;;  %v3760_v10 = vrot.slane %v3758_v40, 1 }
 0x453   : > { %v3419_v55 = vor.u32 %v3417_v11, %v3416_v29  ;;  %v3216_v24 = vmax.f32 %v3152_v18, 0.0  ;;  %v3568_v30 = vsel %vm7229_vm3, %v3416_v29, 0 }
 0x454   : > { %v2952_v61 = vpop.f32.mrb[84].mxu1  ;;  %v4015_v11 = vrot.slane %v3568_v30, 1  ;;  %v3771_v2 = vshll.u32 %v3568_v30, 16 }
 0x455   : > { %v9829_v19 = vsel %vm963_vm1, %v3409_v32, %v3419_v55  ;;  %v3259_v28 = vpack.c.bf16 %v3216_v24, %v3215_v37  ;;  %v3085_v26 = vmul.f32 %v9780_v7, %v2952_v61  ;;  %4113 = vrot.lane.b32.xlu1 %v9453_v39, %s6869_s7  ;;  %4111 = vrot.lane.b32.xlu0 %v9433_v50, %s6869_s7  ;;  %v2954_v36 = vpop.f32.mrb[85].mxu1  ;;  %v3756_v61 = vshrl.u32 %v9815_v21, 16 }
 0x456   : > { %12096 = vst [vmem:[#allocation119_spill] sm:$0xff] %v9829_v19  ;;  %v2955_v62 = vpop.f32.mrb[86].mxu1  ;;  %v4013_v29 = vrot.slane %v9829_v19, 1  ;;  %v3763_v18 = vshll.u32 %v9829_v19, 16  ;;  %v3767_v59 = vshrl.u32 %v9829_v19, 16 }
 0x457   : > { %v3422_v32 = vshrl.u32 %v3259_v28, 16  ;;  %v3153_v55 = vadd.f32 %v9763_v52, %v3085_v26  ;;  %v3086_v37 = vmul.f32 %v9780_v7, %v2955_v62  ;;  %v2957_v24 = vpop.f32.mrb[87].mxu1  ;;  %v3425_v33 = vshll.u32 %v3259_v28, 16 }
 0x458   : > { %v9842_v9 = vsel %vm1640_vm5, %v4013_v29, %v4015_v11  ;;  %v9845_v40 = vsel %vm1640_vm5, %v4012_v58, %v4013_v29  ;;  %v3765_v36 = vrot.slane %v3763_v18, 1  ;;  %v3773_v62 = vrot.slane %v3771_v2, 1 }
 0x459   : > { %12097 = vst [vmem:[#allocation38_spill] sm:$0xff] %v9842_v9  ;;  %12098 = vst [vmem:[#allocation148_spill] sm:$0xff] %v9845_v40  ;;  %v3424_v31 = vrot.slane %v3422_v32, 7  ;;  %v3154_v30 = vadd.f32 %v9763_v52, %v3086_v37  ;;  %4082 = vrot.lane.b32.xlu0 %v9842_v9, %s6861_s14  ;;  %4080 = vrot.lane.b32.xlu1 %v9845_v40, %s6861_s14  ;;  %v3761_v11 = vor.u32 %v3760_v10, %v3756_v61 }
 0x45a   : > { %v3769_v26 = vor.u32 %v3767_v59, %v3765_v36  ;;  %v3217_v46 = vmax.f32 %v3153_v55, 0.0 }
 0x45b   : > { %v3427_v24 = vor.u32 %v3425_v33, %v3424_v31  ;;  %v3218_v58 = vmax.f32 %v3154_v30, 0.0  ;;  %v9857_v28 = vsel %vm1238_vm4, %v3761_v11, %v3765_v36 }
 0x45c   : > { %v2960_v29 = vpop.f32.mrb[88].mxu1  ;;  %v9854_v18 = vsel %vm1238_vm4, %v3769_v26, %v3773_v62  ;;  %12100 = vst [vmem:[#allocation196_spill] sm:$0xff] %v9857_v28 }
 0x45d   : > { %12099 = vst [vmem:[#allocation40_spill] sm:$0xff] %v9854_v18  ;;  %v3260_v32 = vpack.c.bf16 %v3218_v58, %v3217_v46  ;;  %v3087_v37 = vmul.f32 %v9780_v7, %v2960_v29  ;;  %3915 = vrot.lane.b32.xlu1 %v9854_v18, %s6868_s9  ;;  %3913 = vrot.lane.b32.xlu0 %v9857_v28, %s6868_s9  ;;  %v2962_v2 = vpop.f32.mrb[89].mxu1  ;;  %v9866_v33 = vsel %vm7229_vm3, 0, %v3427_v24 }
 0x45e   : > { %12101 = vst [vmem:[#allocation55_spill] sm:$0xff] %v9866_v33  ;;  %v2963_v59 = vpop.f32.mrb[90].mxu1  ;;  %v3778_v62 = vshll.u32 %v9866_v33, 16  ;;  %v4017_v2 = vrot.slane %v9866_v33, 1 }
 0x45f   : > { %v3429_v10 = vshrl.u32 %v3260_v32, 16  ;;  %v3155_v55 = vadd.f32 %v9763_v52, %v3087_v37  ;;  %v3088_v61 = vmul.f32 %v9780_v7, %v2963_v59  ;;  %v2965_v46 = vpop.f32.mrb[91].mxu1  ;;  %v3432_v30 = vshll.u32 %v3260_v32, 16 }
 0x461   : > { %v3431_v36 = vrot.slane %v3429_v10, 7  ;;  %v3156_v26 = vadd.f32 %v9763_v52, %v3088_v61  ;;  %4117 = vrot.lane.b32.xlu1 %v9487_v4, %s6869_s7  ;;  %4115 = vrot.lane.b32.xlu0 %v9467_v54, %s6869_s7  ;;  %v3219_v24 = vmax.f32 %v3155_v55, 0.0  ;;  %v3780_v61 = vrot.slane %v3778_v62, 1 }
 0x463   : > { %v3434_v11 = vor.u32 %v3432_v30, %v3431_v36  ;;  %v3220_v58 = vmax.f32 %v3156_v26, 0.0  ;;  %v3569_v29 = vsel %vm7229_vm3, %v3431_v36, 0 }
 0x464   : > { %v2968_v37 = vpop.f32.mrb[92].mxu1  ;;  %v4020_v30 = vrot.slane %v3569_v29, 1  ;;  %v3791_v9 = vshll.u32 %v3569_v29, 16 }
 0x465   : > { %v9880_v32 = vsel %vm963_vm1, %v3424_v31, %v3434_v11  ;;  %v3261_v59 = vpack.c.bf16 %v3220_v58, %v3219_v24  ;;  %v3089_v10 = vmul.f32 %v9780_v7, %v2968_v37  ;;  %4121 = vrot.lane.b32.xlu1 %v9521_v48, %s6869_s7  ;;  %4119 = vrot.lane.b32.xlu0 %v9501_v8, %s6869_s7  ;;  %v2970_v55 = vpop.f32.mrb[93].mxu1  ;;  %v3776_v37 = vshrl.u32 %v9866_v33, 16 }
 0x466   : > { %v2971_v46 = vpop.f32.mrb[94].mxu1  ;;  %v4018_v36 = vrot.slane %v9880_v32, 1  ;;  %v3783_v26 = vshll.u32 %v9880_v32, 16  ;;  %v3787_v18 = vshrl.u32 %v9880_v32, 16 }
 0x467   : > { %v3437_v31 = vshrl.u32 %v3261_v59, 16  ;;  %v3157_v11 = vadd.f32 %v9763_v52, %v3089_v10  ;;  %v3090_v24 = vmul.f32 %v9780_v7, %v2971_v46  ;;  %v2973_v58 = vpop.f32.mrb[95].mxu1  ;;  %v3440_v44 = vshll.u32 %v3261_v59, 16 }
 0x468   : > { %v9893_v40 = vsel %vm1640_vm5, %v4018_v36, %v4020_v30  ;;  %v9896_v62 = vsel %vm1640_vm5, %v4017_v2, %v4018_v36  ;;  %v3785_v55 = vrot.slane %v3783_v26, 1  ;;  %v3793_v46 = vrot.slane %v3791_v9, 1 }
 0x469   : > { %12102 = vst [vmem:[#allocation87_spill] sm:$0xff] %v9893_v40  ;;  %12103 = vst [vmem:[#allocation29_spill] sm:$0xff] %v9896_v62  ;;  %v3439_v28 = vrot.slane %v3437_v31, 7  ;;  %v3158_v29 = vadd.f32 %v9763_v52, %v3090_v24  ;;  %4086 = vrot.lane.b32.xlu0 %v9893_v40, %s6861_s14  ;;  %4084 = vrot.lane.b32.xlu1 %v9896_v62, %s6861_s14  ;;  %v3781_v30 = vor.u32 %v3780_v61, %v3776_v37  ;;  %v9919_v61 = vpop.permute.xlu1 %3875 }
 0x46a   : > { %v3789_v10 = vor.u32 %v3787_v18, %v3785_v55  ;;  %v3221_v20 = vmax.f32 %v3157_v11, 0.0  ;;  %12106 = vst [vmem:[#allocation59_spill] sm:$0xff] %v9919_v61 }
 0x46b   : > { %v3442_v58 = vor.u32 %v3440_v44, %v3439_v28  ;;  %v3222_v2 = vmax.f32 %v3158_v29, 0.0  ;;  %v9908_v59 = vsel %vm1238_vm4, %v3781_v30, %v3785_v55 }
 0x46c   : > { %v2976_v36 = vpop.f32.mrb[96].mxu1  ;;  %v9905_v26 = vsel %vm1238_vm4, %v3789_v10, %v3793_v46  ;;  %12105 = vst [vmem:[#allocation121_spill] sm:$0xff] %v9908_v59 }
 0x46d   : > { %12104 = vst [vmem:[#allocation34_spill] sm:$0xff] %v9905_v26  ;;  %v3262_v31 = vpack.c.bf16 %v3222_v2, %v3221_v20  ;;  %v3091_v24 = vmul.f32 %v9780_v7, %v2976_v36  ;;  %3919 = vrot.lane.b32.xlu1 %v9905_v26, %s6868_s9  ;;  %3917 = vrot.lane.b32.xlu0 %v9908_v59, %s6868_s9  ;;  %v2978_v9 = vpop.f32.mrb[97].mxu1  ;;  %v9917_v44 = vsel %vm7229_vm3, 0, %v3442_v58  ;;  %v9929_v58 = vpop.permute.xlu0 %3877 }
 0x46e   : > { %v2979_v18 = vpop.f32.mrb[98].mxu1  ;;  %v3798_v30 = vshll.u32 %v9917_v44, 16  ;;  %12107 = vst [vmem:[#allocation156_spill] sm:$0xff] %v9929_v58 }
 0x46f   : > { %v3444_v11 = vshrl.u32 %v3262_v31, 16  ;;  %v3159_v37 = vadd.f32 %v9763_v52, %v3091_v24  ;;  %v3092_v20 = vmul.f32 %v9780_v7, %v2979_v18  ;;  %v2981_v55 = vpop.f32.mrb[99].mxu1  ;;  %v3447_v10 = vshll.u32 %v3262_v31, 16 }
 0x470   : > { %v4022_v31 = vrot.slane %v9917_v44, 1 }
 0x471   : > { %v3446_v29 = vrot.slane %v3444_v11, 7  ;;  %v3160_v46 = vadd.f32 %v9763_v52, %v3092_v20  ;;  %4125 = vrot.lane.b32.xlu1 %v9556_v43, %s6869_s7  ;;  %4123 = vrot.lane.b32.xlu0 %v9535_v6, %s6869_s7  ;;  %v3223_v36 = vmax.f32 %v3159_v37, 0.0  ;;  %v9934_v11 = vpop.permute.xlu1 %3879 }
 0x472   : > { %12108 = vst [vmem:[#allocation47_spill] sm:$0xff] %v9934_v11  ;;  %v3796_v11 = vshrl.u32 %v9917_v44, 16 }
 0x473   : > { %v3449_v2 = vor.u32 %v3447_v10, %v3446_v29  ;;  %v3224_v24 = vmax.f32 %v3160_v46, 0.0  ;;  %v3570_v9 = vsel %vm7229_vm3, %v3446_v29, 0  ;;  %v3800_v10 = vrot.slane %v3798_v30, 1 }
 0x474   : > { %v2984_v18 = vpop.f32.mrb[100].mxu1  ;;  %v4025_v62 = vrot.slane %v3570_v9, 1  ;;  %v3811_v59 = vshll.u32 %v3570_v9, 16 }
 0x475   : > { %v9937_v20 = vsel %vm963_vm1, %v3439_v28, %v3449_v2  ;;  %v3263_v55 = vpack.c.bf16 %v3224_v24, %v3223_v36  ;;  %v3093_v40 = vmul.f32 %v9780_v7, %v2984_v18  ;;  %4129 = vrot.lane.b32.xlu1 %v9600_v5, %s6869_s7  ;;  %4127 = vrot.lane.b32.xlu0 %v9578_v13, %s6869_s7  ;;  %v2986_v37 = vpop.f32.mrb[101].mxu1  ;;  %v9946_v28 = vpop.permute.xlu0 %3881 }
 0x476   : > { %v2987_v29 = vpop.f32.mrb[102].mxu1  ;;  %v4023_v46 = vrot.slane %v9937_v20, 1  ;;  %v3803_v26 = vshll.u32 %v9937_v20, 16  ;;  %12109 = vst [vmem:[#allocation91_spill] sm:$0xff] %v9946_v28  ;;  %v3807_v61 = vshrl.u32 %v9937_v20, 16  ;;  %v9958_v9 = vpop.permute.xlu1 %3883 }
 0x477   : > { %v3452_v2 = vshrl.u32 %v3263_v55, 16  ;;  %v3161_v36 = vadd.f32 %v9763_v52, %v3093_v40  ;;  %v3094_v24 = vmul.f32 %v9780_v7, %v2987_v29  ;;  %v2989_v18 = vpop.f32.mrb[103].mxu1  ;;  %12112 = vst [vmem:[#allocation89_spill] sm:$0xff] %v9958_v9  ;;  %v3455_v5 = vshll.u32 %v3263_v55, 16 }
 0x478   : > { %v9952_v37 = vsel %vm1640_vm5, %v4023_v46, %v4025_v62  ;;  %v9955_v30 = vsel %vm1640_vm5, %v4022_v31, %v4023_v46  ;;  %v3805_v58 = vrot.slane %v3803_v26, 1  ;;  %v3813_v29 = vrot.slane %v3811_v59, 1 }
 0x479   : > { %12110 = vst [vmem:[#allocation50_spill] sm:$0xff] %v9952_v37  ;;  %12111 = vst [vmem:[#allocation28_spill] sm:$0xff] %v9955_v30  ;;  %v3454_v28 = vrot.slane %v3452_v2, 7  ;;  %v3162_v40 = vadd.f32 %v9763_v52, %v3094_v24  ;;  %4090 = vrot.lane.b32.xlu0 %v9952_v37, %s6861_s14  ;;  %4088 = vrot.lane.b32.xlu1 %v9955_v30, %s6861_s14  ;;  %v3801_v18 = vor.u32 %v3800_v10, %v3796_v11  ;;  %v9965_v31 = vpop.permute.xlu0 %3885 }
 0x47a   : > { %v3809_v62 = vor.u32 %v3807_v61, %v3805_v58  ;;  %12113 = vst [vmem:[#allocation61_spill] sm:$0xff] %v9965_v31  ;;  %v3225_v46 = vmax.f32 %v3161_v36, 0.0  ;;  %v9973_v24 = vpop.permute.xlu1 %3887 }
 0x47b   : > { %v3457_v26 = vor.u32 %v3455_v5, %v3454_v28  ;;  %v3226_v13 = vmax.f32 %v3162_v40, 0.0  ;;  %v9971_v55 = vsel %vm1238_vm4, %v3801_v18, %v3805_v58  ;;  %12116 = vst [vmem:[#allocation27_spill] sm:$0xff] %v9973_v24 }
 0x47c   : > { %v2992_v43 = vpop.f32.mrb[104].mxu1  ;;  %v9968_v2 = vsel %vm1238_vm4, %v3809_v62, %v3813_v29  ;;  %12115 = vst [vmem:[#allocation150_spill] sm:$0xff] %v9971_v55 }
 0x47d   : > { %12114 = vst [vmem:[#allocation58_spill] sm:$0xff] %v9968_v2  ;;  %v3264_v37 = vpack.c.bf16 %v3226_v13, %v3225_v46  ;;  %v3095_v30 = vmul.f32 %v9780_v7, %v2992_v43  ;;  %3923 = vrot.lane.b32.xlu1 %v9968_v2, %s6868_s9  ;;  %3921 = vrot.lane.b32.xlu0 %v9971_v55, %s6868_s9  ;;  %v2994_v5 = vpop.f32.mrb[105].mxu1  ;;  %v9982_v59 = vsel %vm7229_vm3, 0, %v3457_v26  ;;  %v9984_v11 = vpop.permute.xlu0 %3889 }
 0x47e   : > { %12117 = vst [vmem:[#allocation92_spill] sm:$0xff] %v9982_v59  ;;  %v2995_v61 = vpop.f32.mrb[106].mxu1  ;;  %12118 = vst [vmem:[#allocation93_spill] sm:$0xff] %v9984_v11  ;;  %v9988_v36 = vpop.permute.xlu1 %3891  ;;  %v3818_v18 = vshll.u32 %v9982_v59, 16 }
 0x47f   : > { %v3459_v58 = vshrl.u32 %v3264_v37, 16  ;;  %v3163_v10 = vadd.f32 %v9763_v52, %v3095_v30  ;;  %v3096_v13 = vmul.f32 %v9780_v7, %v2995_v61  ;;  %v2997_v43 = vpop.f32.mrb[107].mxu1  ;;  %12119 = vst [vmem:[#allocation49_spill] sm:$0xff] %v9988_v36  ;;  %v3462_v62 = vshll.u32 %v3264_v37, 16 }
 0x480   : > { %v4027_v37 = vrot.slane %v9982_v59, 1  ;;  %v3816_v36 = vshrl.u32 %v9982_v59, 16 }
 0x481   : > { %v3461_v40 = vrot.slane %v3459_v58, 7  ;;  %v3164_v29 = vadd.f32 %v9763_v52, %v3096_v13  ;;  %4133 = vrot.lane.b32.xlu1 %v9673_v25, %s6869_s7  ;;  %4131 = vrot.lane.b32.xlu0 %v9638_v15, %s6869_s7  ;;  %v3227_v46 = vmax.f32 %v3163_v10, 0.0  ;;  %v9996_v30 = vpop.permute.xlu0 %3893 }
 0x482   : > { %12120 = vst [vmem:[#allocation123_spill] sm:$0xff] %v9996_v30  ;;  %v10004_v2 = vpop.permute.xlu1 %3895 }
 0x483   : > { %v3464_v26 = vor.u32 %v3462_v62, %v3461_v40  ;;  %v3228_v5 = vmax.f32 %v3164_v29, 0.0  ;;  %v3571_v61 = vsel %vm7229_vm3, %v3461_v40, 0  ;;  %12121 = vst [vmem:[#allocation71_spill] sm:$0xff] %v10004_v2  ;;  %v3820_v62 = vrot.slane %v3818_v18, 1 }
 0x484   : > { %v3000_v58 = vpop.f32.mrb[108].mxu1  ;;  %v4030_v30 = vrot.slane %v3571_v61, 1 }
 0x485   : > { %v10002_v13 = vsel %vm963_vm1, %v3454_v28, %v3464_v26  ;;  %v3265_v43 = vpack.c.bf16 %v3228_v5, %v3227_v46  ;;  %v3097_v55 = vmul.f32 %v9780_v7, %v3000_v58  ;;  %4137 = vrot.lane.b32.xlu1 %v9749_v57, %s6869_s7  ;;  %4135 = vrot.lane.b32.xlu0 %v9711_v51, %s6869_s7  ;;  %v3002_v10 = vpop.f32.mrb[109].mxu1  ;;  %v3831_v26 = vshll.u32 %v3571_v61, 16  ;;  %v10023_v61 = vpop.permute.xlu0 %4042 }
 0x486   : > { %v3003_v40 = vpop.f32.mrb[110].mxu1  ;;  %v4028_v29 = vrot.slane %v10002_v13, 1  ;;  %v3823_v28 = vshll.u32 %v10002_v13, 16  ;;  %v3827_v24 = vshrl.u32 %v10002_v13, 16  ;;  %12124 = vst [vmem:[#allocation94_spill] sm:$0xff] %v10023_v61 }
 0x487   : > { %v3467_v46 = vshrl.u32 %v3265_v43, 16  ;;  %v3165_v5 = vadd.f32 %v9763_v52, %v3097_v55  ;;  %v3098_v58 = vmul.f32 %v9780_v7, %v3003_v40  ;;  %v3005_v2 = vpop.f32.mrb[111].mxu1  ;;  %v3470_v9 = vshll.u32 %v3265_v43, 16 }
 0x488   : > { %v10017_v11 = vsel %vm1640_vm5, %v4028_v29, %v4030_v30  ;;  %v10020_v18 = vsel %vm1640_vm5, %v4027_v37, %v4028_v29  ;;  %v3825_v10 = vrot.slane %v3823_v28, 1  ;;  %v3833_v30 = vrot.slane %v3831_v26, 1  ;;  %v10030_v29 = vpop.permute.xlu1 %4044 }
 0x489   : > { %12122 = vst [vmem:[#allocation158_spill] sm:$0xff] %v10017_v11  ;;  %12123 = vst [vmem:[#allocation51_spill] sm:$0xff] %v10020_v18  ;;  %v3469_v31 = vrot.slane %v3467_v46, 7  ;;  %v3166_v55 = vadd.f32 %v9763_v52, %v3098_v58  ;;  %4094 = vrot.lane.b32.xlu0 %v10017_v11, %s6861_s14  ;;  %4092 = vrot.lane.b32.xlu1 %v10020_v18, %s6861_s14  ;;  %v3821_v40 = vor.u32 %v3820_v62, %v3816_v36 }
 0x48a   : > { %v3829_v2 = vor.u32 %v3827_v24, %v3825_v10  ;;  %v3229_v28 = vmax.f32 %v3165_v5, 0.0 }
 0x48b   : > { %v3472_v37 = vor.u32 %v3470_v9, %v3469_v31  ;;  %v3230_v57 = vmax.f32 %v3166_v55, 0.0  ;;  %v10036_v58 = vsel %vm1238_vm4, %v3821_v40, %v3825_v10 }
 0x48c   : > { %v3008_v46 = vpop.f32.mrb[112].mxu1  ;;  %v10033_v43 = vsel %vm1238_vm4, %v3829_v2, %v3833_v30  ;;  %12126 = vst [vmem:[#allocation56_spill] sm:$0xff] %v10036_v58 }
 0x48d   : > { %12125 = vst [vmem:[#allocation48_spill] sm:$0xff] %v10033_v43  ;;  %v3266_v61 = vpack.c.bf16 %v3230_v57, %v3229_v28  ;;  %v3099_v11 = vmul.f32 %v9780_v7, %v3008_v46  ;;  %v10039_v51 = vpop.permute.xlu0 %3897  ;;  %3927 = vrot.lane.b32.xlu1 %v10033_v43, %s6868_s9  ;;  %3925 = vrot.lane.b32.xlu0 %v10036_v58, %s6868_s9  ;;  %v3010_v9 = vpop.f32.mrb[113].mxu1  ;;  %v10047_v24 = vsel %vm7229_vm3, 0, %v3472_v37 }
 0x48e   : > { %12127 = vst [vmem:[#allocation70_spill] sm:$0xff] %v10039_v51  ;;  %v3011_v36 = vpop.f32.mrb[114].mxu1  ;;  %v3838_v37 = vshll.u32 %v10047_v24, 16 }
 0x48f   : > { %v3474_v62 = vshrl.u32 %v3266_v61, 16  ;;  %v3167_v26 = vadd.f32 %v9763_v52, %v3099_v11  ;;  %v3100_v57 = vmul.f32 %v9780_v7, %v3011_v36  ;;  %v3013_v5 = vpop.f32.mrb[115].mxu1  ;;  %v10051_v10 = vpop.permute.xlu1 %3899  ;;  %v3477_v2 = vshll.u32 %v3266_v61, 16 }
 0x490   : > { %12128 = vst [vmem:[#allocation154_spill] sm:$0xff] %v10051_v10 }
 0x491   : > { %v3476_v55 = vrot.slane %v3474_v62, 7  ;;  %v3168_v30 = vadd.f32 %v9763_v52, %v3100_v57  ;;  %v10054_v40 = vpop.permute.xlu0 %4046  ;;  %4141 = vrot.lane.b32.xlu1 %v9815_v21, %s6869_s7  ;;  %4139 = vrot.lane.b32.xlu0 %v9778_v35, %s6869_s7  ;;  %v3231_v28 = vmax.f32 %v3167_v26, 0.0  ;;  %v4032_v62 = vrot.slane %v10047_v24, 1 }
 0x493   : > { %v3479_v11 = vor.u32 %v3477_v2, %v3476_v55  ;;  %v3232_v46 = vmax.f32 %v3168_v30, 0.0  ;;  %v10061_v9 = vpop.permute.xlu1 %4048  ;;  %v3572_v61 = vsel %vm7229_vm3, %v3476_v55, 0  ;;  %v3840_v2 = vrot.slane %v3838_v37, 1 }
 0x494   : > { %12129 = vst [vmem:[#allocation97_spill] sm:$0xff] %v10061_v9  ;;  %v3016_v36 = vpop.f32.mrb[116].mxu1  ;;  %v4035_v18 = vrot.slane %v3572_v61, 1 }
 0x495   : > { %v10067_v57 = vsel %vm963_vm1, %v3469_v31, %v3479_v11  ;;  %v3267_v5 = vpack.c.bf16 %v3232_v46, %v3231_v28  ;;  %v3101_v10 = vmul.f32 %v9780_v7, %v3016_v36  ;;  %v10070_v51 = vpop.permute.xlu0 %4050  ;;  %4145 = vrot.lane.b32.xlu1 %v9866_v33, %s6869_s7  ;;  %4143 = vrot.lane.b32.xlu0 %v9829_v19, %s6869_s7  ;;  %v3018_v26 = vpop.f32.mrb[117].mxu1  ;;  %v3851_v11 = vshll.u32 %v3572_v61, 16 }
 0x496   : > { %12130 = vst [vmem:[#allocation68_spill] sm:$0xff] %v10070_v51  ;;  %v3019_v55 = vpop.f32.mrb[118].mxu1  ;;  %v4033_v30 = vrot.slane %v10067_v57, 1  ;;  %v3843_v31 = vshll.u32 %v10067_v57, 16  ;;  %v3836_v33 = vshrl.u32 %v10047_v24, 16  ;;  %v3847_v51 = vshrl.u32 %v10067_v57, 16 }
 0x497   : > { %v3482_v28 = vshrl.u32 %v3267_v5, 16  ;;  %v3169_v46 = vadd.f32 %v9763_v52, %v3101_v10  ;;  %v3102_v36 = vmul.f32 %v9780_v7, %v3019_v55  ;;  %v3021_v43 = vpop.f32.mrb[119].mxu1  ;;  %v10080_v58 = vpop.permute.xlu1 %4052  ;;  %v3485_v21 = vshll.u32 %v3267_v5, 16 }
 0x498   : > { %12131 = vst [vmem:[#allocation124_spill] sm:$0xff] %v10080_v58  ;;  %v10084_v26 = vsel %vm1640_vm5, %v4033_v30, %v4035_v18  ;;  %v10087_v37 = vsel %vm1640_vm5, %v4032_v62, %v4033_v30  ;;  %v3845_v19 = vrot.slane %v3843_v31, 1  ;;  %v3853_v43 = vrot.slane %v3851_v11, 1 }
 0x499   : > { %12132 = vst [vmem:[#allocation163_spill] sm:$0xff] %v10084_v26  ;;  %12133 = vst [vmem:[#allocation102_spill] sm:$0xff] %v10087_v37  ;;  %v3484_v61 = vrot.slane %v3482_v28, 7  ;;  %v3170_v10 = vadd.f32 %v9763_v52, %v3102_v36  ;;  %v10091_v9 = vpop.permute.xlu0 %4054  ;;  %4098 = vrot.lane.b32.xlu0 %v10084_v26, %s6861_s14  ;;  %4096 = vrot.lane.b32.xlu1 %v10087_v37, %s6861_s14  ;;  %v3841_v55 = vor.u32 %v3840_v2, %v3836_v33 }
 0x49a   : > { %12134 = vst [vmem:[#allocation66_spill] sm:$0xff] %v10091_v9  ;;  %v3849_v18 = vor.u32 %v3847_v51, %v3845_v19  ;;  %v3233_v30 = vmax.f32 %v3169_v46, 0.0 }
 0x49b   : > { %v3487_v62 = vor.u32 %v3485_v21, %v3484_v61  ;;  %v3234_v31 = vmax.f32 %v3170_v10, 0.0  ;;  %v10097_v58 = vpop.permute.xlu1 %4056  ;;  %v10103_v36 = vsel %vm1238_vm4, %v3841_v55, %v3845_v19 }
 0x49c   : > { %v3024_v28 = vpop.f32.mrb[120].mxu1  ;;  %v10100_v5 = vsel %vm1238_vm4, %v3849_v18, %v3853_v43  ;;  %12136 = vst [vmem:[#allocation157_spill] sm:$0xff] %v10103_v36 }
 0x49d   : > { %12135 = vst [vmem:[#allocation122_spill] sm:$0xff] %v10100_v5  ;;  %v3268_v9 = vpack.c.bf16 %v3234_v31, %v3233_v30  ;;  %v3103_v26 = vmul.f32 %v9780_v7, %v3024_v28  ;;  %v10106_v35 = vpop.permute.xlu0 %3901  ;;  %3931 = vrot.lane.b32.xlu1 %v10100_v5, %s6868_s9  ;;  %3929 = vrot.lane.b32.xlu0 %v10103_v36, %s6868_s9  ;;  %v3026_v51 = vpop.f32.mrb[121].mxu1  ;;  %v10114_v21 = vsel %vm7229_vm3, 0, %v3487_v62 }
 0x49e   : > { %12137 = vst [vmem:[#allocation110_spill] sm:$0xff] %v10106_v35  ;;  %v3027_v33 = vpop.f32.mrb[122].mxu1  ;;  %v3858_v62 = vshll.u32 %v10114_v21, 16  ;;  %v3856_v36 = vshrl.u32 %v10114_v21, 16 }
 0x49f   : > { %v3489_v2 = vshrl.u32 %v3268_v9, 16  ;;  %v3171_v19 = vadd.f32 %v9763_v52, %v3103_v26  ;;  %v3104_v11 = vmul.f32 %v9780_v7, %v3027_v33  ;;  %v3029_v46 = vpop.f32.mrb[123].mxu1  ;;  %v10118_v10 = vpop.permute.xlu1 %3903  ;;  %v3492_v43 = vshll.u32 %v3268_v9, 16 }
 0x4a0   : > { %12138 = vst [vmem:[#allocation77_spill] sm:$0xff] %v10118_v10 }
 0x4a1   : > { %v3491_v18 = vrot.slane %v3489_v2, 7  ;;  %v3172_v55 = vadd.f32 %v9763_v52, %v3104_v11  ;;  %v10121_v30 = vpop.permute.xlu0 %4058  ;;  %4149 = vrot.lane.b32.xlu1 %v9917_v44, %s6869_s7  ;;  %4147 = vrot.lane.b32.xlu0 %v9880_v32, %s6869_s7  ;;  %v3235_v31 = vmax.f32 %v3171_v19, 0.0  ;;  %v4037_v2 = vrot.slane %v10114_v21, 1 }
 0x4a3   : > { %v3494_v26 = vor.u32 %v3492_v43, %v3491_v18  ;;  %v3236_v28 = vmax.f32 %v3172_v55, 0.0  ;;  %v10128_v51 = vpop.permute.xlu1 %4060  ;;  %v3573_v9 = vsel %vm7229_vm3, %v3491_v18, 0  ;;  %v3860_v43 = vrot.slane %v3858_v62, 1 }
 0x4a4   : > { %12139 = vst [vmem:[#allocation125_spill] sm:$0xff] %v10128_v51  ;;  %v3032_v33 = vpop.f32.mrb[124].mxu1  ;;  %v4040_v37 = vrot.slane %v3573_v9, 1 }
 0x4a5   : > { %v10134_v11 = vsel %vm963_vm1, %v3484_v61, %v3494_v26  ;;  %v3269_v46 = vpack.c.bf16 %v3236_v28, %v3235_v31  ;;  %v3105_v10 = vmul.f32 %v9780_v7, %v3032_v33  ;;  %v10137_v35 = vpop.permute.xlu0 %4062  ;;  %4153 = vrot.lane.b32.xlu1 %v9982_v59, %s6869_s7  ;;  %4151 = vrot.lane.b32.xlu0 %v9937_v20, %s6869_s7  ;;  %v3034_v19 = vpop.f32.mrb[125].mxu1  ;;  %v3871_v26 = vshll.u32 %v3573_v9, 16 }
 0x4a6   : > { %12140 = vst [vmem:[#allocation165_spill] sm:$0xff] %v10137_v35  ;;  %v3035_v18 = vpop.f32.mrb[126].mxu1  ;;  %v4038_v55 = vrot.slane %v10134_v11, 1  ;;  %v3863_v61 = vshll.u32 %v10134_v11, 16  ;;  %v3867_v59 = vshrl.u32 %v10134_v11, 16 }
 0x4a7   : > { %v3173_v31 = vadd.f32 %v9763_v52, %v3105_v10  ;;  %v3106_v28 = vmul.f32 %v9780_v7, %v3035_v18  ;;  %v3037_v33 = vpop.f32.mrb[127].mxu1  ;;  %v10147_v5 = vpop.permute.xlu1 %4064  ;;  %v3873_v10 = vrot.slane %v3871_v26, 1 }
 0x4a8   : > { %v10151_v35 = vsel %vm1640_vm5, %v4038_v55, %v4040_v37  ;;  %v10154_v62 = vsel %vm1640_vm5, %v4037_v2, %v4038_v55  ;;  %v3865_v19 = vrot.slane %v3863_v61, 1  ;;  %v3861_v37 = vor.u32 %v3860_v43, %v3856_v36 }
 0x4a9   : > { %12141 = vst [vmem:[#allocation113_spill] sm:$0xff] %v10151_v35  ;;  %12142 = vst [vmem:[#allocation76_spill] sm:$0xff] %v10154_v62  ;;  %v3174_v9 = vadd.f32 %v9763_v52, %v3106_v28  ;;  %v10158_v51 = vpop.permute.xlu0 %4066  ;;  %4102 = vrot.lane.b32.xlu0 %v10151_v35, %s6861_s14  ;;  %4100 = vrot.lane.b32.xlu1 %v10154_v62, %s6861_s14  ;;  %v3237_v18 = vmax.f32 %v3173_v31, 0.0  ;;  %v3497_v55 = vshrl.u32 %v3269_v46, 16  ;;  %s11314_s14 = scalar_lea.hbm %s11363_s6, %s6089_s28 }
 0x4aa   : > { %12143 = vst [vmem:[#allocation41_spill] sm:$0xff] %v10158_v51  ;;  %v3869_v7 = vor.u32 %v3867_v59, %v3865_v19  ;;  %v10170_v52 = vsel %vm1238_vm4, %v3861_v37, %v3865_v19  ;;  %v3500_v19 = vshll.u32 %v3269_v46, 16 }
 0x4ab   : > { %v3238_v33 = vmax.f32 %v3174_v9, 0.0  ;;  %v10164_v2 = vpop.permute.xlu1 %4068  ;;  %12145 = vst [vmem:[#allocation60_spill] sm:$0xff] %v10170_v52  ;;  %v3499_v43 = vrot.slane %v3497_v55, 7 }
 0x4ac   : > { %v10167_v61 = vsel %vm1238_vm4, %v3869_v7, %v3873_v10 }
 0x4ad   : > { %12144 = vst [vmem:[#allocation161_spill] sm:$0xff] %v10167_v61  ;;  %v3270_v28 = vpack.c.bf16 %v3238_v33, %v3237_v18  ;;  %v10172_v51 = vpop.permute.xlu0 %3905  ;;  %3935 = vrot.lane.b32.xlu1 %v10167_v61, %s6868_s9  ;;  %3933 = vrot.lane.b32.xlu0 %v10170_v52, %s6868_s9  ;;  %v3502_v37 = vor.u32 %v3500_v19, %v3499_v43  ;;  %v6586_v33 = vld [vmem:[#allocation11] sm:$0xff]   ;;  %v6588_v19 = vld [vmem:[#allocation11 + $0x10] sm:$0xff]  }
 0x4ae   : > { %12146 = vst [vmem:[#allocation32_spill] sm:$0xff] %v10172_v51  ;;  %6226 = vmatprep.subr.bf16.mxu0 %v6586_v33 }
 0x4af   : > { %v3504_v59 = vshrl.u32 %v3270_v28, 16  ;;  %v10178_v36 = vpop.permute.xlu1 %3907  ;;  %v3507_v31 = vshll.u32 %v3270_v28, 16  ;;  %v10204_v46 = vsel %vm7229_vm3, 0, %v3502_v37  ;;  %6227 = vmatpush3.bf16.msra.mxu0 %v6586_v33  ;;  %v6589_v33 = vld [vmem:[#allocation11 + $0x18] sm:$0xff]  }
 0x4b0   : > { %12147 = vst [vmem:[#allocation126_spill] sm:$0xff] %v10178_v36  ;;  %12152 = vst [vmem:[#allocation44_spill] sm:$0xff] %v10204_v46 }
 0x4b1   : > { %v10180_v26 = vrot.slane %v3504_v59, 7  ;;  %v10182_v9 = vpop.permute.xlu0 %4070  ;;  %4157 = vrot.lane.b32.xlu1 %v10047_v24, %s6869_s7  ;;  %4155 = vrot.lane.b32.xlu0 %v10002_v13, %s6869_s7  ;;  %v6587_v59 = vld [vmem:[#allocation11 + $0x8] sm:$0xff]  }
 0x4b2   : > { %6228 = vmatprep.subr.bf16.mxu0 %v6587_v59 }
 0x4b3   : > { %12148 = vst [vmem:[#allocation170_spill] sm:$0xff] %v10180_v26  ;;  %v3509_v7 = vor.u32 %v3507_v31, %v10180_v26  ;;  %v10189_v10 = vpop.permute.xlu1 %4072  ;;  %6229 = vmatpush3.bf16.msra.mxu0 %v6587_v59 }
 0x4b4   : > { %12149 = vst [vmem:[#allocation26_spill] sm:$0xff] %v10189_v10  ;;  %6230 = vmatprep.subr.bf16.mxu0 %v6588_v19 }
 0x4b5   : > { %4161 = vrot.lane.b32.xlu1 %v10114_v21, %s6869_s7  ;;  %4159 = vrot.lane.b32.xlu0 %v10067_v57, %s6869_s7  ;;  %v10196_v18 = vsel %vm963_vm1, %v3499_v43, %v3509_v7  ;;  %v10198_v55 = vpop.permute.xlu0 %4074  ;;  %vm4891_vm1 = vcmask 457728  }
 0x4b6   : > { %12150 = vst [vmem:[#allocation31_spill] sm:$0xff] %v10196_v18  ;;  %12151 = vst [vmem:[#allocation164_spill] sm:$0xff] %v10198_v55 }
 0x4b7   : > { %v10200_v28 = vpop.permute.xlu1 %4105  ;;  %6231 = vmatpush3.bf16.msra.mxu0 %v6588_v19  ;;  %v6590_v19 = vld [vmem:[#allocation11 + $0x20] ss:$0 sps:$4 sm:$0xff]  }
 0x4b8   : > { %6232 = vmatprep.subr.bf16.mxu0 %v6589_v33 }
 0x4b9   : > { %4163 = vrot.lane.b32.xlu0 %v10134_v11, %s6869_s7  ;;  %4165 = vrot.lane.b32.xlu1 %v10204_v46, %s6869_s7 }
 0x4bb   : > { %v10210_v43 = vpop.permute.xlu0 %4078  ;;  %v10212_v31 = vpop.permute.xlu1 %4076  ;;  %6233 = vmatpush3.bf16.msra.mxu0 %v6589_v33 }
 0x4bc   : > { %12153 = vst [vmem:[#allocation131_spill] sm:$0xff] %v10210_v43  ;;  %12154 = vst [vmem:[#allocation172_spill] sm:$0xff] %v10212_v31  ;;  %6300 = vmatprep.subr.msk.bf16.mxu0 %vm5110_vm12, %v6590_v19 }
 0x4bd   : > { %4189 = vrot.lane.b32.xlu1 %v9401_v27, %s6862_s29  ;;  %4167 = vrot.lane.b32.xlu0 %v10196_v18, %s6869_s7  ;;  %v12212_v18 = vld [vmem:[#allocation94_spill] sm:$0xff] }
 0x4bf   : > { %v10218_v7 = vpop.permute.xlu0 %3909  ;;  %v10220_v37 = vpop.permute.xlu1 %3911 }
 0x4c0   : > { %12155 = vst [vmem:[#allocation96_spill] sm:$0xff] %v10218_v7  ;;  %12156 = vst [vmem:[#allocation53_spill] sm:$0xff] %v10220_v37 }
 0x4c1   : > { %4193 = vrot.lane.b32.xlu1 %v9444_v17, %s6862_s29  ;;  %4191 = vrot.lane.b32.xlu0 %v9412_v56, %s6862_s29  ;;  %v5112_v56 = vsel %vm5110_vm12, %v6590_v19, 0 }
 0x4c2   : > { %6235 = vmatpush3.bf16.msra.mxu0 %v5112_v56 }
 0x4c3   : > { %v10226_v59 = vpop.permute.xlu0 %4107  ;;  %v10228_v27 = vpop.permute.xlu1 %4109 }
 0x4c5   : > { %4195 = vrot.lane.b32.xlu0 %v9449_v47, %s6862_s29  ;;  %4197 = vrot.lane.b32.xlu1 %v9478_v49, %s6862_s29 }
 0x4c7   : > { %v10234_v43 = vpop.permute.xlu0 %4111  ;;  %v10236_v37 = vpop.permute.xlu1 %4113 }
 0x4c9   : > { %4259 = vrot.lane.b32.xlu0 %v9567_v12, %s6870_s8  ;;  %4261 = vrot.lane.b32.xlu1 %v9606_v60, %s6870_s8 }
 0x4cb   : > { %v10242_v33 = vpop.permute.xlu0 %4082  ;;  %v10244_v31 = vpop.permute.xlu1 %4080 }
 0x4cc   : > { %12157 = vst [vmem:[#allocation168_spill] sm:$0xff] %v10242_v33  ;;  %12158 = vst [vmem:[#allocation99_spill] sm:$0xff] %v10244_v31 }
 0x4cd   : > { %4323 = vrot.lane.b32.xlu0 %v9418_v42, %s6863_s13  ;;  %4325 = vrot.lane.b32.xlu1 %v9433_v50, %s6863_s13 }
 0x4cf   : > { %v10250_v7 = vpop.permute.xlu0 %3913  ;;  %v10252_v19 = vpop.permute.xlu1 %3915 }
 0x4d0   : > { %12159 = vst [vmem:[#allocation133_spill] sm:$0xff] %v10250_v7  ;;  %12160 = vst [vmem:[#allocation176_spill] sm:$0xff] %v10252_v19 }
 0x4d1   : > { %4385 = vrot.lane.b32.xlu0 %v9444_v17, %s6871_s10  ;;  %4387 = vrot.lane.b32.xlu1 %v9449_v47, %s6871_s10 }
 0x4d3   : > { %v10258_v12 = vpop.permute.xlu0 %4115  ;;  %v10260_v60 = vpop.permute.xlu1 %4117 }
 0x4d5   : > { %4447 = vrot.lane.b32.xlu0 %v9614_v22, %s6864_s16  ;;  %4449 = vrot.lane.b32.xlu1 %v9623_v34, %s6864_s16 }
 0x4d7   : > { %v10266_v56 = vpop.permute.xlu0 %4119  ;;  %v10268_v33 = vpop.permute.xlu1 %4121 }
 0x4d9   : > { %4263 = vrot.lane.b32.xlu0 %v9614_v22, %s6870_s8  ;;  %4265 = vrot.lane.b32.xlu1 %v9623_v34, %s6870_s8 }
 0x4db   : > { %v10274_v17 = vpop.permute.xlu0 %4086  ;;  %v10276_v47 = vpop.permute.xlu1 %4084 }
 0x4dc   : > { %12161 = vst [vmem:[#allocation106_spill] sm:$0xff] %v10274_v17  ;;  %12162 = vst [vmem:[#allocation129_spill] sm:$0xff] %v10276_v47 }
 0x4dd   : > { %4327 = vrot.lane.b32.xlu0 %v9453_v39, %s6863_s13  ;;  %4329 = vrot.lane.b32.xlu1 %v9467_v54, %s6863_s13 }
 0x4df   : > { %v10282_v19 = vpop.permute.xlu0 %3917  ;;  %v10284_v31 = vpop.permute.xlu1 %3919 }
 0x4e0   : > { %12163 = vst [vmem:[#allocation171_spill] sm:$0xff] %v10282_v19  ;;  %12164 = vst [vmem:[#allocation111_spill] sm:$0xff] %v10284_v31 }
 0x4e1   : > { %4389 = vrot.lane.b32.xlu0 %v9478_v49, %s6871_s10  ;;  %4391 = vrot.lane.b32.xlu1 %v9483_v45, %s6871_s10 }
 0x4e3   : > { %v10290_v22 = vpop.permute.xlu0 %4123  ;;  %v10292_v34 = vpop.permute.xlu1 %4125 }
 0x4e5   : > { %4451 = vrot.lane.b32.xlu0 %v9634_v23, %s6864_s16  ;;  %4453 = vrot.lane.b32.xlu1 %v9644_v1, %s6864_s16 }
 0x4e7   : > { %v10298_v17 = vpop.permute.xlu0 %4127  ;;  %v10300_v47 = vpop.permute.xlu1 %4129 }
 0x4e9   : > { %4199 = vrot.lane.b32.xlu0 %v9483_v45, %s6862_s29  ;;  %4267 = vrot.lane.b32.xlu1 %v9634_v23, %s6870_s8 }
 0x4eb   : > { %v10306_v49 = vpop.permute.xlu0 %4090  ;;  %v10308_v31 = vpop.permute.xlu1 %4088 }
 0x4ec   : > { %12165 = vst [vmem:[#allocation135_spill] sm:$0xff] %v10306_v49  ;;  %12166 = vst [vmem:[#allocation178_spill] sm:$0xff] %v10308_v31 }
 0x4ed   : > { %4269 = vrot.lane.b32.xlu0 %v9644_v1, %s6870_s8  ;;  %4331 = vrot.lane.b32.xlu1 %v9487_v4, %s6863_s13 }
 0x4ef   : > { %v10314_v19 = vpop.permute.xlu0 %3921  ;;  %v10316_v7 = vpop.permute.xlu1 %3923 }
 0x4f0   : > { %12167 = vst [vmem:[#allocation114_spill] sm:$0xff] %v10314_v19  ;;  %12168 = vst [vmem:[#allocation64_spill] sm:$0xff] %v10316_v7 }
 0x4f1   : > { %4333 = vrot.lane.b32.xlu0 %v9501_v8, %s6863_s13  ;;  %4393 = vrot.lane.b32.xlu1 %v9512_v41, %s6871_s10 }
 0x4f3   : > { %v10322_v45 = vpop.permute.xlu0 %4131  ;;  %v10324_v23 = vpop.permute.xlu1 %4133 }
 0x4f5   : > { %4395 = vrot.lane.b32.xlu0 %v9517_v38, %s6871_s10  ;;  %4455 = vrot.lane.b32.xlu1 %v9655_v16, %s6864_s16 }
 0x4f7   : > { %v10330_v1 = vpop.permute.xlu0 %4135  ;;  %v10332_v49 = vpop.permute.xlu1 %4137 }
 0x4f8   : > { %12169 = vst [vmem:[#allocation174_spill] sm:$0xff] %v10332_v49 }
 0x4f9   : > { %4457 = vrot.lane.b32.xlu0 %v9679_v0, %s6864_s16  ;;  %4201 = vrot.lane.b32.xlu1 %v9512_v41, %s6862_s29 }
 0x4fb   : > { %v10338_v31 = vpop.permute.xlu0 %4094  ;;  %v10340_v7 = vpop.permute.xlu1 %4092 }
 0x4fc   : > { %12170 = vst [vmem:[#allocation46_spill] sm:$0xff] %v10338_v31  ;;  %12171 = vst [vmem:[#allocation137_spill] sm:$0xff] %v10340_v7 }
 0x4fd   : > { %4203 = vrot.lane.b32.xlu0 %v9517_v38, %s6862_s29  ;;  %4271 = vrot.lane.b32.xlu1 %v9655_v16, %s6870_s8 }
 0x4ff   : > { %v10346_v19 = vpop.permute.xlu0 %3925  ;;  %v10348_v55 = vpop.permute.xlu1 %3927 }
 0x500   : > { %12172 = vst [vmem:[#allocation183_spill] sm:$0xff] %v10346_v19  ;;  %12173 = vst [vmem:[#allocation90_spill] sm:$0xff] %v10348_v55  ;;  %v12180_v55 = vld [vmem:[#allocation100_spill] sm:$0xff] }
 0x501   : > { %4273 = vrot.lane.b32.xlu0 %v9679_v0, %s6870_s8  ;;  %4335 = vrot.lane.b32.xlu1 %v9521_v48, %s6863_s13 }
 0x503   : > { %v10354_v41 = vpop.permute.xlu0 %4139  ;;  %v10356_v31 = vpop.permute.xlu1 %4141 }
 0x504   : > { %12174 = vst [vmem:[#allocation134_spill] sm:$0xff] %v10354_v41  ;;  %12175 = vst [vmem:[#allocation177_spill] sm:$0xff] %v10356_v31 }
 0x505   : > { %4337 = vrot.lane.b32.xlu0 %v9535_v6, %s6863_s13  ;;  %4397 = vrot.lane.b32.xlu1 %v9546_v14, %s6871_s10 }
 0x507   : > { %v10362_v38 = vpop.permute.xlu0 %4143  ;;  %v10364_v16 = vpop.permute.xlu1 %4145 }
 0x508   : > { %12176 = vst [vmem:[#allocation95_spill] sm:$0xff] %v10362_v38  ;;  %12177 = vst [vmem:[#allocation139_spill] sm:$0xff] %v10364_v16 }
 0x509   : > { %4399 = vrot.lane.b32.xlu0 %v9551_v53, %s6871_s10  ;;  %4459 = vrot.lane.b32.xlu1 %v9687_v3, %s6864_s16 }
 0x50b   : > { %v10370_v0 = vpop.permute.xlu0 %4098  ;;  %v10372_v7 = vpop.permute.xlu1 %4096 }
 0x50c   : > { %12178 = vst [vmem:[#allocation185_spill] sm:$0xff] %v10370_v0  ;;  %12179 = vst [vmem:[#allocation98_spill] sm:$0xff] %v10372_v7  ;;  %v12185_v7 = vld [vmem:[#allocation30_spill] sm:$0xff] }
 0x50d   : > { %4461 = vrot.lane.b32.xlu0 %v12180_v55, %s6864_s16  ;;  %4205 = vrot.lane.b32.xlu1 %v9546_v14, %s6862_s29 }
 0x50f   : > { %v10378_v19 = vpop.permute.xlu0 %3929  ;;  %v10380_v38 = vpop.permute.xlu1 %3931 }
 0x510   : > { %12181 = vst [vmem:[#allocation136_spill] sm:$0xff] %v10378_v19  ;;  %12182 = vst [vmem:[#allocation181_spill] sm:$0xff] %v10380_v38  ;;  %v12188_v38 = vld [vmem:[#allocation75_spill] sm:$0xff] }
 0x511   : > { %4207 = vrot.lane.b32.xlu0 %v9551_v53, %s6862_s29  ;;  %4275 = vrot.lane.b32.xlu1 %v9687_v3, %s6870_s8  ;;  %v12189_v53 = vld [vmem:[#allocation84_spill] sm:$0xff] }
 0x513   : > { %v10386_v16 = vpop.permute.xlu0 %4147  ;;  %v10388_v0 = vpop.permute.xlu1 %4149 }
 0x514   : > { %12183 = vst [vmem:[#allocation101_spill] sm:$0xff] %v10386_v16  ;;  %12184 = vst [vmem:[#allocation140_spill] sm:$0xff] %v10388_v0  ;;  %v12192_v0 = vld [vmem:[#allocation80_spill] sm:$0xff] }
 0x515   : > { %4277 = vrot.lane.b32.xlu0 %v12180_v55, %s6870_s8  ;;  %4339 = vrot.lane.b32.xlu1 %v12185_v7, %s6863_s13  ;;  %v12193_v55 = vld [vmem:[#allocation116_spill] sm:$0xff] }
 0x517   : > { %v10394_v14 = vpop.permute.xlu0 %4151  ;;  %v10396_v19 = vpop.permute.xlu1 %4153 }
 0x518   : > { %12186 = vst [vmem:[#allocation189_spill] sm:$0xff] %v10394_v14  ;;  %12187 = vst [vmem:[#allocation109_spill] sm:$0xff] %v10396_v19  ;;  %v12196_v19 = vld [vmem:[#allocation39_spill] sm:$0xff] }
 0x519   : > { %4341 = vrot.lane.b32.xlu0 %v12188_v38, %s6863_s13  ;;  %4401 = vrot.lane.b32.xlu1 %v12189_v53, %s6871_s10 }
 0x51b   : > { %v10402_v3 = vpop.permute.xlu0 %4102  ;;  %v10404_v16 = vpop.permute.xlu1 %4100 }
 0x51c   : > { %12190 = vst [vmem:[#allocation138_spill] sm:$0xff] %v10402_v3  ;;  %12191 = vst [vmem:[#allocation184_spill] sm:$0xff] %v10404_v16 }
 0x51d   : > { %4403 = vrot.lane.b32.xlu0 %v12192_v0, %s6871_s10  ;;  %4463 = vrot.lane.b32.xlu1 %v12193_v55, %s6864_s16 }
 0x51f   : > { %v10410_v31 = vpop.permute.xlu0 %3933  ;;  %v10412_v14 = vpop.permute.xlu1 %3935 }
 0x520   : > { %12194 = vst [vmem:[#allocation100_spill] sm:$0xff] %v10410_v31  ;;  %12195 = vst [vmem:[#allocation30_spill] sm:$0xff] %v10412_v14  ;;  %v12201_v14 = vld [vmem:[#allocation65_spill] sm:$0xff] }
 0x521   : > { %4465 = vrot.lane.b32.xlu0 %v12196_v19, %s6864_s16  ;;  %4209 = vrot.lane.b32.xlu1 %v12189_v53, %s6862_s29 }
 0x523   : > { %v10418_v41 = vpop.permute.xlu0 %4155  ;;  %v10420_v3 = vpop.permute.xlu1 %4157 }
 0x524   : > { %12197 = vst [vmem:[#allocation75_spill] sm:$0xff] %v10418_v41  ;;  %12198 = vst [vmem:[#allocation84_spill] sm:$0xff] %v10420_v3 }
 0x525   : > { %4211 = vrot.lane.b32.xlu0 %v12192_v0, %s6862_s29  ;;  %4279 = vrot.lane.b32.xlu1 %v12193_v55, %s6870_s8  ;;  %v12204_v0 = vld [vmem:[#allocation120_spill] sm:$0xff] }
 0x527   : > { %v10426_v16 = vpop.permute.xlu0 %4159  ;;  %v10428_v31 = vpop.permute.xlu1 %4161 }
 0x528   : > { %12199 = vst [vmem:[#allocation80_spill] sm:$0xff] %v10426_v16  ;;  %12200 = vst [vmem:[#allocation116_spill] sm:$0xff] %v10428_v31  ;;  %v12206_v31 = vld [vmem:[#allocation85_spill] sm:$0xff] }
 0x529   : > { %4281 = vrot.lane.b32.xlu0 %v12196_v19, %s6870_s8  ;;  %4343 = vrot.lane.b32.xlu1 %v12201_v14, %s6863_s13  ;;  %v12207_v19 = vld [vmem:[#allocation82_spill] sm:$0xff] }
 0x52b   : > { %v10434_v53 = vpop.permute.xlu0 %4163  ;;  %v10436_v41 = vpop.permute.xlu1 %4165 }
 0x52c   : > { %12202 = vst [vmem:[#allocation39_spill] sm:$0xff] %v10434_v53  ;;  %12203 = vst [vmem:[#allocation65_spill] sm:$0xff] %v10436_v41  ;;  %v12208_v53 = vld [vmem:[#allocation33_spill] sm:$0xff] }
 0x52d   : > { %4345 = vrot.lane.b32.xlu0 %v9638_v15, %s6863_s13  ;;  %4405 = vrot.lane.b32.xlu1 %v12204_v0, %s6871_s10 }
 0x52f   : > { %v10442_v55 = vpop.permute.xlu0 %4167  ;;  %v4190_v16 = vpop.permute.xlu1 %4189 }
 0x530   : > { %12205 = vst [vmem:[#allocation120_spill] sm:$0xff] %v10442_v55 }
 0x531   : > { %4407 = vrot.lane.b32.xlu0 %v12206_v31, %s6871_s10  ;;  %4467 = vrot.lane.b32.xlu1 %v12207_v19, %s6864_s16 }
 0x533   : > { %v4192_v3 = vpop.permute.xlu0 %4191  ;;  %v4194_v36 = vpop.permute.xlu1 %4193 }
 0x535   : > { %4469 = vrot.lane.b32.xlu0 %v12208_v53, %s6864_s16  ;;  %4213 = vrot.lane.b32.xlu1 %v12204_v0, %s6862_s29  ;;  %v12209_v0 = vld [vmem:[#allocation59_spill] sm:$0xff] }
 0x536   : > { %v4511_v51 = vsel %vm4509_vm13, 0, %v12209_v0 }
 0x537   : > { %v4196_v41 = vpop.permute.xlu0 %4195  ;;  %v10452_v63 = vpop.permute.xlu1 %4197  ;;  %v4573_v46 = vsel %vm546_vm0, %v4511_v51, %v12212_v18  ;;  %v12213_v51 = vld [vmem:[#allocation72_spill] sm:$0xff] }
 0x538   : > { %v12214_v18 = vld [vmem:[#allocation88_spill] sm:$0xff] }
 0x539   : > { %4215 = vrot.lane.b32.xlu0 %v12206_v31, %s6862_s29  ;;  %4283 = vrot.lane.b32.xlu1 %v12207_v19, %s6870_s8  ;;  %v12210_v31 = vld [vmem:[#allocation83_spill] sm:$0xff]  ;;  %v12211_v19 = vld [vmem:[#allocation108_spill] sm:$0xff] }
 0x53b   : > { %v4260_v55 = vpop.permute.xlu0 %4259  ;;  %v4262_v26 = vpop.permute.xlu1 %4261 }
 0x53d   : > { %4285 = vrot.lane.b32.xlu0 %v12208_v53, %s6870_s8  ;;  %4347 = vrot.lane.b32.xlu1 %v9673_v25, %s6863_s13  ;;  %v4636_v53 = vsel %vm4634_vm14, %v4573_v46, %v10200_v28  ;;  %v4638_v25 = vsel %vm4634_vm14, %v4573_v46, %v10226_v59 }
 0x53e   : > { %v4700_v0 = vsel %vm2185_vm6, %v4636_v53, %v4190_v16  ;;  %v4702_v61 = vsel %vm2185_vm6, %v4638_v25, %v4192_v3 }
 0x53f   : > { %v4324_v49 = vpop.permute.xlu0 %4323  ;;  %v4326_v10 = vpop.permute.xlu1 %4325  ;;  %v4767_v52 = vsel %vm4763_vm15, %v4702_v61, %v4262_v26  ;;  %v12215_v26 = vld [vmem:[#allocation151_spill] sm:$0xff] }
 0x540   : > { %v4831_v46 = vsel %vm2248_vm7, %v4767_v52, %v4326_v10 }
 0x541   : > { %4349 = vrot.lane.b32.xlu0 %v12210_v31, %s6863_s13  ;;  %4409 = vrot.lane.b32.xlu1 %v12211_v19, %s6871_s10  ;;  %v4765_v31 = vsel %vm4763_vm15, %v4700_v0, %v4260_v55  ;;  %v12218_v0 = vld [vmem:[#allocation47_spill] sm:$0xff] }
 0x542   : > { %v4829_v28 = vsel %vm2248_vm7, %v4765_v31, %v4324_v49  ;;  %v12216_v49 = vld [vmem:[#allocation156_spill] sm:$0xff] }
 0x543   : > { %v4386_v35 = vpop.permute.xlu0 %4385  ;;  %v4388_v62 = vpop.permute.xlu1 %4387  ;;  %v12217_v31 = vld [vmem:[#allocation52_spill] sm:$0xff] }
 0x544   : > { %v4893_v59 = vsel %vm4891_vm1, %v4829_v28, %v4386_v35  ;;  %v4895_v16 = vsel %vm4891_vm1, %v4831_v46, %v4388_v62  ;;  %v4513_v53 = vsel %vm4509_vm13, %v12217_v31, %v12216_v49  ;;  %v12220_v46 = vld [vmem:[#allocation24_spill] sm:$0xff] }
 0x545   : > { %4411 = vrot.lane.b32.xlu0 %v12213_v51, %s6871_s10  ;;  %4471 = vrot.lane.b32.xlu1 %v12214_v18, %s6864_s16 }
 0x547   : > { %v4448_v25 = vpop.permute.xlu0 %4447  ;;  %v4450_v3 = vpop.permute.xlu1 %4449 }
 0x548   : > { %v4956_v55 = vsel %vm2313_vm9, %v4893_v59, %v4448_v25  ;;  %v4958_v61 = vsel %vm2313_vm9, %v4895_v16, %v4450_v3 }
 0x549   : > { %4473 = vrot.lane.b32.xlu0 %v12215_v26, %s6864_s16  ;;  %4217 = vrot.lane.b32.xlu1 %v12211_v19, %s6862_s29  ;;  %v12219_v19 = vld [vmem:[#allocation69_spill] sm:$0xff] }
 0x54a   : > { %6236 = vmatprep.mubr.msk.bf16.mxu0 %vm5045_vm2, %v4956_v55  ;;  %v4515_v28 = vsel %vm4509_vm13, %v12219_v19, %v12218_v0  ;;  %v12223_v0 = vld [vmem:[#allocation112_spill] sm:$0xff]  ;;  %v12224_v19 = vld [vmem:[#allocation43_spill] sm:$0xff] }
 0x54b   : > { %6237 = vmatmul.mubr.msk.bf16.vlgmr.msra.gmra.mrb[64].mxu0 %vm5045_vm2, %v4958_v61  ;;  %v4264_v35 = vpop.permute.xlu0 %4263  ;;  %v4266_v52 = vpop.permute.xlu1 %4265 }
 0x54d   : > { %4219 = vrot.lane.b32.xlu0 %v12213_v51, %s6862_s29  ;;  %4287 = vrot.lane.b32.xlu1 %v12214_v18, %s6870_s8  ;;  %v4575_v51 = vsel %vm546_vm0, %v4513_v53, %v10030_v29  ;;  %v4577_v18 = vsel %vm546_vm0, %v4515_v28, %v10054_v40  ;;  %v12221_v29 = vld [vmem:[#allocation62_spill] sm:$0xff] }
 0x54e   : > { %v4640_v59 = vsel %vm4634_vm14, %v4575_v51, %v10228_v27  ;;  %v4642_v16 = vsel %vm4634_vm14, %v4577_v18, %v10234_v43  ;;  %v12222_v40 = vld [vmem:[#allocation74_spill] sm:$0xff] }
 0x54f   : > { %v4328_v62 = vpop.permute.xlu0 %4327  ;;  %v4330_v10 = vpop.permute.xlu1 %4329  ;;  %v4704_v55 = vsel %vm2185_vm6, %v4640_v59, %v4194_v36  ;;  %v4706_v61 = vsel %vm2185_vm6, %v4642_v16, %v4196_v41  ;;  %v12225_v28 = vld [vmem:[#allocation198_spill] sm:$0xff]  ;;  %v12226_v59 = vld [vmem:[#allocation91_spill] sm:$0xff] }
 0x550   : > { %v4771_v49 = vsel %vm4763_vm15, %v4706_v61, %v4266_v52  ;;  %v4517_v16 = vsel %vm4509_vm13, %v9418_v42, %v12226_v59 }
 0x551   : > { %4289 = vrot.lane.b32.xlu0 %v12215_v26, %s6870_s8  ;;  %4351 = vrot.lane.b32.xlu1 %v12220_v46, %s6863_s13  ;;  %v4769_v26 = vsel %vm4763_vm15, %v4704_v55, %v4264_v35  ;;  %v4835_v43 = vsel %vm2248_vm7, %v4771_v49, %v4330_v10 }
 0x552   : > { %v4833_v27 = vsel %vm2248_vm7, %v4769_v26, %v4328_v62 }
 0x553   : > { %v4390_v25 = vpop.permute.xlu0 %4389  ;;  %v4392_v3 = vpop.permute.xlu1 %4391 }
 0x554   : > { %v4897_v31 = vsel %vm4891_vm1, %v4833_v27, %v4390_v25  ;;  %v4899_v36 = vsel %vm4891_vm1, %v4835_v43, %v4392_v3  ;;  %v12227_v25 = vld [vmem:[#allocation97_spill] sm:$0xff]  ;;  %v12229_v43 = vld [vmem:[#allocation86_spill] sm:$0xff] }
 0x555   : > { %4353 = vrot.lane.b32.xlu0 %v12221_v29, %s6863_s13  ;;  %4413 = vrot.lane.b32.xlu1 %v12222_v40, %s6871_s10  ;;  %v4579_v3 = vsel %vm546_vm0, %v4517_v16, %v12227_v25  ;;  %v12233_v16 = vld [vmem:[#allocation40_spill] sm:$0xff] }
 0x556   : > { %v4644_v55 = vsel %vm4634_vm14, %v4579_v3, %v10236_v37 }
 0x557   : > { %v4452_v53 = vpop.permute.xlu0 %4451  ;;  %v4454_v41 = vpop.permute.xlu1 %4453  ;;  %v4708_v49 = vsel %vm2185_vm6, %v4644_v55, %v10452_v63  ;;  %v12235_v55 = vld [vmem:[#allocation38_spill] sm:$0xff] }
 0x558   : > { %v4960_v35 = vsel %vm2313_vm9, %v4897_v31, %v4452_v53  ;;  %v4962_v52 = vsel %vm2313_vm9, %v4899_v36, %v4454_v41  ;;  %v12230_v31 = vld [vmem:[#allocation68_spill] sm:$0xff] }
 0x559   : > { %4415 = vrot.lane.b32.xlu0 %v12223_v0, %s6871_s10  ;;  %4475 = vrot.lane.b32.xlu1 %v12224_v19, %s6864_s16 }
 0x55a   : > { %6240 = vmatprep.mubr.msk.bf16.mxu0 %vm5045_vm2, %v4960_v35 }
 0x55b   : > { %6241 = vmatmul.mubr.msk.bf16.gmra.mrb[68].mxu0 %vm5045_vm2, %v4962_v52  ;;  %v4200_v62 = vpop.permute.xlu0 %4199  ;;  %v4268_v10 = vpop.permute.xlu1 %4267 }
 0x55c   : > { %v4773_v27 = vsel %vm4763_vm15, %v4708_v49, %v4268_v10  ;;  %v12232_v10 = vld [vmem:[#allocation196_spill] sm:$0xff]  ;;  %v12236_v49 = vld [vmem:[#allocation61_spill] sm:$0xff] }
 0x55d   : > { %4477 = vrot.lane.b32.xlu0 %v12225_v28, %s6864_s16  ;;  %4221 = vrot.lane.b32.xlu1 %v12222_v40, %s6862_s29  ;;  %v12228_v40 = vld [vmem:[#allocation89_spill] sm:$0xff] }
 0x55e   : > { %v4519_v42 = vsel %vm4509_vm13, %v9433_v50, %v12228_v40  ;;  %v4521_v40 = vsel %vm4509_vm13, %v9453_v39, %v12236_v49 }
 0x55f   : > { %v4270_v51 = vpop.permute.xlu0 %4269  ;;  %v4332_v18 = vpop.permute.xlu1 %4331  ;;  %v4581_v37 = vsel %vm546_vm0, %v4519_v42, %v12230_v31  ;;  %v12237_v42 = vld [vmem:[#allocation124_spill] sm:$0xff] }
 0x560   : > { %v4837_v36 = vsel %vm2248_vm7, %v4773_v27, %v4332_v18  ;;  %v4646_v63 = vsel %vm4634_vm14, %v4581_v37, %v10258_v12  ;;  %v4583_v27 = vsel %vm546_vm0, %v4521_v40, %v12237_v42  ;;  %v12244_v40 = vld [vmem:[#allocation87_spill] sm:$0xff] }
 0x561   : > { %4223 = vrot.lane.b32.xlu0 %v12223_v0, %s6862_s29  ;;  %4291 = vrot.lane.b32.xlu1 %v12224_v19, %s6870_s8  ;;  %v4710_v35 = vsel %vm2185_vm6, %v4646_v63, %v4200_v62  ;;  %v12231_v19 = vld [vmem:[#allocation119_spill] sm:$0xff]  ;;  %v4648_v31 = vsel %vm4634_vm14, %v4583_v27, %v10260_v60 }
 0x562   : > { %v4775_v0 = vsel %vm4763_vm15, %v4710_v35, %v4270_v51  ;;  %v12234_v51 = vld [vmem:[#allocation148_spill] sm:$0xff]  ;;  %v12240_v35 = vld [vmem:[#allocation66_spill] sm:$0xff] }
 0x563   : > { %v4334_v61 = vpop.permute.xlu0 %4333  ;;  %v4394_v26 = vpop.permute.xlu1 %4393 }
 0x564   : > { %v4901_v53 = vsel %vm4891_vm1, %v4837_v36, %v4394_v26 }
 0x565   : > { %4293 = vrot.lane.b32.xlu0 %v12225_v28, %s6870_s8  ;;  %4355 = vrot.lane.b32.xlu1 %v12229_v43, %s6863_s13  ;;  %v4839_v28 = vsel %vm2248_vm7, %v4775_v0, %v4334_v61 }
 0x567   : > { %v4396_v41 = vpop.permute.xlu0 %4395  ;;  %v4456_v50 = vpop.permute.xlu1 %4455 }
 0x568   : > { %v4964_v52 = vsel %vm2313_vm9, %v4901_v53, %v4456_v50  ;;  %v4903_v12 = vsel %vm4891_vm1, %v4839_v28, %v4396_v41  ;;  %v12238_v53 = vld [vmem:[#allocation27_spill] sm:$0xff] }
 0x569   : > { %4357 = vrot.lane.b32.xlu0 %v12231_v19, %s6863_s13  ;;  %4417 = vrot.lane.b32.xlu1 %v12232_v10, %s6871_s10  ;;  %v4523_v39 = vsel %vm4509_vm13, %v9467_v54, %v12238_v53  ;;  %v12239_v50 = vld [vmem:[#allocation55_spill] sm:$0xff] }
 0x56a   : > { %6244 = vmatprep.mubr.msk.bf16.mxu0 %vm5045_vm2, %v4964_v52  ;;  %v4585_v52 = vsel %vm546_vm0, %v4523_v39, %v12240_v35  ;;  %v12246_v35 = vld [vmem:[#allocation49_spill] sm:$0xff] }
 0x56b   : > { %v4458_v18 = vpop.permute.xlu0 %4457  ;;  %v4202_v59 = vpop.permute.xlu1 %4201  ;;  %v4650_v0 = vsel %vm4634_vm14, %v4585_v52, %v10266_v56 }
 0x56c   : > { %v4966_v62 = vsel %vm2313_vm9, %v4903_v12, %v4458_v18  ;;  %v4712_v63 = vsel %vm2185_vm6, %v4648_v31, %v4202_v59  ;;  %v12245_v31 = vld [vmem:[#allocation93_spill] sm:$0xff] }
 0x56d   : > { %4419 = vrot.lane.b32.xlu0 %v12233_v16, %s6871_s10  ;;  %4479 = vrot.lane.b32.xlu1 %v12234_v51, %s6864_s16 }
 0x56e   : > { %6245 = vmatmul.mubr.msk.bf16.gmra.mrb[72].mxu0 %vm5045_vm2, %v4966_v62  ;;  %v12241_v62 = vld [vmem:[#allocation121_spill] sm:$0xff] }
 0x56f   : > { %v4204_v25 = vpop.permute.xlu0 %4203  ;;  %v4272_v3 = vpop.permute.xlu1 %4271 }
 0x570   : > { %v4777_v41 = vsel %vm4763_vm15, %v4712_v63, %v4272_v3  ;;  %v4714_v12 = vsel %vm2185_vm6, %v4650_v0, %v4204_v25 }
 0x571   : > { %4481 = vrot.lane.b32.xlu0 %v12235_v55, %s6864_s16  ;;  %4225 = vrot.lane.b32.xlu1 %v12232_v10, %s6862_s29 }
 0x573   : > { %v4274_v61 = vpop.permute.xlu0 %4273  ;;  %v4336_v26 = vpop.permute.xlu1 %4335 }
 0x574   : > { %v4841_v60 = vsel %vm2248_vm7, %v4777_v41, %v4336_v26  ;;  %v4779_v59 = vsel %vm4763_vm15, %v4714_v12, %v4274_v61  ;;  %v12243_v61 = vld [vmem:[#allocation29_spill] sm:$0xff] }
 0x575   : > { %4227 = vrot.lane.b32.xlu0 %v12233_v16, %s6862_s29  ;;  %4295 = vrot.lane.b32.xlu1 %v12234_v51, %s6870_s8 }
 0x577   : > { %v4338_v37 = vpop.permute.xlu0 %4337  ;;  %v4398_v36 = vpop.permute.xlu1 %4397 }
 0x578   : > { %v4905_v10 = vsel %vm4891_vm1, %v4841_v60, %v4398_v36  ;;  %v4843_v16 = vsel %vm2248_vm7, %v4779_v59, %v4338_v37  ;;  %v4525_v37 = vsel %vm4509_vm13, %v9487_v4, %v12245_v31  ;;  %v4527_v4 = vsel %vm4509_vm13, %v9501_v8, %v12246_v35  ;;  %v12255_v35 = vld [vmem:[#allocation165_spill] sm:$0xff] }
 0x579   : > { %4297 = vrot.lane.b32.xlu0 %v12235_v55, %s6870_s8  ;;  %4359 = vrot.lane.b32.xlu1 %v12239_v50, %s6863_s13  ;;  %v12242_v55 = vld [vmem:[#allocation34_spill] sm:$0xff]  ;;  %v4587_v36 = vsel %vm546_vm0, %v4525_v37, %v10097_v58  ;;  %v4589_v58 = vsel %vm546_vm0, %v4527_v4, %v10121_v30 }
 0x57a   : > { %v4652_v63 = vsel %vm4634_vm14, %v4587_v36, %v10268_v33  ;;  %v4654_v60 = vsel %vm4634_vm14, %v4589_v58, %v10290_v22  ;;  %v12247_v30 = vld [vmem:[#allocation150_spill] sm:$0xff] }
 0x57b   : > { %v4400_v28 = vpop.permute.xlu0 %4399  ;;  %v4460_v54 = vpop.permute.xlu1 %4459 }
 0x57c   : > { %v4968_v18 = vsel %vm2313_vm9, %v4905_v10, %v4460_v54  ;;  %v4907_v56 = vsel %vm4891_vm1, %v4843_v16, %v4400_v28 }
 0x57d   : > { %4361 = vrot.lane.b32.xlu0 %v9880_v32, %s6863_s13  ;;  %4421 = vrot.lane.b32.xlu1 %v12241_v62, %s6871_s10 }
 0x57e   : > { %6248 = vmatprep.mubr.msk.bf16.mxu0 %vm5045_vm2, %v4968_v18 }
 0x57f   : > { %v4462_v51 = vpop.permute.xlu0 %4461  ;;  %v4206_v3 = vpop.permute.xlu1 %4205 }
 0x580   : > { %v4970_v25 = vsel %vm2313_vm9, %v4907_v56, %v4462_v51  ;;  %v4716_v41 = vsel %vm2185_vm6, %v4652_v63, %v4206_v3  ;;  %v12248_v56 = vld [vmem:[#allocation58_spill] sm:$0xff]  ;;  %v12249_v51 = vld [vmem:[#allocation28_spill] sm:$0xff] }
 0x581   : > { %4423 = vrot.lane.b32.xlu0 %v12242_v55, %s6871_s10  ;;  %4483 = vrot.lane.b32.xlu1 %v12243_v61, %s6864_s16 }
 0x582   : > { %6249 = vmatmul.mubr.msk.bf16.gmra.mrb[76].mxu0 %vm5045_vm2, %v4970_v25 }
 0x583   : > { %v4208_v26 = vpop.permute.xlu0 %4207  ;;  %v4276_v49 = vpop.permute.xlu1 %4275 }
 0x584   : > { %v4781_v52 = vsel %vm4763_vm15, %v4716_v41, %v4276_v49  ;;  %v4718_v28 = vsel %vm2185_vm6, %v4654_v60, %v4208_v26  ;;  %v12251_v49 = vld [vmem:[#allocation123_spill] sm:$0xff]  ;;  %v12254_v41 = vld [vmem:[#allocation92_spill] sm:$0xff] }
 0x585   : > { %4485 = vrot.lane.b32.xlu0 %v12244_v40, %s6864_s16  ;;  %4229 = vrot.lane.b32.xlu1 %v12241_v62, %s6862_s29 }
 0x587   : > { %v4278_v42 = vpop.permute.xlu0 %4277  ;;  %v4340_v27 = vpop.permute.xlu1 %4339 }
 0x588   : > { %v4845_v33 = vsel %vm2248_vm7, %v4781_v52, %v4340_v27  ;;  %v4783_v12 = vsel %vm4763_vm15, %v4718_v28, %v4278_v42  ;;  %v12252_v42 = vld [vmem:[#allocation125_spill] sm:$0xff] }
 0x589   : > { %4231 = vrot.lane.b32.xlu0 %v12242_v55, %s6862_s29  ;;  %4299 = vrot.lane.b32.xlu1 %v12243_v61, %s6870_s8  ;;  %v12250_v55 = vld [vmem:[#allocation50_spill] sm:$0xff] }
 0x58b   : > { %v4342_v53 = vpop.permute.xlu0 %4341  ;;  %v4402_v39 = vpop.permute.xlu1 %4401 }
 0x58c   : > { %v4909_v0 = vsel %vm4891_vm1, %v4845_v33, %v4402_v39  ;;  %v4847_v18 = vsel %vm2248_vm7, %v4783_v12, %v4342_v53  ;;  %v12253_v53 = vld [vmem:[#allocation71_spill] sm:$0xff] }
 0x58d   : > { %4301 = vrot.lane.b32.xlu0 %v12244_v40, %s6870_s8  ;;  %4363 = vrot.lane.b32.xlu1 %v9917_v44, %s6863_s13  ;;  %v4529_v40 = vsel %vm4509_vm13, %v9521_v48, %v12251_v49  ;;  %v4531_v48 = vsel %vm4509_vm13, %v9535_v6, %v12253_v53 }
 0x58e   : > { %v4591_v27 = vsel %vm546_vm0, %v4529_v40, %v12252_v42  ;;  %v4593_v4 = vsel %vm546_vm0, %v4531_v48, %v12255_v35  ;;  %v12261_v42 = vld [vmem:[#allocation154_spill] sm:$0xff]  ;;  %v12263_v35 = vld [vmem:[#allocation157_spill] sm:$0xff] }
 0x58f   : > { %v4404_v10 = vpop.permute.xlu0 %4403  ;;  %v4464_v8 = vpop.permute.xlu1 %4463  ;;  %v4656_v31 = vsel %vm4634_vm14, %v4591_v27, %v10292_v34  ;;  %v4658_v52 = vsel %vm4634_vm14, %v4593_v4, %v10298_v17 }
 0x590   : > { %v4972_v54 = vsel %vm2313_vm9, %v4909_v0, %v4464_v8  ;;  %v4911_v22 = vsel %vm4891_vm1, %v4847_v18, %v4404_v10  ;;  %v12256_v8 = vld [vmem:[#allocation56_spill] sm:$0xff] }
 0x591   : > { %4365 = vrot.lane.b32.xlu0 %v9937_v20, %s6863_s13  ;;  %4425 = vrot.lane.b32.xlu1 %v12247_v30, %s6871_s10  ;;  %v12257_v18 = vld [vmem:[#allocation48_spill] sm:$0xff] }
 0x592   : > { %6252 = vmatprep.mubr.msk.bf16.mxu0 %vm5045_vm2, %v4972_v54 }
 0x593   : > { %v4466_v59 = vpop.permute.xlu0 %4465  ;;  %v4210_v62 = vpop.permute.xlu1 %4209 }
 0x594   : > { %v4974_v16 = vsel %vm2313_vm9, %v4911_v22, %v4466_v59  ;;  %v4720_v63 = vsel %vm2185_vm6, %v4656_v31, %v4210_v62  ;;  %v12258_v22 = vld [vmem:[#allocation51_spill] sm:$0xff] }
 0x595   : > { %4427 = vrot.lane.b32.xlu0 %v12248_v56, %s6871_s10  ;;  %4487 = vrot.lane.b32.xlu1 %v12249_v51, %s6864_s16 }
 0x596   : > { %6253 = vmatmul.mubr.msk.bf16.gmra.mrb[80].mxu0 %vm5045_vm2, %v4974_v16  ;;  %v12259_v16 = vld [vmem:[#allocation158_spill] sm:$0xff] }
 0x597   : > { %v4212_v3 = vpop.permute.xlu0 %4211  ;;  %v4280_v25 = vpop.permute.xlu1 %4279 }
 0x598   : > { %v4785_v39 = vsel %vm4763_vm15, %v4720_v63, %v4280_v25  ;;  %v4722_v60 = vsel %vm2185_vm6, %v4658_v52, %v4212_v3  ;;  %v12260_v3 = vld [vmem:[#allocation70_spill] sm:$0xff] }
 0x599   : > { %4489 = vrot.lane.b32.xlu0 %v12250_v55, %s6864_s16  ;;  %4233 = vrot.lane.b32.xlu1 %v12247_v30, %s6862_s29  ;;  %v4533_v25 = vsel %vm4509_vm13, %v12185_v7, %v12260_v3  ;;  %v4535_v7 = vsel %vm4509_vm13, %v12188_v38, %v12261_v42 }
 0x59b   : > { %v4282_v61 = vpop.permute.xlu0 %4281  ;;  %v4344_v26 = vpop.permute.xlu1 %4343 }
 0x59c   : > { %v4849_v34 = vsel %vm2248_vm7, %v4785_v39, %v4344_v26  ;;  %v4787_v10 = vsel %vm4763_vm15, %v4722_v60, %v4282_v61 }
 0x59d   : > { %4235 = vrot.lane.b32.xlu0 %v12248_v56, %s6862_s29  ;;  %4303 = vrot.lane.b32.xlu1 %v12249_v51, %s6870_s8 }
 0x59f   : > { %v4346_v37 = vpop.permute.xlu0 %4345  ;;  %v4406_v36 = vpop.permute.xlu1 %4405 }
 0x5a0   : > { %v4913_v58 = vsel %vm4891_vm1, %v4849_v34, %v4406_v36  ;;  %v4851_v28 = vsel %vm2248_vm7, %v4787_v10, %v4346_v37  ;;  %v12266_v10 = vld [vmem:[#allocation163_spill] sm:$0xff] }
 0x5a1   : > { %4305 = vrot.lane.b32.xlu0 %v12250_v55, %s6870_s8  ;;  %4367 = vrot.lane.b32.xlu1 %v12254_v41, %s6863_s13  ;;  %v4595_v55 = vsel %vm546_vm0, %v4533_v25, %v10147_v5  ;;  %v12262_v5 = vld [vmem:[#allocation41_spill] sm:$0xff] }
 0x5a2   : > { %v4660_v61 = vsel %vm4634_vm14, %v4595_v55, %v10300_v47  ;;  %v4597_v31 = vsel %vm546_vm0, %v4535_v7, %v12262_v5  ;;  %v12270_v7 = vld [vmem:[#allocation161_spill] sm:$0xff] }
 0x5a3   : > { %v4408_v33 = vpop.permute.xlu0 %4407  ;;  %v4468_v6 = vpop.permute.xlu1 %4467  ;;  %v4662_v37 = vsel %vm4634_vm14, %v4597_v31, %v10322_v45 }
 0x5a4   : > { %v4976_v0 = vsel %vm2313_vm9, %v4913_v58, %v4468_v6  ;;  %v4915_v17 = vsel %vm4891_vm1, %v4851_v28, %v4408_v33  ;;  %v12264_v33 = vld [vmem:[#allocation122_spill] sm:$0xff] }
 0x5a5   : > { %4369 = vrot.lane.b32.xlu0 %v10002_v13, %s6863_s13  ;;  %4429 = vrot.lane.b32.xlu1 %v12256_v8, %s6871_s10  ;;  %v12265_v6 = vld [vmem:[#allocation102_spill] sm:$0xff] }
 0x5a6   : > { %6256 = vmatprep.mubr.msk.bf16.mxu0 %vm5045_vm2, %v4976_v0 }
 0x5a7   : > { %v4470_v54 = vpop.permute.xlu0 %4469  ;;  %v4214_v12 = vpop.permute.xlu1 %4213 }
 0x5a8   : > { %v4978_v30 = vsel %vm2313_vm9, %v4915_v17, %v4470_v54  ;;  %v4724_v40 = vsel %vm2185_vm6, %v4660_v61, %v4214_v12  ;;  %v12267_v17 = vld [vmem:[#allocation110_spill] sm:$0xff] }
 0x5a9   : > { %4431 = vrot.lane.b32.xlu0 %v12257_v18, %s6871_s10  ;;  %4491 = vrot.lane.b32.xlu1 %v12258_v22, %s6864_s16  ;;  %v4537_v54 = vsel %vm4509_vm13, %v12201_v14, %v12267_v17 }
 0x5aa   : > { %6257 = vmatmul.mubr.msk.bf16.gmra.mrb[84].mxu0 %vm5045_vm2, %v4978_v30  ;;  %v4599_v12 = vsel %vm546_vm0, %v4537_v54, %v10164_v2 }
 0x5ab   : > { %v4216_v59 = vpop.permute.xlu0 %4215  ;;  %v4284_v62 = vpop.permute.xlu1 %4283  ;;  %v4664_v30 = vsel %vm4634_vm14, %v4599_v12, %v10324_v23  ;;  %v12281_v12 = vld [vmem:[#allocation126_spill] sm:$0xff] }
 0x5ac   : > { %v4789_v27 = vsel %vm4763_vm15, %v4724_v40, %v4284_v62  ;;  %v4726_v53 = vsel %vm2185_vm6, %v4662_v37, %v4216_v59  ;;  %v12268_v62 = vld [vmem:[#allocation77_spill] sm:$0xff]  ;;  %v12273_v37 = vld [vmem:[#allocation44_spill] sm:$0xff] }
 0x5ad   : > { %4493 = vrot.lane.b32.xlu0 %v12259_v16, %s6864_s16  ;;  %4237 = vrot.lane.b32.xlu1 %v12256_v8, %s6862_s29  ;;  %v4539_v14 = vsel %vm4509_vm13, %v9638_v15, %v12268_v62  ;;  %v12283_v62 = vld [vmem:[#allocation164_spill] sm:$0xff] }
 0x5ae   : > { %v4601_v2 = vsel %vm546_vm0, %v4539_v14, %v10182_v9  ;;  %v12269_v9 = vld [vmem:[#allocation60_spill] sm:$0xff] }
 0x5af   : > { %v4286_v56 = vpop.permute.xlu0 %4285  ;;  %v4348_v51 = vpop.permute.xlu1 %4347 }
 0x5b0   : > { %v4853_v47 = vsel %vm2248_vm7, %v4789_v27, %v4348_v51  ;;  %v4791_v39 = vsel %vm4763_vm15, %v4726_v53, %v4286_v56  ;;  %v4666_v56 = vsel %vm4634_vm14, %v4601_v2, %v10330_v1  ;;  %v12271_v27 = vld [vmem:[#allocation76_spill] sm:$0xff]  ;;  %v12274_v53 = vld [vmem:[#allocation31_spill] sm:$0xff] }
 0x5b1   : > { %4239 = vrot.lane.b32.xlu0 %v12257_v18, %s6862_s29  ;;  %4307 = vrot.lane.b32.xlu1 %v12258_v22, %s6870_s8  ;;  %v4181_v2 = vshrl.u32 %v12274_v53, 16 }
 0x5b3   : > { %v4350_v26 = vpop.permute.xlu0 %4349  ;;  %v4410_v49 = vpop.permute.xlu1 %4409 }
 0x5b4   : > { %v4917_v36 = vsel %vm4891_vm1, %v4853_v47, %v4410_v49  ;;  %v4855_v4 = vsel %vm2248_vm7, %v4791_v39, %v4350_v26  ;;  %v12272_v47 = vld [vmem:[#allocation113_spill] sm:$0xff]  ;;  %v12275_v39 = vld [vmem:[#allocation32_spill] sm:$0xff] }
 0x5b5   : > { %4309 = vrot.lane.b32.xlu0 %v12259_v16, %s6870_s8  ;;  %4371 = vrot.lane.b32.xlu1 %v10047_v24, %s6863_s13 }
 0x5b7   : > { %v4412_v63 = vpop.permute.xlu0 %4411  ;;  %v4472_v38 = vpop.permute.xlu1 %4471 }
 0x5b8   : > { %v4980_v48 = vsel %vm2313_vm9, %v4917_v36, %v4472_v38  ;;  %v4919_v45 = vsel %vm4891_vm1, %v4855_v4, %v4412_v63  ;;  %v4172_v36 = vshll.u32 %v12273_v37, 16 }
 0x5b9   : > { %4373 = vrot.lane.b32.xlu0 %v10067_v57, %s6863_s13  ;;  %4433 = vrot.lane.b32.xlu1 %v12263_v35, %s6871_s10 }
 0x5ba   : > { %6260 = vmatprep.mubr.msk.bf16.mxu0 %vm5045_vm2, %v4980_v48  ;;  %v4177_v48 = vshll.u32 %v12274_v53, 16 }
 0x5bb   : > { %v4474_v34 = vpop.permute.xlu0 %4473  ;;  %v4218_v52 = vpop.permute.xlu1 %4217 }
 0x5bc   : > { %v4982_v58 = vsel %vm2313_vm9, %v4919_v45, %v4474_v34  ;;  %v4728_v59 = vsel %vm2185_vm6, %v4664_v30, %v4218_v52  ;;  %v4174_v45 = vrot.slane %v4172_v36, 1  ;;  %v12277_v34 = vld [vmem:[#allocation26_spill] sm:$0xff]  ;;  %v4179_v54 = vrot.slane %v4177_v48, 1  ;;  %v12282_v30 = vld [vmem:[#allocation83_spill] sm:$0xff] }
 0x5bd   : > { %4435 = vrot.lane.b32.xlu0 %v12264_v33, %s6871_s10  ;;  %4495 = vrot.lane.b32.xlu1 %v12265_v6, %s6864_s16 }
 0x5be   : > { %6261 = vmatmul.mubr.msk.bf16.gmra.mrb[88].mxu0 %vm5045_vm2, %v4982_v58  ;;  %v12278_v58 = vld [vmem:[#allocation174_spill] sm:$0xff] }
 0x5bf   : > { %v4220_v60 = vpop.permute.xlu0 %4219  ;;  %v4288_v0 = vpop.permute.xlu1 %4287 }
 0x5c0   : > { %v4793_v16 = vsel %vm4763_vm15, %v4728_v59, %v4288_v0  ;;  %v4730_v25 = vsel %vm2185_vm6, %v4666_v56, %v4220_v60  ;;  %v4170_v0 = vshrl.u32 %v12273_v37, 16  ;;  %v12284_v56 = vld [vmem:[#allocation134_spill] sm:$0xff] }
 0x5c1   : > { %4497 = vrot.lane.b32.xlu0 %v12266_v10, %s6864_s16  ;;  %4241 = vrot.lane.b32.xlu1 %v12263_v35, %s6862_s29  ;;  %v12276_v35 = vld [vmem:[#allocation79_spill] sm:$0xff] }
 0x5c2   : > { %v4541_v4 = vsel %vm4509_vm13, %v12276_v35, %v12275_v39  ;;  %v4175_v59 = vor.u32 %v4174_v45, %v4170_v0  ;;  %v12285_v39 = vld [vmem:[#allocation96_spill] sm:$0xff] }
 0x5c3   : > { %v4290_v8 = vpop.permute.xlu0 %4289  ;;  %v4352_v28 = vpop.permute.xlu1 %4351  ;;  %v4603_v52 = vsel %vm546_vm0, %v4541_v4, %v12277_v34  ;;  %v4545_v35 = vsel %vm4509_vm13, %v12220_v46, %v12285_v39  ;;  %v12286_v34 = vld [vmem:[#allocation172_spill] sm:$0xff] }
 0x5c4   : > { %v4857_v23 = vsel %vm2248_vm7, %v4793_v16, %v4352_v28  ;;  %v4795_v61 = vsel %vm4763_vm15, %v4730_v25, %v4290_v8 }
 0x5c5   : > { %4243 = vrot.lane.b32.xlu0 %v12264_v33, %s6862_s29  ;;  %4311 = vrot.lane.b32.xlu1 %v12265_v6, %s6870_s8  ;;  %v4668_v33 = vsel %vm4634_vm14, %v4603_v52, %v12278_v58  ;;  %v4607_v52 = vsel %vm546_vm0, %v4545_v35, %v12286_v34  ;;  %v12287_v58 = vld [vmem:[#allocation53_spill] sm:$0xff] }
 0x5c7   : > { %v4354_v18 = vpop.permute.xlu0 %4353  ;;  %v4414_v22 = vpop.permute.xlu1 %4413 }
 0x5c8   : > { %v4921_v51 = vsel %vm4891_vm1, %v4857_v23, %v4414_v22  ;;  %v4859_v26 = vsel %vm2248_vm7, %v4795_v61, %v4354_v18  ;;  %v4543_v18 = vsel %vm4509_vm13, %v12282_v30, %v12281_v12 }
 0x5c9   : > { %4313 = vrot.lane.b32.xlu0 %v12266_v10, %s6870_s8  ;;  %4375 = vrot.lane.b32.xlu1 %v10114_v21, %s6863_s13  ;;  %v12279_v10 = vld [vmem:[#allocation170_spill] sm:$0xff]  ;;  %v4605_v14 = vsel %vm546_vm0, %v4543_v18, %v12283_v62 }
 0x5ca   : > { %v3574_v28 = vsel %vm7229_vm3, %v12279_v10, 0 }
 0x5cb   : > { %v4416_v3 = vpop.permute.xlu0 %4415  ;;  %v4476_v15 = vpop.permute.xlu1 %4475  ;;  %v4185_v23 = vshll.u32 %v3574_v28, 16 }
 0x5cc   : > { %v4984_v55 = vsel %vm2313_vm9, %v4921_v51, %v4476_v15  ;;  %v4923_v1 = vsel %vm4891_vm1, %v4859_v26, %v4416_v3  ;;  %v4670_v51 = vsel %vm4634_vm14, %v4605_v14, %v12284_v56  ;;  %v4180_v26 = vsel %vm1238_vm4, %v4175_v59, %v4179_v54 }
 0x5cd   : > { %4377 = vrot.lane.b32.xlu0 %v10134_v11, %s6863_s13  ;;  %4437 = vrot.lane.b32.xlu1 %v12269_v9, %s6871_s10 }
 0x5ce   : > { %6264 = vmatprep.mubr.msk.bf16.mxu0 %vm5045_vm2, %v4984_v55  ;;  %v4255_v55 = vrot.slane %v12274_v53, 1 }
 0x5cf   : > { %v4478_v49 = vpop.permute.xlu0 %4477  ;;  %v4222_v40 = vpop.permute.xlu1 %4221 }
 0x5d0   : > { %v4986_v42 = vsel %vm2313_vm9, %v4923_v1, %v4478_v49  ;;  %v4732_v17 = vsel %vm2185_vm6, %v4668_v33, %v4222_v40  ;;  %v4183_v1 = vor.u32 %v4181_v2, %v4179_v54  ;;  %v4547_v33 = vsel %vm4509_vm13, %v12221_v29, %v12287_v58  ;;  %v12291_v29 = vld [vmem:[#allocation95_spill] sm:$0xff]  ;;  %v12292_v2 = vld [vmem:[#allocation20_spill] sm:$0xff] }
 0x5d1   : > { %4439 = vrot.lane.b32.xlu0 %v12270_v7, %s6871_s10  ;;  %4499 = vrot.lane.b32.xlu1 %v12271_v27, %s6864_s16 }
 0x5d2   : > { %6265 = vmatmul.mubr.msk.bf16.gmra.mrb[92].mxu0 %vm5045_vm2, %v4986_v42  ;;  %v4187_v42 = vrot.slane %v4185_v23, 1 }
 0x5d3   : > { %v4224_v5 = vpop.permute.xlu0 %4223  ;;  %v4292_v31 = vpop.permute.xlu1 %4291 }
 0x5d4   : > { %v4797_v22 = vsel %vm4763_vm15, %v4732_v17, %v4292_v31  ;;  %v4734_v61 = vsel %vm2185_vm6, %v4670_v51, %v4224_v5  ;;  %v4188_v36 = vsel %vm1238_vm4, %v4183_v1, %v4187_v42  ;;  %v12290_v17 = vld [vmem:[#allocation131_spill] sm:$0xff]  ;;  %v12295_v42 = vld [vmem:[#allocation176_spill] sm:$0xff] }
 0x5d5   : > { %4501 = vrot.lane.b32.xlu0 %v12272_v47, %s6864_s16  ;;  %4245 = vrot.lane.b32.xlu1 %v12269_v9, %s6862_s29  ;;  %v4609_v54 = vsel %vm546_vm0, %v4547_v33, %v12290_v17 }
 0x5d6   : > { %v4674_v30 = vsel %vm4634_vm14, %v4609_v54, %v12291_v29  ;;  %v12300_v54 = vld [vmem:[#allocation129_spill] sm:$0xff]  ;;  %v12301_v29 = vld [vmem:[#allocation111_spill] sm:$0xff] }
 0x5d7   : > { %v4294_v63 = vpop.permute.xlu0 %4293  ;;  %v4356_v38 = vpop.permute.xlu1 %4355 }
 0x5d8   : > { %v4861_v16 = vsel %vm2248_vm7, %v4797_v22, %v4356_v38  ;;  %v4799_v49 = vsel %vm4763_vm15, %v4734_v61, %v4294_v63  ;;  %v4257_v38 = vrot.slane %v3574_v28, 1  ;;  %v12289_v28 = vmov 0   ;;  %v12293_v61 = vld [vmem:[#allocation133_spill] sm:$0xff] }
 0x5d9   : > { %4247 = vrot.lane.b32.xlu0 %v12270_v7, %s6862_s29  ;;  %4315 = vrot.lane.b32.xlu1 %v12271_v27, %s6870_s8  ;;  %v4254_v7 = vrot.slane %v12273_v37, 1 }
 0x5db   : > { %v4358_v6 = vpop.permute.xlu0 %4357  ;;  %v4418_v60 = vpop.permute.xlu1 %4417  ;;  %v4256_v63 = vsel %vm1640_vm5, %v4254_v7, %v4255_v55  ;;  %v4551_v7 = vsel %vm4509_vm13, %v12231_v19, %v12295_v42 }
 0x5dc   : > { %v4925_v3 = vsel %vm4891_vm1, %v4861_v16, %v4418_v60  ;;  %v4863_v40 = vsel %vm2248_vm7, %v4799_v49, %v4358_v6  ;;  %v12288_v6 = vld [vmem:[#allocation177_spill] sm:$0xff]  ;;  %v12294_v49 = vld [vmem:[#allocation99_spill] sm:$0xff] }
 0x5dd   : > { %4317 = vrot.lane.b32.xlu0 %v12272_v47, %s6870_s8  ;;  %4379 = vrot.lane.b32.xlu1 %v12273_v37, %s6863_s13  ;;  %v4258_v37 = vsel %vm1640_vm5, %v4255_v55, %v4257_v38  ;;  %v4672_v60 = vsel %vm4634_vm14, %v4607_v52, %v12288_v6  ;;  %v12297_v38 = vld [vmem:[#allocation168_spill] sm:$0xff] }
 0x5df   : > { %v4420_v15 = vpop.permute.xlu0 %4419  ;;  %v4480_v25 = vpop.permute.xlu1 %4479 }
 0x5e0   : > { %v4988_v9 = vsel %vm2313_vm9, %v4925_v3, %v4480_v25  ;;  %v4927_v27 = vsel %vm4891_vm1, %v4863_v40, %v4420_v15 }
 0x5e1   : > { %4381 = vrot.lane.b32.xlu0 %v12274_v53, %s6863_s13  ;;  %4441 = vrot.lane.b32.xlu1 %v4180_v26, %s6871_s10 }
 0x5e2   : > { %6268 = vmatprep.mubr.msk.bf16.mxu0 %vm5045_vm2, %v4988_v9  ;;  %v4549_v9 = vsel %vm4509_vm13, %v12229_v43, %v12293_v61  ;;  %v4613_v43 = vsel %vm546_vm0, %v4551_v7, %v12297_v38  ;;  %v10952_v61 = vld [vmem:[#allocation7 + $0x3] ss:$0 sm:$0xff] }
 0x5e3   : > { %v4482_v5 = vpop.permute.xlu0 %4481  ;;  %v4226_v31 = vpop.permute.xlu1 %4225  ;;  %v4611_v40 = vsel %vm546_vm0, %v4549_v9, %v12294_v49 }
 0x5e4   : > { %v4990_v47 = vsel %vm2313_vm9, %v4927_v27, %v4482_v5  ;;  %v4736_v46 = vsel %vm2185_vm6, %v4672_v60, %v4226_v31  ;;  %v12296_v27 = vld [vmem:[#allocation139_spill] sm:$0xff] }
 0x5e5   : > { %4443 = vrot.lane.b32.xlu0 %v4188_v36, %s6871_s10  ;;  %4503 = vrot.lane.b32.xlu1 %v4256_v63, %s6864_s16  ;;  %v4676_v5 = vsel %vm4634_vm14, %v4611_v40, %v12296_v27 }
 0x5e6   : > { %6269 = vmatmul.mubr.msk.bf16.gmra.mrb[96].mxu0 %vm5045_vm2, %v4990_v47 }
 0x5e7   : > { %v4228_v53 = vpop.permute.xlu0 %4227  ;;  %v4296_v48 = vpop.permute.xlu1 %4295 }
 0x5e8   : > { %v4801_v8 = vsel %vm4763_vm15, %v4736_v46, %v4296_v48  ;;  %v4738_v62 = vsel %vm2185_vm6, %v4674_v30, %v4228_v53  ;;  %v12298_v48 = vld [vmem:[#allocation101_spill] sm:$0xff]  ;;  %v12299_v46 = vld [vmem:[#allocation171_spill] sm:$0xff]  ;;  %v4555_v30 = vsel %vm4509_vm13, %v9880_v32, %v12301_v29 }
 0x5e9   : > { %4505 = vrot.lane.b32.xlu0 %v4258_v37, %s6864_s16  ;;  %4249 = vrot.lane.b32.xlu1 %v4180_v26, %s6862_s29 }
 0x5eb   : > { %v4298_v4 = vpop.permute.xlu0 %4297  ;;  %v4360_v45 = vpop.permute.xlu1 %4359 }
 0x5ec   : > { %v4865_v12 = vsel %vm2248_vm7, %v4801_v8, %v4360_v45  ;;  %v4803_v16 = vsel %vm4763_vm15, %v4738_v62, %v4298_v4  ;;  %v4553_v8 = vsel %vm4509_vm13, %v12239_v50, %v12299_v46 }
 0x5ed   : > { %4251 = vrot.lane.b32.xlu0 %v4188_v36, %s6862_s29  ;;  %4319 = vrot.lane.b32.xlu1 %v4256_v63, %s6870_s8  ;;  %s5800_s29 = scalar_lea.sflag [#allocation4], %s7161_s2 }
 0x5ef   : > { %v4362_v0 = vpop.permute.xlu0 %4361  ;;  %v4422_v10 = vpop.permute.xlu1 %4421 }
 0x5f0   : > { %v4929_v18 = vsel %vm4891_vm1, %v4865_v12, %v4422_v10  ;;  %v4867_v23 = vsel %vm2248_vm7, %v4803_v16, %v4362_v0  ;;  %v4615_v12 = vsel %vm546_vm0, %v4553_v8, %v12300_v54  ;;  %v12308_v8 = vld [vmem:[#allocation107_spill] sm:$0xff] }
 0x5f1   : > { %4321 = vrot.lane.b32.xlu0 %v4258_v37, %s6870_s8  ;;  %4383 = vrot.lane.b32.xlu1 %v12289_v28, %s6863_s13  ;;  %v4678_v37 = vsel %vm4634_vm14, %v4613_v43, %v12298_v48  ;;  %s6768_s13 = scalar_lea.vmem %s11309_s0, 512 }
 0x5f2   : > { %p6769_p1 = scmp.ne.s32.totalorder %s11309_s0, %s6768_s13 }
 0x5f3   : > { %v4424_v22 = vpop.permute.xlu0 %4423  ;;  %v4484_v59 = vpop.permute.xlu1 %4483 }
 0x5f4   : > { %v4992_v14 = vsel %vm2313_vm9, %v4929_v18, %v4484_v59  ;;  %v4931_v56 = vsel %vm4891_vm1, %v4867_v23, %v4424_v22  ;;  %v12302_v18 = vld [vmem:[#allocation140_spill] sm:$0xff]  ;;  %p6770_p13 = pnand %p6769_p1, %p12393_p3 }
 0x5f5   : > { %4445 = vrot.lane.b32.xlu0 %v12292_v2, %s6871_s10  ;;  %6272 = vmatprep.mubr.msk.bf16.mxu0 %vm5045_vm2, %v4992_v14  ;;  %v4680_v22 = vsel %vm4634_vm14, %v4615_v12, %v12302_v18 }
 0x5f6   : > { %4507 = vrot.lane.b32.xlu1 %v12292_v2, %s6864_s16  ;;  %v12303_v2 = vld [vmem:[#allocation106_spill] sm:$0xff]  ;;  %p6771_p0 = pneg %p6770_p13  ;;  %s6872_s16 = smov [#allocation13]  }
 0x5f7   : > { %v4486_v51 = vpop.permute.xlu0 %4485  ;;  %v4230_v3 = vpop.permute.xlu1 %4229  ;;  %v4617_v50 = vsel %vm546_vm0, %v4555_v30, %v12303_v2  ;;  %v12309_v30 = vld [vmem:[#allocation114_spill] sm:$0xff]  ;;  %s6772_s27 = sshll.u32 %s6872_s16, 4  ;;  %s6773_s27 = int_to_ptr.vmem [resolvable:$false] %s6772_s27 }
 0x5f8   : > { %v4994_v15 = vsel %vm2313_vm9, %v4931_v56, %v4486_v51  ;;  %v4740_v36 = vsel %vm2185_vm6, %v4676_v5, %v4230_v3  ;;  %v12304_v56 = vld [vmem:[#allocation189_spill] sm:$0xff]  ;;  %v10961_v5 = vld [vmem:[#allocation7] ss:$0 sm:$0xff]  ;;  %v4557_v18 = vsel %vm4509_vm13, %v9917_v44, %v12309_v30  ;;  %s6774_s25 = scalar_lea.vmem %s6773_s27, 1024  ;;  %p6775_p10 = scmp.lt.s32.totalorder %s11309_s0, %s6773_s27 }
 0x5f9   : > { %6273 = vmatmul.mubr.msk.bf16.gmra.mrb[100].mxu0 %vm5045_vm2, %v4994_v15  ;;  %v4682_v51 = vsel %vm4634_vm14, %v4617_v50, %v12304_v56  ;;  %p6776_p11 = scmp.lt.s32.totalorder %s6774_s25, %s6768_s13 }
 0x5fb   : > { %v4232_v25 = vpop.permute.xlu0 %4231  ;;  %v4300_v55 = vpop.permute.xlu1 %4299  ;;  %p6777_p9 = por %p6776_p11, %p6775_p10 }
 0x5fc   : > { %v4805_v63 = vsel %vm4763_vm15, %v4740_v36, %v4300_v55  ;;  %v4742_v4 = vsel %vm2185_vm6, %v4678_v37, %v4232_v25 }
 0x5fd   : > { %p6778_p8 = pnand %p6777_p9, %p6771_p0 }
 0x5ff   : > { %v4302_v26 = vpop.permute.xlu0 %4301  ;;  %v4364_v1 = vpop.permute.xlu1 %4363 }
 0x600   : > { %v4869_v53 = vsel %vm2248_vm7, %v4805_v63, %v4364_v1  ;;  %v4807_v34 = vsel %vm4763_vm15, %v4742_v4, %v4302_v26  ;;  %v10957_v1 = vld [vmem:[#allocation7 + $0x4] ss:$0 sm:$0xff] }
 0x603   : > { %v4366_v31 = vpop.permute.xlu0 %4365  ;;  %v4426_v47 = vpop.permute.xlu1 %4425 }
 0x604   : > { %v4933_v39 = vsel %vm4891_vm1, %v4869_v53, %v4426_v47  ;;  %v4871_v52 = vsel %vm2248_vm7, %v4807_v34, %v4366_v31  ;;  %v12306_v34 = vld [vmem:[#allocation104_spill] sm:$0xff] }
 0x607   : > { %v4428_v19 = vpop.permute.xlu0 %4427  ;;  %v4488_v35 = vpop.permute.xlu1 %4487 }
 0x608   : > { %v4996_v45 = vsel %vm2313_vm9, %v4933_v39, %v4488_v35  ;;  %v4935_v58 = vsel %vm4891_vm1, %v4871_v52, %v4428_v19  ;;  %v12305_v39 = vld [vmem:[#allocation103_spill] sm:$0xff]  ;;  %v678_v52 = vadd.f32 %v10961_v5, %v12306_v34 }
 0x609   : > { %6276 = vmatprep.mubr.msk.bf16.mxu0 %vm5045_vm2, %v4996_v45  ;;  %v686_v19 = vadd.f32 %v12305_v39, %v10961_v5 }
 0x60b   : > { %v4490_v33 = vpop.permute.xlu0 %4489  ;;  %v4234_v6 = vpop.permute.xlu1 %4233 }
 0x60c   : > { %v4998_v60 = vsel %vm2313_vm9, %v4935_v58, %v4490_v33  ;;  %v4744_v14 = vsel %vm2185_vm6, %v4680_v22, %v4234_v6 }
 0x60d   : > { %6277 = vmatmul.mubr.msk.bf16.gmra.mrb[104].mxu0 %vm5045_vm2, %v4998_v60  ;;  %v12307_v60 = vld [vmem:[#allocation105_spill] sm:$0xff] }
 0x60f   : > { %v4236_v0 = vpop.permute.xlu0 %4235  ;;  %v4304_v10 = vpop.permute.xlu1 %4303 }
 0x610   : > { %v4809_v16 = vsel %vm4763_vm15, %v4744_v14, %v4304_v10  ;;  %v4746_v25 = vsel %vm2185_vm6, %v4682_v51, %v4236_v0  ;;  %v689_v0 = vadd.f32 %v12307_v60, %v10961_v5 }
 0x613   : > { %v4306_v28 = vpop.permute.xlu0 %4305  ;;  %v4368_v17 = vpop.permute.xlu1 %4367 }
 0x614   : > { %v4873_v23 = vsel %vm2248_vm7, %v4809_v16, %v4368_v17  ;;  %v4811_v9 = vsel %vm4763_vm15, %v4746_v25, %v4306_v28  ;;  %v681_v28 = vadd.f32 %v10961_v5, %v12308_v8  ;;  %v12311_v16 = vld [vmem:[#allocation178_spill] sm:$0xff] }
 0x615   : > { %v4619_v2 = vsel %vm546_vm0, %v4557_v18, %v12311_v16 }
 0x617   : > { %v4370_v59 = vpop.permute.xlu0 %4369  ;;  %v4430_v62 = vpop.permute.xlu1 %4429 }
 0x618   : > { %v4937_v3 = vsel %vm4891_vm1, %v4873_v23, %v4430_v62  ;;  %v4875_v26 = vsel %vm2248_vm7, %v4811_v9, %v4370_v59  ;;  %v12310_v62 = vld [vmem:[#allocation64_spill] sm:$0xff]  ;;  %v12312_v23 = vld [vmem:[#allocation109_spill] sm:$0xff] }
 0x619   : > { %v4559_v14 = vsel %vm4509_vm13, %v9937_v20, %v12310_v62  ;;  %v4684_v56 = vsel %vm4634_vm14, %v4619_v2, %v12312_v23  ;;  %v12319_v2 = vld [vmem:[#allocation183_spill] sm:$0xff]  ;;  %v12320_v23 = vld [vmem:[#allocation90_spill] sm:$0xff] }
 0x61b   : > { %v4432_v32 = vpop.permute.xlu0 %4431  ;;  %v4492_v15 = vpop.permute.xlu1 %4491 }
 0x61c   : > { %v5000_v55 = vsel %vm2313_vm9, %v4937_v3, %v4492_v15  ;;  %v4939_v40 = vsel %vm4891_vm1, %v4875_v26, %v4432_v32  ;;  %v12313_v32 = vld [vmem:[#allocation135_spill] sm:$0xff] }
 0x61d   : > { %6280 = vmatprep.mubr.msk.bf16.mxu0 %vm5045_vm2, %v5000_v55  ;;  %v4621_v44 = vsel %vm546_vm0, %v4559_v14, %v12313_v32  ;;  %v12314_v55 = vld [vmem:[#allocation75_spill] sm:$0xff] }
 0x61e   : > { %v6238_v49 = vpop.f32.mrb[64].mxu0  ;;  %v4686_v20 = vsel %vm4634_vm14, %v4621_v44, %v12314_v55  ;;  %v12322_v44 = vld [vmem:[#allocation84_spill] sm:$0xff] }
 0x61f   : > { %v5409_v42 = vmul.f32 %v6238_v49, %v10952_v61  ;;  %v5148_v7 = vpop.f32.mrb[65].mxu0  ;;  %v4494_v27 = vpop.permute.xlu0 %4493 }
 0x620   : > { %v5407_v31 = vmul.f32 %v10952_v61, %v5148_v7  ;;  %v5002_v47 = vsel %vm2313_vm9, %v4939_v40, %v4494_v27  ;;  %v4238_v36 = vpop.permute.xlu1 %4237  ;;  %v6239_v63 = vpop.f32.mrb[66].mxu0 }
 0x621   : > { %v5477_v38 = vadd.f32 %v10957_v1, %v5409_v42  ;;  %v5410_v43 = vmul.f32 %v6239_v63, %v10952_v61  ;;  %v5151_v53 = vpop.f32.mrb[67].mxu0  ;;  %6281 = vmatmul.mubr.msk.bf16.gmra.mrb[108].mxu0 %vm5045_vm2, %v5002_v47  ;;  %v4748_v3 = vsel %vm2185_vm6, %v4684_v56, %v4238_v36  ;;  %v4563_v56 = vsel %vm4509_vm13, %v10002_v13, %v12320_v23  ;;  %v12329_v23 = vld [vmem:[#allocation136_spill] sm:$0xff] }
 0x622   : > { %v5475_v48 = vadd.f32 %v10957_v1, %v5407_v31  ;;  %v5408_v37 = vmul.f32 %v10952_v61, %v5151_v53 }
 0x623   : > { %v5541_v35 = vmax.f32 %v5477_v38, 0.0  ;;  %v5478_v4 = vadd.f32 %v10957_v1, %v5410_v43  ;;  %v4240_v45 = vpop.permute.xlu0 %4239 }
 0x624   : > { %v5539_v58 = vmax.f32 %v5475_v48, 0.0  ;;  %v5476_v33 = vadd.f32 %v10957_v1, %v5408_v37  ;;  %v4308_v6 = vpop.permute.xlu1 %4307  ;;  %v4750_v42 = vsel %vm2185_vm6, %v4686_v20, %v4240_v45 }
 0x625   : > { %v5605_v10 = vadd.f32 %v5541_v35, %v686_v19  ;;  %v5542_v46 = vmax.f32 %v5478_v4, 0.0  ;;  %v4813_v15 = vsel %vm4763_vm15, %v4748_v3, %v4308_v6  ;;  %v12315_v19 = vld [vmem:[#allocation115_spill] sm:$0xff] }
 0x626   : > { %v5603_v17 = vadd.f32 %v5539_v58, %v678_v52  ;;  %v5540_v54 = vmax.f32 %v5476_v33, 0.0  ;;  %v702_v35 = vadd.f32 %v12315_v19, %v10961_v5  ;;  %v12316_v58 = vld [vmem:[#allocation117_spill] sm:$0xff] }
 0x627   : > { %v5606_v12 = vadd.f32 %v5542_v46, %v689_v0  ;;  %v4310_v29 = vpop.permute.xlu0 %4309  ;;  %v694_v33 = vadd.f32 %v10961_v5, %v12316_v58  ;;  %v12317_v46 = vld [vmem:[#allocation118_spill] sm:$0xff] }
 0x628   : > { %v5604_v22 = vadd.f32 %v5540_v54, %v681_v28  ;;  %v4372_v59 = vpop.permute.xlu1 %4371  ;;  %5667 = vxpose.xlu0.b32.start [1/16] (narrow) %v5603_v17, 8  ;;  %v4815_v36 = vsel %vm4763_vm15, %v4750_v42, %v4310_v29  ;;  %v705_v8 = vadd.f32 %v12317_v46, %v10961_v5  ;;  %v12318_v54 = vld [vmem:[#allocation35_spill] sm:$0xff] }
 0x629   : > { %v4877_v9 = vsel %vm2248_vm7, %v4813_v15, %v4372_v59  ;;  %v697_v29 = vadd.f32 %v10961_v5, %v12318_v54 }
 0x62b   : > { %v4374_v50 = vpop.permute.xlu0 %4373 }
 0x62c   : > { %v4434_v51 = vpop.permute.xlu1 %4433  ;;  %5668 = vxpose.xlu0.b32.cont [2/16] (narrow) %v5604_v22, 8  ;;  %v4879_v48 = vsel %vm2248_vm7, %v4815_v36, %v4374_v50 }
 0x62d   : > { %v4941_v7 = vsel %vm4891_vm1, %v4877_v9, %v4434_v51  ;;  %v12321_v51 = vld [vmem:[#allocation137_spill] sm:$0xff]  ;;  %v12323_v9 = vld [vmem:[#allocation46_spill] sm:$0xff] }
 0x62e   : > { %v6242_v25 = vpop.f32.mrb[68].mxu0 }
 0x62f   : > { %v5413_v26 = vmul.f32 %v6242_v25, %v10952_v61  ;;  %v5164_v49 = vpop.f32.mrb[69].mxu0  ;;  %v4436_v40 = vpop.permute.xlu0 %4435 }
 0x630   : > { %v5411_v27 = vmul.f32 %v10952_v61, %v5164_v49  ;;  %v4496_v31 = vpop.permute.xlu1 %4495  ;;  %v6243_v47 = vpop.f32.mrb[70].mxu0  ;;  %5669 = vxpose.xlu0.b32.cont [3/16] (narrow) %v5605_v10, 8  ;;  %v4943_v45 = vsel %vm4891_vm1, %v4879_v48, %v4436_v40  ;;  %v12324_v40 = vld [vmem:[#allocation80_spill] sm:$0xff] }
 0x631   : > { %v5481_v63 = vadd.f32 %v10957_v1, %v5413_v26  ;;  %v5004_v38 = vsel %vm2313_vm9, %v4941_v7, %v4496_v31  ;;  %v5414_v43 = vmul.f32 %v6243_v47, %v10952_v61  ;;  %v5167_v53 = vpop.f32.mrb[71].mxu0 }
 0x632   : > { %v5479_v37 = vadd.f32 %v10957_v1, %v5411_v27  ;;  %v5412_v39 = vmul.f32 %v10952_v61, %v5167_v53  ;;  %6284 = vmatprep.mubr.msk.bf16.mxu0 %vm5045_vm2, %v5004_v38 }
 0x633   : > { %v5545_v4 = vmax.f32 %v5481_v63, 0.0  ;;  %v5482_v34 = vadd.f32 %v10957_v1, %v5414_v43  ;;  %v4498_v52 = vpop.permute.xlu0 %4497 }
 0x634   : > { %v5543_v6 = vmax.f32 %v5479_v37, 0.0  ;;  %v5480_v60 = vadd.f32 %v10957_v1, %v5412_v39  ;;  %v5006_v0 = vsel %vm2313_vm9, %v4943_v45, %v4498_v52  ;;  %v4242_v10 = vpop.permute.xlu1 %4241  ;;  %5670 = vxpose.xlu0.b32.cont [4/16] (narrow) %v5606_v12, 8  ;;  %v4561_v12 = vsel %vm4509_vm13, %v12254_v41, %v12319_v2 }
 0x635   : > { %v5609_v28 = vadd.f32 %v5545_v4, %v702_v35  ;;  %v5546_v17 = vmax.f32 %v5482_v34, 0.0  ;;  %6285 = vmatmul.mubr.msk.bf16.gmra.mrb[112].mxu0 %vm5045_vm2, %v5006_v0  ;;  %v4623_v3 = vsel %vm546_vm0, %v4561_v12, %v12321_v51  ;;  %v4625_v41 = vsel %vm546_vm0, %v4563_v56, %v12323_v9  ;;  %v12325_v4 = vld [vmem:[#allocation127_spill] sm:$0xff] }
 0x636   : > { %v5607_v30 = vadd.f32 %v5543_v6, %v694_v33  ;;  %v5544_v18 = vmax.f32 %v5480_v60, 0.0  ;;  %v4688_v15 = vsel %vm4634_vm14, %v4623_v3, %v12322_v44  ;;  %v4690_v42 = vsel %vm4634_vm14, %v4625_v41, %v12324_v40  ;;  %v12326_v33 = vld [vmem:[#allocation128_spill] sm:$0xff]  ;;  %v12330_v3 = vld [vmem:[#allocation181_spill] sm:$0xff]  ;;  %v12331_v44 = vld [vmem:[#allocation98_spill] sm:$0xff] }
 0x637   : > { %v5610_v22 = vadd.f32 %v5546_v17, %v705_v8  ;;  %v4244_v59 = vpop.permute.xlu0 %4243  ;;  %v4752_v55 = vsel %vm2185_vm6, %v4688_v15, %v4242_v10  ;;  %v718_v45 = vadd.f32 %v12325_v4, %v10961_v5  ;;  %v710_v6 = vadd.f32 %v10961_v5, %v12326_v33  ;;  %v12327_v8 = vld [vmem:[#allocation130_spill] sm:$0xff] }
 0x638   : > { %v5608_v62 = vadd.f32 %v5544_v18, %v697_v29  ;;  %v4312_v14 = vpop.permute.xlu1 %4311  ;;  %5671 = vxpose.xlu0.b32.cont [5/16] (narrow) %v5607_v30, 8  ;;  %v4754_v36 = vsel %vm2185_vm6, %v4690_v42, %v4244_v59  ;;  %v12328_v18 = vld [vmem:[#allocation132_spill] sm:$0xff]  ;;  %v4565_v56 = vsel %vm4509_vm13, %v10047_v24, %v12329_v23  ;;  %v12334_v42 = vld [vmem:[#allocation39_spill] sm:$0xff] }
 0x639   : > { %v4817_v26 = vsel %vm4763_vm15, %v4752_v55, %v4312_v14  ;;  %v4627_v15 = vsel %vm546_vm0, %v4565_v56, %v12331_v44  ;;  %v12332_v55 = vld [vmem:[#allocation116_spill] sm:$0xff] }
 0x63a   : > { %v12340_v56 = vld [vmem:[#allocation100_spill] sm:$0xff] }
 0x63b   : > { %v4314_v16 = vpop.permute.xlu0 %4313 }
 0x63c   : > { %v4376_v50 = vpop.permute.xlu1 %4375  ;;  %5672 = vxpose.xlu0.b32.cont [6/16] (narrow) %v5608_v62, 8  ;;  %v4819_v37 = vsel %vm4763_vm15, %v4754_v36, %v4314_v16 }
 0x63d   : > { %v4881_v7 = vsel %vm2248_vm7, %v4817_v26, %v4376_v50 }
 0x63f   : > { %v4378_v32 = vpop.permute.xlu0 %4377 }
 0x640   : > { %v4438_v25 = vpop.permute.xlu1 %4437  ;;  %5673 = vxpose.xlu0.b32.cont [7/16] (narrow) %v5609_v28, 8  ;;  %v4883_v34 = vsel %vm2248_vm7, %v4819_v37, %v4378_v32  ;;  %v721_v28 = vadd.f32 %v12327_v8, %v10961_v5  ;;  %v4567_v32 = vsel %vm4509_vm13, %v10067_v57, %v12330_v3 }
 0x641   : > { %v6246_v20 = vpop.f32.mrb[72].mxu0  ;;  %v4945_v63 = vsel %vm4891_vm1, %v4881_v7, %v4438_v25 }
 0x642   : > { %v5417_v49 = vmul.f32 %v6246_v20, %v10952_v61  ;;  %v5180_v13 = vpop.f32.mrb[73].mxu0  ;;  %v4692_v20 = vsel %vm4634_vm14, %v4627_v15, %v12332_v55  ;;  %v12342_v15 = vld [vmem:[#allocation120_spill] sm:$0xff] }
 0x643   : > { %v5415_v27 = vmul.f32 %v10952_v61, %v5180_v13  ;;  %v6247_v31 = vpop.f32.mrb[74].mxu0  ;;  %v4440_v47 = vpop.permute.xlu0 %4439  ;;  %v12343_v55 = vld [vmem:[#allocation184_spill] sm:$0xff] }
 0x644   : > { %v5485_v38 = vadd.f32 %v10957_v1, %v5417_v49  ;;  %v5418_v43 = vmul.f32 %v6247_v31, %v10952_v61  ;;  %v4500_v53 = vpop.permute.xlu1 %4499  ;;  %v5183_v48 = vpop.f32.mrb[75].mxu0  ;;  %5674 = vxpose.xlu0.b32.cont [8/16] (narrow) %v5610_v22, 8  ;;  %v4947_v0 = vsel %vm4891_vm1, %v4883_v34, %v4440_v47  ;;  %v713_v22 = vadd.f32 %v10961_v5, %v12328_v18  ;;  %v12333_v49 = vld [vmem:[#allocation185_spill] sm:$0xff] }
 0x645   : > { %v5483_v39 = vadd.f32 %v10957_v1, %v5415_v27  ;;  %v5008_v19 = vsel %vm2313_vm9, %v4945_v63, %v4500_v53  ;;  %v5416_v35 = vmul.f32 %v10952_v61, %v5183_v48  ;;  %v4629_v24 = vsel %vm546_vm0, %v4567_v32, %v12333_v49  ;;  %v12341_v32 = vld [vmem:[#allocation138_spill] sm:$0xff] }
 0x646   : > { %v5549_v52 = vmax.f32 %v5485_v38, 0.0  ;;  %v5486_v58 = vadd.f32 %v10957_v1, %v5418_v43  ;;  %6288 = vmatprep.mubr.msk.bf16.mxu0 %vm5045_vm2, %v5008_v19  ;;  %v4694_v7 = vsel %vm4634_vm14, %v4629_v24, %v12334_v42 }
 0x647   : > { %v5547_v60 = vmax.f32 %v5483_v39, 0.0  ;;  %v5484_v10 = vadd.f32 %v10957_v1, %v5416_v35  ;;  %v4502_v46 = vpop.permute.xlu0 %4501 }
 0x648   : > { %v5613_v17 = vadd.f32 %v5549_v52, %v718_v45  ;;  %v5550_v54 = vmax.f32 %v5486_v58, 0.0  ;;  %v5010_v29 = vsel %vm2313_vm9, %v4947_v0, %v4502_v46  ;;  %v4246_v30 = vpop.permute.xlu1 %4245  ;;  %v12335_v45 = vld [vmem:[#allocation141_spill] sm:$0xff] }
 0x649   : > { %v5611_v59 = vadd.f32 %v5547_v60, %v710_v6  ;;  %v5548_v62 = vmax.f32 %v5484_v10, 0.0  ;;  %6289 = vmatmul.mubr.msk.bf16.gmra.mrb[116].mxu0 %vm5045_vm2, %v5010_v29  ;;  %v4756_v41 = vsel %vm2185_vm6, %v4692_v20, %v4246_v30  ;;  %v734_v34 = vadd.f32 %v12335_v45, %v10961_v5  ;;  %v12336_v6 = vld [vmem:[#allocation142_spill] sm:$0xff]  ;;  %v12345_v45 = vld [vmem:[#allocation145_spill] sm:$0xff] }
 0x64a   : > { %v5614_v14 = vadd.f32 %v5550_v54, %v721_v28  ;;  %v726_v60 = vadd.f32 %v10961_v5, %v12336_v6  ;;  %v12337_v28 = vld [vmem:[#allocation143_spill] sm:$0xff] }
 0x64b   : > { %v5612_v16 = vadd.f32 %v5548_v62, %v713_v22  ;;  %5675 = vxpose.xlu0.b32.cont [9/16] (narrow) %v5611_v59, 8  ;;  %v4248_v2 = vpop.permute.xlu0 %4247  ;;  %v12338_v22 = vld [vmem:[#allocation144_spill] sm:$0xff] }
 0x64c   : > { %v4316_v12 = vpop.permute.xlu1 %4315  ;;  %v4758_v63 = vsel %vm2185_vm6, %v4694_v7, %v4248_v2  ;;  %v729_v59 = vadd.f32 %v10961_v5, %v12338_v22 }
 0x64d   : > { %v4821_v13 = vsel %vm4763_vm15, %v4756_v41, %v4316_v12  ;;  %v12344_v41 = vld [vmem:[#allocation65_spill] sm:$0xff] }
 0x64f   : > { %5676 = vxpose.xlu0.b32.cont [10/16] (narrow) %v5612_v16, 8  ;;  %v4318_v50 = vpop.permute.xlu0 %4317  ;;  %v12339_v16 = vld [vmem:[#allocation30_spill] sm:$0xff] }
 0x650   : > { %v4380_v51 = vpop.permute.xlu1 %4379  ;;  %v4823_v39 = vsel %vm4763_vm15, %v4758_v63, %v4318_v50  ;;  %v4571_v2 = vsel %vm4509_vm13, %v10134_v11, %v12339_v16 }
 0x651   : > { %v4885_v27 = vsel %vm2248_vm7, %v4821_v13, %v4380_v51  ;;  %v4569_v51 = vsel %vm4509_vm13, %v10114_v21, %v12340_v56  ;;  %v4633_v44 = vsel %vm546_vm0, %v4571_v2, %v12341_v32 }
 0x652   : > { %v4631_v20 = vsel %vm546_vm0, %v4569_v51, %v12343_v55 }
 0x653   : > { %5677 = vxpose.xlu0.b32.cont [11/16] (narrow) %v5613_v17, 8  ;;  %v4382_v25 = vpop.permute.xlu0 %4381  ;;  %v737_v17 = vadd.f32 %v12337_v28, %v10961_v5 }
 0x654   : > { %v4442_v9 = vpop.permute.xlu1 %4441  ;;  %v4887_v52 = vsel %vm2248_vm7, %v4823_v39, %v4382_v25  ;;  %v4698_v25 = vsel %vm4634_vm14, %v4633_v44, %v12342_v15 }
 0x655   : > { %v6250_v26 = vpop.f32.mrb[76].mxu0  ;;  %v4949_v38 = vsel %vm4891_vm1, %v4885_v27, %v4442_v9 }
 0x656   : > { %v5421_v40 = vmul.f32 %v6250_v26, %v10952_v61  ;;  %v5196_v57 = vpop.f32.mrb[77].mxu0  ;;  %v4696_v26 = vsel %vm4634_vm14, %v4631_v20, %v12344_v41 }
 0x657   : > { %v5419_v31 = vmul.f32 %v10952_v61, %v5196_v57  ;;  %v6251_v47 = vpop.f32.mrb[78].mxu0  ;;  %5678 = vxpose.xlu0.b32.cont [12/16] (narrow) %v5614_v14, 8  ;;  %v4444_v36 = vpop.permute.xlu0 %4443 }
 0x658   : > { %v5489_v43 = vadd.f32 %v10957_v1, %v5421_v40  ;;  %v5422_v53 = vmul.f32 %v6251_v47, %v10952_v61  ;;  %v4504_v48 = vpop.permute.xlu1 %4503  ;;  %v5199_v37 = vpop.f32.mrb[79].mxu0  ;;  %v4951_v10 = vsel %vm4891_vm1, %v4887_v52, %v4444_v36 }
 0x659   : > { %v5487_v19 = vadd.f32 %v10957_v1, %v5419_v31  ;;  %v5012_v35 = vsel %vm2313_vm9, %v4949_v38, %v4504_v48  ;;  %v5420_v4 = vmul.f32 %v10952_v61, %v5199_v37 }
 0x65a   : > { %v5553_v58 = vmax.f32 %v5489_v43, 0.0  ;;  %v5490_v33 = vadd.f32 %v10957_v1, %v5422_v53  ;;  %6292 = vmatprep.mubr.msk.bf16.mxu0 %vm5045_vm2, %v5012_v35 }
 0x65b   : > { %v5551_v0 = vmax.f32 %v5487_v19, 0.0  ;;  %v5488_v46 = vadd.f32 %v10957_v1, %v5420_v4  ;;  %v4506_v8 = vpop.permute.xlu0 %4505 }
 0x65c   : > { %v5617_v54 = vadd.f32 %v5553_v58, %v734_v34  ;;  %v5554_v29 = vmax.f32 %v5490_v33, 0.0  ;;  %v5014_v30 = vsel %vm2313_vm9, %v4951_v10, %v4506_v8  ;;  %v4250_v18 = vpop.permute.xlu1 %4249  ;;  %v750_v34 = vadd.f32 %v12345_v45, %v10961_v5  ;;  %v12346_v33 = vld [vmem:[#allocation146_spill] sm:$0xff]  ;;  %v12347_v10 = vld [vmem:[#allocation147_spill] sm:$0xff] }
 0x65d   : > { %v5615_v62 = vadd.f32 %v5551_v0, %v726_v60  ;;  %v5552_v14 = vmax.f32 %v5488_v46, 0.0  ;;  %6293 = vmatmul.mubr.msk.bf16.gmra.mrb[120].mxu0 %vm5045_vm2, %v5014_v30  ;;  %v4760_v24 = vsel %vm2185_vm6, %v4696_v26, %v4250_v18  ;;  %v742_v6 = vadd.f32 %v10961_v5, %v12346_v33 }
 0x65e   : > { %v5618_v12 = vadd.f32 %v5554_v29, %v737_v17  ;;  %v753_v46 = vadd.f32 %v12347_v10, %v10961_v5  ;;  %v12348_v17 = vld [vmem:[#allocation149_spill] sm:$0xff] }
 0x65f   : > { %v5616_v50 = vadd.f32 %v5552_v14, %v729_v59  ;;  %5679 = vxpose.xlu0.b32.cont [13/16] (narrow) %v5615_v62, 8  ;;  %v4252_v23 = vpop.permute.xlu0 %4251 }
 0x660   : > { %v4320_v3 = vpop.permute.xlu1 %4319  ;;  %v4762_v11 = vsel %vm2185_vm6, %v4698_v25, %v4252_v23  ;;  %v12350_v25 = vld [vmem:[#allocation37_spill] sm:$0xff] }
 0x661   : > { %v4825_v13 = vsel %vm4763_vm15, %v4760_v24, %v4320_v3  ;;  %v12349_v3 = vld [vmem:[#allocation152_spill] sm:$0xff]  ;;  %v758_v55 = vadd.f32 %v10961_v5, %v12350_v25 }
 0x662   : > { %v766_v32 = vadd.f32 %v12349_v3, %v10961_v5 }
 0x663   : > { %5680 = vxpose.xlu0.b32.cont [14/16] (narrow) %v5616_v50, 8  ;;  %v4322_v9 = vpop.permute.xlu0 %4321 }
 0x664   : > { %v4827_v49 = vsel %vm4763_vm15, %v4762_v11, %v4322_v9  ;;  %v4384_v21 = vpop.permute.xlu1 %4383  ;;  %v12351_v9 = vld [vmem:[#allocation153_spill] sm:$0xff] }
 0x665   : > { %v4889_v40 = vsel %vm2248_vm7, %v4825_v13, %v4384_v21  ;;  %v4890_v57 = vsel %vm2248_vm7, %v4827_v49, %v4384_v21  ;;  %v769_v41 = vadd.f32 %v12351_v9, %v10961_v5  ;;  %v12352_v21 = vld [vmem:[#allocation155_spill] sm:$0xff] }
 0x666   : > { %v761_v24 = vadd.f32 %v10961_v5, %v12352_v21 }
 0x667   : > { %5681 = vxpose.xlu0.b32.cont [15/16] (narrow) %v5617_v54, 8  ;;  %v4446_v42 = vpop.permute.xlu0 %4445  ;;  %v745_v54 = vadd.f32 %v10961_v5, %v12348_v17 }
 0x668   : > { %v4953_v7 = vsel %vm4891_vm1, %v4889_v40, %v4446_v42  ;;  %v4954_v27 = vsel %vm4891_vm1, %v4890_v57, %v4446_v42  ;;  %v4508_v31 = vpop.permute.xlu1 %4507 }
 0x669   : > { %v5016_v47 = vsel %vm2313_vm9, %v4953_v7, %v4508_v31  ;;  %v5017_v36 = vsel %vm2313_vm9, %v4954_v27, %v4508_v31  ;;  %v6254_v63 = vpop.f32.mrb[80].mxu0 }
 0x66a   : > { %v5425_v38 = vmul.f32 %v6254_v63, %v10952_v61  ;;  %v5212_v43 = vpop.f32.mrb[81].mxu0  ;;  %6296 = vmatprep.mubr.msk.bf16.mxu0 %vm5045_vm2, %v5016_v47 }
 0x66b   : > { %v5423_v53 = vmul.f32 %v10952_v61, %v5212_v43  ;;  %v6255_v48 = vpop.f32.mrb[82].mxu0  ;;  %5682 = vxpose.xlu0.b32.end [16/16] (narrow) %v5618_v12, 8  ;;  %6297 = vmatmul.mubr.msk.bf16.gmra.mrb[124].mxu0 %vm5045_vm2, %v5017_v36 }
 0x66c   : > { %v5493_v37 = vadd.f32 %v10957_v1, %v5425_v38  ;;  %v5426_v39 = vmul.f32 %v6255_v48, %v10952_v61  ;;  %v5215_v19 = vpop.f32.mrb[83].mxu0 }
 0x66d   : > { %v5491_v35 = vadd.f32 %v10957_v1, %v5423_v53  ;;  %v5424_v4 = vmul.f32 %v10952_v61, %v5215_v19 }
 0x66e   : > { %v5557_v52 = vmax.f32 %v5493_v37, 0.0  ;;  %v5494_v58 = vadd.f32 %v10957_v1, %v5426_v39  ;;  %v12353_v37 = vld [vmem:[#allocation159_spill] sm:$0xff] }
 0x66f   : > { %v5555_v60 = vmax.f32 %v5491_v35, 0.0  ;;  %v5492_v0 = vadd.f32 %v10957_v1, %v5424_v4  ;;  %v782_v39 = vadd.f32 %v12353_v37, %v10961_v5  ;;  %v12354_v4 = vld [vmem:[#allocation45_spill] sm:$0xff] }
 0x670   : > { %v5621_v8 = vadd.f32 %v5557_v52, %v750_v34  ;;  %v5558_v28 = vmax.f32 %v5494_v58, 0.0  ;;  %v774_v45 = vadd.f32 %v10961_v5, %v12354_v4  ;;  %v12355_v58 = vld [vmem:[#allocation160_spill] sm:$0xff] }
 0x671   : > { %v5619_v29 = vadd.f32 %v5555_v60, %v742_v6  ;;  %v5556_v30 = vmax.f32 %v5492_v0, 0.0  ;;  %v785_v33 = vadd.f32 %v12355_v58, %v10961_v5  ;;  %v12356_v0 = vld [vmem:[#allocation162_spill] sm:$0xff] }
 0x672   : > { %v5622_v18 = vadd.f32 %v5558_v28, %v753_v46  ;;  %v777_v10 = vadd.f32 %v10961_v5, %v12356_v0 }
 0x673   : > { %v5620_v22 = vadd.f32 %v5556_v30, %v745_v54  ;;  %5699 = vxpose.xlu1.b32.start [1/16] (narrow) %v5619_v29, 8 }
 0x677   : > { %5700 = vxpose.xlu1.b32.cont [2/16] (narrow) %v5620_v22, 8 }
 0x67b   : > { %5701 = vxpose.xlu1.b32.cont [3/16] (narrow) %v5621_v8, 8 }
 0x67d   : > { %v6258_v59 = vpop.f32.mrb[84].mxu0 }
 0x67e   : > { %v5429_v62 = vmul.f32 %v6258_v59, %v10952_v61  ;;  %v5228_v14 = vpop.f32.mrb[85].mxu0 }
 0x67f   : > { %v5427_v16 = vmul.f32 %v10952_v61, %v5228_v14  ;;  %v6259_v2 = vpop.f32.mrb[86].mxu0  ;;  %5702 = vxpose.xlu1.b32.cont [4/16] (narrow) %v5622_v18, 8 }
 0x680   : > { %v5497_v12 = vadd.f32 %v10957_v1, %v5429_v62  ;;  %v5430_v50 = vmul.f32 %v6259_v2, %v10952_v61  ;;  %v5231_v23 = vpop.f32.mrb[87].mxu0 }
 0x681   : > { %v5495_v56 = vadd.f32 %v10957_v1, %v5427_v16  ;;  %v5428_v51 = vmul.f32 %v10952_v61, %v5231_v23 }
 0x682   : > { %v5561_v44 = vmax.f32 %v5497_v12, 0.0  ;;  %v5498_v15 = vadd.f32 %v10957_v1, %v5430_v50  ;;  %v12357_v12 = vld [vmem:[#allocation166_spill] sm:$0xff] }
 0x683   : > { %v5559_v20 = vmax.f32 %v5495_v56, 0.0  ;;  %v5496_v11 = vadd.f32 %v10957_v1, %v5428_v51  ;;  %v798_v50 = vadd.f32 %v12357_v12, %v10961_v5  ;;  %v12358_v51 = vld [vmem:[#allocation57_spill] sm:$0xff] }
 0x684   : > { %v5625_v26 = vadd.f32 %v5561_v44, %v766_v32  ;;  %v5562_v49 = vmax.f32 %v5498_v15, 0.0  ;;  %v790_v3 = vadd.f32 %v10961_v5, %v12358_v51  ;;  %v12359_v15 = vld [vmem:[#allocation167_spill] sm:$0xff] }
 0x685   : > { %v5623_v13 = vadd.f32 %v5559_v20, %v758_v55  ;;  %v5560_v40 = vmax.f32 %v5496_v11, 0.0  ;;  %v801_v25 = vadd.f32 %v12359_v15, %v10961_v5  ;;  %v12360_v11 = vld [vmem:[#allocation169_spill] sm:$0xff] }
 0x686   : > { %v5626_v57 = vadd.f32 %v5562_v49, %v769_v41  ;;  %v793_v9 = vadd.f32 %v10961_v5, %v12360_v11 }
 0x687   : > { %v5624_v42 = vadd.f32 %v5560_v40, %v761_v24  ;;  %5703 = vxpose.xlu1.b32.cont [5/16] (narrow) %v5623_v13, 8 }
 0x68b   : > { %5704 = vxpose.xlu1.b32.cont [6/16] (narrow) %v5624_v42, 8 }
 0x68f   : > { %5705 = vxpose.xlu1.b32.cont [7/16] (narrow) %v5625_v26, 8 }
 0x691   : > { %v6262_v7 = vpop.f32.mrb[88].mxu0 }
 0x692   : > { %v5433_v27 = vmul.f32 %v6262_v7, %v10952_v61  ;;  %v5244_v31 = vpop.f32.mrb[89].mxu0 }
 0x693   : > { %v5431_v47 = vmul.f32 %v10952_v61, %v5244_v31  ;;  %v6263_v36 = vpop.f32.mrb[90].mxu0  ;;  %5706 = vxpose.xlu1.b32.cont [8/16] (narrow) %v5626_v57, 8 }
 0x694   : > { %v5501_v63 = vadd.f32 %v10957_v1, %v5433_v27  ;;  %v5434_v38 = vmul.f32 %v6263_v36, %v10952_v61  ;;  %v5247_v43 = vpop.f32.mrb[91].mxu0 }
 0x695   : > { %v5499_v53 = vadd.f32 %v10957_v1, %v5431_v47  ;;  %v5432_v48 = vmul.f32 %v10952_v61, %v5247_v43 }
 0x696   : > { %v5565_v19 = vmax.f32 %v5501_v63, 0.0  ;;  %v5502_v35 = vadd.f32 %v10957_v1, %v5434_v38  ;;  %v12361_v63 = vld [vmem:[#allocation173_spill] sm:$0xff] }
 0x697   : > { %v5563_v34 = vmax.f32 %v5499_v53, 0.0  ;;  %v5500_v52 = vadd.f32 %v10957_v1, %v5432_v48  ;;  %v814_v38 = vadd.f32 %v12361_v63, %v10961_v5  ;;  %v12362_v48 = vld [vmem:[#allocation67_spill] sm:$0xff]  ;;  %v12370_v63 = vld [vmem:[#allocation78_spill] sm:$0xff] }
 0x698   : > { %v5629_v6 = vadd.f32 %v5565_v19, %v782_v39  ;;  %v5566_v60 = vmax.f32 %v5502_v35, 0.0  ;;  %v806_v37 = vadd.f32 %v10961_v5, %v12362_v48  ;;  %v12363_v35 = vld [vmem:[#allocation25_spill] sm:$0xff]  ;;  %v12371_v48 = vld [vmem:[#allocation187_spill] sm:$0xff] }
 0x699   : > { %v5627_v46 = vadd.f32 %v5563_v34, %v774_v45  ;;  %v5564_v8 = vmax.f32 %v5500_v52, 0.0  ;;  %v817_v4 = vadd.f32 %v12363_v35, %v10961_v5  ;;  %v12364_v52 = vld [vmem:[#allocation175_spill] sm:$0xff]  ;;  %v12372_v35 = vld [vmem:[#allocation188_spill] sm:$0xff] }
 0x69a   : > { %v5630_v28 = vadd.f32 %v5566_v60, %v785_v33  ;;  %v809_v58 = vadd.f32 %v10961_v5, %v12364_v52 }
 0x69b   : > { %v5628_v17 = vadd.f32 %v5564_v8, %v777_v10  ;;  %5707 = vxpose.xlu1.b32.cont [9/16] (narrow) %v5627_v46, 8 }
 0x69f   : > { %5708 = vxpose.xlu1.b32.cont [10/16] (narrow) %v5628_v17, 8 }
 0x6a3   : > { %5709 = vxpose.xlu1.b32.cont [11/16] (narrow) %v5629_v6, 8 }
 0x6a5   : > { %v6266_v54 = vpop.f32.mrb[92].mxu0 }
 0x6a6   : > { %v5437_v29 = vmul.f32 %v6266_v54, %v10952_v61  ;;  %v5260_v30 = vpop.f32.mrb[93].mxu0 }
 0x6a7   : > { %v5435_v18 = vmul.f32 %v10952_v61, %v5260_v30  ;;  %v6267_v22 = vpop.f32.mrb[94].mxu0  ;;  %5710 = vxpose.xlu1.b32.cont [12/16] (narrow) %v5630_v28, 8 }
 0x6a8   : > { %v5505_v59 = vadd.f32 %v10957_v1, %v5437_v29  ;;  %v5438_v62 = vmul.f32 %v6267_v22, %v10952_v61  ;;  %v5263_v14 = vpop.f32.mrb[95].mxu0 }
 0x6a9   : > { %v5503_v16 = vadd.f32 %v10957_v1, %v5435_v18  ;;  %v5436_v2 = vmul.f32 %v10952_v61, %v5263_v14 }
 0x6aa   : > { %v5569_v23 = vmax.f32 %v5505_v59, 0.0  ;;  %v5506_v56 = vadd.f32 %v10957_v1, %v5438_v62  ;;  %v12365_v59 = vld [vmem:[#allocation179_spill] sm:$0xff] }
 0x6ab   : > { %v5567_v32 = vmax.f32 %v5503_v16, 0.0  ;;  %v5504_v44 = vadd.f32 %v10957_v1, %v5436_v2  ;;  %v830_v62 = vadd.f32 %v12365_v59, %v10961_v5  ;;  %v12366_v2 = vld [vmem:[#allocation73_spill] sm:$0xff] }
 0x6ac   : > { %v5633_v55 = vadd.f32 %v5569_v23, %v798_v50  ;;  %v5570_v20 = vmax.f32 %v5506_v56, 0.0  ;;  %v822_v12 = vadd.f32 %v10961_v5, %v12366_v2  ;;  %v12367_v56 = vld [vmem:[#allocation180_spill] sm:$0xff]  ;;  %v12374_v59 = vld [vmem:[#allocation81_spill] sm:$0xff]  ;;  %v12375_v2 = vld [vmem:[#allocation191_spill] sm:$0xff] }
 0x6ad   : > { %v5631_v41 = vadd.f32 %v5567_v32, %v790_v3  ;;  %v5568_v26 = vmax.f32 %v5504_v44, 0.0  ;;  %v833_v51 = vadd.f32 %v12367_v56, %v10961_v5  ;;  %v12368_v44 = vld [vmem:[#allocation182_spill] sm:$0xff]  ;;  %v12376_v56 = vld [vmem:[#allocation192_spill] sm:$0xff] }
 0x6ae   : > { %v5634_v49 = vadd.f32 %v5570_v20, %v801_v25  ;;  %v825_v15 = vadd.f32 %v10961_v5, %v12368_v44 }
 0x6af   : > { %v5632_v21 = vadd.f32 %v5568_v26, %v793_v9  ;;  %5711 = vxpose.xlu1.b32.cont [13/16] (narrow) %v5631_v41, 8  ;;  %v5683_v9 = vpop.trf.xlu0 }
 0x6b0   : > { %5795 = vst [vmem:[%s11230_s11] sm:$0xff] %v5683_v9 }
 0x6b3   : > { %5712 = vxpose.xlu1.b32.cont [14/16] (narrow) %v5632_v21, 8 }
 0x6b7   : > { %5713 = vxpose.xlu1.b32.cont [15/16] (narrow) %v5633_v55, 8 }
 0x6b9   : > { %v6270_v24 = vpop.f32.mrb[96].mxu0 }
 0x6ba   : > { %v5441_v13 = vmul.f32 %v6270_v24, %v10952_v61  ;;  %v5276_v40 = vpop.f32.mrb[97].mxu0 }
 0x6bb   : > { %v5439_v57 = vmul.f32 %v10952_v61, %v5276_v40  ;;  %v6271_v42 = vpop.f32.mrb[98].mxu0  ;;  %5714 = vxpose.xlu1.b32.end [16/16] (narrow) %v5634_v49, 8 }
 0x6bc   : > { %v5509_v7 = vadd.f32 %v10957_v1, %v5441_v13  ;;  %v5442_v27 = vmul.f32 %v6271_v42, %v10952_v61  ;;  %v5279_v31 = vpop.f32.mrb[99].mxu0 }
 0x6bd   : > { %v5507_v47 = vadd.f32 %v10957_v1, %v5439_v57  ;;  %v5440_v36 = vmul.f32 %v10952_v61, %v5279_v31 }
 0x6be   : > { %v5573_v43 = vmax.f32 %v5509_v7, 0.0  ;;  %v5510_v53 = vadd.f32 %v10957_v1, %v5442_v27  ;;  %v12369_v27 = vld [vmem:[#allocation186_spill] sm:$0xff] }
 0x6bf   : > { %v5571_v39 = vmax.f32 %v5507_v47, 0.0  ;;  %v5508_v19 = vadd.f32 %v10957_v1, %v5440_v36  ;;  %v846_v31 = vadd.f32 %v12369_v27, %v10961_v5  ;;  %v12378_v27 = vld [vmem:[#allocation194_spill] sm:$0xff] }
 0x6c0   : > { %v5574_v45 = vmax.f32 %v5510_v53, 0.0  ;;  %v5637_v34 = vadd.f32 %v5573_v43, %v814_v38  ;;  %v838_v38 = vadd.f32 %v10961_v5, %v12370_v63  ;;  %v12379_v63 = vld [vmem:[#allocation195_spill] sm:$0xff] }
 0x6c1   : > { %v5572_v33 = vmax.f32 %v5508_v19, 0.0  ;;  %v5635_v6 = vadd.f32 %v5571_v39, %v806_v37  ;;  %v849_v37 = vadd.f32 %v12371_v48, %v10961_v5  ;;  %v12380_v48 = vld [vmem:[#allocation197_spill] sm:$0xff] }
 0x6c2   : > { %v5638_v60 = vadd.f32 %v5574_v45, %v817_v4  ;;  %v841_v4 = vadd.f32 %v10961_v5, %v12372_v35 }
 0x6c3   : > { %5731 = vxpose.xlu0.b32.start [1/16] (narrow) %v5635_v6, 8  ;;  %v5636_v0 = vadd.f32 %v5572_v33, %v809_v58 }
 0x6c7   : > { %5732 = vxpose.xlu0.b32.cont [2/16] (narrow) %v5636_v0, 8 }
 0x6cb   : > { %5733 = vxpose.xlu0.b32.cont [3/16] (narrow) %v5637_v34, 8 }
 0x6cc   : > { %v6274_v10 = vpop.f32.mrb[100].mxu0 }
 0x6cd   : > { %v5445_v46 = vmul.f32 %v6274_v10, %v10952_v61  ;;  %v5292_v8 = vpop.f32.mrb[101].mxu0 }
 0x6ce   : > { %v5443_v28 = vmul.f32 %v10952_v61, %v5292_v8  ;;  %v6275_v17 = vpop.f32.mrb[102].mxu0 }
 0x6cf   : > { %v5513_v54 = vadd.f32 %v10957_v1, %v5445_v46  ;;  %v5446_v29 = vmul.f32 %v6275_v17, %v10952_v61  ;;  %5734 = vxpose.xlu0.b32.cont [4/16] (narrow) %v5638_v60, 8  ;;  %v5295_v30 = vpop.f32.mrb[103].mxu0 }
 0x6d0   : > { %v5511_v18 = vadd.f32 %v10957_v1, %v5443_v28  ;;  %v5444_v22 = vmul.f32 %v10952_v61, %v5295_v30 }
 0x6d1   : > { %v5577_v14 = vmax.f32 %v5513_v54, 0.0  ;;  %v5514_v16 = vadd.f32 %v10957_v1, %v5446_v29  ;;  %v12373_v29 = vld [vmem:[#allocation190_spill] sm:$0xff] }
 0x6d2   : > { %v5575_v50 = vmax.f32 %v5511_v18, 0.0  ;;  %v5512_v23 = vadd.f32 %v10957_v1, %v5444_v22  ;;  %v862_v30 = vadd.f32 %v12373_v29, %v10961_v5  ;;  %v12382_v29 = vld [vmem:[#allocation22_spill] sm:$0xff] }
 0x6d3   : > { %v5578_v3 = vmax.f32 %v5514_v16, 0.0  ;;  %v5641_v32 = vadd.f32 %v5577_v14, %v830_v62  ;;  %v854_v62 = vadd.f32 %v10961_v5, %v12374_v59  ;;  %v12383_v59 = vld [vmem:[#allocation200_spill] sm:$0xff] }
 0x6d4   : > { %v5576_v25 = vmax.f32 %v5512_v23, 0.0  ;;  %v5639_v55 = vadd.f32 %v5575_v50, %v822_v12  ;;  %v865_v12 = vadd.f32 %v12375_v2, %v10961_v5  ;;  %v12384_v2 = vld [vmem:[#allocation201_spill] sm:$0xff] }
 0x6d5   : > { %v5642_v20 = vadd.f32 %v5578_v3, %v833_v51  ;;  %v857_v51 = vadd.f32 %v10961_v5, %v12376_v56 }
 0x6d6   : > { %5735 = vxpose.xlu0.b32.cont [5/16] (narrow) %v5639_v55, 8  ;;  %v5640_v11 = vadd.f32 %v5576_v25, %v825_v15 }
 0x6da   : > { %5736 = vxpose.xlu0.b32.cont [6/16] (narrow) %v5640_v11, 8 }
 0x6de   : > { %5737 = vxpose.xlu0.b32.cont [7/16] (narrow) %v5641_v32, 8 }
 0x6e0   : > { %v6278_v41 = vpop.f32.mrb[104].mxu0 }
 0x6e1   : > { %v5449_v26 = vmul.f32 %v6278_v41, %v10952_v61  ;;  %v5308_v49 = vpop.f32.mrb[105].mxu0 }
 0x6e2   : > { %v5447_v21 = vmul.f32 %v10952_v61, %v5308_v49  ;;  %v6279_v24 = vpop.f32.mrb[106].mxu0  ;;  %5738 = vxpose.xlu0.b32.cont [8/16] (narrow) %v5642_v20, 8 }
 0x6e3   : > { %v5517_v13 = vadd.f32 %v10957_v1, %v5449_v26  ;;  %v5450_v40 = vmul.f32 %v6279_v24, %v10952_v61  ;;  %v5311_v57 = vpop.f32.mrb[107].mxu0 }
 0x6e4   : > { %v5515_v42 = vadd.f32 %v10957_v1, %v5447_v21  ;;  %v5448_v7 = vmul.f32 %v10952_v61, %v5311_v57 }
 0x6e5   : > { %v5581_v47 = vmax.f32 %v5517_v13, 0.0  ;;  %v5518_v36 = vadd.f32 %v10957_v1, %v5450_v40  ;;  %v12377_v40 = vld [vmem:[#allocation193_spill] sm:$0xff] }
 0x6e6   : > { %v5579_v43 = vmax.f32 %v5515_v42, 0.0  ;;  %v5516_v53 = vadd.f32 %v10957_v1, %v5448_v7  ;;  %v878_v57 = vadd.f32 %v12377_v40, %v10961_v5 }
 0x6e7   : > { %v5582_v39 = vmax.f32 %v5518_v36, 0.0  ;;  %v5645_v19 = vadd.f32 %v5581_v47, %v846_v31  ;;  %v870_v31 = vadd.f32 %v10961_v5, %v12378_v27 }
 0x6e8   : > { %v5580_v45 = vmax.f32 %v5516_v53, 0.0  ;;  %v5643_v34 = vadd.f32 %v5579_v43, %v838_v38  ;;  %v881_v38 = vadd.f32 %v12379_v63, %v10961_v5 }
 0x6e9   : > { %v5646_v52 = vadd.f32 %v5582_v39, %v849_v37  ;;  %v873_v37 = vadd.f32 %v10961_v5, %v12380_v48 }
 0x6ea   : > { %5739 = vxpose.xlu0.b32.cont [9/16] (narrow) %v5643_v34, 8  ;;  %v5644_v58 = vadd.f32 %v5580_v45, %v841_v4 }
 0x6ee   : > { %5740 = vxpose.xlu0.b32.cont [10/16] (narrow) %v5644_v58, 8 }
 0x6f2   : > { %5741 = vxpose.xlu0.b32.cont [11/16] (narrow) %v5645_v19, 8 }
 0x6f4   : > { %v6282_v33 = vpop.f32.mrb[108].mxu0 }
 0x6f5   : > { %v5453_v6 = vmul.f32 %v6282_v33, %v10952_v61  ;;  %v5324_v60 = vpop.f32.mrb[109].mxu0 }
 0x6f6   : > { %v5451_v0 = vmul.f32 %v10952_v61, %v5324_v60  ;;  %v6283_v10 = vpop.f32.mrb[110].mxu0  ;;  %5742 = vxpose.xlu0.b32.cont [12/16] (narrow) %v5646_v52, 8 }
 0x6f7   : > { %v5521_v46 = vadd.f32 %v10957_v1, %v5453_v6  ;;  %v5454_v8 = vmul.f32 %v6283_v10, %v10952_v61  ;;  %v5327_v28 = vpop.f32.mrb[111].mxu0 }
 0x6f8   : > { %v5519_v17 = vadd.f32 %v10957_v1, %v5451_v0  ;;  %v5452_v54 = vmul.f32 %v10952_v61, %v5327_v28 }
 0x6f9   : > { %v5585_v18 = vmax.f32 %v5521_v46, 0.0  ;;  %v5522_v22 = vadd.f32 %v10957_v1, %v5454_v8  ;;  %v12381_v8 = vld [vmem:[#allocation199_spill] sm:$0xff] }
 0x6fa   : > { %v5583_v14 = vmax.f32 %v5519_v17, 0.0  ;;  %v5520_v16 = vadd.f32 %v10957_v1, %v5452_v54  ;;  %v894_v28 = vadd.f32 %v12381_v8, %v10961_v5 }
 0x6fb   : > { %v5586_v50 = vmax.f32 %v5522_v22, 0.0  ;;  %v5649_v23 = vadd.f32 %v5585_v18, %v862_v30  ;;  %v886_v30 = vadd.f32 %v10961_v5, %v12382_v29 }
 0x6fc   : > { %v5584_v3 = vmax.f32 %v5520_v16, 0.0  ;;  %v5647_v32 = vadd.f32 %v5583_v14, %v854_v62  ;;  %v897_v62 = vadd.f32 %v12383_v59, %v10961_v5 }
 0x6fd   : > { %v5650_v44 = vadd.f32 %v5586_v50, %v865_v12 }
 0x6fe   : > { %5743 = vxpose.xlu0.b32.cont [13/16] (narrow) %v5647_v32, 8  ;;  %v5648_v15 = vadd.f32 %v5584_v3, %v857_v51  ;;  %v6593_v3 = vld [vmem:[#allocation7 + $0x3] ss:$0 sm:$0xff] }
 0x6ff   : > { %v5715_v25 = vpop.trf.xlu1 }
 0x700   : > { %5796 = vst [vmem:[%s11230_s11 + $0x8] sm:$0xff] %v5715_v25  ;;  %v6594_v25 = vld [vmem:[#allocation7 + $0x4] ss:$0 sm:$0xff] }
 0x702   : > { %5744 = vxpose.xlu0.b32.cont [14/16] (narrow) %v5648_v15, 8 }
 0x706   : > { %5745 = vxpose.xlu0.b32.cont [15/16] (narrow) %v5649_v23, 8 }
 0x708   : > { %v6286_v55 = vpop.f32.mrb[112].mxu0 }
 0x709   : > { %v5457_v20 = vmul.f32 %v6286_v55, %v10952_v61  ;;  %v5340_v11 = vpop.f32.mrb[113].mxu0 }
 0x70a   : > { %v5455_v9 = vmul.f32 %v10952_v61, %v5340_v11  ;;  %v6287_v41 = vpop.f32.mrb[114].mxu0  ;;  %5746 = vxpose.xlu0.b32.end [16/16] (narrow) %v5650_v44, 8 }
 0x70b   : > { %v5525_v26 = vadd.f32 %v10957_v1, %v5457_v20  ;;  %v5458_v49 = vmul.f32 %v6287_v41, %v10952_v61  ;;  %v5343_v21 = vpop.f32.mrb[115].mxu0  ;;  %v6595_v41 = vld [vmem:[#allocation7] ss:$0 sm:$0xff] }
 0x70c   : > { %v5523_v24 = vadd.f32 %v10957_v1, %v5455_v9  ;;  %v5456_v13 = vmul.f32 %v10952_v61, %v5343_v21 }
 0x70d   : > { %v5589_v42 = vmax.f32 %v5525_v26, 0.0  ;;  %v5526_v7 = vadd.f32 %v10957_v1, %v5458_v49  ;;  %v12385_v26 = vld [vmem:[#allocation202_spill] sm:$0xff] }
 0x70e   : > { %v5587_v47 = vmax.f32 %v5523_v24, 0.0  ;;  %v5524_v36 = vadd.f32 %v10957_v1, %v5456_v13  ;;  %v910_v49 = vadd.f32 %v6595_v41, %v12385_v26  ;;  %v12386_v13 = vld [vmem:[#allocation54_spill] sm:$0xff] }
 0x70f   : > { %v5590_v43 = vmax.f32 %v5526_v7, 0.0  ;;  %v5653_v53 = vadd.f32 %v5589_v42, %v878_v57  ;;  %v902_v40 = vadd.f32 %v6595_v41, %v12386_v13  ;;  %v12387_v7 = vld [vmem:[#allocation36_spill] sm:$0xff] }
 0x710   : > { %v5588_v39 = vmax.f32 %v5524_v36, 0.0  ;;  %v5651_v19 = vadd.f32 %v5587_v47, %v870_v31  ;;  %v913_v27 = vadd.f32 %v6595_v41, %v12387_v7  ;;  %v12388_v36 = vld [vmem:[#allocation203_spill] sm:$0xff] }
 0x711   : > { %v5654_v35 = vadd.f32 %v5590_v43, %v881_v38  ;;  %v905_v63 = vadd.f32 %v6595_v41, %v12388_v36 }
 0x712   : > { %5763 = vxpose.xlu1.b32.start [1/16] (narrow) %v5651_v19, 8  ;;  %v5652_v4 = vadd.f32 %v5588_v39, %v873_v37 }
 0x716   : > { %5764 = vxpose.xlu1.b32.cont [2/16] (narrow) %v5652_v4, 8 }
 0x71a   : > { %5765 = vxpose.xlu1.b32.cont [3/16] (narrow) %v5653_v53, 8 }
 0x71c   : > { %v6290_v45 = vpop.f32.mrb[116].mxu0 }
 0x71d   : > { %v5461_v34 = vmul.f32 %v6290_v45, %v10952_v61  ;;  %v5356_v52 = vpop.f32.mrb[117].mxu0 }
 0x71e   : > { %v5459_v58 = vmul.f32 %v10952_v61, %v5356_v52  ;;  %v6291_v33 = vpop.f32.mrb[118].mxu0  ;;  %5766 = vxpose.xlu1.b32.cont [4/16] (narrow) %v5654_v35, 8 }
 0x71f   : > { %v5529_v6 = vadd.f32 %v10957_v1, %v5461_v34  ;;  %v5462_v60 = vmul.f32 %v6291_v33, %v10952_v61  ;;  %v5359_v0 = vpop.f32.mrb[119].mxu0 }
 0x720   : > { %v5527_v10 = vadd.f32 %v10957_v1, %v5459_v58  ;;  %v5460_v46 = vmul.f32 %v10952_v61, %v5359_v0  ;;  %v889_v61 = vadd.f32 %v10961_v5, %v12384_v2 }
 0x721   : > { %v5593_v17 = vmax.f32 %v5529_v6, 0.0  ;;  %v5530_v54 = vadd.f32 %v10957_v1, %v5462_v60  ;;  %v12389_v6 = vld [vmem:[#allocation204_spill] sm:$0xff] }
 0x722   : > { %v5591_v18 = vmax.f32 %v5527_v10, 0.0  ;;  %v5528_v22 = vadd.f32 %v10957_v1, %v5460_v46  ;;  %v926_v60 = vadd.f32 %v6595_v41, %v12389_v6  ;;  %v12390_v46 = vld [vmem:[#allocation42_spill] sm:$0xff] }
 0x723   : > { %v5594_v14 = vmax.f32 %v5530_v54, 0.0  ;;  %v5657_v16 = vadd.f32 %v5593_v17, %v894_v28  ;;  %v918_v8 = vadd.f32 %v6595_v41, %v12390_v46  ;;  %v12391_v54 = vld [vmem:[#allocation63_spill] sm:$0xff] }
 0x724   : > { %v5592_v12 = vmax.f32 %v5528_v22, 0.0  ;;  %v5655_v50 = vadd.f32 %v5591_v18, %v886_v30  ;;  %v929_v29 = vadd.f32 %v6595_v41, %v12391_v54  ;;  %v12392_v22 = vld [vmem:[#allocation21_spill] sm:$0xff] }
 0x725   : > { %v5658_v23 = vadd.f32 %v5594_v14, %v897_v62  ;;  %v921_v59 = vadd.f32 %v6595_v41, %v12392_v22 }
 0x726   : > { %5767 = vxpose.xlu1.b32.cont [5/16] (narrow) %v5655_v50, 8  ;;  %v5656_v56 = vadd.f32 %v5592_v12, %v889_v61 }
 0x72a   : > { %5768 = vxpose.xlu1.b32.cont [6/16] (narrow) %v5656_v56, 8 }
 0x72e   : > { %5769 = vxpose.xlu1.b32.cont [7/16] (narrow) %v5657_v16, 8 }
 0x730   : > { %v6294_v51 = vpop.f32.mrb[120].mxu0 }
 0x731   : > { %v5465_v32 = vmul.f32 %v6593_v3, %v6294_v51  ;;  %v5372_v44 = vpop.f32.mrb[121].mxu0 }
 0x732   : > { %v5463_v1 = vmul.f32 %v6593_v3, %v5372_v44  ;;  %v6295_v15 = vpop.f32.mrb[122].mxu0  ;;  %5770 = vxpose.xlu1.b32.cont [8/16] (narrow) %v5658_v23, 8 }
 0x733   : > { %v5533_v55 = vadd.f32 %v6594_v25, %v5465_v32  ;;  %v5466_v20 = vmul.f32 %v6593_v3, %v6295_v15  ;;  %v5375_v11 = vpop.f32.mrb[123].mxu0 }
 0x734   : > { %v5531_v9 = vadd.f32 %v6594_v25, %v5463_v1  ;;  %v5464_v5 = vmul.f32 %v6593_v3, %v5375_v11 }
 0x735   : > { %v5597_v21 = vmax.f32 %v5533_v55, 0.0  ;;  %v5534_v24 = vadd.f32 %v6594_v25, %v5466_v20 }
 0x736   : > { %v5595_v57 = vmax.f32 %v5531_v9, 0.0  ;;  %v5532_v42 = vadd.f32 %v6594_v25, %v5464_v5 }
 0x737   : > { %v5598_v31 = vmax.f32 %v5534_v24, 0.0  ;;  %v5661_v47 = vadd.f32 %v5597_v21, %v910_v49 }
 0x738   : > { %v5596_v38 = vmax.f32 %v5532_v42, 0.0  ;;  %v5659_v43 = vadd.f32 %v5595_v57, %v902_v40 }
 0x739   : > { %v5662_v53 = vadd.f32 %v5598_v31, %v913_v27 }
 0x73a   : > { %5771 = vxpose.xlu1.b32.cont [9/16] (narrow) %v5659_v43, 8  ;;  %v5660_v48 = vadd.f32 %v5596_v38, %v905_v63 }
 0x73e   : > { %v6298_v37 = vpop.f32.mrb[124].mxu0  ;;  %5772 = vxpose.xlu1.b32.cont [10/16] (narrow) %v5660_v48, 8 }
 0x73f   : > { %v5469_v39 = vmul.f32 %v6593_v3, %v6298_v37  ;;  %v5388_v19 = vpop.f32.mrb[125].mxu0 }
 0x740   : > { %v5467_v35 = vmul.f32 %v6593_v3, %v5388_v19  ;;  %v6299_v4 = vpop.f32.mrb[126].mxu0 }
 0x741   : > { %v5537_v45 = vadd.f32 %v6594_v25, %v5469_v39  ;;  %v5470_v34 = vmul.f32 %v6593_v3, %v6299_v4  ;;  %v5391_v52 = vpop.f32.mrb[127].mxu0 }
 0x742   : > { %v5535_v58 = vadd.f32 %v6594_v25, %v5467_v35  ;;  %v5468_v33 = vmul.f32 %v6593_v3, %v5391_v52  ;;  %5773 = vxpose.xlu1.b32.cont [11/16] (narrow) %v5661_v47, 8 }
 0x743   : > { %v5601_v0 = vmax.f32 %v5537_v45, 0.0  ;;  %v5538_v10 = vadd.f32 %v6594_v25, %v5470_v34 }
 0x744   : > { %v5599_v28 = vmax.f32 %v5535_v58, 0.0  ;;  %v5536_v17 = vadd.f32 %v6594_v25, %v5468_v33 }
 0x745   : > { %v5602_v30 = vmax.f32 %v5538_v10, 0.0  ;;  %v5665_v18 = vadd.f32 %v5601_v0, %v926_v60 }
 0x746   : > { %v5600_v62 = vmax.f32 %v5536_v17, 0.0  ;;  %5774 = vxpose.xlu1.b32.cont [12/16] (narrow) %v5662_v53, 8  ;;  %v5663_v14 = vadd.f32 %v5599_v28, %v918_v8 }
 0x747   : > { %v5666_v16 = vadd.f32 %v5602_v30, %v929_v29 }
 0x748   : > { %v5664_v2 = vadd.f32 %v5600_v62, %v921_v59 }
 0x74a   : > { %5775 = vxpose.xlu1.b32.cont [13/16] (narrow) %v5663_v14, 8 }
 0x74e   : > { %5776 = vxpose.xlu1.b32.cont [14/16] (narrow) %v5664_v2, 8  ;;  %v5747_v61 = vpop.trf.xlu0 }
 0x74f   : > { %5797 = vst [vmem:[%s11230_s11 + $0x10] sm:$0xff] %v5747_v61 }
 0x752   : > { %5777 = vxpose.xlu1.b32.cont [15/16] (narrow) %v5665_v18, 8 }
 0x756   : > { %5778 = vxpose.xlu1.b32.end [16/16] (narrow) %v5666_v16, 8 }
 0x79a   : > { %v5779_v12 = vpop.trf.xlu1 }
 0x79b   : > { %5798 = vst [vmem:[%s11230_s11 + $0x18] sm:$0xff] %v5779_v12 }
 0x79c   : > { %6781 = shalt.err (!%p6778_p8)
}
 0x79d   : > { %s6782_s2 = scalar_lea.hbm %s11314_s14, 512  ;;  %s6786_s9 = scalar_lea.hbm %s11363_s6, 1024 }
 0x79e   : > { %p6783_p6 = scmp.ne.s32.totalorder %s11314_s14, %s6782_s2  ;;  %p6787_p5 = scmp.lt.u32.totalorder %s11314_s14, %s11363_s6 }
 0x79f   : > { %p6788_p7 = scmp.lt.u32.totalorder %s6786_s9, %s6782_s2  ;;  %p6790_p1 = scmp.lt.u32.totalorder %s6782_s2, %s11314_s14 }
 0x7a0   : > { %p6784_p2 = pnand %p6783_p6, %p12393_p3 }
 0x7a1   : > { %p6789_p4 = por %p6788_p7, %p6787_p5 }
 0x7a2   : > { %p6785_p12 = pneg %p6784_p2 }
 0x7a3   : > { %p6791_p13 = por %p6790_p1, %p6789_p4 }
 0x7a5   : > { %p6792_p0 = pnand %p6791_p13, %p6785_p12 }
 0x7a7   : > { %6795 = shalt.err (!%p6792_p0)
}
 0x7a8   : > { %6321 = dma.vmem_to_hbm [thread:$0]  (%p12393_p3), %s11309_s0, 512, %s11314_s14, %s5800_s29  }
 0x7a9 PF: > { %s5826_s10 = sand.u32 1, %s6838_s21   ;;  %p12394_p10 = scmp.ne.s32.totalorder %s11643_s19, 0 }
 0x7aa   : > { %p12395_p11 = scmp.ge.s32.totalorder %s6850_s24, 2  ;;  %s5827_s11 = scalar_lea.sflag [#allocation4], %s5826_s10 }
 0x7ac   : > { %p6344_p9 = pnand %p12395_p11, %p12394_p10 }
 0x7ae   : > { %6833 = dma.done.wait (!%p6344_p9), %s5827_s11, 512  }
 0x7af   : > { %6835 = vsyncadd (!%p6344_p9), %s5827_s11, 4294966784  ;;  %p24_p8 = scmp.ge.s32.totalorder %s7050_s15, 4   ;;  %s12396_s21 = smov %s6842_s22 }
 0x7b0   : > { %s12397_s22 = smov %s6846_s23  ;;  %s12398_s23 = smov %s7061_s26 }
 0x7b1   : > { %s12399_s24 = smov %s7050_s15  ;;  %26 = sbr.rel (!%p24_p8) target bundleno = 12 (0xc), region = 118 }
 0x7b8   :  { %5832 = vsyncpa [#allocation3], 1 }
 0x7b9   :  { %5834 = vsyncpa [#allocation3 + $0x1], 1 }
 0x7ba   :  { %5835 = vsyncpa [#allocation6], 1 }
 0x7bb   :  { %5837 = vsyncpa [#allocation6 + $0x1], 1 }
 0x7bc   :  { %5838 = vsyncpa [#allocation9], 1 }
 0x7bd   :  { %5839 = vsyncpa [#allocation12], 1 }
 0x7be   :  { %5840 = vsyncpa [#allocation4], 1 }
 0x7bf   :  { %5842 = vsyncpa [#allocation4 + $0x1], 1 }

</bundles_post_ra>
